<compile_context>
chip_gen: v7x
topology: tpu7x:2x2x1
jax: 0.10.0
libtpu: 0.0.40
codegen_flags: <defaults>
</compile_context>

<pallas_src>
import functools

import jax
import jax.numpy as jnp
import numpy as np
from jax.experimental import pallas as pl
from jax.experimental.pallas import tpu as pltpu

# ----------------------------- configuration ------------------------------ #
B = 2
HISTORY_LEN = 4
NUM_SLOTS = 4
SLOT_SIZE = 16
D_MODEL = 32
NUM_HEADS = 4
HEAD_DIM = D_MODEL // NUM_HEADS
FFN_DIM = 64
NUM_LAYERS = 2
PRED_LEN = 3
L = HISTORY_LEN * NUM_SLOTS
EPS = 1e-5
ATTN_SCALE = 1.0 / float(np.sqrt(HEAD_DIM))
BLOB_LANES = 128


# -------------------------- packed operand layouts ------------------------- #
def _round_up(v, m):
    return (v + m - 1) // m * m


def _build_layout(items, row_align, total_align):
    layout, off = {}, 0
    for name, (r, c) in items:
        layout[name] = (off, r, c)
        off += _round_up(r, row_align)
    return layout, _round_up(off, total_align)


def _w_items():
    items = [("win", (SLOT_SIZE, D_MODEL))]
    for l in range(NUM_LAYERS):
        items += [(f"wqkv{l}", (D_MODEL, 3 * D_MODEL)),
                  (f"wo{l}", (D_MODEL, D_MODEL)),
                  (f"w1_{l}", (D_MODEL, FFN_DIM)),
                  (f"w2_{l}", (FFN_DIM, D_MODEL))]
    items.append(("wout", (D_MODEL, SLOT_SIZE)))
    return items


def _b_items():
    items = []
    for l in range(NUM_LAYERS):
        items += [(f"bqkv{l}", (1, 3 * D_MODEL)),
                  (f"bo{l}", (1, D_MODEL)),
                  (f"b1_{l}", (1, FFN_DIM)),
                  (f"b2_{l}", (1, D_MODEL)),
                  (f"ln1w{l}", (1, D_MODEL)),
                  (f"ln1b{l}", (1, D_MODEL)),
                  (f"ln2w{l}", (1, D_MODEL)),
                  (f"ln2b{l}", (1, D_MODEL))]
    items.append(("bout", (1, SLOT_SIZE)))
    return items


W_LAYOUT, W_ROWS = _build_layout(_w_items(), row_align=16, total_align=16)
B_LAYOUT, B_ROWS = _build_layout(_b_items(), row_align=1, total_align=8)


# ------------------------------ pos encoding ------------------------------ #
def get_sin_pos_enc(seq_len, d_model):
    """Sinusoid absolute positional encoding (matches the torch reference)."""
    inv_freq = 1.0 / (10000.0 ** (jnp.arange(0, d_model, 2, dtype=jnp.float32)
                                  / d_model))
    pos_seq = jnp.arange(seq_len - 1, -1, -1, dtype=jnp.float32)
    sinusoid_inp = jnp.outer(pos_seq, inv_freq)
    return jnp.concatenate([jnp.sin(sinusoid_inp), jnp.cos(sinusoid_inp)],
                           axis=-1)                       # [seq_len, d_model]


def build_enc_pe():
    # enc_t_pe.unsqueeze(2).repeat(B, 1, num_slots, 1).flatten(1, 2):
    # each time-step's PE repeated for every slot (slot index fastest).
    pe_t = get_sin_pos_enc(HISTORY_LEN, D_MODEL)          # [T, D]
    return jnp.repeat(pe_t, NUM_SLOTS, axis=0)            # [L, D]


# -------------------------------- kernel ----------------------------------- #
def _layernorm(x, w, b):
    mu = jnp.mean(x, axis=-1, keepdims=True)
    xc = x - mu
    var = jnp.mean(xc * xc, axis=-1, keepdims=True)
    return xc * jax.lax.rsqrt(var + EPS) * w + b


def _mxdot(x, w):
    """MXU matmul: bf16 inputs, f32 accumulation (w is already bf16)."""
    return jnp.dot(x.astype(jnp.bfloat16), w,
                   preferred_element_type=jnp.float32)


def slot_rollout_kernel(in_x_ref, pe_ref, w_ref, b_ref, out_ref, win_s, attn_s):
    """Full autoregressive rollout for one batch block, all pred steps."""
    bb = in_x_ref.shape[0]          # block batch size (B, or 1 on v7x)
    bl = bb * L

    def w_(name):                   # static weight slice (lane offset 0)
        off, r, c = W_LAYOUT[name]
        return w_ref[off:off + r, 0:c]

    def b_(name):                   # static bias/LN slice (lane offset 0)
        off, r, c = B_LAYOUT[name]
        return b_ref[off:off + r, 0:c]

    win_s[...] = in_x_ref[...]                            # [bb, L, SLOT_SIZE]
    pe = pe_ref[...].reshape(bl, D_MODEL)                 # pe + in_proj bias

    for step in range(PRED_LEN):                          # static unroll
        window = win_s[...]
        # in_proj + temporal positional encoding (bias folded into pe)
        x = _mxdot(window.reshape(bl, SLOT_SIZE), w_("win")) + pe   # [bl, D]

        for l in range(NUM_LAYERS):
            # --- pre-norm multi-head self-attention ---
            h = _layernorm(x, b_(f"ln1w{l}"), b_(f"ln1b{l}"))
            qkv = _mxdot(h, w_(f"wqkv{l}")) + b_(f"bqkv{l}")        # [bl, 3D]
            # single bf16 cast per layer, then cheap row split
            qkv_b = qkv.astype(jnp.bfloat16).reshape(bb, L, 3 * D_MODEL)
            for hh in range(NUM_HEADS):
                lo = hh * HEAD_DIM
                qh = qkv_b[:, :, lo:lo + HEAD_DIM]
                kh = qkv_b[:, :, D_MODEL + lo:D_MODEL + lo + HEAD_DIM]
                vh = qkv_b[:, :, 2 * D_MODEL + lo:2 * D_MODEL + lo + HEAD_DIM]
                s = jnp.einsum("bqd,bkd->bqk", qh, kh,
                               preferred_element_type=jnp.float32)
                s = s - jnp.max(s, axis=-1, keepdims=True)
                p = jnp.exp(s)
                p = p * pl.reciprocal(jnp.sum(p, axis=-1, keepdims=True),
                                      approx=True)
                o = jnp.einsum("bqk,bkd->bqd", p.astype(jnp.bfloat16), vh,
                               preferred_element_type=jnp.float32)
                # assemble heads via VMEM stores (no lane-concat on the XLU)
                attn_s[:, lo:lo + HEAD_DIM] = o.reshape(bl, HEAD_DIM)
            x = x + _mxdot(attn_s[...], w_(f"wo{l}")) + b_(f"bo{l}")

            # --- pre-norm feed-forward (ReLU) ---
            h2 = _layernorm(x, b_(f"ln2w{l}"), b_(f"ln2b{l}"))
            f = jnp.maximum(_mxdot(h2, w_(f"w1_{l}")) + b_(f"b1_{l}"), 0.0)
            x = x + _mxdot(f, w_(f"w2_{l}")) + b_(f"b2_{l}")

        # out_proj (1/10 pre-folded into wout/bout); keep last num_slots tokens
        res = (_mxdot(x, w_("wout")) + b_("bout")).reshape(bb, L, SLOT_SIZE)
        pred = res[:, L - NUM_SLOTS:, :] + window[:, L - NUM_SLOTS:, :]
        out_ref[:, step, :, :] = pred

        # slide the in-VMEM window: drop oldest num_slots tokens, append pred
        if step != PRED_LEN - 1:
            win_s[:, 0:L - NUM_SLOTS, :] = window[:, NUM_SLOTS:, :]
            win_s[:, L - NUM_SLOTS:, :] = pred


# ------------------------- one-time parameter packing ----------------------- #
def pack_params(params, pe):
    """Pack the 22 small tensors into 3 operands; fold scale/10 constants."""
    def put(blob, layout, name, arr):
        off, r, c = layout[name]
        return blob.at[off:off + r, 0:c].set(arr.reshape(r, c))

    wblob = jnp.zeros((W_ROWS, BLOB_LANES), jnp.float32)
    wblob = put(wblob, W_LAYOUT, "win", params["win"])
    for l in range(NUM_LAYERS):
        wqkv = jnp.concatenate([params["wq"][l] * ATTN_SCALE,
                                params["wk"][l], params["wv"][l]], axis=-1)
        wblob = put(wblob, W_LAYOUT, f"wqkv{l}", wqkv)
        wblob = put(wblob, W_LAYOUT, f"wo{l}", params["wo"][l])
        wblob = put(wblob, W_LAYOUT, f"w1_{l}", params["w1"][l])
        wblob = put(wblob, W_LAYOUT, f"w2_{l}", params["w2"][l])
    wblob = put(wblob, W_LAYOUT, "wout", params["wout"] * 0.1)
    wblob = wblob.astype(jnp.bfloat16)

    bblob = jnp.zeros((B_ROWS, BLOB_LANES), jnp.float32)
    for l in range(NUM_LAYERS):
        bqkv = jnp.concatenate([params["bq"][l] * ATTN_SCALE,
                                params["bk"][l], params["bv"][l]], axis=-1)
        bblob = put(bblob, B_LAYOUT, f"bqkv{l}", bqkv)
        bblob = put(bblob, B_LAYOUT, f"bo{l}", params["bo"][l])
        bblob = put(bblob, B_LAYOUT, f"b1_{l}", params["b1"][l])
        bblob = put(bblob, B_LAYOUT, f"b2_{l}", params["b2"][l])
        bblob = put(bblob, B_LAYOUT, f"ln1w{l}", params["ln1w"][l])
        bblob = put(bblob, B_LAYOUT, f"ln1b{l}", params["ln1b"][l])
        bblob = put(bblob, B_LAYOUT, f"ln2w{l}", params["ln2w"][l])
        bblob = put(bblob, B_LAYOUT, f"ln2b{l}", params["ln2b"][l])
    bblob = put(bblob, B_LAYOUT, "bout", params["bout"] * 0.1)

    pe_b = jnp.broadcast_to((pe + params["bin"])[None],
                            (B, L, D_MODEL)).astype(jnp.float32)
    return {"wblob": wblob, "bblob": bblob, "pe_b": pe_b}


def _default_batch_block():
    """One program per batch element only on v7x (2 TensorCores per chip)."""
    try:
        kind = jax.devices()[0].device_kind.lower()
    except Exception:
        return B
    if "v7" in kind or "7x" in kind:
        return 1 if B > 1 else B
    return B     # v5e/v6e: single TC -> keep the whole batch in one program


# ------------------------------ pallas wrapper ------------------------------ #
@functools.partial(jax.jit, static_argnames=("bb",))
def slot_rollouter_forward(x4, pe_b, wblob, bblob, *, bb):
    """x4: [B, history_len, num_slots, slot_size] -> [B, pred_len, num_slots, slot_size]."""
    assert x4.shape == (B, HISTORY_LEN, NUM_SLOTS, SLOT_SIZE), "wrong burn-in steps"
    in_x = x4.reshape(B, L, SLOT_SIZE).astype(jnp.float32)
    grid = (B // bb,)
    return pl.pallas_call(
        slot_rollout_kernel,
        out_shape=jax.ShapeDtypeStruct((B, PRED_LEN, NUM_SLOTS, SLOT_SIZE),
                                       jnp.float32),
        grid=grid,
        in_specs=[
            pl.BlockSpec((bb, L, SLOT_SIZE), lambda i: (i, 0, 0)),
            pl.BlockSpec((bb, L, D_MODEL), lambda i: (i, 0, 0)),
            pl.BlockSpec((W_ROWS, BLOB_LANES), lambda i: (0, 0)),
            pl.BlockSpec((B_ROWS, BLOB_LANES), lambda i: (0, 0)),
        ],
        out_specs=pl.BlockSpec((bb, PRED_LEN, NUM_SLOTS, SLOT_SIZE),
                               lambda i: (i, 0, 0, 0)),
        scratch_shapes=[pltpu.VMEM((bb, L, SLOT_SIZE), jnp.float32),
                        pltpu.VMEM((bb * L, D_MODEL), jnp.float32)],
        compiler_params=pltpu.CompilerParams(
            dimension_semantics=("parallel",) if grid[0] > 1 else ("arbitrary",)),
    )(in_x, pe_b, wblob, bblob)


# ------------------------- pure-JAX reference (check) ----------------------- #
def _ref_ln(x, w, b):
    mu = jnp.mean(x, axis=-1, keepdims=True)
    var = jnp.mean((x - mu) ** 2, axis=-1, keepdims=True)
    return (x - mu) / jnp.sqrt(var + EPS) * w + b


def ref_forward(x4, pred_len, p, pe):
    bsz = x4.shape[0]
    in_x = x4.reshape(bsz, L, SLOT_SIZE)
    preds = []
    for _ in range(pred_len):
        x = in_x @ p["win"] + p["bin"] + pe[None]
        for lyr in range(NUM_LAYERS):
            h = _ref_ln(x, p["ln1w"][lyr], p["ln1b"][lyr])
            q = h @ p["wq"][lyr] + p["bq"][lyr]
            k = h @ p["wk"][lyr] + p["bk"][lyr]
            v = h @ p["wv"][lyr] + p["bv"][lyr]
            heads = []
            for hh in range(NUM_HEADS):
                lo = hh * HEAD_DIM
                qh, kh, vh = (q[..., lo:lo + HEAD_DIM],
                              k[..., lo:lo + HEAD_DIM],
                              v[..., lo:lo + HEAD_DIM])
                s = jnp.einsum("bqd,bkd->bqk", qh, kh) * ATTN_SCALE
                pmat = jax.nn.softmax(s, axis=-1)
                heads.append(jnp.einsum("bqk,bkd->bqd", pmat, vh))
            attn = jnp.concatenate(heads, axis=-1)
            attn = attn @ p["wo"][lyr] + p["bo"][lyr]
            x = x + attn
            h2 = _ref_ln(x, p["ln2w"][lyr], p["ln2b"][lyr])
            f = jnp.maximum(h2 @ p["w1"][lyr] + p["b1"][lyr], 0.0)
            f = f @ p["w2"][lyr] + p["b2"][lyr]
            x = x + f
        res = (x[:, -NUM_SLOTS:] @ p["wout"] + p["bout"]) / 10.0
        pred = res + in_x[:, -NUM_SLOTS:]
        preds.append(pred)
        in_x = jnp.concatenate([in_x[:, NUM_SLOTS:], pred], axis=1)
    return jnp.stack(preds, axis=1)


# ------------------------------ parameter init ------------------------------ #
def init_params(key):
    keys = jax.random.split(key, 32)
    it = iter(range(32))

    def nrm(shape, scale):
        return jax.random.normal(keys[next(it)], shape, jnp.float32) * scale

    return {
        "win": nrm((SLOT_SIZE, D_MODEL), 1.0 / np.sqrt(SLOT_SIZE)),
        "bin": nrm((1, D_MODEL), 0.01),
        "wq": nrm((NUM_LAYERS, D_MODEL, D_MODEL), 1.0 / np.sqrt(D_MODEL)),
        "wk": nrm((NUM_LAYERS, D_MODEL, D_MODEL), 1.0 / np.sqrt(D_MODEL)),
        "wv": nrm((NUM_LAYERS, D_MODEL, D_MODEL), 1.0 / np.sqrt(D_MODEL)),
        "bq": nrm((NUM_LAYERS, 1, D_MODEL), 0.01),
        "bk": nrm((NUM_LAYERS, 1, D_MODEL), 0.01),
        "bv": nrm((NUM_LAYERS, 1, D_MODEL), 0.01),
        "wo": nrm((NUM_LAYERS, D_MODEL, D_MODEL), 1.0 / np.sqrt(D_MODEL)),
        "bo": nrm((NUM_LAYERS, 1, D_MODEL), 0.01),
        "ln1w": jnp.ones((NUM_LAYERS, 1, D_MODEL), jnp.float32),
        "ln1b": jnp.zeros((NUM_LAYERS, 1, D_MODEL), jnp.float32),
        "ln2w": jnp.ones((NUM_LAYERS, 1, D_MODEL), jnp.float32),
        "ln2b": jnp.zeros((NUM_LAYERS, 1, D_MODEL), jnp.float32),
        "w1": nrm((NUM_LAYERS, D_MODEL, FFN_DIM), 1.0 / np.sqrt(D_MODEL)),
        "b1": nrm((NUM_LAYERS, 1, FFN_DIM), 0.01),
        "w2": nrm((NUM_LAYERS, FFN_DIM, D_MODEL), 1.0 / np.sqrt(FFN_DIM)),
        "b2": nrm((NUM_LAYERS, 1, D_MODEL), 0.01),
        "wout": nrm((D_MODEL, SLOT_SIZE), 1.0 / np.sqrt(D_MODEL)),
        "bout": nrm((1, SLOT_SIZE), 0.01),
    }


# ---------------------------------- main ------------------------------------ #
if __name__ == "__main__":
    key = jax.random.PRNGKey(0)
    k_param, k_x = jax.random.split(key)

    params = init_params(k_param)
    pe = build_enc_pe()                                    # [L, D_MODEL]
    packed = pack_params(params, pe)                       # one-time packing
    x = jax.random.normal(k_x, (B, HISTORY_LEN, NUM_SLOTS, SLOT_SIZE),
                          jnp.float32)

    bb = _default_batch_block()                            # B, or 1 on v7x
    out = slot_rollouter_forward(x, packed["pe_b"], packed["wblob"],
                                 packed["bblob"], bb=bb)
    out = jax.block_until_ready(out)
    assert out.shape == (B, PRED_LEN, NUM_SLOTS, SLOT_SIZE)

    ref = jax.block_until_ready(ref_forward(x, PRED_LEN, params, pe))
    np.testing.assert_allclose(np.asarray(out), np.asarray(ref),
                               atol=5e-2, rtol=5e-2)

    print("KERNEL_OK")
</pallas_src>

<mosaic_0001>
module attributes {stable_mosaic.version = 11 : i64} {
  func.func @slot_rollout_kernel(%arg0: i32, %arg1: memref<2x16x16xf32, #tpu.memory_space<vmem>>, %arg2: memref<2x16x32xf32, #tpu.memory_space<vmem>>, %arg3: memref<368x128xbf16, #tpu.memory_space<vmem>>, %arg4: memref<24x128xf32, #tpu.memory_space<vmem>>, %arg5: memref<2x3x4x16xf32, #tpu.memory_space<vmem>>, %arg6: memref<2x16x16xf32, #tpu.memory_space<vmem>>, %arg7: memref<32x32xf32, #tpu.memory_space<vmem>>) attributes {dimension_semantics = [#tpu.dimension_semantics<arbitrary>], iteration_bounds = array<i64: 1>, scalar_prefetch = 0 : i64, scratch_operands = 2 : i64, tpu.core_type = #tpu.core_type<tc>, window_params = [{transform_indices = @transform_0, window_bounds = array<i64: 2, 16, 16>}, {transform_indices = @transform_1, window_bounds = array<i64: 2, 16, 32>}, {pipeline_mode = #tpu.pipeline_mode<synchronous>, transform_indices = @transform_2, window_bounds = array<i64: 368, 128>}, {pipeline_mode = #tpu.pipeline_mode<synchronous>, transform_indices = @transform_3, window_bounds = array<i64: 24, 128>}, {transform_indices = @transform_4, window_bounds = array<i64: 2, 3, 4, 16>}]} {
    %c0 = arith.constant 0 : index
    %c0_0 = arith.constant 0 : index
    %c0_1 = arith.constant 0 : index
    %0 = vector.load %arg1[%c0, %c0_0, %c0_1] : memref<2x16x16xf32, #tpu.memory_space<vmem>>, vector<2x16x16xf32>
    %c0_2 = arith.constant 0 : index
    %c0_3 = arith.constant 0 : index
    %c0_4 = arith.constant 0 : index
    %1 = vector.load %arg6[%c0_2, %c0_3, %c0_4] : memref<2x16x16xf32, #tpu.memory_space<vmem>>, vector<2x16x16xf32>
    tpu.vector_store %arg6[%c0_2, %c0_3, %c0_4], %0 {strides = array<i32>} : memref<2x16x16xf32, #tpu.memory_space<vmem>>, vector<2x16x16xf32>,
    %c0_5 = arith.constant 0 : index
    %c0_6 = arith.constant 0 : index
    %c0_7 = arith.constant 0 : index
    %2 = vector.load %arg2[%c0_5, %c0_6, %c0_7] : memref<2x16x32xf32, #tpu.memory_space<vmem>>, vector<2x16x32xf32>
    %3 = vector.shape_cast %2 : vector<2x16x32xf32> to vector<32x32xf32>
    %c0_8 = arith.constant 0 : index
    %c0_9 = arith.constant 0 : index
    %c0_10 = arith.constant 0 : index
    %4 = vector.load %arg6[%c0_8, %c0_9, %c0_10] : memref<2x16x16xf32, #tpu.memory_space<vmem>>, vector<2x16x16xf32>
    %5 = vector.shape_cast %4 : vector<2x16x16xf32> to vector<32x16xf32>
    %c0_11 = arith.constant 0 : index
    %c0_12 = arith.constant 0 : index
    %6 = vector.load %arg3[%c0_11, %c0_12] : memref<368x128xbf16, #tpu.memory_space<vmem>>, vector<16x32xbf16>
    %7 = arith.truncf %5 : vector<32x16xf32> to vector<32x16xbf16>
    %cst = arith.constant dense<0.000000e+00> : vector<32x32xf32>
    %8 = tpu.matmul %7, %6, %cst {dimension_numbers = #tpu.dot_dimension_numbers<[1], [0], [0], [1], [0, 0, 1, 1], [], []>} : vector<32x16xbf16>, vector<16x32xbf16>, vector<32x32xf32> -> vector<32x32xf32>
    %9 = arith.addf %8, %3 : vector<32x32xf32>
    %c4 = arith.constant 4 : index
    %c0_13 = arith.constant 0 : index
    %10 = vector.load %arg4[%c4, %c0_13] : memref<24x128xf32, #tpu.memory_space<vmem>>, vector<1x32xf32>
    %c5 = arith.constant 5 : index
    %c0_14 = arith.constant 0 : index
    %11 = vector.load %arg4[%c5, %c0_14] : memref<24x128xf32, #tpu.memory_space<vmem>>, vector<1x32xf32>
    %cst_15 = arith.constant dense<0.000000e+00> : vector<32xf32>
    %12 = vector.multi_reduction <add>, %9, %cst_15 [1] : vector<32x32xf32> to vector<32xf32>
    %13 = vector.shape_cast %12 : vector<32xf32> to vector<32x1xf32>
    %cst_16 = arith.constant 3.200000e+01 : f32
    %14 = vector.broadcast %cst_16 : f32 to vector<32x1xf32>
    %15 = arith.divf %13, %14 : vector<32x1xf32>
    %16 = vector.broadcast %15 : vector<32x1xf32> to vector<32x32xf32>
    %17 = arith.subf %9, %16 : vector<32x32xf32>
    %18 = arith.mulf %17, %17 : vector<32x32xf32>
    %cst_17 = arith.constant dense<0.000000e+00> : vector<32xf32>
    %19 = vector.multi_reduction <add>, %18, %cst_17 [1] : vector<32x32xf32> to vector<32xf32>
    %20 = vector.shape_cast %19 : vector<32xf32> to vector<32x1xf32>
    %cst_18 = arith.constant 3.200000e+01 : f32
    %21 = vector.broadcast %cst_18 : f32 to vector<32x1xf32>
    %22 = arith.divf %20, %21 : vector<32x1xf32>
    %cst_19 = arith.constant 9.99999974E-6 : f32
    %23 = vector.broadcast %cst_19 : f32 to vector<32x1xf32>
    %24 = arith.addf %22, %23 : vector<32x1xf32>
    %25 = math.rsqrt %24 : vector<32x1xf32>
    %26 = vector.broadcast %25 : vector<32x1xf32> to vector<32x32xf32>
    %27 = arith.mulf %17, %26 : vector<32x32xf32>
    %28 = vector.broadcast %10 : vector<1x32xf32> to vector<32x32xf32>
    %29 = arith.mulf %27, %28 : vector<32x32xf32>
    %30 = vector.broadcast %11 : vector<1x32xf32> to vector<32x32xf32>
    %31 = arith.addf %29, %30 : vector<32x32xf32>
    %c16 = arith.constant 16 : index
    %c0_20 = arith.constant 0 : index
    %32 = vector.load %arg3[%c16, %c0_20] : memref<368x128xbf16, #tpu.memory_space<vmem>>, vector<32x96xbf16>
    %33 = arith.truncf %31 : vector<32x32xf32> to vector<32x32xbf16>
    %cst_21 = arith.constant dense<0.000000e+00> : vector<32x96xf32>
    %34 = tpu.matmul %33, %32, %cst_21 {dimension_numbers = #tpu.dot_dimension_numbers<[1], [0], [0], [1], [0, 0, 1, 1], [], []>} : vector<32x32xbf16>, vector<32x96xbf16>, vector<32x96xf32> -> vector<32x96xf32>
    %c0_22 = arith.constant 0 : index
    %c0_23 = arith.constant 0 : index
    %35 = vector.load %arg4[%c0_22, %c0_23] : memref<24x128xf32, #tpu.memory_space<vmem>>, vector<1x96xf32>
    %36 = vector.broadcast %35 : vector<1x96xf32> to vector<32x96xf32>
    %37 = arith.addf %34, %36 : vector<32x96xf32>
    %38 = arith.truncf %37 : vector<32x96xf32> to vector<32x96xbf16>
    %39 = vector.shape_cast %38 : vector<32x96xbf16> to vector<2x16x96xbf16>
    %40 = vector.extract_strided_slice %39 {offsets = [0, 0, 0], sizes = [2, 16, 8], strides = [1, 1, 1]} : vector<2x16x96xbf16> to vector<2x16x8xbf16>
    %41 = vector.extract_strided_slice %39 {offsets = [0, 0, 32], sizes = [2, 16, 8], strides = [1, 1, 1]} : vector<2x16x96xbf16> to vector<2x16x8xbf16>
    %42 = vector.extract_strided_slice %39 {offsets = [0, 0, 64], sizes = [2, 16, 8], strides = [1, 1, 1]} : vector<2x16x96xbf16> to vector<2x16x8xbf16>
    "tpu.trace_start"() <{level = 10 : i32, message = "bqd,bkd->bqk"}> : () -> ()
    %cst_24 = arith.constant dense<0.000000e+00> : vector<2x16x16xf32>
    %43 = tpu.matmul %40, %41, %cst_24 {dimension_numbers = #tpu.dot_dimension_numbers<[2], [2], [1], [1], [0, 0, 0, 1, 1, 1], [0], [0]>} : vector<2x16x8xbf16>, vector<2x16x8xbf16>, vector<2x16x16xf32> -> vector<2x16x16xf32>
    "tpu.trace_stop"() : () -> ()
    %cst_25 = arith.constant dense<0xFF800000> : vector<2x16xf32>
    %44 = vector.multi_reduction <maximumf>, %43, %cst_25 [2] : vector<2x16x16xf32> to vector<2x16xf32>
    %45 = vector.shape_cast %44 : vector<2x16xf32> to vector<2x16x1xf32>
    %46 = vector.broadcast %45 : vector<2x16x1xf32> to vector<2x16x16xf32>
    %47 = arith.subf %43, %46 : vector<2x16x16xf32>
    %48 = math.exp %47 : vector<2x16x16xf32>
    %cst_26 = arith.constant dense<0.000000e+00> : vector<2x16xf32>
    %49 = vector.multi_reduction <add>, %48, %cst_26 [2] : vector<2x16x16xf32> to vector<2x16xf32>
    %50 = vector.shape_cast %49 : vector<2x16xf32> to vector<2x16x1xf32>
    %51 = tpu.reciprocal %50 {approx = true} : vector<2x16x1xf32> -> vector<2x16x1xf32>
    %52 = vector.broadcast %51 : vector<2x16x1xf32> to vector<2x16x16xf32>
    %53 = arith.mulf %48, %52 : vector<2x16x16xf32>
    %54 = arith.truncf %53 : vector<2x16x16xf32> to vector<2x16x16xbf16>
    "tpu.trace_start"() <{level = 10 : i32, message = "bqk,bkd->bqd"}> : () -> ()
    %cst_27 = arith.constant dense<0.000000e+00> : vector<2x16x8xf32>
    %55 = tpu.matmul %54, %42, %cst_27 {dimension_numbers = #tpu.dot_dimension_numbers<[2], [1], [1], [2], [0, 0, 0, 1, 1, 2], [0], [0]>} : vector<2x16x16xbf16>, vector<2x16x8xbf16>, vector<2x16x8xf32> -> vector<2x16x8xf32>
    "tpu.trace_stop"() : () -> ()
    %56 = vector.shape_cast %55 : vector<2x16x8xf32> to vector<32x8xf32>
    %c0_28 = arith.constant 0 : index
    %c0_29 = arith.constant 0 : index
    %57 = vector.load %arg7[%c0_28, %c0_29] : memref<32x32xf32, #tpu.memory_space<vmem>>, vector<32x8xf32>
    tpu.vector_store %arg7[%c0_28, %c0_29], %56 {strides = array<i32>} : memref<32x32xf32, #tpu.memory_space<vmem>>, vector<32x8xf32>,
    %58 = vector.extract_strided_slice %39 {offsets = [0, 0, 8], sizes = [2, 16, 8], strides = [1, 1, 1]} : vector<2x16x96xbf16> to vector<2x16x8xbf16>
    %59 = vector.extract_strided_slice %39 {offsets = [0, 0, 40], sizes = [2, 16, 8], strides = [1, 1, 1]} : vector<2x16x96xbf16> to vector<2x16x8xbf16>
    %60 = vector.extract_strided_slice %39 {offsets = [0, 0, 72], sizes = [2, 16, 8], strides = [1, 1, 1]} : vector<2x16x96xbf16> to vector<2x16x8xbf16>
    "tpu.trace_start"() <{level = 10 : i32, message = "bqd,bkd->bqk"}> : () -> ()
    %cst_30 = arith.constant dense<0.000000e+00> : vector<2x16x16xf32>
    %61 = tpu.matmul %58, %59, %cst_30 {dimension_numbers = #tpu.dot_dimension_numbers<[2], [2], [1], [1], [0, 0, 0, 1, 1, 1], [0], [0]>} : vector<2x16x8xbf16>, vector<2x16x8xbf16>, vector<2x16x16xf32> -> vector<2x16x16xf32>
    "tpu.trace_stop"() : () -> ()
    %cst_31 = arith.constant dense<0xFF800000> : vector<2x16xf32>
    %62 = vector.multi_reduction <maximumf>, %61, %cst_31 [2] : vector<2x16x16xf32> to vector<2x16xf32>
    %63 = vector.shape_cast %62 : vector<2x16xf32> to vector<2x16x1xf32>
    %64 = vector.broadcast %63 : vector<2x16x1xf32> to vector<2x16x16xf32>
    %65 = arith.subf %61, %64 : vector<2x16x16xf32>
    %66 = math.exp %65 : vector<2x16x16xf32>
    %cst_32 = arith.constant dense<0.000000e+00> : vector<2x16xf32>
    %67 = vector.multi_reduction <add>, %66, %cst_32 [2] : vector<2x16x16xf32> to vector<2x16xf32>
    %68 = vector.shape_cast %67 : vector<2x16xf32> to vector<2x16x1xf32>
    %69 = tpu.reciprocal %68 {approx = true} : vector<2x16x1xf32> -> vector<2x16x1xf32>
    %70 = vector.broadcast %69 : vector<2x16x1xf32> to vector<2x16x16xf32>
    %71 = arith.mulf %66, %70 : vector<2x16x16xf32>
    %72 = arith.truncf %71 : vector<2x16x16xf32> to vector<2x16x16xbf16>
    "tpu.trace_start"() <{level = 10 : i32, message = "bqk,bkd->bqd"}> : () -> ()
    %cst_33 = arith.constant dense<0.000000e+00> : vector<2x16x8xf32>
    %73 = tpu.matmul %72, %60, %cst_33 {dimension_numbers = #tpu.dot_dimension_numbers<[2], [1], [1], [2], [0, 0, 0, 1, 1, 2], [0], [0]>} : vector<2x16x16xbf16>, vector<2x16x8xbf16>, vector<2x16x8xf32> -> vector<2x16x8xf32>
    "tpu.trace_stop"() : () -> ()
    %74 = vector.shape_cast %73 : vector<2x16x8xf32> to vector<32x8xf32>
    %c0_34 = arith.constant 0 : index
    %c8 = arith.constant 8 : index
    %75 = vector.load %arg7[%c0_34, %c8] : memref<32x32xf32, #tpu.memory_space<vmem>>, vector<32x8xf32>
    tpu.vector_store %arg7[%c0_34, %c8], %74 {strides = array<i32>} : memref<32x32xf32, #tpu.memory_space<vmem>>, vector<32x8xf32>,
    %76 = vector.extract_strided_slice %39 {offsets = [0, 0, 16], sizes = [2, 16, 8], strides = [1, 1, 1]} : vector<2x16x96xbf16> to vector<2x16x8xbf16>
    %77 = vector.extract_strided_slice %39 {offsets = [0, 0, 48], sizes = [2, 16, 8], strides = [1, 1, 1]} : vector<2x16x96xbf16> to vector<2x16x8xbf16>
    %78 = vector.extract_strided_slice %39 {offsets = [0, 0, 80], sizes = [2, 16, 8], strides = [1, 1, 1]} : vector<2x16x96xbf16> to vector<2x16x8xbf16>
    "tpu.trace_start"() <{level = 10 : i32, message = "bqd,bkd->bqk"}> : () -> ()
    %cst_35 = arith.constant dense<0.000000e+00> : vector<2x16x16xf32>
    %79 = tpu.matmul %76, %77, %cst_35 {dimension_numbers = #tpu.dot_dimension_numbers<[2], [2], [1], [1], [0, 0, 0, 1, 1, 1], [0], [0]>} : vector<2x16x8xbf16>, vector<2x16x8xbf16>, vector<2x16x16xf32> -> vector<2x16x16xf32>
    "tpu.trace_stop"() : () -> ()
    %cst_36 = arith.constant dense<0xFF800000> : vector<2x16xf32>
    %80 = vector.multi_reduction <maximumf>, %79, %cst_36 [2] : vector<2x16x16xf32> to vector<2x16xf32>
    %81 = vector.shape_cast %80 : vector<2x16xf32> to vector<2x16x1xf32>
    %82 = vector.broadcast %81 : vector<2x16x1xf32> to vector<2x16x16xf32>
    %83 = arith.subf %79, %82 : vector<2x16x16xf32>
    %84 = math.exp %83 : vector<2x16x16xf32>
    %cst_37 = arith.constant dense<0.000000e+00> : vector<2x16xf32>
    %85 = vector.multi_reduction <add>, %84, %cst_37 [2] : vector<2x16x16xf32> to vector<2x16xf32>
    %86 = vector.shape_cast %85 : vector<2x16xf32> to vector<2x16x1xf32>
    %87 = tpu.reciprocal %86 {approx = true} : vector<2x16x1xf32> -> vector<2x16x1xf32>
    %88 = vector.broadcast %87 : vector<2x16x1xf32> to vector<2x16x16xf32>
    %89 = arith.mulf %84, %88 : vector<2x16x16xf32>
    %90 = arith.truncf %89 : vector<2x16x16xf32> to vector<2x16x16xbf16>
    "tpu.trace_start"() <{level = 10 : i32, message = "bqk,bkd->bqd"}> : () -> ()
    %cst_38 = arith.constant dense<0.000000e+00> : vector<2x16x8xf32>
    %91 = tpu.matmul %90, %78, %cst_38 {dimension_numbers = #tpu.dot_dimension_numbers<[2], [1], [1], [2], [0, 0, 0, 1, 1, 2], [0], [0]>} : vector<2x16x16xbf16>, vector<2x16x8xbf16>, vector<2x16x8xf32> -> vector<2x16x8xf32>
    "tpu.trace_stop"() : () -> ()
    %92 = vector.shape_cast %91 : vector<2x16x8xf32> to vector<32x8xf32>
    %c0_39 = arith.constant 0 : index
    %c16_40 = arith.constant 16 : index
    %93 = vector.load %arg7[%c0_39, %c16_40] : memref<32x32xf32, #tpu.memory_space<vmem>>, vector<32x8xf32>
    tpu.vector_store %arg7[%c0_39, %c16_40], %92 {strides = array<i32>} : memref<32x32xf32, #tpu.memory_space<vmem>>, vector<32x8xf32>,
    %94 = vector.extract_strided_slice %39 {offsets = [0, 0, 24], sizes = [2, 16, 8], strides = [1, 1, 1]} : vector<2x16x96xbf16> to vector<2x16x8xbf16>
    %95 = vector.extract_strided_slice %39 {offsets = [0, 0, 56], sizes = [2, 16, 8], strides = [1, 1, 1]} : vector<2x16x96xbf16> to vector<2x16x8xbf16>
    %96 = vector.extract_strided_slice %39 {offsets = [0, 0, 88], sizes = [2, 16, 8], strides = [1, 1, 1]} : vector<2x16x96xbf16> to vector<2x16x8xbf16>
    "tpu.trace_start"() <{level = 10 : i32, message = "bqd,bkd->bqk"}> : () -> ()
    %cst_41 = arith.constant dense<0.000000e+00> : vector<2x16x16xf32>
    %97 = tpu.matmul %94, %95, %cst_41 {dimension_numbers = #tpu.dot_dimension_numbers<[2], [2], [1], [1], [0, 0, 0, 1, 1, 1], [0], [0]>} : vector<2x16x8xbf16>, vector<2x16x8xbf16>, vector<2x16x16xf32> -> vector<2x16x16xf32>
    "tpu.trace_stop"() : () -> ()
    %cst_42 = arith.constant dense<0xFF800000> : vector<2x16xf32>
    %98 = vector.multi_reduction <maximumf>, %97, %cst_42 [2] : vector<2x16x16xf32> to vector<2x16xf32>
    %99 = vector.shape_cast %98 : vector<2x16xf32> to vector<2x16x1xf32>
    %100 = vector.broadcast %99 : vector<2x16x1xf32> to vector<2x16x16xf32>
    %101 = arith.subf %97, %100 : vector<2x16x16xf32>
    %102 = math.exp %101 : vector<2x16x16xf32>
    %cst_43 = arith.constant dense<0.000000e+00> : vector<2x16xf32>
    %103 = vector.multi_reduction <add>, %102, %cst_43 [2] : vector<2x16x16xf32> to vector<2x16xf32>
    %104 = vector.shape_cast %103 : vector<2x16xf32> to vector<2x16x1xf32>
    %105 = tpu.reciprocal %104 {approx = true} : vector<2x16x1xf32> -> vector<2x16x1xf32>
    %106 = vector.broadcast %105 : vector<2x16x1xf32> to vector<2x16x16xf32>
    %107 = arith.mulf %102, %106 : vector<2x16x16xf32>
    %108 = arith.truncf %107 : vector<2x16x16xf32> to vector<2x16x16xbf16>
    "tpu.trace_start"() <{level = 10 : i32, message = "bqk,bkd->bqd"}> : () -> ()
    %cst_44 = arith.constant dense<0.000000e+00> : vector<2x16x8xf32>
    %109 = tpu.matmul %108, %96, %cst_44 {dimension_numbers = #tpu.dot_dimension_numbers<[2], [1], [1], [2], [0, 0, 0, 1, 1, 2], [0], [0]>} : vector<2x16x16xbf16>, vector<2x16x8xbf16>, vector<2x16x8xf32> -> vector<2x16x8xf32>
    "tpu.trace_stop"() : () -> ()
    %110 = vector.shape_cast %109 : vector<2x16x8xf32> to vector<32x8xf32>
    %c0_45 = arith.constant 0 : index
    %c24 = arith.constant 24 : index
    %111 = vector.load %arg7[%c0_45, %c24] : memref<32x32xf32, #tpu.memory_space<vmem>>, vector<32x8xf32>
    tpu.vector_store %arg7[%c0_45, %c24], %110 {strides = array<i32>} : memref<32x32xf32, #tpu.memory_space<vmem>>, vector<32x8xf32>,
    %c0_46 = arith.constant 0 : index
    %c0_47 = arith.constant 0 : index
    %112 = vector.load %arg7[%c0_46, %c0_47] : memref<32x32xf32, #tpu.memory_space<vmem>>, vector<32x32xf32>
    %c48 = arith.constant 48 : index
    %c0_48 = arith.constant 0 : index
    %113 = vector.load %arg3[%c48, %c0_48] : memref<368x128xbf16, #tpu.memory_space<vmem>>, vector<32x32xbf16>
    %114 = arith.truncf %112 : vector<32x32xf32> to vector<32x32xbf16>
    %cst_49 = arith.constant dense<0.000000e+00> : vector<32x32xf32>
    %115 = tpu.matmul %114, %113, %cst_49 {dimension_numbers = #tpu.dot_dimension_numbers<[1], [0], [0], [1], [0, 0, 1, 1], [], []>} : vector<32x32xbf16>, vector<32x32xbf16>, vector<32x32xf32> -> vector<32x32xf32>
    %116 = arith.addf %9, %115 : vector<32x32xf32>
    %c1 = arith.constant 1 : index
    %c0_50 = arith.constant 0 : index
    %117 = vector.load %arg4[%c1, %c0_50] : memref<24x128xf32, #tpu.memory_space<vmem>>, vector<1x32xf32>
    %118 = vector.broadcast %117 : vector<1x32xf32> to vector<32x32xf32>
    %119 = arith.addf %116, %118 : vector<32x32xf32>
    %c6 = arith.constant 6 : index
    %c0_51 = arith.constant 0 : index
    %120 = vector.load %arg4[%c6, %c0_51] : memref<24x128xf32, #tpu.memory_space<vmem>>, vector<1x32xf32>
    %c7 = arith.constant 7 : index
    %c0_52 = arith.constant 0 : index
    %121 = vector.load %arg4[%c7, %c0_52] : memref<24x128xf32, #tpu.memory_space<vmem>>, vector<1x32xf32>
    %cst_53 = arith.constant dense<0.000000e+00> : vector<32xf32>
    %122 = vector.multi_reduction <add>, %119, %cst_53 [1] : vector<32x32xf32> to vector<32xf32>
    %123 = vector.shape_cast %122 : vector<32xf32> to vector<32x1xf32>
    %cst_54 = arith.constant 3.200000e+01 : f32
    %124 = vector.broadcast %cst_54 : f32 to vector<32x1xf32>
    %125 = arith.divf %123, %124 : vector<32x1xf32>
    %126 = vector.broadcast %125 : vector<32x1xf32> to vector<32x32xf32>
    %127 = arith.subf %119, %126 : vector<32x32xf32>
    %128 = arith.mulf %127, %127 : vector<32x32xf32>
    %cst_55 = arith.constant dense<0.000000e+00> : vector<32xf32>
    %129 = vector.multi_reduction <add>, %128, %cst_55 [1] : vector<32x32xf32> to vector<32xf32>
    %130 = vector.shape_cast %129 : vector<32xf32> to vector<32x1xf32>
    %cst_56 = arith.constant 3.200000e+01 : f32
    %131 = vector.broadcast %cst_56 : f32 to vector<32x1xf32>
    %132 = arith.divf %130, %131 : vector<32x1xf32>
    %cst_57 = arith.constant 9.99999974E-6 : f32
    %133 = vector.broadcast %cst_57 : f32 to vector<32x1xf32>
    %134 = arith.addf %132, %133 : vector<32x1xf32>
    %135 = math.rsqrt %134 : vector<32x1xf32>
    %136 = vector.broadcast %135 : vector<32x1xf32> to vector<32x32xf32>
    %137 = arith.mulf %127, %136 : vector<32x32xf32>
    %138 = vector.broadcast %120 : vector<1x32xf32> to vector<32x32xf32>
    %139 = arith.mulf %137, %138 : vector<32x32xf32>
    %140 = vector.broadcast %121 : vector<1x32xf32> to vector<32x32xf32>
    %141 = arith.addf %139, %140 : vector<32x32xf32>
    %c80 = arith.constant 80 : index
    %c0_58 = arith.constant 0 : index
    %142 = vector.load %arg3[%c80, %c0_58] : memref<368x128xbf16, #tpu.memory_space<vmem>>, vector<32x64xbf16>
    %143 = arith.truncf %141 : vector<32x32xf32> to vector<32x32xbf16>
    %cst_59 = arith.constant dense<0.000000e+00> : vector<32x64xf32>
    %144 = tpu.matmul %143, %142, %cst_59 {dimension_numbers = #tpu.dot_dimension_numbers<[1], [0], [0], [1], [0, 0, 1, 1], [], []>} : vector<32x32xbf16>, vector<32x64xbf16>, vector<32x64xf32> -> vector<32x64xf32>
    %c2 = arith.constant 2 : index
    %c0_60 = arith.constant 0 : index
    %145 = vector.load %arg4[%c2, %c0_60] : memref<24x128xf32, #tpu.memory_space<vmem>>, vector<1x64xf32>
    %146 = vector.broadcast %145 : vector<1x64xf32> to vector<32x64xf32>
    %147 = arith.addf %144, %146 : vector<32x64xf32>
    %cst_61 = arith.constant 0.000000e+00 : f32
    %148 = vector.broadcast %cst_61 : f32 to vector<32x64xf32>
    %149 = arith.maximumf %147, %148 : vector<32x64xf32>
    %c112 = arith.constant 112 : index
    %c0_62 = arith.constant 0 : index
    %150 = vector.load %arg3[%c112, %c0_62] : memref<368x128xbf16, #tpu.memory_space<vmem>>, vector<64x32xbf16>
    %151 = arith.truncf %149 : vector<32x64xf32> to vector<32x64xbf16>
    %cst_63 = arith.constant dense<0.000000e+00> : vector<32x32xf32>
    %152 = tpu.matmul %151, %150, %cst_63 {dimension_numbers = #tpu.dot_dimension_numbers<[1], [0], [0], [1], [0, 0, 1, 1], [], []>} : vector<32x64xbf16>, vector<64x32xbf16>, vector<32x32xf32> -> vector<32x32xf32>
    %153 = arith.addf %119, %152 : vector<32x32xf32>
    %c3 = arith.constant 3 : index
    %c0_64 = arith.constant 0 : index
    %154 = vector.load %arg4[%c3, %c0_64] : memref<24x128xf32, #tpu.memory_space<vmem>>, vector<1x32xf32>
    %155 = vector.broadcast %154 : vector<1x32xf32> to vector<32x32xf32>
    %156 = arith.addf %153, %155 : vector<32x32xf32>
    %c12 = arith.constant 12 : index
    %c0_65 = arith.constant 0 : index
    %157 = vector.load %arg4[%c12, %c0_65] : memref<24x128xf32, #tpu.memory_space<vmem>>, vector<1x32xf32>
    %c13 = arith.constant 13 : index
    %c0_66 = arith.constant 0 : index
    %158 = vector.load %arg4[%c13, %c0_66] : memref<24x128xf32, #tpu.memory_space<vmem>>, vector<1x32xf32>
    %cst_67 = arith.constant dense<0.000000e+00> : vector<32xf32>
    %159 = vector.multi_reduction <add>, %156, %cst_67 [1] : vector<32x32xf32> to vector<32xf32>
    %160 = vector.shape_cast %159 : vector<32xf32> to vector<32x1xf32>
    %cst_68 = arith.constant 3.200000e+01 : f32
    %161 = vector.broadcast %cst_68 : f32 to vector<32x1xf32>
    %162 = arith.divf %160, %161 : vector<32x1xf32>
    %163 = vector.broadcast %162 : vector<32x1xf32> to vector<32x32xf32>
    %164 = arith.subf %156, %163 : vector<32x32xf32>
    %165 = arith.mulf %164, %164 : vector<32x32xf32>
    %cst_69 = arith.constant dense<0.000000e+00> : vector<32xf32>
    %166 = vector.multi_reduction <add>, %165, %cst_69 [1] : vector<32x32xf32> to vector<32xf32>
    %167 = vector.shape_cast %166 : vector<32xf32> to vector<32x1xf32>
    %cst_70 = arith.constant 3.200000e+01 : f32
    %168 = vector.broadcast %cst_70 : f32 to vector<32x1xf32>
    %169 = arith.divf %167, %168 : vector<32x1xf32>
    %cst_71 = arith.constant 9.99999974E-6 : f32
    %170 = vector.broadcast %cst_71 : f32 to vector<32x1xf32>
    %171 = arith.addf %169, %170 : vector<32x1xf32>
    %172 = math.rsqrt %171 : vector<32x1xf32>
    %173 = vector.broadcast %172 : vector<32x1xf32> to vector<32x32xf32>
    %174 = arith.mulf %164, %173 : vector<32x32xf32>
    %175 = vector.broadcast %157 : vector<1x32xf32> to vector<32x32xf32>
    %176 = arith.mulf %174, %175 : vector<32x32xf32>
    %177 = vector.broadcast %158 : vector<1x32xf32> to vector<32x32xf32>
    %178 = arith.addf %176, %177 : vector<32x32xf32>
    %c176 = arith.constant 176 : index
    %c0_72 = arith.constant 0 : index
    %179 = vector.load %arg3[%c176, %c0_72] : memref<368x128xbf16, #tpu.memory_space<vmem>>, vector<32x96xbf16>
    %180 = arith.truncf %178 : vector<32x32xf32> to vector<32x32xbf16>
    %cst_73 = arith.constant dense<0.000000e+00> : vector<32x96xf32>
    %181 = tpu.matmul %180, %179, %cst_73 {dimension_numbers = #tpu.dot_dimension_numbers<[1], [0], [0], [1], [0, 0, 1, 1], [], []>} : vector<32x32xbf16>, vector<32x96xbf16>, vector<32x96xf32> -> vector<32x96xf32>
    %c8_74 = arith.constant 8 : index
    %c0_75 = arith.constant 0 : index
    %182 = vector.load %arg4[%c8_74, %c0_75] : memref<24x128xf32, #tpu.memory_space<vmem>>, vector<1x96xf32>
    %183 = vector.broadcast %182 : vector<1x96xf32> to vector<32x96xf32>
    %184 = arith.addf %181, %183 : vector<32x96xf32>
    %185 = arith.truncf %184 : vector<32x96xf32> to vector<32x96xbf16>
    %186 = vector.shape_cast %185 : vector<32x96xbf16> to vector<2x16x96xbf16>
    %187 = vector.extract_strided_slice %186 {offsets = [0, 0, 0], sizes = [2, 16, 8], strides = [1, 1, 1]} : vector<2x16x96xbf16> to vector<2x16x8xbf16>
    %188 = vector.extract_strided_slice %186 {offsets = [0, 0, 32], sizes = [2, 16, 8], strides = [1, 1, 1]} : vector<2x16x96xbf16> to vector<2x16x8xbf16>
    %189 = vector.extract_strided_slice %186 {offsets = [0, 0, 64], sizes = [2, 16, 8], strides = [1, 1, 1]} : vector<2x16x96xbf16> to vector<2x16x8xbf16>
    "tpu.trace_start"() <{level = 10 : i32, message = "bqd,bkd->bqk"}> : () -> ()
    %cst_76 = arith.constant dense<0.000000e+00> : vector<2x16x16xf32>
    %190 = tpu.matmul %187, %188, %cst_76 {dimension_numbers = #tpu.dot_dimension_numbers<[2], [2], [1], [1], [0, 0, 0, 1, 1, 1], [0], [0]>} : vector<2x16x8xbf16>, vector<2x16x8xbf16>, vector<2x16x16xf32> -> vector<2x16x16xf32>
    "tpu.trace_stop"() : () -> ()
    %cst_77 = arith.constant dense<0xFF800000> : vector<2x16xf32>
    %191 = vector.multi_reduction <maximumf>, %190, %cst_77 [2] : vector<2x16x16xf32> to vector<2x16xf32>
    %192 = vector.shape_cast %191 : vector<2x16xf32> to vector<2x16x1xf32>
    %193 = vector.broadcast %192 : vector<2x16x1xf32> to vector<2x16x16xf32>
    %194 = arith.subf %190, %193 : vector<2x16x16xf32>
    %195 = math.exp %194 : vector<2x16x16xf32>
    %cst_78 = arith.constant dense<0.000000e+00> : vector<2x16xf32>
    %196 = vector.multi_reduction <add>, %195, %cst_78 [2] : vector<2x16x16xf32> to vector<2x16xf32>
    %197 = vector.shape_cast %196 : vector<2x16xf32> to vector<2x16x1xf32>
    %198 = tpu.reciprocal %197 {approx = true} : vector<2x16x1xf32> -> vector<2x16x1xf32>
    %199 = vector.broadcast %198 : vector<2x16x1xf32> to vector<2x16x16xf32>
    %200 = arith.mulf %195, %199 : vector<2x16x16xf32>
    %201 = arith.truncf %200 : vector<2x16x16xf32> to vector<2x16x16xbf16>
    "tpu.trace_start"() <{level = 10 : i32, message = "bqk,bkd->bqd"}> : () -> ()
    %cst_79 = arith.constant dense<0.000000e+00> : vector<2x16x8xf32>
    %202 = tpu.matmul %201, %189, %cst_79 {dimension_numbers = #tpu.dot_dimension_numbers<[2], [1], [1], [2], [0, 0, 0, 1, 1, 2], [0], [0]>} : vector<2x16x16xbf16>, vector<2x16x8xbf16>, vector<2x16x8xf32> -> vector<2x16x8xf32>
    "tpu.trace_stop"() : () -> ()
    %203 = vector.shape_cast %202 : vector<2x16x8xf32> to vector<32x8xf32>
    %c0_80 = arith.constant 0 : index
    %c0_81 = arith.constant 0 : index
    %204 = vector.load %arg7[%c0_80, %c0_81] : memref<32x32xf32, #tpu.memory_space<vmem>>, vector<32x8xf32>
    tpu.vector_store %arg7[%c0_80, %c0_81], %203 {strides = array<i32>} : memref<32x32xf32, #tpu.memory_space<vmem>>, vector<32x8xf32>,
    %205 = vector.extract_strided_slice %186 {offsets = [0, 0, 8], sizes = [2, 16, 8], strides = [1, 1, 1]} : vector<2x16x96xbf16> to vector<2x16x8xbf16>
    %206 = vector.extract_strided_slice %186 {offsets = [0, 0, 40], sizes = [2, 16, 8], strides = [1, 1, 1]} : vector<2x16x96xbf16> to vector<2x16x8xbf16>
    %207 = vector.extract_strided_slice %186 {offsets = [0, 0, 72], sizes = [2, 16, 8], strides = [1, 1, 1]} : vector<2x16x96xbf16> to vector<2x16x8xbf16>
    "tpu.trace_start"() <{level = 10 : i32, message = "bqd,bkd->bqk"}> : () -> ()
    %cst_82 = arith.constant dense<0.000000e+00> : vector<2x16x16xf32>
    %208 = tpu.matmul %205, %206, %cst_82 {dimension_numbers = #tpu.dot_dimension_numbers<[2], [2], [1], [1], [0, 0, 0, 1, 1, 1], [0], [0]>} : vector<2x16x8xbf16>, vector<2x16x8xbf16>, vector<2x16x16xf32> -> vector<2x16x16xf32>
    "tpu.trace_stop"() : () -> ()
    %cst_83 = arith.constant dense<0xFF800000> : vector<2x16xf32>
    %209 = vector.multi_reduction <maximumf>, %208, %cst_83 [2] : vector<2x16x16xf32> to vector<2x16xf32>
    %210 = vector.shape_cast %209 : vector<2x16xf32> to vector<2x16x1xf32>
    %211 = vector.broadcast %210 : vector<2x16x1xf32> to vector<2x16x16xf32>
    %212 = arith.subf %208, %211 : vector<2x16x16xf32>
    %213 = math.exp %212 : vector<2x16x16xf32>
    %cst_84 = arith.constant dense<0.000000e+00> : vector<2x16xf32>
    %214 = vector.multi_reduction <add>, %213, %cst_84 [2] : vector<2x16x16xf32> to vector<2x16xf32>
    %215 = vector.shape_cast %214 : vector<2x16xf32> to vector<2x16x1xf32>
    %216 = tpu.reciprocal %215 {approx = true} : vector<2x16x1xf32> -> vector<2x16x1xf32>
    %217 = vector.broadcast %216 : vector<2x16x1xf32> to vector<2x16x16xf32>
    %218 = arith.mulf %213, %217 : vector<2x16x16xf32>
    %219 = arith.truncf %218 : vector<2x16x16xf32> to vector<2x16x16xbf16>
    "tpu.trace_start"() <{level = 10 : i32, message = "bqk,bkd->bqd"}> : () -> ()
    %cst_85 = arith.constant dense<0.000000e+00> : vector<2x16x8xf32>
    %220 = tpu.matmul %219, %207, %cst_85 {dimension_numbers = #tpu.dot_dimension_numbers<[2], [1], [1], [2], [0, 0, 0, 1, 1, 2], [0], [0]>} : vector<2x16x16xbf16>, vector<2x16x8xbf16>, vector<2x16x8xf32> -> vector<2x16x8xf32>
    "tpu.trace_stop"() : () -> ()
    %221 = vector.shape_cast %220 : vector<2x16x8xf32> to vector<32x8xf32>
    %c0_86 = arith.constant 0 : index
    %c8_87 = arith.constant 8 : index
    %222 = vector.load %arg7[%c0_86, %c8_87] : memref<32x32xf32, #tpu.memory_space<vmem>>, vector<32x8xf32>
    tpu.vector_store %arg7[%c0_86, %c8_87], %221 {strides = array<i32>} : memref<32x32xf32, #tpu.memory_space<vmem>>, vector<32x8xf32>,
    %223 = vector.extract_strided_slice %186 {offsets = [0, 0, 16], sizes = [2, 16, 8], strides = [1, 1, 1]} : vector<2x16x96xbf16> to vector<2x16x8xbf16>
    %224 = vector.extract_strided_slice %186 {offsets = [0, 0, 48], sizes = [2, 16, 8], strides = [1, 1, 1]} : vector<2x16x96xbf16> to vector<2x16x8xbf16>
    %225 = vector.extract_strided_slice %186 {offsets = [0, 0, 80], sizes = [2, 16, 8], strides = [1, 1, 1]} : vector<2x16x96xbf16> to vector<2x16x8xbf16>
    "tpu.trace_start"() <{level = 10 : i32, message = "bqd,bkd->bqk"}> : () -> ()
    %cst_88 = arith.constant dense<0.000000e+00> : vector<2x16x16xf32>
    %226 = tpu.matmul %223, %224, %cst_88 {dimension_numbers = #tpu.dot_dimension_numbers<[2], [2], [1], [1], [0, 0, 0, 1, 1, 1], [0], [0]>} : vector<2x16x8xbf16>, vector<2x16x8xbf16>, vector<2x16x16xf32> -> vector<2x16x16xf32>
    "tpu.trace_stop"() : () -> ()
    %cst_89 = arith.constant dense<0xFF800000> : vector<2x16xf32>
    %227 = vector.multi_reduction <maximumf>, %226, %cst_89 [2] : vector<2x16x16xf32> to vector<2x16xf32>
    %228 = vector.shape_cast %227 : vector<2x16xf32> to vector<2x16x1xf32>
    %229 = vector.broadcast %228 : vector<2x16x1xf32> to vector<2x16x16xf32>
    %230 = arith.subf %226, %229 : vector<2x16x16xf32>
    %231 = math.exp %230 : vector<2x16x16xf32>
    %cst_90 = arith.constant dense<0.000000e+00> : vector<2x16xf32>
    %232 = vector.multi_reduction <add>, %231, %cst_90 [2] : vector<2x16x16xf32> to vector<2x16xf32>
    %233 = vector.shape_cast %232 : vector<2x16xf32> to vector<2x16x1xf32>
    %234 = tpu.reciprocal %233 {approx = true} : vector<2x16x1xf32> -> vector<2x16x1xf32>
    %235 = vector.broadcast %234 : vector<2x16x1xf32> to vector<2x16x16xf32>
    %236 = arith.mulf %231, %235 : vector<2x16x16xf32>
    %237 = arith.truncf %236 : vector<2x16x16xf32> to vector<2x16x16xbf16>
    "tpu.trace_start"() <{level = 10 : i32, message = "bqk,bkd->bqd"}> : () -> ()
    %cst_91 = arith.constant dense<0.000000e+00> : vector<2x16x8xf32>
    %238 = tpu.matmul %237, %225, %cst_91 {dimension_numbers = #tpu.dot_dimension_numbers<[2], [1], [1], [2], [0, 0, 0, 1, 1, 2], [0], [0]>} : vector<2x16x16xbf16>, vector<2x16x8xbf16>, vector<2x16x8xf32> -> vector<2x16x8xf32>
    "tpu.trace_stop"() : () -> ()
    %239 = vector.shape_cast %238 : vector<2x16x8xf32> to vector<32x8xf32>
    %c0_92 = arith.constant 0 : index
    %c16_93 = arith.constant 16 : index
    %240 = vector.load %arg7[%c0_92, %c16_93] : memref<32x32xf32, #tpu.memory_space<vmem>>, vector<32x8xf32>
    tpu.vector_store %arg7[%c0_92, %c16_93], %239 {strides = array<i32>} : memref<32x32xf32, #tpu.memory_space<vmem>>, vector<32x8xf32>,
    %241 = vector.extract_strided_slice %186 {offsets = [0, 0, 24], sizes = [2, 16, 8], strides = [1, 1, 1]} : vector<2x16x96xbf16> to vector<2x16x8xbf16>
    %242 = vector.extract_strided_slice %186 {offsets = [0, 0, 56], sizes = [2, 16, 8], strides = [1, 1, 1]} : vector<2x16x96xbf16> to vector<2x16x8xbf16>
    %243 = vector.extract_strided_slice %186 {offsets = [0, 0, 88], sizes = [2, 16, 8], strides = [1, 1, 1]} : vector<2x16x96xbf16> to vector<2x16x8xbf16>
    "tpu.trace_start"() <{level = 10 : i32, message = "bqd,bkd->bqk"}> : () -> ()
    %cst_94 = arith.constant dense<0.000000e+00> : vector<2x16x16xf32>
    %244 = tpu.matmul %241, %242, %cst_94 {dimension_numbers = #tpu.dot_dimension_numbers<[2], [2], [1], [1], [0, 0, 0, 1, 1, 1], [0], [0]>} : vector<2x16x8xbf16>, vector<2x16x8xbf16>, vector<2x16x16xf32> -> vector<2x16x16xf32>
    "tpu.trace_stop"() : () -> ()
    %cst_95 = arith.constant dense<0xFF800000> : vector<2x16xf32>
    %245 = vector.multi_reduction <maximumf>, %244, %cst_95 [2] : vector<2x16x16xf32> to vector<2x16xf32>
    %246 = vector.shape_cast %245 : vector<2x16xf32> to vector<2x16x1xf32>
    %247 = vector.broadcast %246 : vector<2x16x1xf32> to vector<2x16x16xf32>
    %248 = arith.subf %244, %247 : vector<2x16x16xf32>
    %249 = math.exp %248 : vector<2x16x16xf32>
    %cst_96 = arith.constant dense<0.000000e+00> : vector<2x16xf32>
    %250 = vector.multi_reduction <add>, %249, %cst_96 [2] : vector<2x16x16xf32> to vector<2x16xf32>
    %251 = vector.shape_cast %250 : vector<2x16xf32> to vector<2x16x1xf32>
    %252 = tpu.reciprocal %251 {approx = true} : vector<2x16x1xf32> -> vector<2x16x1xf32>
    %253 = vector.broadcast %252 : vector<2x16x1xf32> to vector<2x16x16xf32>
    %254 = arith.mulf %249, %253 : vector<2x16x16xf32>
    %255 = arith.truncf %254 : vector<2x16x16xf32> to vector<2x16x16xbf16>
    "tpu.trace_start"() <{level = 10 : i32, message = "bqk,bkd->bqd"}> : () -> ()
    %cst_97 = arith.constant dense<0.000000e+00> : vector<2x16x8xf32>
    %256 = tpu.matmul %255, %243, %cst_97 {dimension_numbers = #tpu.dot_dimension_numbers<[2], [1], [1], [2], [0, 0, 0, 1, 1, 2], [0], [0]>} : vector<2x16x16xbf16>, vector<2x16x8xbf16>, vector<2x16x8xf32> -> vector<2x16x8xf32>
    "tpu.trace_stop"() : () -> ()
    %257 = vector.shape_cast %256 : vector<2x16x8xf32> to vector<32x8xf32>
    %c0_98 = arith.constant 0 : index
    %c24_99 = arith.constant 24 : index
    %258 = vector.load %arg7[%c0_98, %c24_99] : memref<32x32xf32, #tpu.memory_space<vmem>>, vector<32x8xf32>
    tpu.vector_store %arg7[%c0_98, %c24_99], %257 {strides = array<i32>} : memref<32x32xf32, #tpu.memory_space<vmem>>, vector<32x8xf32>,
    %c0_100 = arith.constant 0 : index
    %c0_101 = arith.constant 0 : index
    %259 = vector.load %arg7[%c0_100, %c0_101] : memref<32x32xf32, #tpu.memory_space<vmem>>, vector<32x32xf32>
    %c208 = arith.constant 208 : index
    %c0_102 = arith.constant 0 : index
    %260 = vector.load %arg3[%c208, %c0_102] : memref<368x128xbf16, #tpu.memory_space<vmem>>, vector<32x32xbf16>
    %261 = arith.truncf %259 : vector<32x32xf32> to vector<32x32xbf16>
    %cst_103 = arith.constant dense<0.000000e+00> : vector<32x32xf32>
    %262 = tpu.matmul %261, %260, %cst_103 {dimension_numbers = #tpu.dot_dimension_numbers<[1], [0], [0], [1], [0, 0, 1, 1], [], []>} : vector<32x32xbf16>, vector<32x32xbf16>, vector<32x32xf32> -> vector<32x32xf32>
    %263 = arith.addf %156, %262 : vector<32x32xf32>
    %c9 = arith.constant 9 : index
    %c0_104 = arith.constant 0 : index
    %264 = vector.load %arg4[%c9, %c0_104] : memref<24x128xf32, #tpu.memory_space<vmem>>, vector<1x32xf32>
    %265 = vector.broadcast %264 : vector<1x32xf32> to vector<32x32xf32>
    %266 = arith.addf %263, %265 : vector<32x32xf32>
    %c14 = arith.constant 14 : index
    %c0_105 = arith.constant 0 : index
    %267 = vector.load %arg4[%c14, %c0_105] : memref<24x128xf32, #tpu.memory_space<vmem>>, vector<1x32xf32>
    %c15 = arith.constant 15 : index
    %c0_106 = arith.constant 0 : index
    %268 = vector.load %arg4[%c15, %c0_106] : memref<24x128xf32, #tpu.memory_space<vmem>>, vector<1x32xf32>
    %cst_107 = arith.constant dense<0.000000e+00> : vector<32xf32>
    %269 = vector.multi_reduction <add>, %266, %cst_107 [1] : vector<32x32xf32> to vector<32xf32>
    %270 = vector.shape_cast %269 : vector<32xf32> to vector<32x1xf32>
    %cst_108 = arith.constant 3.200000e+01 : f32
    %271 = vector.broadcast %cst_108 : f32 to vector<32x1xf32>
    %272 = arith.divf %270, %271 : vector<32x1xf32>
    %273 = vector.broadcast %272 : vector<32x1xf32> to vector<32x32xf32>
    %274 = arith.subf %266, %273 : vector<32x32xf32>
    %275 = arith.mulf %274, %274 : vector<32x32xf32>
    %cst_109 = arith.constant dense<0.000000e+00> : vector<32xf32>
    %276 = vector.multi_reduction <add>, %275, %cst_109 [1] : vector<32x32xf32> to vector<32xf32>
    %277 = vector.shape_cast %276 : vector<32xf32> to vector<32x1xf32>
    %cst_110 = arith.constant 3.200000e+01 : f32
    %278 = vector.broadcast %cst_110 : f32 to vector<32x1xf32>
    %279 = arith.divf %277, %278 : vector<32x1xf32>
    %cst_111 = arith.constant 9.99999974E-6 : f32
    %280 = vector.broadcast %cst_111 : f32 to vector<32x1xf32>
    %281 = arith.addf %279, %280 : vector<32x1xf32>
    %282 = math.rsqrt %281 : vector<32x1xf32>
    %283 = vector.broadcast %282 : vector<32x1xf32> to vector<32x32xf32>
    %284 = arith.mulf %274, %283 : vector<32x32xf32>
    %285 = vector.broadcast %267 : vector<1x32xf32> to vector<32x32xf32>
    %286 = arith.mulf %284, %285 : vector<32x32xf32>
    %287 = vector.broadcast %268 : vector<1x32xf32> to vector<32x32xf32>
    %288 = arith.addf %286, %287 : vector<32x32xf32>
    %c240 = arith.constant 240 : index
    %c0_112 = arith.constant 0 : index
    %289 = vector.load %arg3[%c240, %c0_112] : memref<368x128xbf16, #tpu.memory_space<vmem>>, vector<32x64xbf16>
    %290 = arith.truncf %288 : vector<32x32xf32> to vector<32x32xbf16>
    %cst_113 = arith.constant dense<0.000000e+00> : vector<32x64xf32>
    %291 = tpu.matmul %290, %289, %cst_113 {dimension_numbers = #tpu.dot_dimension_numbers<[1], [0], [0], [1], [0, 0, 1, 1], [], []>} : vector<32x32xbf16>, vector<32x64xbf16>, vector<32x64xf32> -> vector<32x64xf32>
    %c10 = arith.constant 10 : index
    %c0_114 = arith.constant 0 : index
    %292 = vector.load %arg4[%c10, %c0_114] : memref<24x128xf32, #tpu.memory_space<vmem>>, vector<1x64xf32>
    %293 = vector.broadcast %292 : vector<1x64xf32> to vector<32x64xf32>
    %294 = arith.addf %291, %293 : vector<32x64xf32>
    %cst_115 = arith.constant 0.000000e+00 : f32
    %295 = vector.broadcast %cst_115 : f32 to vector<32x64xf32>
    %296 = arith.maximumf %294, %295 : vector<32x64xf32>
    %c272 = arith.constant 272 : index
    %c0_116 = arith.constant 0 : index
    %297 = vector.load %arg3[%c272, %c0_116] : memref<368x128xbf16, #tpu.memory_space<vmem>>, vector<64x32xbf16>
    %298 = arith.truncf %296 : vector<32x64xf32> to vector<32x64xbf16>
    %cst_117 = arith.constant dense<0.000000e+00> : vector<32x32xf32>
    %299 = tpu.matmul %298, %297, %cst_117 {dimension_numbers = #tpu.dot_dimension_numbers<[1], [0], [0], [1], [0, 0, 1, 1], [], []>} : vector<32x64xbf16>, vector<64x32xbf16>, vector<32x32xf32> -> vector<32x32xf32>
    %300 = arith.addf %266, %299 : vector<32x32xf32>
    %c11 = arith.constant 11 : index
    %c0_118 = arith.constant 0 : index
    %301 = vector.load %arg4[%c11, %c0_118] : memref<24x128xf32, #tpu.memory_space<vmem>>, vector<1x32xf32>
    %302 = vector.broadcast %301 : vector<1x32xf32> to vector<32x32xf32>
    %303 = arith.addf %300, %302 : vector<32x32xf32>
    %c336 = arith.constant 336 : index
    %c0_119 = arith.constant 0 : index
    %304 = vector.load %arg3[%c336, %c0_119] : memref<368x128xbf16, #tpu.memory_space<vmem>>, vector<32x16xbf16>
    %305 = arith.truncf %303 : vector<32x32xf32> to vector<32x32xbf16>
    %cst_120 = arith.constant dense<0.000000e+00> : vector<32x16xf32>
    %306 = tpu.matmul %305, %304, %cst_120 {dimension_numbers = #tpu.dot_dimension_numbers<[1], [0], [0], [1], [0, 0, 1, 1], [], []>} : vector<32x32xbf16>, vector<32x16xbf16>, vector<32x16xf32> -> vector<32x16xf32>
    %c16_121 = arith.constant 16 : index
    %c0_122 = arith.constant 0 : index
    %307 = vector.load %arg4[%c16_121, %c0_122] : memref<24x128xf32, #tpu.memory_space<vmem>>, vector<1x16xf32>
    %308 = vector.broadcast %307 : vector<1x16xf32> to vector<32x16xf32>
    %309 = arith.addf %306, %308 : vector<32x16xf32>
    %310 = vector.shape_cast %309 : vector<32x16xf32> to vector<2x16x16xf32>
    %311 = vector.extract_strided_slice %310 {offsets = [0, 12, 0], sizes = [2, 4, 16], strides = [1, 1, 1]} : vector<2x16x16xf32> to vector<2x4x16xf32>
    %312 = vector.extract_strided_slice %4 {offsets = [0, 12, 0], sizes = [2, 4, 16], strides = [1, 1, 1]} : vector<2x16x16xf32> to vector<2x4x16xf32>
    %313 = arith.addf %311, %312 : vector<2x4x16xf32>
    %c0_123 = arith.constant 0 : index
    %c0_124 = arith.constant 0 : index
    %c0_125 = arith.constant 0 : index
    %c0_126 = arith.constant 0 : index
    %314 = vector.load %arg5[%c0_123, %c0_124, %c0_125, %c0_126] : memref<2x3x4x16xf32, #tpu.memory_space<vmem>>, vector<2x1x4x16xf32>
    %315 = vector.shape_cast %314 : vector<2x1x4x16xf32> to vector<2x4x16xf32>
    %316 = vector.shape_cast %313 : vector<2x4x16xf32> to vector<2x1x4x16xf32>
    tpu.vector_store %arg5[%c0_123, %c0_124, %c0_125, %c0_126], %316 {strides = array<i32>} : memref<2x3x4x16xf32, #tpu.memory_space<vmem>>, vector<2x1x4x16xf32>,
    %317 = vector.extract_strided_slice %4 {offsets = [0, 4, 0], sizes = [2, 12, 16], strides = [1, 1, 1]} : vector<2x16x16xf32> to vector<2x12x16xf32>
    %c0_127 = arith.constant 0 : index
    %c0_128 = arith.constant 0 : index
    %c0_129 = arith.constant 0 : index
    %318 = vector.load %arg6[%c0_127, %c0_128, %c0_129] : memref<2x16x16xf32, #tpu.memory_space<vmem>>, vector<2x12x16xf32>
    tpu.vector_store %arg6[%c0_127, %c0_128, %c0_129], %317 {strides = array<i32>} : memref<2x16x16xf32, #tpu.memory_space<vmem>>, vector<2x12x16xf32>,
    %c0_130 = arith.constant 0 : index
    %c12_131 = arith.constant 12 : index
    %c0_132 = arith.constant 0 : index
    %319 = vector.load %arg6[%c0_130, %c12_131, %c0_132] : memref<2x16x16xf32, #tpu.memory_space<vmem>>, vector<2x4x16xf32>
    tpu.vector_store %arg6[%c0_130, %c12_131, %c0_132], %313 {strides = array<i32>} : memref<2x16x16xf32, #tpu.memory_space<vmem>>, vector<2x4x16xf32>,
    %c0_133 = arith.constant 0 : index
    %c0_134 = arith.constant 0 : index
    %c0_135 = arith.constant 0 : index
    %320 = vector.load %arg6[%c0_133, %c0_134, %c0_135] : memref<2x16x16xf32, #tpu.memory_space<vmem>>, vector<2x16x16xf32>
    %321 = vector.shape_cast %320 : vector<2x16x16xf32> to vector<32x16xf32>
    %c0_136 = arith.constant 0 : index
    %c0_137 = arith.constant 0 : index
    %322 = vector.load %arg3[%c0_136, %c0_137] : memref<368x128xbf16, #tpu.memory_space<vmem>>, vector<16x32xbf16>
    %323 = arith.truncf %321 : vector<32x16xf32> to vector<32x16xbf16>
    %cst_138 = arith.constant dense<0.000000e+00> : vector<32x32xf32>
    %324 = tpu.matmul %323, %322, %cst_138 {dimension_numbers = #tpu.dot_dimension_numbers<[1], [0], [0], [1], [0, 0, 1, 1], [], []>} : vector<32x16xbf16>, vector<16x32xbf16>, vector<32x32xf32> -> vector<32x32xf32>
    %325 = arith.addf %324, %3 : vector<32x32xf32>
    %c4_139 = arith.constant 4 : index
    %c0_140 = arith.constant 0 : index
    %326 = vector.load %arg4[%c4_139, %c0_140] : memref<24x128xf32, #tpu.memory_space<vmem>>, vector<1x32xf32>
    %c5_141 = arith.constant 5 : index
    %c0_142 = arith.constant 0 : index
    %327 = vector.load %arg4[%c5_141, %c0_142] : memref<24x128xf32, #tpu.memory_space<vmem>>, vector<1x32xf32>
    %cst_143 = arith.constant dense<0.000000e+00> : vector<32xf32>
    %328 = vector.multi_reduction <add>, %325, %cst_143 [1] : vector<32x32xf32> to vector<32xf32>
    %329 = vector.shape_cast %328 : vector<32xf32> to vector<32x1xf32>
    %cst_144 = arith.constant 3.200000e+01 : f32
    %330 = vector.broadcast %cst_144 : f32 to vector<32x1xf32>
    %331 = arith.divf %329, %330 : vector<32x1xf32>
    %332 = vector.broadcast %331 : vector<32x1xf32> to vector<32x32xf32>
    %333 = arith.subf %325, %332 : vector<32x32xf32>
    %334 = arith.mulf %333, %333 : vector<32x32xf32>
    %cst_145 = arith.constant dense<0.000000e+00> : vector<32xf32>
    %335 = vector.multi_reduction <add>, %334, %cst_145 [1] : vector<32x32xf32> to vector<32xf32>
    %336 = vector.shape_cast %335 : vector<32xf32> to vector<32x1xf32>
    %cst_146 = arith.constant 3.200000e+01 : f32
    %337 = vector.broadcast %cst_146 : f32 to vector<32x1xf32>
    %338 = arith.divf %336, %337 : vector<32x1xf32>
    %cst_147 = arith.constant 9.99999974E-6 : f32
    %339 = vector.broadcast %cst_147 : f32 to vector<32x1xf32>
    %340 = arith.addf %338, %339 : vector<32x1xf32>
    %341 = math.rsqrt %340 : vector<32x1xf32>
    %342 = vector.broadcast %341 : vector<32x1xf32> to vector<32x32xf32>
    %343 = arith.mulf %333, %342 : vector<32x32xf32>
    %344 = vector.broadcast %326 : vector<1x32xf32> to vector<32x32xf32>
    %345 = arith.mulf %343, %344 : vector<32x32xf32>
    %346 = vector.broadcast %327 : vector<1x32xf32> to vector<32x32xf32>
    %347 = arith.addf %345, %346 : vector<32x32xf32>
    %c16_148 = arith.constant 16 : index
    %c0_149 = arith.constant 0 : index
    %348 = vector.load %arg3[%c16_148, %c0_149] : memref<368x128xbf16, #tpu.memory_space<vmem>>, vector<32x96xbf16>
    %349 = arith.truncf %347 : vector<32x32xf32> to vector<32x32xbf16>
    %cst_150 = arith.constant dense<0.000000e+00> : vector<32x96xf32>
    %350 = tpu.matmul %349, %348, %cst_150 {dimension_numbers = #tpu.dot_dimension_numbers<[1], [0], [0], [1], [0, 0, 1, 1], [], []>} : vector<32x32xbf16>, vector<32x96xbf16>, vector<32x96xf32> -> vector<32x96xf32>
    %c0_151 = arith.constant 0 : index
    %c0_152 = arith.constant 0 : index
    %351 = vector.load %arg4[%c0_151, %c0_152] : memref<24x128xf32, #tpu.memory_space<vmem>>, vector<1x96xf32>
    %352 = vector.broadcast %351 : vector<1x96xf32> to vector<32x96xf32>
    %353 = arith.addf %350, %352 : vector<32x96xf32>
    %354 = arith.truncf %353 : vector<32x96xf32> to vector<32x96xbf16>
    %355 = vector.shape_cast %354 : vector<32x96xbf16> to vector<2x16x96xbf16>
    %356 = vector.extract_strided_slice %355 {offsets = [0, 0, 0], sizes = [2, 16, 8], strides = [1, 1, 1]} : vector<2x16x96xbf16> to vector<2x16x8xbf16>
    %357 = vector.extract_strided_slice %355 {offsets = [0, 0, 32], sizes = [2, 16, 8], strides = [1, 1, 1]} : vector<2x16x96xbf16> to vector<2x16x8xbf16>
    %358 = vector.extract_strided_slice %355 {offsets = [0, 0, 64], sizes = [2, 16, 8], strides = [1, 1, 1]} : vector<2x16x96xbf16> to vector<2x16x8xbf16>
    "tpu.trace_start"() <{level = 10 : i32, message = "bqd,bkd->bqk"}> : () -> ()
    %cst_153 = arith.constant dense<0.000000e+00> : vector<2x16x16xf32>
    %359 = tpu.matmul %356, %357, %cst_153 {dimension_numbers = #tpu.dot_dimension_numbers<[2], [2], [1], [1], [0, 0, 0, 1, 1, 1], [0], [0]>} : vector<2x16x8xbf16>, vector<2x16x8xbf16>, vector<2x16x16xf32> -> vector<2x16x16xf32>
    "tpu.trace_stop"() : () -> ()
    %cst_154 = arith.constant dense<0xFF800000> : vector<2x16xf32>
    %360 = vector.multi_reduction <maximumf>, %359, %cst_154 [2] : vector<2x16x16xf32> to vector<2x16xf32>
    %361 = vector.shape_cast %360 : vector<2x16xf32> to vector<2x16x1xf32>
    %362 = vector.broadcast %361 : vector<2x16x1xf32> to vector<2x16x16xf32>
    %363 = arith.subf %359, %362 : vector<2x16x16xf32>
    %364 = math.exp %363 : vector<2x16x16xf32>
    %cst_155 = arith.constant dense<0.000000e+00> : vector<2x16xf32>
    %365 = vector.multi_reduction <add>, %364, %cst_155 [2] : vector<2x16x16xf32> to vector<2x16xf32>
    %366 = vector.shape_cast %365 : vector<2x16xf32> to vector<2x16x1xf32>
    %367 = tpu.reciprocal %366 {approx = true} : vector<2x16x1xf32> -> vector<2x16x1xf32>
    %368 = vector.broadcast %367 : vector<2x16x1xf32> to vector<2x16x16xf32>
    %369 = arith.mulf %364, %368 : vector<2x16x16xf32>
    %370 = arith.truncf %369 : vector<2x16x16xf32> to vector<2x16x16xbf16>
    "tpu.trace_start"() <{level = 10 : i32, message = "bqk,bkd->bqd"}> : () -> ()
    %cst_156 = arith.constant dense<0.000000e+00> : vector<2x16x8xf32>
    %371 = tpu.matmul %370, %358, %cst_156 {dimension_numbers = #tpu.dot_dimension_numbers<[2], [1], [1], [2], [0, 0, 0, 1, 1, 2], [0], [0]>} : vector<2x16x16xbf16>, vector<2x16x8xbf16>, vector<2x16x8xf32> -> vector<2x16x8xf32>
    "tpu.trace_stop"() : () -> ()
    %372 = vector.shape_cast %371 : vector<2x16x8xf32> to vector<32x8xf32>
    %c0_157 = arith.constant 0 : index
    %c0_158 = arith.constant 0 : index
    %373 = vector.load %arg7[%c0_157, %c0_158] : memref<32x32xf32, #tpu.memory_space<vmem>>, vector<32x8xf32>
    tpu.vector_store %arg7[%c0_157, %c0_158], %372 {strides = array<i32>} : memref<32x32xf32, #tpu.memory_space<vmem>>, vector<32x8xf32>,
    %374 = vector.extract_strided_slice %355 {offsets = [0, 0, 8], sizes = [2, 16, 8], strides = [1, 1, 1]} : vector<2x16x96xbf16> to vector<2x16x8xbf16>
    %375 = vector.extract_strided_slice %355 {offsets = [0, 0, 40], sizes = [2, 16, 8], strides = [1, 1, 1]} : vector<2x16x96xbf16> to vector<2x16x8xbf16>
    %376 = vector.extract_strided_slice %355 {offsets = [0, 0, 72], sizes = [2, 16, 8], strides = [1, 1, 1]} : vector<2x16x96xbf16> to vector<2x16x8xbf16>
    "tpu.trace_start"() <{level = 10 : i32, message = "bqd,bkd->bqk"}> : () -> ()
    %cst_159 = arith.constant dense<0.000000e+00> : vector<2x16x16xf32>
    %377 = tpu.matmul %374, %375, %cst_159 {dimension_numbers = #tpu.dot_dimension_numbers<[2], [2], [1], [1], [0, 0, 0, 1, 1, 1], [0], [0]>} : vector<2x16x8xbf16>, vector<2x16x8xbf16>, vector<2x16x16xf32> -> vector<2x16x16xf32>
    "tpu.trace_stop"() : () -> ()
    %cst_160 = arith.constant dense<0xFF800000> : vector<2x16xf32>
    %378 = vector.multi_reduction <maximumf>, %377, %cst_160 [2] : vector<2x16x16xf32> to vector<2x16xf32>
    %379 = vector.shape_cast %378 : vector<2x16xf32> to vector<2x16x1xf32>
    %380 = vector.broadcast %379 : vector<2x16x1xf32> to vector<2x16x16xf32>
    %381 = arith.subf %377, %380 : vector<2x16x16xf32>
    %382 = math.exp %381 : vector<2x16x16xf32>
    %cst_161 = arith.constant dense<0.000000e+00> : vector<2x16xf32>
    %383 = vector.multi_reduction <add>, %382, %cst_161 [2] : vector<2x16x16xf32> to vector<2x16xf32>
    %384 = vector.shape_cast %383 : vector<2x16xf32> to vector<2x16x1xf32>
    %385 = tpu.reciprocal %384 {approx = true} : vector<2x16x1xf32> -> vector<2x16x1xf32>
    %386 = vector.broadcast %385 : vector<2x16x1xf32> to vector<2x16x16xf32>
    %387 = arith.mulf %382, %386 : vector<2x16x16xf32>
    %388 = arith.truncf %387 : vector<2x16x16xf32> to vector<2x16x16xbf16>
    "tpu.trace_start"() <{level = 10 : i32, message = "bqk,bkd->bqd"}> : () -> ()
    %cst_162 = arith.constant dense<0.000000e+00> : vector<2x16x8xf32>
    %389 = tpu.matmul %388, %376, %cst_162 {dimension_numbers = #tpu.dot_dimension_numbers<[2], [1], [1], [2], [0, 0, 0, 1, 1, 2], [0], [0]>} : vector<2x16x16xbf16>, vector<2x16x8xbf16>, vector<2x16x8xf32> -> vector<2x16x8xf32>
    "tpu.trace_stop"() : () -> ()
    %390 = vector.shape_cast %389 : vector<2x16x8xf32> to vector<32x8xf32>
    %c0_163 = arith.constant 0 : index
    %c8_164 = arith.constant 8 : index
    %391 = vector.load %arg7[%c0_163, %c8_164] : memref<32x32xf32, #tpu.memory_space<vmem>>, vector<32x8xf32>
    tpu.vector_store %arg7[%c0_163, %c8_164], %390 {strides = array<i32>} : memref<32x32xf32, #tpu.memory_space<vmem>>, vector<32x8xf32>,
    %392 = vector.extract_strided_slice %355 {offsets = [0, 0, 16], sizes = [2, 16, 8], strides = [1, 1, 1]} : vector<2x16x96xbf16> to vector<2x16x8xbf16>
    %393 = vector.extract_strided_slice %355 {offsets = [0, 0, 48], sizes = [2, 16, 8], strides = [1, 1, 1]} : vector<2x16x96xbf16> to vector<2x16x8xbf16>
    %394 = vector.extract_strided_slice %355 {offsets = [0, 0, 80], sizes = [2, 16, 8], strides = [1, 1, 1]} : vector<2x16x96xbf16> to vector<2x16x8xbf16>
    "tpu.trace_start"() <{level = 10 : i32, message = "bqd,bkd->bqk"}> : () -> ()
    %cst_165 = arith.constant dense<0.000000e+00> : vector<2x16x16xf32>
    %395 = tpu.matmul %392, %393, %cst_165 {dimension_numbers = #tpu.dot_dimension_numbers<[2], [2], [1], [1], [0, 0, 0, 1, 1, 1], [0], [0]>} : vector<2x16x8xbf16>, vector<2x16x8xbf16>, vector<2x16x16xf32> -> vector<2x16x16xf32>
    "tpu.trace_stop"() : () -> ()
    %cst_166 = arith.constant dense<0xFF800000> : vector<2x16xf32>
    %396 = vector.multi_reduction <maximumf>, %395, %cst_166 [2] : vector<2x16x16xf32> to vector<2x16xf32>
    %397 = vector.shape_cast %396 : vector<2x16xf32> to vector<2x16x1xf32>
    %398 = vector.broadcast %397 : vector<2x16x1xf32> to vector<2x16x16xf32>
    %399 = arith.subf %395, %398 : vector<2x16x16xf32>
    %400 = math.exp %399 : vector<2x16x16xf32>
    %cst_167 = arith.constant dense<0.000000e+00> : vector<2x16xf32>
    %401 = vector.multi_reduction <add>, %400, %cst_167 [2] : vector<2x16x16xf32> to vector<2x16xf32>
    %402 = vector.shape_cast %401 : vector<2x16xf32> to vector<2x16x1xf32>
    %403 = tpu.reciprocal %402 {approx = true} : vector<2x16x1xf32> -> vector<2x16x1xf32>
    %404 = vector.broadcast %403 : vector<2x16x1xf32> to vector<2x16x16xf32>
    %405 = arith.mulf %400, %404 : vector<2x16x16xf32>
    %406 = arith.truncf %405 : vector<2x16x16xf32> to vector<2x16x16xbf16>
    "tpu.trace_start"() <{level = 10 : i32, message = "bqk,bkd->bqd"}> : () -> ()
    %cst_168 = arith.constant dense<0.000000e+00> : vector<2x16x8xf32>
    %407 = tpu.matmul %406, %394, %cst_168 {dimension_numbers = #tpu.dot_dimension_numbers<[2], [1], [1], [2], [0, 0, 0, 1, 1, 2], [0], [0]>} : vector<2x16x16xbf16>, vector<2x16x8xbf16>, vector<2x16x8xf32> -> vector<2x16x8xf32>
    "tpu.trace_stop"() : () -> ()
    %408 = vector.shape_cast %407 : vector<2x16x8xf32> to vector<32x8xf32>
    %c0_169 = arith.constant 0 : index
    %c16_170 = arith.constant 16 : index
    %409 = vector.load %arg7[%c0_169, %c16_170] : memref<32x32xf32, #tpu.memory_space<vmem>>, vector<32x8xf32>
    tpu.vector_store %arg7[%c0_169, %c16_170], %408 {strides = array<i32>} : memref<32x32xf32, #tpu.memory_space<vmem>>, vector<32x8xf32>,
    %410 = vector.extract_strided_slice %355 {offsets = [0, 0, 24], sizes = [2, 16, 8], strides = [1, 1, 1]} : vector<2x16x96xbf16> to vector<2x16x8xbf16>
    %411 = vector.extract_strided_slice %355 {offsets = [0, 0, 56], sizes = [2, 16, 8], strides = [1, 1, 1]} : vector<2x16x96xbf16> to vector<2x16x8xbf16>
    %412 = vector.extract_strided_slice %355 {offsets = [0, 0, 88], sizes = [2, 16, 8], strides = [1, 1, 1]} : vector<2x16x96xbf16> to vector<2x16x8xbf16>
    "tpu.trace_start"() <{level = 10 : i32, message = "bqd,bkd->bqk"}> : () -> ()
    %cst_171 = arith.constant dense<0.000000e+00> : vector<2x16x16xf32>
    %413 = tpu.matmul %410, %411, %cst_171 {dimension_numbers = #tpu.dot_dimension_numbers<[2], [2], [1], [1], [0, 0, 0, 1, 1, 1], [0], [0]>} : vector<2x16x8xbf16>, vector<2x16x8xbf16>, vector<2x16x16xf32> -> vector<2x16x16xf32>
    "tpu.trace_stop"() : () -> ()
    %cst_172 = arith.constant dense<0xFF800000> : vector<2x16xf32>
    %414 = vector.multi_reduction <maximumf>, %413, %cst_172 [2] : vector<2x16x16xf32> to vector<2x16xf32>
    %415 = vector.shape_cast %414 : vector<2x16xf32> to vector<2x16x1xf32>
    %416 = vector.broadcast %415 : vector<2x16x1xf32> to vector<2x16x16xf32>
    %417 = arith.subf %413, %416 : vector<2x16x16xf32>
    %418 = math.exp %417 : vector<2x16x16xf32>
    %cst_173 = arith.constant dense<0.000000e+00> : vector<2x16xf32>
    %419 = vector.multi_reduction <add>, %418, %cst_173 [2] : vector<2x16x16xf32> to vector<2x16xf32>
    %420 = vector.shape_cast %419 : vector<2x16xf32> to vector<2x16x1xf32>
    %421 = tpu.reciprocal %420 {approx = true} : vector<2x16x1xf32> -> vector<2x16x1xf32>
    %422 = vector.broadcast %421 : vector<2x16x1xf32> to vector<2x16x16xf32>
    %423 = arith.mulf %418, %422 : vector<2x16x16xf32>
    %424 = arith.truncf %423 : vector<2x16x16xf32> to vector<2x16x16xbf16>
    "tpu.trace_start"() <{level = 10 : i32, message = "bqk,bkd->bqd"}> : () -> ()
    %cst_174 = arith.constant dense<0.000000e+00> : vector<2x16x8xf32>
    %425 = tpu.matmul %424, %412, %cst_174 {dimension_numbers = #tpu.dot_dimension_numbers<[2], [1], [1], [2], [0, 0, 0, 1, 1, 2], [0], [0]>} : vector<2x16x16xbf16>, vector<2x16x8xbf16>, vector<2x16x8xf32> -> vector<2x16x8xf32>
    "tpu.trace_stop"() : () -> ()
    %426 = vector.shape_cast %425 : vector<2x16x8xf32> to vector<32x8xf32>
    %c0_175 = arith.constant 0 : index
    %c24_176 = arith.constant 24 : index
    %427 = vector.load %arg7[%c0_175, %c24_176] : memref<32x32xf32, #tpu.memory_space<vmem>>, vector<32x8xf32>
    tpu.vector_store %arg7[%c0_175, %c24_176], %426 {strides = array<i32>} : memref<32x32xf32, #tpu.memory_space<vmem>>, vector<32x8xf32>,
    %c0_177 = arith.constant 0 : index
    %c0_178 = arith.constant 0 : index
    %428 = vector.load %arg7[%c0_177, %c0_178] : memref<32x32xf32, #tpu.memory_space<vmem>>, vector<32x32xf32>
    %c48_179 = arith.constant 48 : index
    %c0_180 = arith.constant 0 : index
    %429 = vector.load %arg3[%c48_179, %c0_180] : memref<368x128xbf16, #tpu.memory_space<vmem>>, vector<32x32xbf16>
    %430 = arith.truncf %428 : vector<32x32xf32> to vector<32x32xbf16>
    %cst_181 = arith.constant dense<0.000000e+00> : vector<32x32xf32>
    %431 = tpu.matmul %430, %429, %cst_181 {dimension_numbers = #tpu.dot_dimension_numbers<[1], [0], [0], [1], [0, 0, 1, 1], [], []>} : vector<32x32xbf16>, vector<32x32xbf16>, vector<32x32xf32> -> vector<32x32xf32>
    %432 = arith.addf %325, %431 : vector<32x32xf32>
    %c1_182 = arith.constant 1 : index
    %c0_183 = arith.constant 0 : index
    %433 = vector.load %arg4[%c1_182, %c0_183] : memref<24x128xf32, #tpu.memory_space<vmem>>, vector<1x32xf32>
    %434 = vector.broadcast %433 : vector<1x32xf32> to vector<32x32xf32>
    %435 = arith.addf %432, %434 : vector<32x32xf32>
    %c6_184 = arith.constant 6 : index
    %c0_185 = arith.constant 0 : index
    %436 = vector.load %arg4[%c6_184, %c0_185] : memref<24x128xf32, #tpu.memory_space<vmem>>, vector<1x32xf32>
    %c7_186 = arith.constant 7 : index
    %c0_187 = arith.constant 0 : index
    %437 = vector.load %arg4[%c7_186, %c0_187] : memref<24x128xf32, #tpu.memory_space<vmem>>, vector<1x32xf32>
    %cst_188 = arith.constant dense<0.000000e+00> : vector<32xf32>
    %438 = vector.multi_reduction <add>, %435, %cst_188 [1] : vector<32x32xf32> to vector<32xf32>
    %439 = vector.shape_cast %438 : vector<32xf32> to vector<32x1xf32>
    %cst_189 = arith.constant 3.200000e+01 : f32
    %440 = vector.broadcast %cst_189 : f32 to vector<32x1xf32>
    %441 = arith.divf %439, %440 : vector<32x1xf32>
    %442 = vector.broadcast %441 : vector<32x1xf32> to vector<32x32xf32>
    %443 = arith.subf %435, %442 : vector<32x32xf32>
    %444 = arith.mulf %443, %443 : vector<32x32xf32>
    %cst_190 = arith.constant dense<0.000000e+00> : vector<32xf32>
    %445 = vector.multi_reduction <add>, %444, %cst_190 [1] : vector<32x32xf32> to vector<32xf32>
    %446 = vector.shape_cast %445 : vector<32xf32> to vector<32x1xf32>
    %cst_191 = arith.constant 3.200000e+01 : f32
    %447 = vector.broadcast %cst_191 : f32 to vector<32x1xf32>
    %448 = arith.divf %446, %447 : vector<32x1xf32>
    %cst_192 = arith.constant 9.99999974E-6 : f32
    %449 = vector.broadcast %cst_192 : f32 to vector<32x1xf32>
    %450 = arith.addf %448, %449 : vector<32x1xf32>
    %451 = math.rsqrt %450 : vector<32x1xf32>
    %452 = vector.broadcast %451 : vector<32x1xf32> to vector<32x32xf32>
    %453 = arith.mulf %443, %452 : vector<32x32xf32>
    %454 = vector.broadcast %436 : vector<1x32xf32> to vector<32x32xf32>
    %455 = arith.mulf %453, %454 : vector<32x32xf32>
    %456 = vector.broadcast %437 : vector<1x32xf32> to vector<32x32xf32>
    %457 = arith.addf %455, %456 : vector<32x32xf32>
    %c80_193 = arith.constant 80 : index
    %c0_194 = arith.constant 0 : index
    %458 = vector.load %arg3[%c80_193, %c0_194] : memref<368x128xbf16, #tpu.memory_space<vmem>>, vector<32x64xbf16>
    %459 = arith.truncf %457 : vector<32x32xf32> to vector<32x32xbf16>
    %cst_195 = arith.constant dense<0.000000e+00> : vector<32x64xf32>
    %460 = tpu.matmul %459, %458, %cst_195 {dimension_numbers = #tpu.dot_dimension_numbers<[1], [0], [0], [1], [0, 0, 1, 1], [], []>} : vector<32x32xbf16>, vector<32x64xbf16>, vector<32x64xf32> -> vector<32x64xf32>
    %c2_196 = arith.constant 2 : index
    %c0_197 = arith.constant 0 : index
    %461 = vector.load %arg4[%c2_196, %c0_197] : memref<24x128xf32, #tpu.memory_space<vmem>>, vector<1x64xf32>
    %462 = vector.broadcast %461 : vector<1x64xf32> to vector<32x64xf32>
    %463 = arith.addf %460, %462 : vector<32x64xf32>
    %cst_198 = arith.constant 0.000000e+00 : f32
    %464 = vector.broadcast %cst_198 : f32 to vector<32x64xf32>
    %465 = arith.maximumf %463, %464 : vector<32x64xf32>
    %c112_199 = arith.constant 112 : index
    %c0_200 = arith.constant 0 : index
    %466 = vector.load %arg3[%c112_199, %c0_200] : memref<368x128xbf16, #tpu.memory_space<vmem>>, vector<64x32xbf16>
    %467 = arith.truncf %465 : vector<32x64xf32> to vector<32x64xbf16>
    %cst_201 = arith.constant dense<0.000000e+00> : vector<32x32xf32>
    %468 = tpu.matmul %467, %466, %cst_201 {dimension_numbers = #tpu.dot_dimension_numbers<[1], [0], [0], [1], [0, 0, 1, 1], [], []>} : vector<32x64xbf16>, vector<64x32xbf16>, vector<32x32xf32> -> vector<32x32xf32>
    %469 = arith.addf %435, %468 : vector<32x32xf32>
    %c3_202 = arith.constant 3 : index
    %c0_203 = arith.constant 0 : index
    %470 = vector.load %arg4[%c3_202, %c0_203] : memref<24x128xf32, #tpu.memory_space<vmem>>, vector<1x32xf32>
    %471 = vector.broadcast %470 : vector<1x32xf32> to vector<32x32xf32>
    %472 = arith.addf %469, %471 : vector<32x32xf32>
    %c12_204 = arith.constant 12 : index
    %c0_205 = arith.constant 0 : index
    %473 = vector.load %arg4[%c12_204, %c0_205] : memref<24x128xf32, #tpu.memory_space<vmem>>, vector<1x32xf32>
    %c13_206 = arith.constant 13 : index
    %c0_207 = arith.constant 0 : index
    %474 = vector.load %arg4[%c13_206, %c0_207] : memref<24x128xf32, #tpu.memory_space<vmem>>, vector<1x32xf32>
    %cst_208 = arith.constant dense<0.000000e+00> : vector<32xf32>
    %475 = vector.multi_reduction <add>, %472, %cst_208 [1] : vector<32x32xf32> to vector<32xf32>
    %476 = vector.shape_cast %475 : vector<32xf32> to vector<32x1xf32>
    %cst_209 = arith.constant 3.200000e+01 : f32
    %477 = vector.broadcast %cst_209 : f32 to vector<32x1xf32>
    %478 = arith.divf %476, %477 : vector<32x1xf32>
    %479 = vector.broadcast %478 : vector<32x1xf32> to vector<32x32xf32>
    %480 = arith.subf %472, %479 : vector<32x32xf32>
    %481 = arith.mulf %480, %480 : vector<32x32xf32>
    %cst_210 = arith.constant dense<0.000000e+00> : vector<32xf32>
    %482 = vector.multi_reduction <add>, %481, %cst_210 [1] : vector<32x32xf32> to vector<32xf32>
    %483 = vector.shape_cast %482 : vector<32xf32> to vector<32x1xf32>
    %cst_211 = arith.constant 3.200000e+01 : f32
    %484 = vector.broadcast %cst_211 : f32 to vector<32x1xf32>
    %485 = arith.divf %483, %484 : vector<32x1xf32>
    %cst_212 = arith.constant 9.99999974E-6 : f32
    %486 = vector.broadcast %cst_212 : f32 to vector<32x1xf32>
    %487 = arith.addf %485, %486 : vector<32x1xf32>
    %488 = math.rsqrt %487 : vector<32x1xf32>
    %489 = vector.broadcast %488 : vector<32x1xf32> to vector<32x32xf32>
    %490 = arith.mulf %480, %489 : vector<32x32xf32>
    %491 = vector.broadcast %473 : vector<1x32xf32> to vector<32x32xf32>
    %492 = arith.mulf %490, %491 : vector<32x32xf32>
    %493 = vector.broadcast %474 : vector<1x32xf32> to vector<32x32xf32>
    %494 = arith.addf %492, %493 : vector<32x32xf32>
    %c176_213 = arith.constant 176 : index
    %c0_214 = arith.constant 0 : index
    %495 = vector.load %arg3[%c176_213, %c0_214] : memref<368x128xbf16, #tpu.memory_space<vmem>>, vector<32x96xbf16>
    %496 = arith.truncf %494 : vector<32x32xf32> to vector<32x32xbf16>
    %cst_215 = arith.constant dense<0.000000e+00> : vector<32x96xf32>
    %497 = tpu.matmul %496, %495, %cst_215 {dimension_numbers = #tpu.dot_dimension_numbers<[1], [0], [0], [1], [0, 0, 1, 1], [], []>} : vector<32x32xbf16>, vector<32x96xbf16>, vector<32x96xf32> -> vector<32x96xf32>
    %c8_216 = arith.constant 8 : index
    %c0_217 = arith.constant 0 : index
    %498 = vector.load %arg4[%c8_216, %c0_217] : memref<24x128xf32, #tpu.memory_space<vmem>>, vector<1x96xf32>
    %499 = vector.broadcast %498 : vector<1x96xf32> to vector<32x96xf32>
    %500 = arith.addf %497, %499 : vector<32x96xf32>
    %501 = arith.truncf %500 : vector<32x96xf32> to vector<32x96xbf16>
    %502 = vector.shape_cast %501 : vector<32x96xbf16> to vector<2x16x96xbf16>
    %503 = vector.extract_strided_slice %502 {offsets = [0, 0, 0], sizes = [2, 16, 8], strides = [1, 1, 1]} : vector<2x16x96xbf16> to vector<2x16x8xbf16>
    %504 = vector.extract_strided_slice %502 {offsets = [0, 0, 32], sizes = [2, 16, 8], strides = [1, 1, 1]} : vector<2x16x96xbf16> to vector<2x16x8xbf16>
    %505 = vector.extract_strided_slice %502 {offsets = [0, 0, 64], sizes = [2, 16, 8], strides = [1, 1, 1]} : vector<2x16x96xbf16> to vector<2x16x8xbf16>
    "tpu.trace_start"() <{level = 10 : i32, message = "bqd,bkd->bqk"}> : () -> ()
    %cst_218 = arith.constant dense<0.000000e+00> : vector<2x16x16xf32>
    %506 = tpu.matmul %503, %504, %cst_218 {dimension_numbers = #tpu.dot_dimension_numbers<[2], [2], [1], [1], [0, 0, 0, 1, 1, 1], [0], [0]>} : vector<2x16x8xbf16>, vector<2x16x8xbf16>, vector<2x16x16xf32> -> vector<2x16x16xf32>
    "tpu.trace_stop"() : () -> ()
    %cst_219 = arith.constant dense<0xFF800000> : vector<2x16xf32>
    %507 = vector.multi_reduction <maximumf>, %506, %cst_219 [2] : vector<2x16x16xf32> to vector<2x16xf32>
    %508 = vector.shape_cast %507 : vector<2x16xf32> to vector<2x16x1xf32>
    %509 = vector.broadcast %508 : vector<2x16x1xf32> to vector<2x16x16xf32>
    %510 = arith.subf %506, %509 : vector<2x16x16xf32>
    %511 = math.exp %510 : vector<2x16x16xf32>
    %cst_220 = arith.constant dense<0.000000e+00> : vector<2x16xf32>
    %512 = vector.multi_reduction <add>, %511, %cst_220 [2] : vector<2x16x16xf32> to vector<2x16xf32>
    %513 = vector.shape_cast %512 : vector<2x16xf32> to vector<2x16x1xf32>
    %514 = tpu.reciprocal %513 {approx = true} : vector<2x16x1xf32> -> vector<2x16x1xf32>
    %515 = vector.broadcast %514 : vector<2x16x1xf32> to vector<2x16x16xf32>
    %516 = arith.mulf %511, %515 : vector<2x16x16xf32>
    %517 = arith.truncf %516 : vector<2x16x16xf32> to vector<2x16x16xbf16>
    "tpu.trace_start"() <{level = 10 : i32, message = "bqk,bkd->bqd"}> : () -> ()
    %cst_221 = arith.constant dense<0.000000e+00> : vector<2x16x8xf32>
    %518 = tpu.matmul %517, %505, %cst_221 {dimension_numbers = #tpu.dot_dimension_numbers<[2], [1], [1], [2], [0, 0, 0, 1, 1, 2], [0], [0]>} : vector<2x16x16xbf16>, vector<2x16x8xbf16>, vector<2x16x8xf32> -> vector<2x16x8xf32>
    "tpu.trace_stop"() : () -> ()
    %519 = vector.shape_cast %518 : vector<2x16x8xf32> to vector<32x8xf32>
    %c0_222 = arith.constant 0 : index
    %c0_223 = arith.constant 0 : index
    %520 = vector.load %arg7[%c0_222, %c0_223] : memref<32x32xf32, #tpu.memory_space<vmem>>, vector<32x8xf32>
    tpu.vector_store %arg7[%c0_222, %c0_223], %519 {strides = array<i32>} : memref<32x32xf32, #tpu.memory_space<vmem>>, vector<32x8xf32>,
    %521 = vector.extract_strided_slice %502 {offsets = [0, 0, 8], sizes = [2, 16, 8], strides = [1, 1, 1]} : vector<2x16x96xbf16> to vector<2x16x8xbf16>
    %522 = vector.extract_strided_slice %502 {offsets = [0, 0, 40], sizes = [2, 16, 8], strides = [1, 1, 1]} : vector<2x16x96xbf16> to vector<2x16x8xbf16>
    %523 = vector.extract_strided_slice %502 {offsets = [0, 0, 72], sizes = [2, 16, 8], strides = [1, 1, 1]} : vector<2x16x96xbf16> to vector<2x16x8xbf16>
    "tpu.trace_start"() <{level = 10 : i32, message = "bqd,bkd->bqk"}> : () -> ()
    %cst_224 = arith.constant dense<0.000000e+00> : vector<2x16x16xf32>
    %524 = tpu.matmul %521, %522, %cst_224 {dimension_numbers = #tpu.dot_dimension_numbers<[2], [2], [1], [1], [0, 0, 0, 1, 1, 1], [0], [0]>} : vector<2x16x8xbf16>, vector<2x16x8xbf16>, vector<2x16x16xf32> -> vector<2x16x16xf32>
    "tpu.trace_stop"() : () -> ()
    %cst_225 = arith.constant dense<0xFF800000> : vector<2x16xf32>
    %525 = vector.multi_reduction <maximumf>, %524, %cst_225 [2] : vector<2x16x16xf32> to vector<2x16xf32>
    %526 = vector.shape_cast %525 : vector<2x16xf32> to vector<2x16x1xf32>
    %527 = vector.broadcast %526 : vector<2x16x1xf32> to vector<2x16x16xf32>
    %528 = arith.subf %524, %527 : vector<2x16x16xf32>
    %529 = math.exp %528 : vector<2x16x16xf32>
    %cst_226 = arith.constant dense<0.000000e+00> : vector<2x16xf32>
    %530 = vector.multi_reduction <add>, %529, %cst_226 [2] : vector<2x16x16xf32> to vector<2x16xf32>
    %531 = vector.shape_cast %530 : vector<2x16xf32> to vector<2x16x1xf32>
    %532 = tpu.reciprocal %531 {approx = true} : vector<2x16x1xf32> -> vector<2x16x1xf32>
    %533 = vector.broadcast %532 : vector<2x16x1xf32> to vector<2x16x16xf32>
    %534 = arith.mulf %529, %533 : vector<2x16x16xf32>
    %535 = arith.truncf %534 : vector<2x16x16xf32> to vector<2x16x16xbf16>
    "tpu.trace_start"() <{level = 10 : i32, message = "bqk,bkd->bqd"}> : () -> ()
    %cst_227 = arith.constant dense<0.000000e+00> : vector<2x16x8xf32>
    %536 = tpu.matmul %535, %523, %cst_227 {dimension_numbers = #tpu.dot_dimension_numbers<[2], [1], [1], [2], [0, 0, 0, 1, 1, 2], [0], [0]>} : vector<2x16x16xbf16>, vector<2x16x8xbf16>, vector<2x16x8xf32> -> vector<2x16x8xf32>
    "tpu.trace_stop"() : () -> ()
    %537 = vector.shape_cast %536 : vector<2x16x8xf32> to vector<32x8xf32>
    %c0_228 = arith.constant 0 : index
    %c8_229 = arith.constant 8 : index
    %538 = vector.load %arg7[%c0_228, %c8_229] : memref<32x32xf32, #tpu.memory_space<vmem>>, vector<32x8xf32>
    tpu.vector_store %arg7[%c0_228, %c8_229], %537 {strides = array<i32>} : memref<32x32xf32, #tpu.memory_space<vmem>>, vector<32x8xf32>,
    %539 = vector.extract_strided_slice %502 {offsets = [0, 0, 16], sizes = [2, 16, 8], strides = [1, 1, 1]} : vector<2x16x96xbf16> to vector<2x16x8xbf16>
    %540 = vector.extract_strided_slice %502 {offsets = [0, 0, 48], sizes = [2, 16, 8], strides = [1, 1, 1]} : vector<2x16x96xbf16> to vector<2x16x8xbf16>
    %541 = vector.extract_strided_slice %502 {offsets = [0, 0, 80], sizes = [2, 16, 8], strides = [1, 1, 1]} : vector<2x16x96xbf16> to vector<2x16x8xbf16>
    "tpu.trace_start"() <{level = 10 : i32, message = "bqd,bkd->bqk"}> : () -> ()
    %cst_230 = arith.constant dense<0.000000e+00> : vector<2x16x16xf32>
    %542 = tpu.matmul %539, %540, %cst_230 {dimension_numbers = #tpu.dot_dimension_numbers<[2], [2], [1], [1], [0, 0, 0, 1, 1, 1], [0], [0]>} : vector<2x16x8xbf16>, vector<2x16x8xbf16>, vector<2x16x16xf32> -> vector<2x16x16xf32>
    "tpu.trace_stop"() : () -> ()
    %cst_231 = arith.constant dense<0xFF800000> : vector<2x16xf32>
    %543 = vector.multi_reduction <maximumf>, %542, %cst_231 [2] : vector<2x16x16xf32> to vector<2x16xf32>
    %544 = vector.shape_cast %543 : vector<2x16xf32> to vector<2x16x1xf32>
    %545 = vector.broadcast %544 : vector<2x16x1xf32> to vector<2x16x16xf32>
    %546 = arith.subf %542, %545 : vector<2x16x16xf32>
    %547 = math.exp %546 : vector<2x16x16xf32>
    %cst_232 = arith.constant dense<0.000000e+00> : vector<2x16xf32>
    %548 = vector.multi_reduction <add>, %547, %cst_232 [2] : vector<2x16x16xf32> to vector<2x16xf32>
    %549 = vector.shape_cast %548 : vector<2x16xf32> to vector<2x16x1xf32>
    %550 = tpu.reciprocal %549 {approx = true} : vector<2x16x1xf32> -> vector<2x16x1xf32>
    %551 = vector.broadcast %550 : vector<2x16x1xf32> to vector<2x16x16xf32>
    %552 = arith.mulf %547, %551 : vector<2x16x16xf32>
    %553 = arith.truncf %552 : vector<2x16x16xf32> to vector<2x16x16xbf16>
    "tpu.trace_start"() <{level = 10 : i32, message = "bqk,bkd->bqd"}> : () -> ()
    %cst_233 = arith.constant dense<0.000000e+00> : vector<2x16x8xf32>
    %554 = tpu.matmul %553, %541, %cst_233 {dimension_numbers = #tpu.dot_dimension_numbers<[2], [1], [1], [2], [0, 0, 0, 1, 1, 2], [0], [0]>} : vector<2x16x16xbf16>, vector<2x16x8xbf16>, vector<2x16x8xf32> -> vector<2x16x8xf32>
    "tpu.trace_stop"() : () -> ()
    %555 = vector.shape_cast %554 : vector<2x16x8xf32> to vector<32x8xf32>
    %c0_234 = arith.constant 0 : index
    %c16_235 = arith.constant 16 : index
    %556 = vector.load %arg7[%c0_234, %c16_235] : memref<32x32xf32, #tpu.memory_space<vmem>>, vector<32x8xf32>
    tpu.vector_store %arg7[%c0_234, %c16_235], %555 {strides = array<i32>} : memref<32x32xf32, #tpu.memory_space<vmem>>, vector<32x8xf32>,
    %557 = vector.extract_strided_slice %502 {offsets = [0, 0, 24], sizes = [2, 16, 8], strides = [1, 1, 1]} : vector<2x16x96xbf16> to vector<2x16x8xbf16>
    %558 = vector.extract_strided_slice %502 {offsets = [0, 0, 56], sizes = [2, 16, 8], strides = [1, 1, 1]} : vector<2x16x96xbf16> to vector<2x16x8xbf16>
    %559 = vector.extract_strided_slice %502 {offsets = [0, 0, 88], sizes = [2, 16, 8], strides = [1, 1, 1]} : vector<2x16x96xbf16> to vector<2x16x8xbf16>
    "tpu.trace_start"() <{level = 10 : i32, message = "bqd,bkd->bqk"}> : () -> ()
    %cst_236 = arith.constant dense<0.000000e+00> : vector<2x16x16xf32>
    %560 = tpu.matmul %557, %558, %cst_236 {dimension_numbers = #tpu.dot_dimension_numbers<[2], [2], [1], [1], [0, 0, 0, 1, 1, 1], [0], [0]>} : vector<2x16x8xbf16>, vector<2x16x8xbf16>, vector<2x16x16xf32> -> vector<2x16x16xf32>
    "tpu.trace_stop"() : () -> ()
    %cst_237 = arith.constant dense<0xFF800000> : vector<2x16xf32>
    %561 = vector.multi_reduction <maximumf>, %560, %cst_237 [2] : vector<2x16x16xf32> to vector<2x16xf32>
    %562 = vector.shape_cast %561 : vector<2x16xf32> to vector<2x16x1xf32>
    %563 = vector.broadcast %562 : vector<2x16x1xf32> to vector<2x16x16xf32>
    %564 = arith.subf %560, %563 : vector<2x16x16xf32>
    %565 = math.exp %564 : vector<2x16x16xf32>
    %cst_238 = arith.constant dense<0.000000e+00> : vector<2x16xf32>
    %566 = vector.multi_reduction <add>, %565, %cst_238 [2] : vector<2x16x16xf32> to vector<2x16xf32>
    %567 = vector.shape_cast %566 : vector<2x16xf32> to vector<2x16x1xf32>
    %568 = tpu.reciprocal %567 {approx = true} : vector<2x16x1xf32> -> vector<2x16x1xf32>
    %569 = vector.broadcast %568 : vector<2x16x1xf32> to vector<2x16x16xf32>
    %570 = arith.mulf %565, %569 : vector<2x16x16xf32>
    %571 = arith.truncf %570 : vector<2x16x16xf32> to vector<2x16x16xbf16>
    "tpu.trace_start"() <{level = 10 : i32, message = "bqk,bkd->bqd"}> : () -> ()
    %cst_239 = arith.constant dense<0.000000e+00> : vector<2x16x8xf32>
    %572 = tpu.matmul %571, %559, %cst_239 {dimension_numbers = #tpu.dot_dimension_numbers<[2], [1], [1], [2], [0, 0, 0, 1, 1, 2], [0], [0]>} : vector<2x16x16xbf16>, vector<2x16x8xbf16>, vector<2x16x8xf32> -> vector<2x16x8xf32>
    "tpu.trace_stop"() : () -> ()
    %573 = vector.shape_cast %572 : vector<2x16x8xf32> to vector<32x8xf32>
    %c0_240 = arith.constant 0 : index
    %c24_241 = arith.constant 24 : index
    %574 = vector.load %arg7[%c0_240, %c24_241] : memref<32x32xf32, #tpu.memory_space<vmem>>, vector<32x8xf32>
    tpu.vector_store %arg7[%c0_240, %c24_241], %573 {strides = array<i32>} : memref<32x32xf32, #tpu.memory_space<vmem>>, vector<32x8xf32>,
    %c0_242 = arith.constant 0 : index
    %c0_243 = arith.constant 0 : index
    %575 = vector.load %arg7[%c0_242, %c0_243] : memref<32x32xf32, #tpu.memory_space<vmem>>, vector<32x32xf32>
    %c208_244 = arith.constant 208 : index
    %c0_245 = arith.constant 0 : index
    %576 = vector.load %arg3[%c208_244, %c0_245] : memref<368x128xbf16, #tpu.memory_space<vmem>>, vector<32x32xbf16>
    %577 = arith.truncf %575 : vector<32x32xf32> to vector<32x32xbf16>
    %cst_246 = arith.constant dense<0.000000e+00> : vector<32x32xf32>
    %578 = tpu.matmul %577, %576, %cst_246 {dimension_numbers = #tpu.dot_dimension_numbers<[1], [0], [0], [1], [0, 0, 1, 1], [], []>} : vector<32x32xbf16>, vector<32x32xbf16>, vector<32x32xf32> -> vector<32x32xf32>
    %579 = arith.addf %472, %578 : vector<32x32xf32>
    %c9_247 = arith.constant 9 : index
    %c0_248 = arith.constant 0 : index
    %580 = vector.load %arg4[%c9_247, %c0_248] : memref<24x128xf32, #tpu.memory_space<vmem>>, vector<1x32xf32>
    %581 = vector.broadcast %580 : vector<1x32xf32> to vector<32x32xf32>
    %582 = arith.addf %579, %581 : vector<32x32xf32>
    %c14_249 = arith.constant 14 : index
    %c0_250 = arith.constant 0 : index
    %583 = vector.load %arg4[%c14_249, %c0_250] : memref<24x128xf32, #tpu.memory_space<vmem>>, vector<1x32xf32>
    %c15_251 = arith.constant 15 : index
    %c0_252 = arith.constant 0 : index
    %584 = vector.load %arg4[%c15_251, %c0_252] : memref<24x128xf32, #tpu.memory_space<vmem>>, vector<1x32xf32>
    %cst_253 = arith.constant dense<0.000000e+00> : vector<32xf32>
    %585 = vector.multi_reduction <add>, %582, %cst_253 [1] : vector<32x32xf32> to vector<32xf32>
    %586 = vector.shape_cast %585 : vector<32xf32> to vector<32x1xf32>
    %cst_254 = arith.constant 3.200000e+01 : f32
    %587 = vector.broadcast %cst_254 : f32 to vector<32x1xf32>
    %588 = arith.divf %586, %587 : vector<32x1xf32>
    %589 = vector.broadcast %588 : vector<32x1xf32> to vector<32x32xf32>
    %590 = arith.subf %582, %589 : vector<32x32xf32>
    %591 = arith.mulf %590, %590 : vector<32x32xf32>
    %cst_255 = arith.constant dense<0.000000e+00> : vector<32xf32>
    %592 = vector.multi_reduction <add>, %591, %cst_255 [1] : vector<32x32xf32> to vector<32xf32>
    %593 = vector.shape_cast %592 : vector<32xf32> to vector<32x1xf32>
    %cst_256 = arith.constant 3.200000e+01 : f32
    %594 = vector.broadcast %cst_256 : f32 to vector<32x1xf32>
    %595 = arith.divf %593, %594 : vector<32x1xf32>
    %cst_257 = arith.constant 9.99999974E-6 : f32
    %596 = vector.broadcast %cst_257 : f32 to vector<32x1xf32>
    %597 = arith.addf %595, %596 : vector<32x1xf32>
    %598 = math.rsqrt %597 : vector<32x1xf32>
    %599 = vector.broadcast %598 : vector<32x1xf32> to vector<32x32xf32>
    %600 = arith.mulf %590, %599 : vector<32x32xf32>
    %601 = vector.broadcast %583 : vector<1x32xf32> to vector<32x32xf32>
    %602 = arith.mulf %600, %601 : vector<32x32xf32>
    %603 = vector.broadcast %584 : vector<1x32xf32> to vector<32x32xf32>
    %604 = arith.addf %602, %603 : vector<32x32xf32>
    %c240_258 = arith.constant 240 : index
    %c0_259 = arith.constant 0 : index
    %605 = vector.load %arg3[%c240_258, %c0_259] : memref<368x128xbf16, #tpu.memory_space<vmem>>, vector<32x64xbf16>
    %606 = arith.truncf %604 : vector<32x32xf32> to vector<32x32xbf16>
    %cst_260 = arith.constant dense<0.000000e+00> : vector<32x64xf32>
    %607 = tpu.matmul %606, %605, %cst_260 {dimension_numbers = #tpu.dot_dimension_numbers<[1], [0], [0], [1], [0, 0, 1, 1], [], []>} : vector<32x32xbf16>, vector<32x64xbf16>, vector<32x64xf32> -> vector<32x64xf32>
    %c10_261 = arith.constant 10 : index
    %c0_262 = arith.constant 0 : index
    %608 = vector.load %arg4[%c10_261, %c0_262] : memref<24x128xf32, #tpu.memory_space<vmem>>, vector<1x64xf32>
    %609 = vector.broadcast %608 : vector<1x64xf32> to vector<32x64xf32>
    %610 = arith.addf %607, %609 : vector<32x64xf32>
    %cst_263 = arith.constant 0.000000e+00 : f32
    %611 = vector.broadcast %cst_263 : f32 to vector<32x64xf32>
    %612 = arith.maximumf %610, %611 : vector<32x64xf32>
    %c272_264 = arith.constant 272 : index
    %c0_265 = arith.constant 0 : index
    %613 = vector.load %arg3[%c272_264, %c0_265] : memref<368x128xbf16, #tpu.memory_space<vmem>>, vector<64x32xbf16>
    %614 = arith.truncf %612 : vector<32x64xf32> to vector<32x64xbf16>
    %cst_266 = arith.constant dense<0.000000e+00> : vector<32x32xf32>
    %615 = tpu.matmul %614, %613, %cst_266 {dimension_numbers = #tpu.dot_dimension_numbers<[1], [0], [0], [1], [0, 0, 1, 1], [], []>} : vector<32x64xbf16>, vector<64x32xbf16>, vector<32x32xf32> -> vector<32x32xf32>
    %616 = arith.addf %582, %615 : vector<32x32xf32>
    %c11_267 = arith.constant 11 : index
    %c0_268 = arith.constant 0 : index
    %617 = vector.load %arg4[%c11_267, %c0_268] : memref<24x128xf32, #tpu.memory_space<vmem>>, vector<1x32xf32>
    %618 = vector.broadcast %617 : vector<1x32xf32> to vector<32x32xf32>
    %619 = arith.addf %616, %618 : vector<32x32xf32>
    %c336_269 = arith.constant 336 : index
    %c0_270 = arith.constant 0 : index
    %620 = vector.load %arg3[%c336_269, %c0_270] : memref<368x128xbf16, #tpu.memory_space<vmem>>, vector<32x16xbf16>
    %621 = arith.truncf %619 : vector<32x32xf32> to vector<32x32xbf16>
    %cst_271 = arith.constant dense<0.000000e+00> : vector<32x16xf32>
    %622 = tpu.matmul %621, %620, %cst_271 {dimension_numbers = #tpu.dot_dimension_numbers<[1], [0], [0], [1], [0, 0, 1, 1], [], []>} : vector<32x32xbf16>, vector<32x16xbf16>, vector<32x16xf32> -> vector<32x16xf32>
    %c16_272 = arith.constant 16 : index
    %c0_273 = arith.constant 0 : index
    %623 = vector.load %arg4[%c16_272, %c0_273] : memref<24x128xf32, #tpu.memory_space<vmem>>, vector<1x16xf32>
    %624 = vector.broadcast %623 : vector<1x16xf32> to vector<32x16xf32>
    %625 = arith.addf %622, %624 : vector<32x16xf32>
    %626 = vector.shape_cast %625 : vector<32x16xf32> to vector<2x16x16xf32>
    %627 = vector.extract_strided_slice %626 {offsets = [0, 12, 0], sizes = [2, 4, 16], strides = [1, 1, 1]} : vector<2x16x16xf32> to vector<2x4x16xf32>
    %628 = vector.extract_strided_slice %320 {offsets = [0, 12, 0], sizes = [2, 4, 16], strides = [1, 1, 1]} : vector<2x16x16xf32> to vector<2x4x16xf32>
    %629 = arith.addf %627, %628 : vector<2x4x16xf32>
    %c0_274 = arith.constant 0 : index
    %c1_275 = arith.constant 1 : index
    %c0_276 = arith.constant 0 : index
    %c0_277 = arith.constant 0 : index
    %630 = vector.load %arg5[%c0_274, %c1_275, %c0_276, %c0_277] : memref<2x3x4x16xf32, #tpu.memory_space<vmem>>, vector<2x1x4x16xf32>
    %631 = vector.shape_cast %630 : vector<2x1x4x16xf32> to vector<2x4x16xf32>
    %632 = vector.shape_cast %629 : vector<2x4x16xf32> to vector<2x1x4x16xf32>
    tpu.vector_store %arg5[%c0_274, %c1_275, %c0_276, %c0_277], %632 {strides = array<i32>} : memref<2x3x4x16xf32, #tpu.memory_space<vmem>>, vector<2x1x4x16xf32>,
    %633 = vector.extract_strided_slice %320 {offsets = [0, 4, 0], sizes = [2, 12, 16], strides = [1, 1, 1]} : vector<2x16x16xf32> to vector<2x12x16xf32>
    %c0_278 = arith.constant 0 : index
    %c0_279 = arith.constant 0 : index
    %c0_280 = arith.constant 0 : index
    %634 = vector.load %arg6[%c0_278, %c0_279, %c0_280] : memref<2x16x16xf32, #tpu.memory_space<vmem>>, vector<2x12x16xf32>
    tpu.vector_store %arg6[%c0_278, %c0_279, %c0_280], %633 {strides = array<i32>} : memref<2x16x16xf32, #tpu.memory_space<vmem>>, vector<2x12x16xf32>,
    %c0_281 = arith.constant 0 : index
    %c12_282 = arith.constant 12 : index
    %c0_283 = arith.constant 0 : index
    %635 = vector.load %arg6[%c0_281, %c12_282, %c0_283] : memref<2x16x16xf32, #tpu.memory_space<vmem>>, vector<2x4x16xf32>
    tpu.vector_store %arg6[%c0_281, %c12_282, %c0_283], %629 {strides = array<i32>} : memref<2x16x16xf32, #tpu.memory_space<vmem>>, vector<2x4x16xf32>,
    %c0_284 = arith.constant 0 : index
    %c0_285 = arith.constant 0 : index
    %c0_286 = arith.constant 0 : index
    %636 = vector.load %arg6[%c0_284, %c0_285, %c0_286] : memref<2x16x16xf32, #tpu.memory_space<vmem>>, vector<2x16x16xf32>
    %637 = vector.shape_cast %636 : vector<2x16x16xf32> to vector<32x16xf32>
    %c0_287 = arith.constant 0 : index
    %c0_288 = arith.constant 0 : index
    %638 = vector.load %arg3[%c0_287, %c0_288] : memref<368x128xbf16, #tpu.memory_space<vmem>>, vector<16x32xbf16>
    %639 = arith.truncf %637 : vector<32x16xf32> to vector<32x16xbf16>
    %cst_289 = arith.constant dense<0.000000e+00> : vector<32x32xf32>
    %640 = tpu.matmul %639, %638, %cst_289 {dimension_numbers = #tpu.dot_dimension_numbers<[1], [0], [0], [1], [0, 0, 1, 1], [], []>} : vector<32x16xbf16>, vector<16x32xbf16>, vector<32x32xf32> -> vector<32x32xf32>
    %641 = arith.addf %640, %3 : vector<32x32xf32>
    %c4_290 = arith.constant 4 : index
    %c0_291 = arith.constant 0 : index
    %642 = vector.load %arg4[%c4_290, %c0_291] : memref<24x128xf32, #tpu.memory_space<vmem>>, vector<1x32xf32>
    %c5_292 = arith.constant 5 : index
    %c0_293 = arith.constant 0 : index
    %643 = vector.load %arg4[%c5_292, %c0_293] : memref<24x128xf32, #tpu.memory_space<vmem>>, vector<1x32xf32>
    %cst_294 = arith.constant dense<0.000000e+00> : vector<32xf32>
    %644 = vector.multi_reduction <add>, %641, %cst_294 [1] : vector<32x32xf32> to vector<32xf32>
    %645 = vector.shape_cast %644 : vector<32xf32> to vector<32x1xf32>
    %cst_295 = arith.constant 3.200000e+01 : f32
    %646 = vector.broadcast %cst_295 : f32 to vector<32x1xf32>
    %647 = arith.divf %645, %646 : vector<32x1xf32>
    %648 = vector.broadcast %647 : vector<32x1xf32> to vector<32x32xf32>
    %649 = arith.subf %641, %648 : vector<32x32xf32>
    %650 = arith.mulf %649, %649 : vector<32x32xf32>
    %cst_296 = arith.constant dense<0.000000e+00> : vector<32xf32>
    %651 = vector.multi_reduction <add>, %650, %cst_296 [1] : vector<32x32xf32> to vector<32xf32>
    %652 = vector.shape_cast %651 : vector<32xf32> to vector<32x1xf32>
    %cst_297 = arith.constant 3.200000e+01 : f32
    %653 = vector.broadcast %cst_297 : f32 to vector<32x1xf32>
    %654 = arith.divf %652, %653 : vector<32x1xf32>
    %cst_298 = arith.constant 9.99999974E-6 : f32
    %655 = vector.broadcast %cst_298 : f32 to vector<32x1xf32>
    %656 = arith.addf %654, %655 : vector<32x1xf32>
    %657 = math.rsqrt %656 : vector<32x1xf32>
    %658 = vector.broadcast %657 : vector<32x1xf32> to vector<32x32xf32>
    %659 = arith.mulf %649, %658 : vector<32x32xf32>
    %660 = vector.broadcast %642 : vector<1x32xf32> to vector<32x32xf32>
    %661 = arith.mulf %659, %660 : vector<32x32xf32>
    %662 = vector.broadcast %643 : vector<1x32xf32> to vector<32x32xf32>
    %663 = arith.addf %661, %662 : vector<32x32xf32>
    %c16_299 = arith.constant 16 : index
    %c0_300 = arith.constant 0 : index
    %664 = vector.load %arg3[%c16_299, %c0_300] : memref<368x128xbf16, #tpu.memory_space<vmem>>, vector<32x96xbf16>
    %665 = arith.truncf %663 : vector<32x32xf32> to vector<32x32xbf16>
    %cst_301 = arith.constant dense<0.000000e+00> : vector<32x96xf32>
    %666 = tpu.matmul %665, %664, %cst_301 {dimension_numbers = #tpu.dot_dimension_numbers<[1], [0], [0], [1], [0, 0, 1, 1], [], []>} : vector<32x32xbf16>, vector<32x96xbf16>, vector<32x96xf32> -> vector<32x96xf32>
    %c0_302 = arith.constant 0 : index
    %c0_303 = arith.constant 0 : index
    %667 = vector.load %arg4[%c0_302, %c0_303] : memref<24x128xf32, #tpu.memory_space<vmem>>, vector<1x96xf32>
    %668 = vector.broadcast %667 : vector<1x96xf32> to vector<32x96xf32>
    %669 = arith.addf %666, %668 : vector<32x96xf32>
    %670 = arith.truncf %669 : vector<32x96xf32> to vector<32x96xbf16>
    %671 = vector.shape_cast %670 : vector<32x96xbf16> to vector<2x16x96xbf16>
    %672 = vector.extract_strided_slice %671 {offsets = [0, 0, 0], sizes = [2, 16, 8], strides = [1, 1, 1]} : vector<2x16x96xbf16> to vector<2x16x8xbf16>
    %673 = vector.extract_strided_slice %671 {offsets = [0, 0, 32], sizes = [2, 16, 8], strides = [1, 1, 1]} : vector<2x16x96xbf16> to vector<2x16x8xbf16>
    %674 = vector.extract_strided_slice %671 {offsets = [0, 0, 64], sizes = [2, 16, 8], strides = [1, 1, 1]} : vector<2x16x96xbf16> to vector<2x16x8xbf16>
    "tpu.trace_start"() <{level = 10 : i32, message = "bqd,bkd->bqk"}> : () -> ()
    %cst_304 = arith.constant dense<0.000000e+00> : vector<2x16x16xf32>
    %675 = tpu.matmul %672, %673, %cst_304 {dimension_numbers = #tpu.dot_dimension_numbers<[2], [2], [1], [1], [0, 0, 0, 1, 1, 1], [0], [0]>} : vector<2x16x8xbf16>, vector<2x16x8xbf16>, vector<2x16x16xf32> -> vector<2x16x16xf32>
    "tpu.trace_stop"() : () -> ()
    %cst_305 = arith.constant dense<0xFF800000> : vector<2x16xf32>
    %676 = vector.multi_reduction <maximumf>, %675, %cst_305 [2] : vector<2x16x16xf32> to vector<2x16xf32>
    %677 = vector.shape_cast %676 : vector<2x16xf32> to vector<2x16x1xf32>
    %678 = vector.broadcast %677 : vector<2x16x1xf32> to vector<2x16x16xf32>
    %679 = arith.subf %675, %678 : vector<2x16x16xf32>
    %680 = math.exp %679 : vector<2x16x16xf32>
    %cst_306 = arith.constant dense<0.000000e+00> : vector<2x16xf32>
    %681 = vector.multi_reduction <add>, %680, %cst_306 [2] : vector<2x16x16xf32> to vector<2x16xf32>
    %682 = vector.shape_cast %681 : vector<2x16xf32> to vector<2x16x1xf32>
    %683 = tpu.reciprocal %682 {approx = true} : vector<2x16x1xf32> -> vector<2x16x1xf32>
    %684 = vector.broadcast %683 : vector<2x16x1xf32> to vector<2x16x16xf32>
    %685 = arith.mulf %680, %684 : vector<2x16x16xf32>
    %686 = arith.truncf %685 : vector<2x16x16xf32> to vector<2x16x16xbf16>
    "tpu.trace_start"() <{level = 10 : i32, message = "bqk,bkd->bqd"}> : () -> ()
    %cst_307 = arith.constant dense<0.000000e+00> : vector<2x16x8xf32>
    %687 = tpu.matmul %686, %674, %cst_307 {dimension_numbers = #tpu.dot_dimension_numbers<[2], [1], [1], [2], [0, 0, 0, 1, 1, 2], [0], [0]>} : vector<2x16x16xbf16>, vector<2x16x8xbf16>, vector<2x16x8xf32> -> vector<2x16x8xf32>
    "tpu.trace_stop"() : () -> ()
    %688 = vector.shape_cast %687 : vector<2x16x8xf32> to vector<32x8xf32>
    %c0_308 = arith.constant 0 : index
    %c0_309 = arith.constant 0 : index
    %689 = vector.load %arg7[%c0_308, %c0_309] : memref<32x32xf32, #tpu.memory_space<vmem>>, vector<32x8xf32>
    tpu.vector_store %arg7[%c0_308, %c0_309], %688 {strides = array<i32>} : memref<32x32xf32, #tpu.memory_space<vmem>>, vector<32x8xf32>,
    %690 = vector.extract_strided_slice %671 {offsets = [0, 0, 8], sizes = [2, 16, 8], strides = [1, 1, 1]} : vector<2x16x96xbf16> to vector<2x16x8xbf16>
    %691 = vector.extract_strided_slice %671 {offsets = [0, 0, 40], sizes = [2, 16, 8], strides = [1, 1, 1]} : vector<2x16x96xbf16> to vector<2x16x8xbf16>
    %692 = vector.extract_strided_slice %671 {offsets = [0, 0, 72], sizes = [2, 16, 8], strides = [1, 1, 1]} : vector<2x16x96xbf16> to vector<2x16x8xbf16>
    "tpu.trace_start"() <{level = 10 : i32, message = "bqd,bkd->bqk"}> : () -> ()
    %cst_310 = arith.constant dense<0.000000e+00> : vector<2x16x16xf32>
    %693 = tpu.matmul %690, %691, %cst_310 {dimension_numbers = #tpu.dot_dimension_numbers<[2], [2], [1], [1], [0, 0, 0, 1, 1, 1], [0], [0]>} : vector<2x16x8xbf16>, vector<2x16x8xbf16>, vector<2x16x16xf32> -> vector<2x16x16xf32>
    "tpu.trace_stop"() : () -> ()
    %cst_311 = arith.constant dense<0xFF800000> : vector<2x16xf32>
    %694 = vector.multi_reduction <maximumf>, %693, %cst_311 [2] : vector<2x16x16xf32> to vector<2x16xf32>
    %695 = vector.shape_cast %694 : vector<2x16xf32> to vector<2x16x1xf32>
    %696 = vector.broadcast %695 : vector<2x16x1xf32> to vector<2x16x16xf32>
    %697 = arith.subf %693, %696 : vector<2x16x16xf32>
    %698 = math.exp %697 : vector<2x16x16xf32>
    %cst_312 = arith.constant dense<0.000000e+00> : vector<2x16xf32>
    %699 = vector.multi_reduction <add>, %698, %cst_312 [2] : vector<2x16x16xf32> to vector<2x16xf32>
    %700 = vector.shape_cast %699 : vector<2x16xf32> to vector<2x16x1xf32>
    %701 = tpu.reciprocal %700 {approx = true} : vector<2x16x1xf32> -> vector<2x16x1xf32>
    %702 = vector.broadcast %701 : vector<2x16x1xf32> to vector<2x16x16xf32>
    %703 = arith.mulf %698, %702 : vector<2x16x16xf32>
    %704 = arith.truncf %703 : vector<2x16x16xf32> to vector<2x16x16xbf16>
    "tpu.trace_start"() <{level = 10 : i32, message = "bqk,bkd->bqd"}> : () -> ()
    %cst_313 = arith.constant dense<0.000000e+00> : vector<2x16x8xf32>
    %705 = tpu.matmul %704, %692, %cst_313 {dimension_numbers = #tpu.dot_dimension_numbers<[2], [1], [1], [2], [0, 0, 0, 1, 1, 2], [0], [0]>} : vector<2x16x16xbf16>, vector<2x16x8xbf16>, vector<2x16x8xf32> -> vector<2x16x8xf32>
    "tpu.trace_stop"() : () -> ()
    %706 = vector.shape_cast %705 : vector<2x16x8xf32> to vector<32x8xf32>
    %c0_314 = arith.constant 0 : index
    %c8_315 = arith.constant 8 : index
    %707 = vector.load %arg7[%c0_314, %c8_315] : memref<32x32xf32, #tpu.memory_space<vmem>>, vector<32x8xf32>
    tpu.vector_store %arg7[%c0_314, %c8_315], %706 {strides = array<i32>} : memref<32x32xf32, #tpu.memory_space<vmem>>, vector<32x8xf32>,
    %708 = vector.extract_strided_slice %671 {offsets = [0, 0, 16], sizes = [2, 16, 8], strides = [1, 1, 1]} : vector<2x16x96xbf16> to vector<2x16x8xbf16>
    %709 = vector.extract_strided_slice %671 {offsets = [0, 0, 48], sizes = [2, 16, 8], strides = [1, 1, 1]} : vector<2x16x96xbf16> to vector<2x16x8xbf16>
    %710 = vector.extract_strided_slice %671 {offsets = [0, 0, 80], sizes = [2, 16, 8], strides = [1, 1, 1]} : vector<2x16x96xbf16> to vector<2x16x8xbf16>
    "tpu.trace_start"() <{level = 10 : i32, message = "bqd,bkd->bqk"}> : () -> ()
    %cst_316 = arith.constant dense<0.000000e+00> : vector<2x16x16xf32>
    %711 = tpu.matmul %708, %709, %cst_316 {dimension_numbers = #tpu.dot_dimension_numbers<[2], [2], [1], [1], [0, 0, 0, 1, 1, 1], [0], [0]>} : vector<2x16x8xbf16>, vector<2x16x8xbf16>, vector<2x16x16xf32> -> vector<2x16x16xf32>
    "tpu.trace_stop"() : () -> ()
    %cst_317 = arith.constant dense<0xFF800000> : vector<2x16xf32>
    %712 = vector.multi_reduction <maximumf>, %711, %cst_317 [2] : vector<2x16x16xf32> to vector<2x16xf32>
    %713 = vector.shape_cast %712 : vector<2x16xf32> to vector<2x16x1xf32>
    %714 = vector.broadcast %713 : vector<2x16x1xf32> to vector<2x16x16xf32>
    %715 = arith.subf %711, %714 : vector<2x16x16xf32>
    %716 = math.exp %715 : vector<2x16x16xf32>
    %cst_318 = arith.constant dense<0.000000e+00> : vector<2x16xf32>
    %717 = vector.multi_reduction <add>, %716, %cst_318 [2] : vector<2x16x16xf32> to vector<2x16xf32>
    %718 = vector.shape_cast %717 : vector<2x16xf32> to vector<2x16x1xf32>
    %719 = tpu.reciprocal %718 {approx = true} : vector<2x16x1xf32> -> vector<2x16x1xf32>
    %720 = vector.broadcast %719 : vector<2x16x1xf32> to vector<2x16x16xf32>
    %721 = arith.mulf %716, %720 : vector<2x16x16xf32>
    %722 = arith.truncf %721 : vector<2x16x16xf32> to vector<2x16x16xbf16>
    "tpu.trace_start"() <{level = 10 : i32, message = "bqk,bkd->bqd"}> : () -> ()
    %cst_319 = arith.constant dense<0.000000e+00> : vector<2x16x8xf32>
    %723 = tpu.matmul %722, %710, %cst_319 {dimension_numbers = #tpu.dot_dimension_numbers<[2], [1], [1], [2], [0, 0, 0, 1, 1, 2], [0], [0]>} : vector<2x16x16xbf16>, vector<2x16x8xbf16>, vector<2x16x8xf32> -> vector<2x16x8xf32>
    "tpu.trace_stop"() : () -> ()
    %724 = vector.shape_cast %723 : vector<2x16x8xf32> to vector<32x8xf32>
    %c0_320 = arith.constant 0 : index
    %c16_321 = arith.constant 16 : index
    %725 = vector.load %arg7[%c0_320, %c16_321] : memref<32x32xf32, #tpu.memory_space<vmem>>, vector<32x8xf32>
    tpu.vector_store %arg7[%c0_320, %c16_321], %724 {strides = array<i32>} : memref<32x32xf32, #tpu.memory_space<vmem>>, vector<32x8xf32>,
    %726 = vector.extract_strided_slice %671 {offsets = [0, 0, 24], sizes = [2, 16, 8], strides = [1, 1, 1]} : vector<2x16x96xbf16> to vector<2x16x8xbf16>
    %727 = vector.extract_strided_slice %671 {offsets = [0, 0, 56], sizes = [2, 16, 8], strides = [1, 1, 1]} : vector<2x16x96xbf16> to vector<2x16x8xbf16>
    %728 = vector.extract_strided_slice %671 {offsets = [0, 0, 88], sizes = [2, 16, 8], strides = [1, 1, 1]} : vector<2x16x96xbf16> to vector<2x16x8xbf16>
    "tpu.trace_start"() <{level = 10 : i32, message = "bqd,bkd->bqk"}> : () -> ()
    %cst_322 = arith.constant dense<0.000000e+00> : vector<2x16x16xf32>
    %729 = tpu.matmul %726, %727, %cst_322 {dimension_numbers = #tpu.dot_dimension_numbers<[2], [2], [1], [1], [0, 0, 0, 1, 1, 1], [0], [0]>} : vector<2x16x8xbf16>, vector<2x16x8xbf16>, vector<2x16x16xf32> -> vector<2x16x16xf32>
    "tpu.trace_stop"() : () -> ()
    %cst_323 = arith.constant dense<0xFF800000> : vector<2x16xf32>
    %730 = vector.multi_reduction <maximumf>, %729, %cst_323 [2] : vector<2x16x16xf32> to vector<2x16xf32>
    %731 = vector.shape_cast %730 : vector<2x16xf32> to vector<2x16x1xf32>
    %732 = vector.broadcast %731 : vector<2x16x1xf32> to vector<2x16x16xf32>
    %733 = arith.subf %729, %732 : vector<2x16x16xf32>
    %734 = math.exp %733 : vector<2x16x16xf32>
    %cst_324 = arith.constant dense<0.000000e+00> : vector<2x16xf32>
    %735 = vector.multi_reduction <add>, %734, %cst_324 [2] : vector<2x16x16xf32> to vector<2x16xf32>
    %736 = vector.shape_cast %735 : vector<2x16xf32> to vector<2x16x1xf32>
    %737 = tpu.reciprocal %736 {approx = true} : vector<2x16x1xf32> -> vector<2x16x1xf32>
    %738 = vector.broadcast %737 : vector<2x16x1xf32> to vector<2x16x16xf32>
    %739 = arith.mulf %734, %738 : vector<2x16x16xf32>
    %740 = arith.truncf %739 : vector<2x16x16xf32> to vector<2x16x16xbf16>
    "tpu.trace_start"() <{level = 10 : i32, message = "bqk,bkd->bqd"}> : () -> ()
    %cst_325 = arith.constant dense<0.000000e+00> : vector<2x16x8xf32>
    %741 = tpu.matmul %740, %728, %cst_325 {dimension_numbers = #tpu.dot_dimension_numbers<[2], [1], [1], [2], [0, 0, 0, 1, 1, 2], [0], [0]>} : vector<2x16x16xbf16>, vector<2x16x8xbf16>, vector<2x16x8xf32> -> vector<2x16x8xf32>
    "tpu.trace_stop"() : () -> ()
    %742 = vector.shape_cast %741 : vector<2x16x8xf32> to vector<32x8xf32>
    %c0_326 = arith.constant 0 : index
    %c24_327 = arith.constant 24 : index
    %743 = vector.load %arg7[%c0_326, %c24_327] : memref<32x32xf32, #tpu.memory_space<vmem>>, vector<32x8xf32>
    tpu.vector_store %arg7[%c0_326, %c24_327], %742 {strides = array<i32>} : memref<32x32xf32, #tpu.memory_space<vmem>>, vector<32x8xf32>,
    %c0_328 = arith.constant 0 : index
    %c0_329 = arith.constant 0 : index
    %744 = vector.load %arg7[%c0_328, %c0_329] : memref<32x32xf32, #tpu.memory_space<vmem>>, vector<32x32xf32>
    %c48_330 = arith.constant 48 : index
    %c0_331 = arith.constant 0 : index
    %745 = vector.load %arg3[%c48_330, %c0_331] : memref<368x128xbf16, #tpu.memory_space<vmem>>, vector<32x32xbf16>
    %746 = arith.truncf %744 : vector<32x32xf32> to vector<32x32xbf16>
    %cst_332 = arith.constant dense<0.000000e+00> : vector<32x32xf32>
    %747 = tpu.matmul %746, %745, %cst_332 {dimension_numbers = #tpu.dot_dimension_numbers<[1], [0], [0], [1], [0, 0, 1, 1], [], []>} : vector<32x32xbf16>, vector<32x32xbf16>, vector<32x32xf32> -> vector<32x32xf32>
    %748 = arith.addf %641, %747 : vector<32x32xf32>
    %c1_333 = arith.constant 1 : index
    %c0_334 = arith.constant 0 : index
    %749 = vector.load %arg4[%c1_333, %c0_334] : memref<24x128xf32, #tpu.memory_space<vmem>>, vector<1x32xf32>
    %750 = vector.broadcast %749 : vector<1x32xf32> to vector<32x32xf32>
    %751 = arith.addf %748, %750 : vector<32x32xf32>
    %c6_335 = arith.constant 6 : index
    %c0_336 = arith.constant 0 : index
    %752 = vector.load %arg4[%c6_335, %c0_336] : memref<24x128xf32, #tpu.memory_space<vmem>>, vector<1x32xf32>
    %c7_337 = arith.constant 7 : index
    %c0_338 = arith.constant 0 : index
    %753 = vector.load %arg4[%c7_337, %c0_338] : memref<24x128xf32, #tpu.memory_space<vmem>>, vector<1x32xf32>
    %cst_339 = arith.constant dense<0.000000e+00> : vector<32xf32>
    %754 = vector.multi_reduction <add>, %751, %cst_339 [1] : vector<32x32xf32> to vector<32xf32>
    %755 = vector.shape_cast %754 : vector<32xf32> to vector<32x1xf32>
    %cst_340 = arith.constant 3.200000e+01 : f32
    %756 = vector.broadcast %cst_340 : f32 to vector<32x1xf32>
    %757 = arith.divf %755, %756 : vector<32x1xf32>
    %758 = vector.broadcast %757 : vector<32x1xf32> to vector<32x32xf32>
    %759 = arith.subf %751, %758 : vector<32x32xf32>
    %760 = arith.mulf %759, %759 : vector<32x32xf32>
    %cst_341 = arith.constant dense<0.000000e+00> : vector<32xf32>
    %761 = vector.multi_reduction <add>, %760, %cst_341 [1] : vector<32x32xf32> to vector<32xf32>
    %762 = vector.shape_cast %761 : vector<32xf32> to vector<32x1xf32>
    %cst_342 = arith.constant 3.200000e+01 : f32
    %763 = vector.broadcast %cst_342 : f32 to vector<32x1xf32>
    %764 = arith.divf %762, %763 : vector<32x1xf32>
    %cst_343 = arith.constant 9.99999974E-6 : f32
    %765 = vector.broadcast %cst_343 : f32 to vector<32x1xf32>
    %766 = arith.addf %764, %765 : vector<32x1xf32>
    %767 = math.rsqrt %766 : vector<32x1xf32>
    %768 = vector.broadcast %767 : vector<32x1xf32> to vector<32x32xf32>
    %769 = arith.mulf %759, %768 : vector<32x32xf32>
    %770 = vector.broadcast %752 : vector<1x32xf32> to vector<32x32xf32>
    %771 = arith.mulf %769, %770 : vector<32x32xf32>
    %772 = vector.broadcast %753 : vector<1x32xf32> to vector<32x32xf32>
    %773 = arith.addf %771, %772 : vector<32x32xf32>
    %c80_344 = arith.constant 80 : index
    %c0_345 = arith.constant 0 : index
    %774 = vector.load %arg3[%c80_344, %c0_345] : memref<368x128xbf16, #tpu.memory_space<vmem>>, vector<32x64xbf16>
    %775 = arith.truncf %773 : vector<32x32xf32> to vector<32x32xbf16>
    %cst_346 = arith.constant dense<0.000000e+00> : vector<32x64xf32>
    %776 = tpu.matmul %775, %774, %cst_346 {dimension_numbers = #tpu.dot_dimension_numbers<[1], [0], [0], [1], [0, 0, 1, 1], [], []>} : vector<32x32xbf16>, vector<32x64xbf16>, vector<32x64xf32> -> vector<32x64xf32>
    %c2_347 = arith.constant 2 : index
    %c0_348 = arith.constant 0 : index
    %777 = vector.load %arg4[%c2_347, %c0_348] : memref<24x128xf32, #tpu.memory_space<vmem>>, vector<1x64xf32>
    %778 = vector.broadcast %777 : vector<1x64xf32> to vector<32x64xf32>
    %779 = arith.addf %776, %778 : vector<32x64xf32>
    %cst_349 = arith.constant 0.000000e+00 : f32
    %780 = vector.broadcast %cst_349 : f32 to vector<32x64xf32>
    %781 = arith.maximumf %779, %780 : vector<32x64xf32>
    %c112_350 = arith.constant 112 : index
    %c0_351 = arith.constant 0 : index
    %782 = vector.load %arg3[%c112_350, %c0_351] : memref<368x128xbf16, #tpu.memory_space<vmem>>, vector<64x32xbf16>
    %783 = arith.truncf %781 : vector<32x64xf32> to vector<32x64xbf16>
    %cst_352 = arith.constant dense<0.000000e+00> : vector<32x32xf32>
    %784 = tpu.matmul %783, %782, %cst_352 {dimension_numbers = #tpu.dot_dimension_numbers<[1], [0], [0], [1], [0, 0, 1, 1], [], []>} : vector<32x64xbf16>, vector<64x32xbf16>, vector<32x32xf32> -> vector<32x32xf32>
    %785 = arith.addf %751, %784 : vector<32x32xf32>
    %c3_353 = arith.constant 3 : index
    %c0_354 = arith.constant 0 : index
    %786 = vector.load %arg4[%c3_353, %c0_354] : memref<24x128xf32, #tpu.memory_space<vmem>>, vector<1x32xf32>
    %787 = vector.broadcast %786 : vector<1x32xf32> to vector<32x32xf32>
    %788 = arith.addf %785, %787 : vector<32x32xf32>
    %c12_355 = arith.constant 12 : index
    %c0_356 = arith.constant 0 : index
    %789 = vector.load %arg4[%c12_355, %c0_356] : memref<24x128xf32, #tpu.memory_space<vmem>>, vector<1x32xf32>
    %c13_357 = arith.constant 13 : index
    %c0_358 = arith.constant 0 : index
    %790 = vector.load %arg4[%c13_357, %c0_358] : memref<24x128xf32, #tpu.memory_space<vmem>>, vector<1x32xf32>
    %cst_359 = arith.constant dense<0.000000e+00> : vector<32xf32>
    %791 = vector.multi_reduction <add>, %788, %cst_359 [1] : vector<32x32xf32> to vector<32xf32>
    %792 = vector.shape_cast %791 : vector<32xf32> to vector<32x1xf32>
    %cst_360 = arith.constant 3.200000e+01 : f32
    %793 = vector.broadcast %cst_360 : f32 to vector<32x1xf32>
    %794 = arith.divf %792, %793 : vector<32x1xf32>
    %795 = vector.broadcast %794 : vector<32x1xf32> to vector<32x32xf32>
    %796 = arith.subf %788, %795 : vector<32x32xf32>
    %797 = arith.mulf %796, %796 : vector<32x32xf32>
    %cst_361 = arith.constant dense<0.000000e+00> : vector<32xf32>
    %798 = vector.multi_reduction <add>, %797, %cst_361 [1] : vector<32x32xf32> to vector<32xf32>
    %799 = vector.shape_cast %798 : vector<32xf32> to vector<32x1xf32>
    %cst_362 = arith.constant 3.200000e+01 : f32
    %800 = vector.broadcast %cst_362 : f32 to vector<32x1xf32>
    %801 = arith.divf %799, %800 : vector<32x1xf32>
    %cst_363 = arith.constant 9.99999974E-6 : f32
    %802 = vector.broadcast %cst_363 : f32 to vector<32x1xf32>
    %803 = arith.addf %801, %802 : vector<32x1xf32>
    %804 = math.rsqrt %803 : vector<32x1xf32>
    %805 = vector.broadcast %804 : vector<32x1xf32> to vector<32x32xf32>
    %806 = arith.mulf %796, %805 : vector<32x32xf32>
    %807 = vector.broadcast %789 : vector<1x32xf32> to vector<32x32xf32>
    %808 = arith.mulf %806, %807 : vector<32x32xf32>
    %809 = vector.broadcast %790 : vector<1x32xf32> to vector<32x32xf32>
    %810 = arith.addf %808, %809 : vector<32x32xf32>
    %c176_364 = arith.constant 176 : index
    %c0_365 = arith.constant 0 : index
    %811 = vector.load %arg3[%c176_364, %c0_365] : memref<368x128xbf16, #tpu.memory_space<vmem>>, vector<32x96xbf16>
    %812 = arith.truncf %810 : vector<32x32xf32> to vector<32x32xbf16>
    %cst_366 = arith.constant dense<0.000000e+00> : vector<32x96xf32>
    %813 = tpu.matmul %812, %811, %cst_366 {dimension_numbers = #tpu.dot_dimension_numbers<[1], [0], [0], [1], [0, 0, 1, 1], [], []>} : vector<32x32xbf16>, vector<32x96xbf16>, vector<32x96xf32> -> vector<32x96xf32>
    %c8_367 = arith.constant 8 : index
    %c0_368 = arith.constant 0 : index
    %814 = vector.load %arg4[%c8_367, %c0_368] : memref<24x128xf32, #tpu.memory_space<vmem>>, vector<1x96xf32>
    %815 = vector.broadcast %814 : vector<1x96xf32> to vector<32x96xf32>
    %816 = arith.addf %813, %815 : vector<32x96xf32>
    %817 = arith.truncf %816 : vector<32x96xf32> to vector<32x96xbf16>
    %818 = vector.shape_cast %817 : vector<32x96xbf16> to vector<2x16x96xbf16>
    %819 = vector.extract_strided_slice %818 {offsets = [0, 0, 0], sizes = [2, 16, 8], strides = [1, 1, 1]} : vector<2x16x96xbf16> to vector<2x16x8xbf16>
    %820 = vector.extract_strided_slice %818 {offsets = [0, 0, 32], sizes = [2, 16, 8], strides = [1, 1, 1]} : vector<2x16x96xbf16> to vector<2x16x8xbf16>
    %821 = vector.extract_strided_slice %818 {offsets = [0, 0, 64], sizes = [2, 16, 8], strides = [1, 1, 1]} : vector<2x16x96xbf16> to vector<2x16x8xbf16>
    "tpu.trace_start"() <{level = 10 : i32, message = "bqd,bkd->bqk"}> : () -> ()
    %cst_369 = arith.constant dense<0.000000e+00> : vector<2x16x16xf32>
    %822 = tpu.matmul %819, %820, %cst_369 {dimension_numbers = #tpu.dot_dimension_numbers<[2], [2], [1], [1], [0, 0, 0, 1, 1, 1], [0], [0]>} : vector<2x16x8xbf16>, vector<2x16x8xbf16>, vector<2x16x16xf32> -> vector<2x16x16xf32>
    "tpu.trace_stop"() : () -> ()
    %cst_370 = arith.constant dense<0xFF800000> : vector<2x16xf32>
    %823 = vector.multi_reduction <maximumf>, %822, %cst_370 [2] : vector<2x16x16xf32> to vector<2x16xf32>
    %824 = vector.shape_cast %823 : vector<2x16xf32> to vector<2x16x1xf32>
    %825 = vector.broadcast %824 : vector<2x16x1xf32> to vector<2x16x16xf32>
    %826 = arith.subf %822, %825 : vector<2x16x16xf32>
    %827 = math.exp %826 : vector<2x16x16xf32>
    %cst_371 = arith.constant dense<0.000000e+00> : vector<2x16xf32>
    %828 = vector.multi_reduction <add>, %827, %cst_371 [2] : vector<2x16x16xf32> to vector<2x16xf32>
    %829 = vector.shape_cast %828 : vector<2x16xf32> to vector<2x16x1xf32>
    %830 = tpu.reciprocal %829 {approx = true} : vector<2x16x1xf32> -> vector<2x16x1xf32>
    %831 = vector.broadcast %830 : vector<2x16x1xf32> to vector<2x16x16xf32>
    %832 = arith.mulf %827, %831 : vector<2x16x16xf32>
    %833 = arith.truncf %832 : vector<2x16x16xf32> to vector<2x16x16xbf16>
    "tpu.trace_start"() <{level = 10 : i32, message = "bqk,bkd->bqd"}> : () -> ()
    %cst_372 = arith.constant dense<0.000000e+00> : vector<2x16x8xf32>
    %834 = tpu.matmul %833, %821, %cst_372 {dimension_numbers = #tpu.dot_dimension_numbers<[2], [1], [1], [2], [0, 0, 0, 1, 1, 2], [0], [0]>} : vector<2x16x16xbf16>, vector<2x16x8xbf16>, vector<2x16x8xf32> -> vector<2x16x8xf32>
    "tpu.trace_stop"() : () -> ()
    %835 = vector.shape_cast %834 : vector<2x16x8xf32> to vector<32x8xf32>
    %c0_373 = arith.constant 0 : index
    %c0_374 = arith.constant 0 : index
    %836 = vector.load %arg7[%c0_373, %c0_374] : memref<32x32xf32, #tpu.memory_space<vmem>>, vector<32x8xf32>
    tpu.vector_store %arg7[%c0_373, %c0_374], %835 {strides = array<i32>} : memref<32x32xf32, #tpu.memory_space<vmem>>, vector<32x8xf32>,
    %837 = vector.extract_strided_slice %818 {offsets = [0, 0, 8], sizes = [2, 16, 8], strides = [1, 1, 1]} : vector<2x16x96xbf16> to vector<2x16x8xbf16>
    %838 = vector.extract_strided_slice %818 {offsets = [0, 0, 40], sizes = [2, 16, 8], strides = [1, 1, 1]} : vector<2x16x96xbf16> to vector<2x16x8xbf16>
    %839 = vector.extract_strided_slice %818 {offsets = [0, 0, 72], sizes = [2, 16, 8], strides = [1, 1, 1]} : vector<2x16x96xbf16> to vector<2x16x8xbf16>
    "tpu.trace_start"() <{level = 10 : i32, message = "bqd,bkd->bqk"}> : () -> ()
    %cst_375 = arith.constant dense<0.000000e+00> : vector<2x16x16xf32>
    %840 = tpu.matmul %837, %838, %cst_375 {dimension_numbers = #tpu.dot_dimension_numbers<[2], [2], [1], [1], [0, 0, 0, 1, 1, 1], [0], [0]>} : vector<2x16x8xbf16>, vector<2x16x8xbf16>, vector<2x16x16xf32> -> vector<2x16x16xf32>
    "tpu.trace_stop"() : () -> ()
    %cst_376 = arith.constant dense<0xFF800000> : vector<2x16xf32>
    %841 = vector.multi_reduction <maximumf>, %840, %cst_376 [2] : vector<2x16x16xf32> to vector<2x16xf32>
    %842 = vector.shape_cast %841 : vector<2x16xf32> to vector<2x16x1xf32>
    %843 = vector.broadcast %842 : vector<2x16x1xf32> to vector<2x16x16xf32>
    %844 = arith.subf %840, %843 : vector<2x16x16xf32>
    %845 = math.exp %844 : vector<2x16x16xf32>
    %cst_377 = arith.constant dense<0.000000e+00> : vector<2x16xf32>
    %846 = vector.multi_reduction <add>, %845, %cst_377 [2] : vector<2x16x16xf32> to vector<2x16xf32>
    %847 = vector.shape_cast %846 : vector<2x16xf32> to vector<2x16x1xf32>
    %848 = tpu.reciprocal %847 {approx = true} : vector<2x16x1xf32> -> vector<2x16x1xf32>
    %849 = vector.broadcast %848 : vector<2x16x1xf32> to vector<2x16x16xf32>
    %850 = arith.mulf %845, %849 : vector<2x16x16xf32>
    %851 = arith.truncf %850 : vector<2x16x16xf32> to vector<2x16x16xbf16>
    "tpu.trace_start"() <{level = 10 : i32, message = "bqk,bkd->bqd"}> : () -> ()
    %cst_378 = arith.constant dense<0.000000e+00> : vector<2x16x8xf32>
    %852 = tpu.matmul %851, %839, %cst_378 {dimension_numbers = #tpu.dot_dimension_numbers<[2], [1], [1], [2], [0, 0, 0, 1, 1, 2], [0], [0]>} : vector<2x16x16xbf16>, vector<2x16x8xbf16>, vector<2x16x8xf32> -> vector<2x16x8xf32>
    "tpu.trace_stop"() : () -> ()
    %853 = vector.shape_cast %852 : vector<2x16x8xf32> to vector<32x8xf32>
    %c0_379 = arith.constant 0 : index
    %c8_380 = arith.constant 8 : index
    %854 = vector.load %arg7[%c0_379, %c8_380] : memref<32x32xf32, #tpu.memory_space<vmem>>, vector<32x8xf32>
    tpu.vector_store %arg7[%c0_379, %c8_380], %853 {strides = array<i32>} : memref<32x32xf32, #tpu.memory_space<vmem>>, vector<32x8xf32>,
    %855 = vector.extract_strided_slice %818 {offsets = [0, 0, 16], sizes = [2, 16, 8], strides = [1, 1, 1]} : vector<2x16x96xbf16> to vector<2x16x8xbf16>
    %856 = vector.extract_strided_slice %818 {offsets = [0, 0, 48], sizes = [2, 16, 8], strides = [1, 1, 1]} : vector<2x16x96xbf16> to vector<2x16x8xbf16>
    %857 = vector.extract_strided_slice %818 {offsets = [0, 0, 80], sizes = [2, 16, 8], strides = [1, 1, 1]} : vector<2x16x96xbf16> to vector<2x16x8xbf16>
    "tpu.trace_start"() <{level = 10 : i32, message = "bqd,bkd->bqk"}> : () -> ()
    %cst_381 = arith.constant dense<0.000000e+00> : vector<2x16x16xf32>
    %858 = tpu.matmul %855, %856, %cst_381 {dimension_numbers = #tpu.dot_dimension_numbers<[2], [2], [1], [1], [0, 0, 0, 1, 1, 1], [0], [0]>} : vector<2x16x8xbf16>, vector<2x16x8xbf16>, vector<2x16x16xf32> -> vector<2x16x16xf32>
    "tpu.trace_stop"() : () -> ()
    %cst_382 = arith.constant dense<0xFF800000> : vector<2x16xf32>
    %859 = vector.multi_reduction <maximumf>, %858, %cst_382 [2] : vector<2x16x16xf32> to vector<2x16xf32>
    %860 = vector.shape_cast %859 : vector<2x16xf32> to vector<2x16x1xf32>
    %861 = vector.broadcast %860 : vector<2x16x1xf32> to vector<2x16x16xf32>
    %862 = arith.subf %858, %861 : vector<2x16x16xf32>
    %863 = math.exp %862 : vector<2x16x16xf32>
    %cst_383 = arith.constant dense<0.000000e+00> : vector<2x16xf32>
    %864 = vector.multi_reduction <add>, %863, %cst_383 [2] : vector<2x16x16xf32> to vector<2x16xf32>
    %865 = vector.shape_cast %864 : vector<2x16xf32> to vector<2x16x1xf32>
    %866 = tpu.reciprocal %865 {approx = true} : vector<2x16x1xf32> -> vector<2x16x1xf32>
    %867 = vector.broadcast %866 : vector<2x16x1xf32> to vector<2x16x16xf32>
    %868 = arith.mulf %863, %867 : vector<2x16x16xf32>
    %869 = arith.truncf %868 : vector<2x16x16xf32> to vector<2x16x16xbf16>
    "tpu.trace_start"() <{level = 10 : i32, message = "bqk,bkd->bqd"}> : () -> ()
    %cst_384 = arith.constant dense<0.000000e+00> : vector<2x16x8xf32>
    %870 = tpu.matmul %869, %857, %cst_384 {dimension_numbers = #tpu.dot_dimension_numbers<[2], [1], [1], [2], [0, 0, 0, 1, 1, 2], [0], [0]>} : vector<2x16x16xbf16>, vector<2x16x8xbf16>, vector<2x16x8xf32> -> vector<2x16x8xf32>
    "tpu.trace_stop"() : () -> ()
    %871 = vector.shape_cast %870 : vector<2x16x8xf32> to vector<32x8xf32>
    %c0_385 = arith.constant 0 : index
    %c16_386 = arith.constant 16 : index
    %872 = vector.load %arg7[%c0_385, %c16_386] : memref<32x32xf32, #tpu.memory_space<vmem>>, vector<32x8xf32>
    tpu.vector_store %arg7[%c0_385, %c16_386], %871 {strides = array<i32>} : memref<32x32xf32, #tpu.memory_space<vmem>>, vector<32x8xf32>,
    %873 = vector.extract_strided_slice %818 {offsets = [0, 0, 24], sizes = [2, 16, 8], strides = [1, 1, 1]} : vector<2x16x96xbf16> to vector<2x16x8xbf16>
    %874 = vector.extract_strided_slice %818 {offsets = [0, 0, 56], sizes = [2, 16, 8], strides = [1, 1, 1]} : vector<2x16x96xbf16> to vector<2x16x8xbf16>
    %875 = vector.extract_strided_slice %818 {offsets = [0, 0, 88], sizes = [2, 16, 8], strides = [1, 1, 1]} : vector<2x16x96xbf16> to vector<2x16x8xbf16>
    "tpu.trace_start"() <{level = 10 : i32, message = "bqd,bkd->bqk"}> : () -> ()
    %cst_387 = arith.constant dense<0.000000e+00> : vector<2x16x16xf32>
    %876 = tpu.matmul %873, %874, %cst_387 {dimension_numbers = #tpu.dot_dimension_numbers<[2], [2], [1], [1], [0, 0, 0, 1, 1, 1], [0], [0]>} : vector<2x16x8xbf16>, vector<2x16x8xbf16>, vector<2x16x16xf32> -> vector<2x16x16xf32>
    "tpu.trace_stop"() : () -> ()
    %cst_388 = arith.constant dense<0xFF800000> : vector<2x16xf32>
    %877 = vector.multi_reduction <maximumf>, %876, %cst_388 [2] : vector<2x16x16xf32> to vector<2x16xf32>
    %878 = vector.shape_cast %877 : vector<2x16xf32> to vector<2x16x1xf32>
    %879 = vector.broadcast %878 : vector<2x16x1xf32> to vector<2x16x16xf32>
    %880 = arith.subf %876, %879 : vector<2x16x16xf32>
    %881 = math.exp %880 : vector<2x16x16xf32>
    %cst_389 = arith.constant dense<0.000000e+00> : vector<2x16xf32>
    %882 = vector.multi_reduction <add>, %881, %cst_389 [2] : vector<2x16x16xf32> to vector<2x16xf32>
    %883 = vector.shape_cast %882 : vector<2x16xf32> to vector<2x16x1xf32>
    %884 = tpu.reciprocal %883 {approx = true} : vector<2x16x1xf32> -> vector<2x16x1xf32>
    %885 = vector.broadcast %884 : vector<2x16x1xf32> to vector<2x16x16xf32>
    %886 = arith.mulf %881, %885 : vector<2x16x16xf32>
    %887 = arith.truncf %886 : vector<2x16x16xf32> to vector<2x16x16xbf16>
    "tpu.trace_start"() <{level = 10 : i32, message = "bqk,bkd->bqd"}> : () -> ()
    %cst_390 = arith.constant dense<0.000000e+00> : vector<2x16x8xf32>
    %888 = tpu.matmul %887, %875, %cst_390 {dimension_numbers = #tpu.dot_dimension_numbers<[2], [1], [1], [2], [0, 0, 0, 1, 1, 2], [0], [0]>} : vector<2x16x16xbf16>, vector<2x16x8xbf16>, vector<2x16x8xf32> -> vector<2x16x8xf32>
    "tpu.trace_stop"() : () -> ()
    %889 = vector.shape_cast %888 : vector<2x16x8xf32> to vector<32x8xf32>
    %c0_391 = arith.constant 0 : index
    %c24_392 = arith.constant 24 : index
    %890 = vector.load %arg7[%c0_391, %c24_392] : memref<32x32xf32, #tpu.memory_space<vmem>>, vector<32x8xf32>
    tpu.vector_store %arg7[%c0_391, %c24_392], %889 {strides = array<i32>} : memref<32x32xf32, #tpu.memory_space<vmem>>, vector<32x8xf32>,
    %c0_393 = arith.constant 0 : index
    %c0_394 = arith.constant 0 : index
    %891 = vector.load %arg7[%c0_393, %c0_394] : memref<32x32xf32, #tpu.memory_space<vmem>>, vector<32x32xf32>
    %c208_395 = arith.constant 208 : index
    %c0_396 = arith.constant 0 : index
    %892 = vector.load %arg3[%c208_395, %c0_396] : memref<368x128xbf16, #tpu.memory_space<vmem>>, vector<32x32xbf16>
    %893 = arith.truncf %891 : vector<32x32xf32> to vector<32x32xbf16>
    %cst_397 = arith.constant dense<0.000000e+00> : vector<32x32xf32>
    %894 = tpu.matmul %893, %892, %cst_397 {dimension_numbers = #tpu.dot_dimension_numbers<[1], [0], [0], [1], [0, 0, 1, 1], [], []>} : vector<32x32xbf16>, vector<32x32xbf16>, vector<32x32xf32> -> vector<32x32xf32>
    %895 = arith.addf %788, %894 : vector<32x32xf32>
    %c9_398 = arith.constant 9 : index
    %c0_399 = arith.constant 0 : index
    %896 = vector.load %arg4[%c9_398, %c0_399] : memref<24x128xf32, #tpu.memory_space<vmem>>, vector<1x32xf32>
    %897 = vector.broadcast %896 : vector<1x32xf32> to vector<32x32xf32>
    %898 = arith.addf %895, %897 : vector<32x32xf32>
    %c14_400 = arith.constant 14 : index
    %c0_401 = arith.constant 0 : index
    %899 = vector.load %arg4[%c14_400, %c0_401] : memref<24x128xf32, #tpu.memory_space<vmem>>, vector<1x32xf32>
    %c15_402 = arith.constant 15 : index
    %c0_403 = arith.constant 0 : index
    %900 = vector.load %arg4[%c15_402, %c0_403] : memref<24x128xf32, #tpu.memory_space<vmem>>, vector<1x32xf32>
    %cst_404 = arith.constant dense<0.000000e+00> : vector<32xf32>
    %901 = vector.multi_reduction <add>, %898, %cst_404 [1] : vector<32x32xf32> to vector<32xf32>
    %902 = vector.shape_cast %901 : vector<32xf32> to vector<32x1xf32>
    %cst_405 = arith.constant 3.200000e+01 : f32
    %903 = vector.broadcast %cst_405 : f32 to vector<32x1xf32>
    %904 = arith.divf %902, %903 : vector<32x1xf32>
    %905 = vector.broadcast %904 : vector<32x1xf32> to vector<32x32xf32>
    %906 = arith.subf %898, %905 : vector<32x32xf32>
    %907 = arith.mulf %906, %906 : vector<32x32xf32>
    %cst_406 = arith.constant dense<0.000000e+00> : vector<32xf32>
    %908 = vector.multi_reduction <add>, %907, %cst_406 [1] : vector<32x32xf32> to vector<32xf32>
    %909 = vector.shape_cast %908 : vector<32xf32> to vector<32x1xf32>
    %cst_407 = arith.constant 3.200000e+01 : f32
    %910 = vector.broadcast %cst_407 : f32 to vector<32x1xf32>
    %911 = arith.divf %909, %910 : vector<32x1xf32>
    %cst_408 = arith.constant 9.99999974E-6 : f32
    %912 = vector.broadcast %cst_408 : f32 to vector<32x1xf32>
    %913 = arith.addf %911, %912 : vector<32x1xf32>
    %914 = math.rsqrt %913 : vector<32x1xf32>
    %915 = vector.broadcast %914 : vector<32x1xf32> to vector<32x32xf32>
    %916 = arith.mulf %906, %915 : vector<32x32xf32>
    %917 = vector.broadcast %899 : vector<1x32xf32> to vector<32x32xf32>
    %918 = arith.mulf %916, %917 : vector<32x32xf32>
    %919 = vector.broadcast %900 : vector<1x32xf32> to vector<32x32xf32>
    %920 = arith.addf %918, %919 : vector<32x32xf32>
    %c240_409 = arith.constant 240 : index
    %c0_410 = arith.constant 0 : index
    %921 = vector.load %arg3[%c240_409, %c0_410] : memref<368x128xbf16, #tpu.memory_space<vmem>>, vector<32x64xbf16>
    %922 = arith.truncf %920 : vector<32x32xf32> to vector<32x32xbf16>
    %cst_411 = arith.constant dense<0.000000e+00> : vector<32x64xf32>
    %923 = tpu.matmul %922, %921, %cst_411 {dimension_numbers = #tpu.dot_dimension_numbers<[1], [0], [0], [1], [0, 0, 1, 1], [], []>} : vector<32x32xbf16>, vector<32x64xbf16>, vector<32x64xf32> -> vector<32x64xf32>
    %c10_412 = arith.constant 10 : index
    %c0_413 = arith.constant 0 : index
    %924 = vector.load %arg4[%c10_412, %c0_413] : memref<24x128xf32, #tpu.memory_space<vmem>>, vector<1x64xf32>
    %925 = vector.broadcast %924 : vector<1x64xf32> to vector<32x64xf32>
    %926 = arith.addf %923, %925 : vector<32x64xf32>
    %cst_414 = arith.constant 0.000000e+00 : f32
    %927 = vector.broadcast %cst_414 : f32 to vector<32x64xf32>
    %928 = arith.maximumf %926, %927 : vector<32x64xf32>
    %c272_415 = arith.constant 272 : index
    %c0_416 = arith.constant 0 : index
    %929 = vector.load %arg3[%c272_415, %c0_416] : memref<368x128xbf16, #tpu.memory_space<vmem>>, vector<64x32xbf16>
    %930 = arith.truncf %928 : vector<32x64xf32> to vector<32x64xbf16>
    %cst_417 = arith.constant dense<0.000000e+00> : vector<32x32xf32>
    %931 = tpu.matmul %930, %929, %cst_417 {dimension_numbers = #tpu.dot_dimension_numbers<[1], [0], [0], [1], [0, 0, 1, 1], [], []>} : vector<32x64xbf16>, vector<64x32xbf16>, vector<32x32xf32> -> vector<32x32xf32>
    %932 = arith.addf %898, %931 : vector<32x32xf32>
    %c11_418 = arith.constant 11 : index
    %c0_419 = arith.constant 0 : index
    %933 = vector.load %arg4[%c11_418, %c0_419] : memref<24x128xf32, #tpu.memory_space<vmem>>, vector<1x32xf32>
    %934 = vector.broadcast %933 : vector<1x32xf32> to vector<32x32xf32>
    %935 = arith.addf %932, %934 : vector<32x32xf32>
    %c336_420 = arith.constant 336 : index
    %c0_421 = arith.constant 0 : index
    %936 = vector.load %arg3[%c336_420, %c0_421] : memref<368x128xbf16, #tpu.memory_space<vmem>>, vector<32x16xbf16>
    %937 = arith.truncf %935 : vector<32x32xf32> to vector<32x32xbf16>
    %cst_422 = arith.constant dense<0.000000e+00> : vector<32x16xf32>
    %938 = tpu.matmul %937, %936, %cst_422 {dimension_numbers = #tpu.dot_dimension_numbers<[1], [0], [0], [1], [0, 0, 1, 1], [], []>} : vector<32x32xbf16>, vector<32x16xbf16>, vector<32x16xf32> -> vector<32x16xf32>
    %c16_423 = arith.constant 16 : index
    %c0_424 = arith.constant 0 : index
    %939 = vector.load %arg4[%c16_423, %c0_424] : memref<24x128xf32, #tpu.memory_space<vmem>>, vector<1x16xf32>
    %940 = vector.broadcast %939 : vector<1x16xf32> to vector<32x16xf32>
    %941 = arith.addf %938, %940 : vector<32x16xf32>
    %942 = vector.shape_cast %941 : vector<32x16xf32> to vector<2x16x16xf32>
    %943 = vector.extract_strided_slice %942 {offsets = [0, 12, 0], sizes = [2, 4, 16], strides = [1, 1, 1]} : vector<2x16x16xf32> to vector<2x4x16xf32>
    %944 = vector.extract_strided_slice %636 {offsets = [0, 12, 0], sizes = [2, 4, 16], strides = [1, 1, 1]} : vector<2x16x16xf32> to vector<2x4x16xf32>
    %945 = arith.addf %943, %944 : vector<2x4x16xf32>
    %c0_425 = arith.constant 0 : index
    %c2_426 = arith.constant 2 : index
    %c0_427 = arith.constant 0 : index
    %c0_428 = arith.constant 0 : index
    %946 = vector.load %arg5[%c0_425, %c2_426, %c0_427, %c0_428] : memref<2x3x4x16xf32, #tpu.memory_space<vmem>>, vector<2x1x4x16xf32>
    %947 = vector.shape_cast %946 : vector<2x1x4x16xf32> to vector<2x4x16xf32>
    %948 = vector.shape_cast %945 : vector<2x4x16xf32> to vector<2x1x4x16xf32>
    tpu.vector_store %arg5[%c0_425, %c2_426, %c0_427, %c0_428], %948 {strides = array<i32>} : memref<2x3x4x16xf32, #tpu.memory_space<vmem>>, vector<2x1x4x16xf32>,
    return
  }
  func.func @transform_0(%arg0: i32) -> (i32, i32, i32) {
    %c0_i32 = arith.constant 0 : i32
    %c0_i32_0 = arith.constant 0 : i32
    %c0_i32_1 = arith.constant 0 : i32
    return %arg0, %c0_i32, %c0_i32_0 : i32, i32, i32
  }
  func.func @transform_1(%arg0: i32) -> (i32, i32, i32) {
    %c0_i32 = arith.constant 0 : i32
    %c0_i32_0 = arith.constant 0 : i32
    %c0_i32_1 = arith.constant 0 : i32
    return %arg0, %c0_i32, %c0_i32_0 : i32, i32, i32
  }
  func.func @transform_2(%arg0: i32) -> (i32, i32) {
    %c0_i32 = arith.constant 0 : i32
    %c0_i32_0 = arith.constant 0 : i32
    %c0_i32_1 = arith.constant 0 : i32
    return %c0_i32, %c0_i32_0 : i32, i32
  }
  func.func @transform_3(%arg0: i32) -> (i32, i32) {
    %c0_i32 = arith.constant 0 : i32
    %c0_i32_0 = arith.constant 0 : i32
    %c0_i32_1 = arith.constant 0 : i32
    return %c0_i32, %c0_i32_0 : i32, i32
  }
  func.func @transform_4(%arg0: i32) -> (i32, i32, i32, i32) {
    %c0_i32 = arith.constant 0 : i32
    %c0_i32_0 = arith.constant 0 : i32
    %c0_i32_1 = arith.constant 0 : i32
    %c0_i32_2 = arith.constant 0 : i32
    return %arg0, %c0_i32, %c0_i32_0, %c0_i32_1 : i32, i32, i32, i32
  }
}

</mosaic_0001>

<bundles_post_ra>
// kernel: slot_rollouter_forward.1
= control target key start
LH: loop header
LB: loop body
LE: loop exit
PB: predicated region body
PF: predicated region fallthrough
CT: control target
= control target key end

     0   :  { %9 = vsyncpa [#allocation5], 0  ;;  %s13582_s0 = inlined_call_operand.hbm [shape: f32[2,16,16], index: 0, kind: input, shape index: {}]   ;;  %s13583_s1 = inlined_call_operand.hbm [shape: f32[2,16,32], index: 1, kind: input, shape index: {}]   ;;  %s13584_s2 = inlined_call_operand.hbm [shape: bf16[368,128], index: 2, kind: input, shape index: {}]   ;;  %s13585_s3 = inlined_call_operand.hbm [shape: f32[24,128], index: 3, kind: input, shape index: {}]   ;;  %s13586_s4 = inlined_call_operand.hbm [shape: f32[2,3,4,16], index: 4, kind: output, shape index: {}]  }
   0x1   :  { %10 = vsyncpa [#allocation8], 0 }
   0x2   :  { %11 = vsyncpa [#allocation11], 0 }
   0x3   :  { %12 = vsyncpa [#allocation6], 0  ;;  %s11850_s15 = smov [#allocation7]   ;;  %s11851_s17 = smov [#allocation4]  }
   0x4   :  { %s30_s16 = sshll.u32 %s11850_s15, 4  ;;  %s18_s18 = sshll.u32 %s11851_s17, 4  ;;  %s31_s16 = int_to_ptr.vmem [resolvable:$true] %s30_s16  ;;  %s11898_s18 = int_to_ptr.vmem [resolvable:$true] %s18_s18 }
   0x5   :  { %s11732_s21 = scalar_lea.hbm %s13583_s1, 512 }
   0x6   :  { %p11733_p0 = scmp.ne.s32.totalorder %s13583_s1, %s11732_s21  ;;  %p11736_p1 = scmp.lt.u32.totalorder %s11732_s21, %s13583_s1 }
   0x8   :  { %p11738_p2 = pnand %p11736_p1, %p11733_p0 }
   0xa   :  { %11741 = shalt.err (!%p11738_p2)
}
   0xb   :  { %s11742_s26 = scalar_lea.vmem %s31_s16, 512  ;;  %p11747_p4 = scmp.lt.s32.totalorder %s31_s16, %s31_s16 }
   0xc   :  { %p11743_p3 = scmp.ne.s32.totalorder %s31_s16, %s11742_s26  ;;  %p11748_p5 = scmp.lt.s32.totalorder %s11742_s26, %s11742_s26 }
   0xe   :  { %p11749_p6 = por %p11748_p5, %p11747_p4 }
  0x10   :  { %p11750_p7 = pnand %p11749_p6, %p11743_p3 }
  0x12   :  { %11753 = shalt.err (!%p11750_p7)
}
  0x13   :  { %s11852_s27 = smov 128   ;;  %s11853_s28 = smov 8  }
  0x14   :  { %36 = dma.hbm_to_vmem [thread:$0]  %s13583_s1, 512, %s31_s16, [#allocation8], %s11852_s27, %s11852_s27, %s11853_s28  }
  0x15   :  { %s11754_s7 = scalar_lea.hbm %s13582_s0, 512 }
  0x16   :  { %p11755_p8 = scmp.ne.s32.totalorder %s13582_s0, %s11754_s7  ;;  %p11758_p9 = scmp.lt.u32.totalorder %s11754_s7, %s13582_s0 }
  0x18   :  { %p11760_p10 = pnand %p11758_p9, %p11755_p8 }
  0x1a   :  { %11763 = shalt.err (!%p11760_p10)
}
  0x1b   :  { %s11764_s12 = scalar_lea.vmem %s11898_s18, 512  ;;  %p11769_p12 = scmp.lt.s32.totalorder %s11898_s18, %s11898_s18 }
  0x1c   :  { %p11765_p11 = scmp.ne.s32.totalorder %s11898_s18, %s11764_s12  ;;  %p11770_p13 = scmp.lt.s32.totalorder %s11764_s12, %s11764_s12 }
  0x1e   :  { %p11771_p0 = por %p11770_p13, %p11769_p12 }
  0x20   :  { %p11772_p1 = pnand %p11771_p0, %p11765_p11 }
  0x22   :  { %11775 = shalt.err (!%p11772_p1)
}
  0x23   :  { %24 = dma.hbm_to_vmem [thread:$0]  %s13582_s0, 512, %s11898_s18, [#allocation5], %s11852_s27, %s11852_s27, %s11853_s28  }
  0x24   :  { %s11854_s14 = smov [#allocation9]   ;;  %s11776_s19 = scalar_lea.hbm %s13584_s2, 2944 }
  0x25   :  { %s42_s15 = sshll.u32 %s11854_s14, 4  ;;  %p11777_p2 = scmp.ne.s32.totalorder %s13584_s2, %s11776_s19  ;;  %s43_s15 = int_to_ptr.vmem [resolvable:$true] %s42_s15 }
  0x26   :  { %p11780_p3 = scmp.lt.u32.totalorder %s11776_s19, %s13584_s2 }
  0x28   :  { %p11782_p4 = pnand %p11780_p3, %p11777_p2 }
  0x2a   :  { %11785 = shalt.err (!%p11782_p4)
}
  0x2b   :  { %s11786_s24 = scalar_lea.vmem %s43_s15, 2944  ;;  %p11791_p6 = scmp.lt.s32.totalorder %s43_s15, %s43_s15 }
  0x2c   :  { %p11787_p5 = scmp.ne.s32.totalorder %s43_s15, %s11786_s24  ;;  %p11792_p7 = scmp.lt.s32.totalorder %s11786_s24, %s11786_s24 }
  0x2e   :  { %p11793_p8 = por %p11792_p7, %p11791_p6 }
  0x30   :  { %p11794_p9 = pnand %p11793_p8, %p11787_p5 }
  0x32   :  { %11797 = shalt.err (!%p11794_p9)
}
  0x33   :  { %s11855_s0 = smov 64   ;;  %s11856_s18 = smov 4  }
  0x34   :  { %48 = dma.hbm_to_vmem [thread:$0]  %s13584_s2, 2944, %s43_s15, [#allocation8], %s11855_s0, %s11855_s0, %s11856_s18  }
  0x35   :  { %s11857_s29 = smov [#allocation10]   ;;  %s11798_s7 = scalar_lea.hbm %s13585_s3, 384 }
  0x36   :  { %s54_s30 = sshll.u32 %s11857_s29, 4  ;;  %p11799_p10 = scmp.ne.s32.totalorder %s13585_s3, %s11798_s7  ;;  %s55_s30 = int_to_ptr.vmem [resolvable:$true] %s54_s30 }
  0x37   :  { %p11802_p11 = scmp.lt.u32.totalorder %s11798_s7, %s13585_s3 }
  0x39   :  { %p11804_p12 = pnand %p11802_p11, %p11799_p10 }
  0x3b   :  { %11807 = shalt.err (!%p11804_p12)
}
  0x3c   :  { %s11808_s12 = scalar_lea.vmem %s55_s30, 384  ;;  %p11813_p0 = scmp.lt.s32.totalorder %s55_s30, %s55_s30 }
  0x3d   :  { %p11809_p13 = scmp.ne.s32.totalorder %s55_s30, %s11808_s12  ;;  %p11814_p1 = scmp.lt.s32.totalorder %s11808_s12, %s11808_s12 }
  0x3f   :  { %p11815_p2 = por %p11814_p1, %p11813_p0 }
  0x41   :  { %p11816_p3 = pnand %p11815_p2, %p11809_p13 }
  0x43   :  { %11819 = shalt.err (!%p11816_p3)
}
  0x44   :  { %60 = dma.hbm_to_vmem [thread:$0]  %s13585_s3, 384, %s55_s30, [#allocation11], %s11852_s27, %s11852_s27, %s11853_s28  }
  0x45   :  { %11842 = dma.done.wait [#allocation5], 512  }
  0x46   :  { %11843 = vsyncadd [#allocation5], 4294966784 }
  0x47   :  { %11844 = dma.done.wait [#allocation8], 3456  }
  0x48   :  { %11845 = vsyncadd [#allocation8], 4294963840 }
  0x49   :  { %11846 = dma.done.wait [#allocation11], 384  }
  0x4a   :  { %11847 = vsyncadd [#allocation11], 4294966912  ;;  %vm78_vm0 = vcmask 130048   ;;  %v11173_v0 = vld [vmem:[#allocation9] sm:$0xff]   ;;  %v75_v2 = vld [vmem:[#allocation4 + $0x8] sm:$0xff]  ;;  %vm3289_vm1 = vcmask 130052  }
  0x4b   :  { %v74_v1 = vld [vmem:[#allocation4] sm:$0xff]  ;;  %v76_v3 = vld [vmem:[#allocation4 + $0x10] sm:$0xff]  ;;  %10316 = vmatprep.subr.bf16.mxu0 %v11173_v0  ;;  %80 = vst.msk [vmem:[#allocation2 + $0x8] sm:$0xff] %vm78_vm0, %v75_v2  ;;  %v77_v4 = vld [vmem:[#allocation4 + $0x18] sm:$0xff]  ;;  %vm158_vm2 = vcmask 261120   ;;  %vm11859_vm3 = vmmov 0  }
  0x4c   :  { %79 = vst.msk [vmem:[#allocation2] sm:$0xff] %vm78_vm0, %v74_v1  ;;  %81 = vst.msk [vmem:[#allocation2 + $0x10] sm:$0xff] %vm78_vm0, %v76_v3  ;;  %10317 = vmatpush3.bf16.msra.mxu0 %v11173_v0  ;;  %v85_v11 = vld [vmem:[#allocation7 + $0x10] sm:$0xff]  ;;  %v83_v12 = vld [vmem:[#allocation7] sm:$0xff]  ;;  %s11860_s3 = smov 96   ;;  %vm311_vm4 = vcmask 64512  }
  0x4d   :  { %82 = vst.msk [vmem:[#allocation2 + $0x18] sm:$0xff] %vm78_vm0, %v77_v4  ;;  %v86_v14 = vld [vmem:[#allocation7 + $0x18] sm:$0xff]  ;;  %v84_v17 = vld [vmem:[#allocation7 + $0x8] sm:$0xff]  ;;  %v11175_v48 = vld [vmem:[#allocation9 + $0x10] sm:$0xff]   ;;  %s11861_s27 = smov 88   ;;  %s11862_s13 = smov 120  }
  0x4e   :  { %v11174_v47 = vld [vmem:[#allocation9 + $0x8] sm:$0xff]   ;;  %v9722_v63 = vld [vmem:[#allocation10 + $0x4] ss:$0 sm:$0xff]  ;;  %v9723_v4 = vld [vmem:[#allocation10 + $0x5] ss:$0 sm:$0xff]  ;;  %s11863_s14 = smov 56  }
  0x4f   :  { %10322 = vmatprep.subr.bf16.mxu1 %v11174_v47  ;;  %s11864_s15 = smov 80   ;;  %s11865_s16 = smov 112   ;;  %vm811_vm5 = vcmask 130112   ;;  %vm1074_vm6 = vcmask 195712   ;;  %vm1337_vm7 = vcmask 261312   ;;  %vm1618_vm8 = vcmask 523264  }
  0x50   :  { %10323 = vmatpush3.bf16.msra.mxu1 %v11174_v47  ;;  %s11866_s17 = smov 48   ;;  %s11867_s19 = smov 72  }
  0x51   :  { %10324 = vmatprep.subr.bf16.mxu1 %v11175_v48  ;;  %s11868_s20 = smov 104   ;;  %s11869_s21 = smov 40  }
  0x52   :  { %v11969_v6 = vld [vmem:[#allocation2 + $0x8] sm:$0xff]  ;;  %s11870_s22 = smov 16   ;;  %s11871_s23 = smov 24  }
  0x53   :  { %v87_v5 = vld [vmem:[#allocation2] sm:$0xff]  ;;  %v89_v7 = vld [vmem:[#allocation2 + $0x10] sm:$0xff] }
  0x54   :  { %v93_v8 = vpack.c.bf16 %v11969_v6, %v87_v5  ;;  %3292 = vst.msk [vmem:[#allocation2 - $0x4] sm:$0xf0] %vm3289_vm1, %v87_v5  ;;  %v11975_v9 = vld [vmem:[#allocation2 + $0x18] sm:$0xff]  ;;  %3294 = vst.msk [vmem:[#allocation2 + $0xc] sm:$0xf0] %vm3289_vm1, %v89_v7  ;;  %10325 = vmatpush3.bf16.msra.mxu1 %v11175_v48 }
  0x55   :  { %3293 = vst.msk [vmem:[#allocation2 + $0x4] sm:$0xff] %vm78_vm0, %v11969_v6  ;;  %v94_v10 = vpack.c.bf16 %v11975_v9, %v89_v7  ;;  %3295 = vst.msk [vmem:[#allocation2 + $0x14] sm:$0xff] %vm78_vm0, %v11975_v9 }
  0x56   :  { %10318 = vmatprep.mubr.msk.bf16.mxu0 %vm78_vm0, %v93_v8 }
  0x57   :  { %10319 = vmatmul.mubr.msk.bf16.vlgmr.msra.gmra.mrb[0].mxu0 %vm78_vm0, %v94_v10 }
 0x12a   :  { %v10320_v13 = vpop.f32.mrb[0].mxu0 }
 0x12b   :  { %v11983_v15 = vadd.f32 %v10320_v13, %v85_v11  ;;  %v141_v16 = vpop.f32.mrb[1].mxu0 }
 0x12c   :  { %v11985_v18 = vadd.f32 %v141_v16, %v83_v12  ;;  %v10321_v19 = vpop.f32.mrb[2].mxu0 }
 0x12d   :  { %v11987_v20 = vadd.f32 %v10321_v19, %v86_v14  ;;  %v144_v21 = vpop.f32.mrb[3].mxu0  ;;  %v165_v22 = vsel %vm158_vm2, %v11983_v15, 0.0 }
 0x12e   :  { %v11991_v23 = vadd.f32 %v144_v21, %v84_v17  ;;  %166 = vadd.xlane.f32.xlu1 %v165_v22  ;;  %v159_v24 = vsel %vm158_vm2, %v11985_v18, 0.0  ;;  %v11858_v22 = vmov 0.0  }
 0x12f   :  { %160 = vadd.xlane.f32.xlu0 %v159_v24  ;;  %v168_v25 = vsel %vm158_vm2, %v11987_v20, 0.0  ;;  %10336 = vmatprep.subr.bf16.mxu1 %v11858_v22 }
 0x130   :  { %v162_v26 = vsel %vm158_vm2, %v11991_v23, 0.0  ;;  %10330 = vmatprep.subr.bf16.mxu0 %v11858_v22  ;;  %10332 = vmatprep.mubr.msk.bf16.mxu0 %vm11859_vm3, %v11858_v22 }
 0x132   :  { %169 = vadd.xlane.f32.xlu1 %v168_v25  ;;  %v9724_v25 = vld [vmem:[#allocation10] ss:$0 sm:$0xff] }
 0x133   :  { %163 = vadd.xlane.f32.xlu0 %v162_v26 }
 0x1bb   :  { %v167_v27 = vpop.xlane.xlu1 %166 }
 0x1bc   :  { %v174_v28 = vmul.f32 0.03125, %v167_v27  ;;  %v161_v29 = vpop.xlane.xlu0 %160 }
 0x1bd   :  { %v172_v30 = vmul.f32 0.03125, %v161_v29 }
 0x1be   :  { %v178_v31 = vsub.f32 %v11983_v15, %v174_v28 }
 0x1bf   :  { %v176_v32 = vsub.f32 %v11985_v18, %v172_v30  ;;  %v170_v33 = vpop.xlane.xlu1 %169 }
 0x1c0   :  { %v175_v34 = vmul.f32 0.03125, %v170_v33  ;;  %v164_v35 = vpop.xlane.xlu0 %163  ;;  %v182_v41 = vmul.f32 %v178_v31, %v178_v31 }
 0x1c1   :  { %v173_v36 = vmul.f32 0.03125, %v164_v35  ;;  %v180_v37 = vmul.f32 %v176_v32, %v176_v32 }
 0x1c2   :  { %v179_v38 = vsub.f32 %v11987_v20, %v175_v34  ;;  %v190_v43 = vsel %vm158_vm2, %v182_v41, 0.0 }
 0x1c3   :  { %v177_v39 = vsub.f32 %v11991_v23, %v173_v36  ;;  %v184_v40 = vsel %vm158_vm2, %v180_v37, 0.0 }
 0x1c4   :  { %185 = vadd.xlane.f32.xlu0 %v184_v40  ;;  %v183_v45 = vmul.f32 %v179_v38, %v179_v38 }
 0x1c5   :  { %v181_v42 = vmul.f32 %v177_v39, %v177_v39 }
 0x1c6   :  { %v193_v46 = vsel %vm158_vm2, %v183_v45, 0.0 }
 0x1c7   :  { %v187_v44 = vsel %vm158_vm2, %v181_v42, 0.0 }
 0x1c8   :  { %191 = vadd.xlane.f32.xlu0 %v190_v43  ;;  %188 = vadd.xlane.f32.xlu1 %v187_v44 }
 0x1cc   :  { %194 = vadd.xlane.f32.xlu1 %v193_v46 }
 0x251   :  { %v186_v49 = vpop.xlane.xlu0 %185 }
 0x252   :  { %v196_v50 = vmul.f32 0.03125, %v186_v49 }
 0x254   :  { %v200_v51 = vadd.f32 1e-05, %v196_v50 }
 0x255   :  { %v189_v52 = vpop.xlane.xlu1 %188  ;;  %v192_v53 = vpop.xlane.xlu0 %191 }
 0x256   :  { %11242 = vrsqrt.f32 %v200_v51  ;;  %v197_v54 = vmul.f32 0.03125, %v189_v52  ;;  %v198_v55 = vmul.f32 0.03125, %v192_v53 }
 0x258   :  { %v201_v56 = vadd.f32 1e-05, %v197_v54  ;;  %v202_v57 = vadd.f32 1e-05, %v198_v55 }
 0x259   :  { %v195_v58 = vpop.xlane.xlu1 %194 }
 0x25a   :  { %11244 = vrsqrt.f32 %v201_v56  ;;  %v199_v59 = vmul.f32 0.03125, %v195_v58 }
 0x25b   :  { %11246 = vrsqrt.f32 %v202_v57 }
 0x25c   :  { %v203_v60 = vadd.f32 1e-05, %v199_v59 }
 0x25e   :  { %11248 = vrsqrt.f32 %v203_v60 }
 0x260   :  { %v11243_v61 = vpop.eup %11242 }
 0x261   :  { %v208_v62 = vmul.f32 %v11243_v61, %v176_v32 }
 0x263   :  { %v216_v3 = vmul.f32 %v9722_v63, %v208_v62 }
 0x264   :  { %v11245_v0 = vpop.eup %11244 }
 0x265   :  { %v11247_v1 = vpop.eup %11246  ;;  %v209_v2 = vmul.f32 %v11245_v0, %v177_v39  ;;  %v224_v10 = vadd.f32 %v9723_v4, %v216_v3 }
 0x266   :  { %v210_v5 = vmul.f32 %v11247_v1, %v178_v31 }
 0x267   :  { %v217_v7 = vmul.f32 %v9722_v63, %v209_v2 }
 0x268   :  { %v11249_v8 = vpop.eup %11248  ;;  %v218_v13 = vmul.f32 %v9722_v63, %v210_v5 }
 0x269   :  { %v225_v11 = vadd.f32 %v9723_v4, %v217_v7  ;;  %v211_v12 = vmul.f32 %v11249_v8, %v179_v38 }
 0x26a   :  { %v226_v17 = vadd.f32 %v9723_v4, %v218_v13 }
 0x26b   :  { %v232_v14 = vpack.c.bf16 %v225_v11, %v224_v10  ;;  %v219_v16 = vmul.f32 %v9722_v63, %v211_v12 }
 0x26d   :  { %10326 = vmatprep.mubr.msk.bf16.mxu1 %vm158_vm2, %v232_v14  ;;  %v227_v19 = vadd.f32 %v9723_v4, %v219_v16 }
 0x26f   :  { %v233_v21 = vpack.c.bf16 %v227_v19, %v226_v17 }
 0x271   :  { %10327 = vmatmul.mubr.msk.bf16.vlgmr.msra.gmra.mrb[0].mxu1 %vm158_vm2, %v233_v21 }
 0x272   :  { %10338 = vmatprep.mubr.msk.bf16.mxu1 %vm11859_vm3, %v11858_v22 }
 0x344   :  { %v10328_v24 = vpop.f32.mrb[0].mxu1 }
 0x345   :  { %v291_v26 = vpop.f32.mrb[1].mxu1  ;;  %v300_v28 = vadd.f32 %v10328_v24, %v9724_v25 }
 0x346   :  { %v10329_v27 = vpop.f32.mrb[2].mxu1  ;;  %v292_v31 = vadd.f32 %v9724_v25, %v291_v26 }
 0x347   :  { %v303_v29 = vadd.f32 %v10329_v27, %v9724_v25  ;;  %v294_v30 = vpop.f32.mrb[3].mxu1 }
 0x348   :  { %v295_v32 = vadd.f32 %v9724_v25, %v294_v30 }
 0x349   :  { %v12015_v33 = vpack.c.bf16 %v303_v29, %v300_v28 }
 0x34a   :  { %v12017_v34 = vpack.c.bf16 %v295_v32, %v292_v31 }
 0x34b   :  { %360 = vrot.lane.b32.xlu1 %v12015_v33, %s11860_s3 }
 0x34c   :  { %309 = vrot.lane.b32.xlu0 %v12017_v34, %s11860_s3 }
 0x3bd   :  { %v361_v35 = vpop.permute.xlu1 %360 }
 0x3be   :  { %v366_v36 = vsel %vm311_vm4, %v361_v35, 0  ;;  %v310_v37 = vpop.permute.xlu0 %309 }
 0x3bf   :  { %v316_v38 = vsel %vm311_vm4, %v310_v37, 0  ;;  %10337 = vmatpush3.bf16.xpose.msra.mxu1 %v366_v36 }
 0x3c0   :  { %10331 = vmatpush3.bf16.xpose.msra.mxu0 %v316_v38  ;;  %10348 = vmatprep.subr.bf16.mxu1 %v11858_v22 }
 0x3c1   :  { %10342 = vmatprep.subr.bf16.mxu0 %v11858_v22 }
 0x3c6   :  { %10339 = vmatmul.mubr.msk.bf16.vlgmr.msra.gmra.mrb[4].mxu1 %vm311_vm4, %v12015_v33 }
 0x3c7   :  { %10333 = vmatmul.mubr.msk.bf16.vlgmr.msra.gmra.mrb[4].mxu0 %vm311_vm4, %v12017_v34  ;;  %10350 = vmatprep.mubr.msk.bf16.mxu1 %vm11859_vm3, %v11858_v22 }
 0x3c8   :  { %10344 = vmatprep.mubr.msk.bf16.mxu0 %vm11859_vm3, %v11858_v22 }
 0x499   :  { %v402_v39 = vpop.f32.mrb[4].mxu1 }
 0x49a   :  { %v352_v40 = vpop.f32.mrb[4].mxu0  ;;  %v10340_v41 = vpop.f32.mrb[5].mxu1  ;;  %v415_v50 = vsel %vm78_vm0, %v402_v39, -inf }
 0x49b   :  { %v10334_v42 = vpop.f32.mrb[5].mxu0  ;;  %v405_v43 = vpop.f32.mrb[6].mxu1  ;;  %v409_v44 = vsel %vm78_vm0, %v352_v40, -inf }
 0x49c   :  { %v10341_v45 = vpop.f32.mrb[7].mxu1  ;;  %410 = vmax.xlane.f32.xlu1 %v409_v44  ;;  %v355_v46 = vpop.f32.mrb[6].mxu0  ;;  %v418_v49 = vsel %vm78_vm0, %v405_v43, -inf }
 0x49d   :  { %v10335_v47 = vpop.f32.mrb[7].mxu0  ;;  %v412_v48 = vsel %vm78_vm0, %v355_v46, -inf }
 0x49e   :  { %413 = vmax.xlane.f32.xlu0 %v412_v48 }
 0x4a0   :  { %419 = vmax.xlane.f32.xlu1 %v418_v49 }
 0x4a2   :  { %416 = vmax.xlane.f32.xlu0 %v415_v50 }
 0x4b1   :  { %502 = vrot.lane.b32.xlu1 %v12015_v33, %s11855_s0 }
 0x4b5   :  { %555 = vrot.lane.b32.xlu1 %v12017_v34, %s11861_s27 }
 0x529   :  { %v411_v51 = vpop.xlane.xlu1 %410 }
 0x52a   :  { %v421_v55 = vsub.f32 %v352_v40, %v411_v51 }
 0x52b   :  { %v414_v52 = vpop.xlane.xlu0 %413 }
 0x52c   :  { %v422_v53 = vsub.f32 %v355_v46, %v414_v52  ;;  %v425_v62 = vmul.f32 1.442695, %v421_v55 }
 0x52d   :  { %v420_v54 = vpop.xlane.xlu1 %419 }
 0x52e   :  { %v424_v56 = vsub.f32 %v405_v43, %v420_v54  ;;  %v427_v57 = vmul.f32 1.442695, %v422_v53 }
 0x52f   :  { %v417_v58 = vpop.xlane.xlu0 %416 }
 0x530   :  { %v431_v59 = vmul.f32 1.442695, %v424_v56  ;;  %v423_v60 = vsub.f32 %v402_v39, %v417_v58 }
 0x531   :  { %v503_v61 = vpop.permute.xlu1 %502 }
 0x532   :  { %11250 = vpow2.f32 %v431_v59  ;;  %v429_v63 = vmul.f32 1.442695, %v423_v60  ;;  %10349 = vmatpush3.bf16.msra.mxu1 %v503_v61 }
 0x533   :  { %11252 = vpow2.f32 %v427_v57  ;;  %10360 = vmatprep.subr.bf16.mxu1 %v11858_v22 }
 0x534   :  { %11254 = vpow2.f32 %v429_v63 }
 0x535   :  { %11256 = vpow2.f32 %v425_v62  ;;  %v556_v10 = vpop.permute.xlu1 %555 }
 0x536   :  { %v561_v35 = vsel %vm311_vm4, %v556_v10, 0 }
 0x53c   :  { %v11251_v0 = vpop.eup %11250 }
 0x53d   :  { %v11253_v1 = vpop.eup %11252  ;;  %v442_v2 = vsel %vm78_vm0, %v11251_v0, 0.0 }
 0x53e   :  { %v11255_v3 = vpop.eup %11254  ;;  %443 = vadd.xlane.f32.xlu1 %v442_v2  ;;  %v436_v7 = vsel %vm78_vm0, %v11253_v1, 0.0 }
 0x53f   :  { %v439_v4 = vsel %vm78_vm0, %v11255_v3, 0.0  ;;  %v11257_v5 = vpop.eup %11256 }
 0x540   :  { %440 = vadd.xlane.f32.xlu0 %v439_v4  ;;  %v433_v8 = vsel %vm78_vm0, %v11257_v5, 0.0 }
 0x542   :  { %437 = vadd.xlane.f32.xlu1 %v436_v7 }
 0x544   :  { %434 = vadd.xlane.f32.xlu0 %v433_v8 }
 0x553   :  { %606 = vrot.lane.b32.xlu1 %v12015_v33, %s11861_s27 }
 0x557   :  { %604 = vrot.lane.b32.xlu1 %v12015_v33, %s11862_s13 }
 0x55a   :  { %455 = vrot.lane.b32.xlu0 %v12017_v34, %s11855_s0 }
 0x55e   :  { %553 = vrot.lane.b32.xlu0 %v12017_v34, %s11862_s13 }
 0x5cb   :  { %v444_v11 = vpop.xlane.xlu1 %443 }
 0x5cc   :  { %11258 = vrcp.f32 %v444_v11 }
 0x5cd   :  { %v441_v12 = vpop.xlane.xlu0 %440 }
 0x5ce   :  { %11260 = vrcp.f32 %v441_v12 }
 0x5cf   :  { %v438_v13 = vpop.xlane.xlu1 %437 }
 0x5d0   :  { %11262 = vrcp.f32 %v438_v13 }
 0x5d1   :  { %v435_v14 = vpop.xlane.xlu0 %434 }
 0x5d2   :  { %11264 = vrcp.f32 %v435_v14 }
 0x5d3   :  { %v607_v26 = vpop.permute.xlu1 %606 }
 0x5d4   :  { %v612_v31 = vsel %vm311_vm4, %v607_v26, 0 }
 0x5d5   :  { %v456_v16 = vpop.permute.xlu0 %455 }
 0x5d6   :  { %v11259_v17 = vpop.eup %11258  ;;  %10343 = vmatpush3.bf16.msra.mxu0 %v456_v16 }
 0x5d7   :  { %10354 = vmatprep.subr.bf16.mxu0 %v11858_v22  ;;  %v452_v21 = vmul.f32 %v11259_v17, %v11251_v0  ;;  %v605_v36 = vpop.permute.xlu1 %604 }
 0x5d8   :  { %v11261_v19 = vpop.eup %11260 }
 0x5d9   :  { %v451_v24 = vmul.f32 %v11261_v19, %v11255_v3  ;;  %v554_v37 = vpop.permute.xlu0 %553 }
 0x5da   :  { %v11263_v25 = vpop.eup %11262 }
 0x5db   :  { %v454_v27 = vpack.c.bf16 %v452_v21, %v451_v24  ;;  %v450_v29 = vmul.f32 %v11263_v25, %v11253_v1 }
 0x5dc   :  { %v11265_v28 = vpop.eup %11264 }
 0x5dd   :  { %v449_v30 = vmul.f32 %v11265_v28, %v11257_v5  ;;  %10351 = vmatmul.mubr.msk.bf16.vlgmr.msra.gmra.mrb[8].mxu1 %vm78_vm0, %v454_v27 }
 0x5de   :  { %10361 = vmatpush3.bf16.xpose.msra.mxu1 %v612_v31  ;;  %10362 = vmatprep.mubr.msk.bf16.mxu1 %vm11859_vm3, %v11858_v22 }
 0x5df   :  { %v453_v32 = vpack.c.bf16 %v450_v29, %v449_v30  ;;  %10372 = vmatprep.subr.bf16.mxu1 %v11858_v22 }
 0x5e1   :  { %10345 = vmatmul.mubr.msk.bf16.vlgmr.msra.gmra.mrb[8].mxu0 %vm78_vm0, %v453_v32 }
 0x5e2   :  { %10355 = vmatpush3.bf16.xpose.msra.mxu0 %v561_v35  ;;  %10356 = vmatprep.mubr.msk.bf16.mxu0 %vm11859_vm3, %v11858_v22 }
 0x5e3   :  { %10366 = vmatprep.subr.bf16.mxu0 %v11858_v22 }
 0x5e5   :  { %10363 = vmatmul.mubr.msk.bf16.vlgmr.msra.gmra.mrb[12].mxu1 %vm311_vm4, %v605_v36 }
 0x5e6   :  { %10374 = vmatprep.mubr.msk.bf16.mxu1 %vm11859_vm3, %v11858_v22 }
 0x5e9   :  { %10357 = vmatmul.mubr.msk.bf16.vlgmr.msra.gmra.mrb[12].mxu0 %vm311_vm4, %v554_v37 }
 0x5ea   :  { %10368 = vmatprep.mubr.msk.bf16.mxu0 %vm11859_vm3, %v11858_v22 }
 0x6b0   :  { %v542_v38 = vpop.f32.mrb[8].mxu1 }
 0x6b1   :  { %551 = vst.msk [vmem:[#allocation3 + $0x10] sm:$0xff] %vm311_vm4, %v542_v38  ;;  %v10352_v39 = vpop.f32.mrb[9].mxu1 }
 0x6b2   :  { %v545_v40 = vpop.f32.mrb[10].mxu1 }
 0x6b3   :  { %552 = vst.msk [vmem:[#allocation3 + $0x18] sm:$0xff] %vm311_vm4, %v545_v40  ;;  %v10353_v41 = vpop.f32.mrb[11].mxu1 }
 0x6b4   :  { %v495_v42 = vpop.f32.mrb[8].mxu0 }
 0x6b5   :  { %549 = vst.msk [vmem:[#allocation3] sm:$0xff] %vm311_vm4, %v495_v42  ;;  %v10346_v43 = vpop.f32.mrb[9].mxu0 }
 0x6b6   :  { %v498_v44 = vpop.f32.mrb[10].mxu0 }
 0x6b7   :  { %550 = vst.msk [vmem:[#allocation3 + $0x8] sm:$0xff] %vm311_vm4, %v498_v44  ;;  %v10347_v45 = vpop.f32.mrb[11].mxu0 }
 0x6b8   :  { %v648_v46 = vpop.f32.mrb[12].mxu1 }
 0x6b9   :  { %v10364_v47 = vpop.f32.mrb[13].mxu1  ;;  %v661_v56 = vsel %vm78_vm0, %v648_v46, -inf }
 0x6ba   :  { %v651_v48 = vpop.f32.mrb[14].mxu1 }
 0x6bb   :  { %v10365_v49 = vpop.f32.mrb[15].mxu1  ;;  %v664_v57 = vsel %vm78_vm0, %v651_v48, -inf }
 0x6bc   :  { %v597_v50 = vpop.f32.mrb[12].mxu0 }
 0x6bd   :  { %v10358_v51 = vpop.f32.mrb[13].mxu0  ;;  %v655_v52 = vsel %vm78_vm0, %v597_v50, -inf }
 0x6be   :  { %656 = vmax.xlane.f32.xlu0 %v655_v52  ;;  %v600_v53 = vpop.f32.mrb[14].mxu0 }
 0x6bf   :  { %v10359_v54 = vpop.f32.mrb[15].mxu0  ;;  %v658_v55 = vsel %vm78_vm0, %v600_v53, -inf }
 0x6c0   :  { %659 = vmax.xlane.f32.xlu1 %v658_v55 }
 0x6c2   :  { %662 = vmax.xlane.f32.xlu0 %v661_v56 }
 0x6c6   :  { %665 = vmax.xlane.f32.xlu0 %v664_v57 }
 0x6d1   :  { %748 = vrot.lane.b32.xlu1 %v12015_v33, %s11863_s14 }
 0x6d5   :  { %818 = vrot.lane.b32.xlu1 %v12017_v34, %s11864_s15 }
 0x74b   :  { %v657_v58 = vpop.xlane.xlu0 %656 }
 0x74c   :  { %v667_v60 = vsub.f32 %v597_v50, %v657_v58 }
 0x74d   :  { %v660_v59 = vpop.xlane.xlu1 %659 }
 0x74e   :  { %v671_v0 = vmul.f32 1.442695, %v667_v60  ;;  %v668_v1 = vsub.f32 %v600_v53, %v660_v59 }
 0x74f   :  { %v663_v61 = vpop.xlane.xlu0 %662 }
 0x750   :  { %v669_v62 = vsub.f32 %v648_v46, %v663_v61  ;;  %v673_v5 = vmul.f32 1.442695, %v668_v1 }
 0x751   :  { %v749_v63 = vpop.permute.xlu1 %748 }
 0x752   :  { %v675_v2 = vmul.f32 1.442695, %v669_v62  ;;  %10373 = vmatpush3.bf16.msra.mxu1 %v749_v63 }
 0x753   :  { %v666_v3 = vpop.xlane.xlu0 %665  ;;  %10384 = vmatprep.subr.bf16.mxu1 %v11858_v22 }
 0x754   :  { %11266 = vpow2.f32 %v675_v2  ;;  %v670_v4 = vsub.f32 %v651_v48, %v666_v3 }
 0x755   :  { %11268 = vpow2.f32 %v671_v0  ;;  %v819_v19 = vpop.permute.xlu1 %818 }
 0x756   :  { %v677_v7 = vmul.f32 1.442695, %v670_v4  ;;  %v824_v42 = vsel %vm311_vm4, %v819_v19, 0 }
 0x758   :  { %11270 = vpow2.f32 %v677_v7 }
 0x759   :  { %11272 = vpow2.f32 %v673_v5 }
 0x75e   :  { %v11267_v8 = vpop.eup %11266 }
 0x75f   :  { %v685_v10 = vsel %vm78_vm0, %v11267_v8, 0.0  ;;  %v11269_v11 = vpop.eup %11268 }
 0x760   :  { %686 = vadd.xlane.f32.xlu0 %v685_v10  ;;  %v679_v13 = vsel %vm78_vm0, %v11269_v11, 0.0 }
 0x762   :  { %v11271_v12 = vpop.eup %11270 }
 0x763   :  { %v688_v14 = vsel %vm78_vm0, %v11271_v12, 0.0  ;;  %v11273_v16 = vpop.eup %11272 }
 0x764   :  { %680 = vadd.xlane.f32.xlu0 %v679_v13  ;;  %689 = vadd.xlane.f32.xlu1 %v688_v14  ;;  %v682_v17 = vsel %vm78_vm0, %v11273_v16, 0.0 }
 0x768   :  { %683 = vadd.xlane.f32.xlu1 %v682_v17 }
 0x779   :  { %869 = vrot.lane.b32.xlu1 %v12015_v33, %s11864_s15 }
 0x77a   :  { %701 = vrot.lane.b32.xlu0 %v12017_v34, %s11863_s14 }
 0x77d   :  { %867 = vrot.lane.b32.xlu1 %v12015_v33, %s11865_s16 }
 0x77e   :  { %816 = vrot.lane.b32.xlu0 %v12017_v34, %s11865_s16 }
 0x7ed   :  { %v687_v21 = vpop.xlane.xlu0 %686 }
 0x7ee   :  { %11274 = vrcp.f32 %v687_v21 }
 0x7f1   :  { %v681_v24 = vpop.xlane.xlu0 %680  ;;  %v690_v25 = vpop.xlane.xlu1 %689 }
 0x7f2   :  { %11276 = vrcp.f32 %v690_v25 }
 0x7f3   :  { %11278 = vrcp.f32 %v681_v24 }
 0x7f5   :  { %v702_v26 = vpop.permute.xlu0 %701  ;;  %v684_v27 = vpop.xlane.xlu1 %683 }
 0x7f6   :  { %11280 = vrcp.f32 %v684_v27  ;;  %10367 = vmatpush3.bf16.msra.mxu0 %v702_v26 }
 0x7f7   :  { %10378 = vmatprep.subr.bf16.mxu0 %v11858_v22 }
 0x7f8   :  { %v11275_v28 = vpop.eup %11274 }
 0x7f9   :  { %v697_v31 = vmul.f32 %v11275_v28, %v11267_v8  ;;  %v870_v35 = vpop.permute.xlu1 %869  ;;  %v817_v44 = vpop.permute.xlu0 %816 }
 0x7fa   :  { %v875_v40 = vsel %vm311_vm4, %v870_v35, 0 }
 0x7fc   :  { %v11277_v29 = vpop.eup %11276 }
 0x7fd   :  { %v11279_v30 = vpop.eup %11278  ;;  %v698_v32 = vmul.f32 %v11277_v29, %v11271_v12  ;;  %v868_v43 = vpop.permute.xlu1 %867 }
 0x7fe   :  { %v695_v38 = vmul.f32 %v11279_v30, %v11269_v11 }
 0x7ff   :  { %v700_v37 = vpack.c.bf16 %v698_v32, %v697_v31 }
 0x800   :  { %v11281_v36 = vpop.eup %11280 }
 0x801   :  { %v696_v39 = vmul.f32 %v11281_v36, %v11273_v16  ;;  %10375 = vmatmul.mubr.msk.bf16.vlgmr.msra.gmra.mrb[16].mxu1 %vm78_vm0, %v700_v37 }
 0x802   :  { %10385 = vmatpush3.bf16.xpose.msra.mxu1 %v875_v40  ;;  %10386 = vmatprep.mubr.msk.bf16.mxu1 %vm11859_vm3, %v11858_v22 }
 0x803   :  { %v699_v41 = vpack.c.bf16 %v696_v39, %v695_v38  ;;  %10396 = vmatprep.subr.bf16.mxu1 %v11858_v22 }
 0x805   :  { %10369 = vmatmul.mubr.msk.bf16.vlgmr.msra.gmra.mrb[16].mxu0 %vm78_vm0, %v699_v41 }
 0x806   :  { %10379 = vmatpush3.bf16.xpose.msra.mxu0 %v824_v42  ;;  %10380 = vmatprep.mubr.msk.bf16.mxu0 %vm11859_vm3, %v11858_v22 }
 0x807   :  { %10390 = vmatprep.subr.bf16.mxu0 %v11858_v22 }
 0x809   :  { %10387 = vmatmul.mubr.msk.bf16.vlgmr.msra.gmra.mrb[20].mxu1 %vm311_vm4, %v868_v43 }
 0x80a   :  { %10398 = vmatprep.mubr.msk.bf16.mxu1 %vm11859_vm3, %v11858_v22 }
 0x80d   :  { %10381 = vmatmul.mubr.msk.bf16.vlgmr.msra.gmra.mrb[20].mxu0 %vm311_vm4, %v817_v44 }
 0x80e   :  { %10392 = vmatprep.mubr.msk.bf16.mxu0 %vm11859_vm3, %v11858_v22 }
 0x8d4   :  { %v12115_v45 = vpop.f32.mrb[16].mxu1 }
 0x8d5   :  { %v10376_v46 = vpop.f32.mrb[17].mxu1 }
 0x8d6   :  { %v12117_v47 = vpop.f32.mrb[18].mxu1 }
 0x8d7   :  { %v10377_v48 = vpop.f32.mrb[19].mxu1 }
 0x8d8   :  { %v12119_v49 = vpop.f32.mrb[16].mxu0 }
 0x8d9   :  { %v10370_v50 = vpop.f32.mrb[17].mxu0 }
 0x8da   :  { %v12121_v51 = vpop.f32.mrb[18].mxu0 }
 0x8db   :  { %v10371_v52 = vpop.f32.mrb[19].mxu0 }
 0x8dc   :  { %v911_v53 = vpop.f32.mrb[20].mxu1 }
 0x8dd   :  { %v10388_v54 = vpop.f32.mrb[21].mxu1  ;;  %v924_v63 = vsel %vm78_vm0, %v911_v53, -inf }
 0x8de   :  { %v914_v55 = vpop.f32.mrb[22].mxu1 }
 0x8df   :  { %v10389_v56 = vpop.f32.mrb[23].mxu1  ;;  %v927_v0 = vsel %vm78_vm0, %v914_v55, -inf }
 0x8e0   :  { %v860_v57 = vpop.f32.mrb[20].mxu0 }
 0x8e1   :  { %v10382_v58 = vpop.f32.mrb[21].mxu0  ;;  %v918_v59 = vsel %vm78_vm0, %v860_v57, -inf }
 0x8e2   :  { %919 = vmax.xlane.f32.xlu0 %v918_v59  ;;  %v863_v60 = vpop.f32.mrb[22].mxu0 }
 0x8e3   :  { %v10383_v61 = vpop.f32.mrb[23].mxu0  ;;  %v921_v62 = vsel %vm78_vm0, %v863_v60, -inf }
 0x8e4   :  { %922 = vmax.xlane.f32.xlu1 %v921_v62 }
 0x8e6   :  { %925 = vmax.xlane.f32.xlu0 %v924_v63 }
 0x8ea   :  { %928 = vmax.xlane.f32.xlu0 %v927_v0 }
 0x8f5   :  { %1011 = vrot.lane.b32.xlu1 %v12015_v33, %s11866_s17 }
 0x8f9   :  { %1081 = vrot.lane.b32.xlu1 %v12017_v34, %s11867_s19 }
 0x96f   :  { %v920_v1 = vpop.xlane.xlu0 %919 }
 0x970   :  { %v930_v3 = vsub.f32 %v860_v57, %v920_v1 }
 0x971   :  { %v923_v2 = vpop.xlane.xlu1 %922 }
 0x972   :  { %v934_v8 = vmul.f32 1.442695, %v930_v3  ;;  %v931_v10 = vsub.f32 %v863_v60, %v923_v2 }
 0x973   :  { %v926_v4 = vpop.xlane.xlu0 %925 }
 0x974   :  { %v932_v5 = vsub.f32 %v911_v53, %v926_v4  ;;  %v936_v14 = vmul.f32 1.442695, %v931_v10 }
 0x975   :  { %v1012_v7 = vpop.permute.xlu1 %1011 }
 0x976   :  { %v938_v11 = vmul.f32 1.442695, %v932_v5  ;;  %10397 = vmatpush3.bf16.msra.mxu1 %v1012_v7 }
 0x977   :  { %v929_v12 = vpop.xlane.xlu0 %928  ;;  %10408 = vmatprep.subr.bf16.mxu1 %v11858_v22 }
 0x978   :  { %11282 = vpow2.f32 %v938_v11  ;;  %v933_v13 = vsub.f32 %v914_v55, %v929_v12 }
 0x979   :  { %11284 = vpow2.f32 %v934_v8  ;;  %v1082_v29 = vpop.permute.xlu1 %1081 }
 0x97a   :  { %v940_v16 = vmul.f32 1.442695, %v933_v13  ;;  %v1087_v53 = vsel %vm311_vm4, %v1082_v29, 0 }
 0x97c   :  { %11286 = vpow2.f32 %v940_v16 }
 0x97d   :  { %11288 = vpow2.f32 %v936_v14 }
 0x982   :  { %v11283_v17 = vpop.eup %11282 }
 0x983   :  { %v948_v19 = vsel %vm78_vm0, %v11283_v17, 0.0  ;;  %v11285_v21 = vpop.eup %11284 }
 0x984   :  { %949 = vadd.xlane.f32.xlu0 %v948_v19  ;;  %v942_v25 = vsel %vm78_vm0, %v11285_v21, 0.0 }
 0x986   :  { %v11287_v24 = vpop.eup %11286 }
 0x987   :  { %v951_v26 = vsel %vm78_vm0, %v11287_v24, 0.0  ;;  %v11289_v27 = vpop.eup %11288 }
 0x988   :  { %943 = vadd.xlane.f32.xlu0 %v942_v25  ;;  %952 = vadd.xlane.f32.xlu1 %v951_v26  ;;  %v945_v28 = vsel %vm78_vm0, %v11289_v27, 0.0 }
 0x98c   :  { %946 = vadd.xlane.f32.xlu1 %v945_v28 }
 0x99d   :  { %1132 = vrot.lane.b32.xlu1 %v12015_v33, %s11867_s19 }
 0x99e   :  { %964 = vrot.lane.b32.xlu0 %v12017_v34, %s11866_s17 }
 0x9a1   :  { %1130 = vrot.lane.b32.xlu1 %v12015_v33, %s11868_s20 }
 0x9a2   :  { %1079 = vrot.lane.b32.xlu0 %v12017_v34, %s11868_s20 }
 0xa11   :  { %v950_v30 = vpop.xlane.xlu0 %949 }
 0xa12   :  { %11290 = vrcp.f32 %v950_v30 }
 0xa15   :  { %v944_v31 = vpop.xlane.xlu0 %943  ;;  %v953_v32 = vpop.xlane.xlu1 %952 }
 0xa16   :  { %11292 = vrcp.f32 %v953_v32 }
 0xa17   :  { %11294 = vrcp.f32 %v944_v31 }
 0xa19   :  { %v965_v35 = vpop.permute.xlu0 %964  ;;  %v947_v36 = vpop.xlane.xlu1 %946 }
 0xa1a   :  { %11296 = vrcp.f32 %v947_v36  ;;  %10391 = vmatpush3.bf16.msra.mxu0 %v965_v35 }
 0xa1b   :  { %10402 = vmatprep.subr.bf16.mxu0 %v11858_v22 }
 0xa1c   :  { %v11291_v37 = vpop.eup %11290 }
 0xa1d   :  { %v960_v40 = vmul.f32 %v11291_v37, %v11283_v17  ;;  %v1133_v42 = vpop.permute.xlu1 %1132  ;;  %v1080_v55 = vpop.permute.xlu0 %1079 }
 0xa1e   :  { %v1138_v50 = vsel %vm311_vm4, %v1133_v42, 0 }
 0xa20   :  { %v11293_v38 = vpop.eup %11292 }
 0xa21   :  { %v11295_v39 = vpop.eup %11294  ;;  %v961_v41 = vmul.f32 %v11293_v38, %v11287_v24  ;;  %v1131_v54 = vpop.permute.xlu1 %1130 }
 0xa22   :  { %v958_v46 = vmul.f32 %v11295_v39, %v11285_v21 }
 0xa23   :  { %v963_v44 = vpack.c.bf16 %v961_v41, %v960_v40 }
 0xa24   :  { %v11297_v43 = vpop.eup %11296 }
 0xa25   :  { %v959_v48 = vmul.f32 %v11297_v43, %v11289_v27  ;;  %10399 = vmatmul.mubr.msk.bf16.vlgmr.msra.gmra.mrb[24].mxu1 %vm78_vm0, %v963_v44 }
 0xa26   :  { %10409 = vmatpush3.bf16.xpose.msra.mxu1 %v1138_v50  ;;  %10410 = vmatprep.mubr.msk.bf16.mxu1 %vm11859_vm3, %v11858_v22 }
 0xa27   :  { %v962_v52 = vpack.c.bf16 %v959_v48, %v958_v46  ;;  %10420 = vmatprep.subr.bf16.mxu1 %v11858_v22 }
 0xa29   :  { %10393 = vmatmul.mubr.msk.bf16.vlgmr.msra.gmra.mrb[24].mxu0 %vm78_vm0, %v962_v52 }
 0xa2a   :  { %10403 = vmatpush3.bf16.xpose.msra.mxu0 %v1087_v53  ;;  %10404 = vmatprep.mubr.msk.bf16.mxu0 %vm11859_vm3, %v11858_v22 }
 0xa2b   :  { %10414 = vmatprep.subr.bf16.mxu0 %v11858_v22 }
 0xa2d   :  { %10411 = vmatmul.mubr.msk.bf16.vlgmr.msra.gmra.mrb[28].mxu1 %vm311_vm4, %v1131_v54 }
 0xa2e   :  { %10422 = vmatprep.mubr.msk.bf16.mxu1 %vm11859_vm3, %v11858_v22 }
 0xa31   :  { %10405 = vmatmul.mubr.msk.bf16.vlgmr.msra.gmra.mrb[28].mxu0 %vm311_vm4, %v1080_v55 }
 0xa32   :  { %10416 = vmatprep.mubr.msk.bf16.mxu0 %vm11859_vm3, %v11858_v22 }
 0xaf8   :  { %v1051_v56 = vpop.f32.mrb[24].mxu1 }
 0xaf9   :  { %v10400_v57 = vpop.f32.mrb[25].mxu1 }
 0xafa   :  { %v1054_v58 = vpop.f32.mrb[26].mxu1 }
 0xafb   :  { %v10401_v59 = vpop.f32.mrb[27].mxu1 }
 0xafc   :  { %v1004_v60 = vpop.f32.mrb[24].mxu0 }
 0xafd   :  { %v10394_v61 = vpop.f32.mrb[25].mxu0 }
 0xafe   :  { %v1007_v62 = vpop.f32.mrb[26].mxu0 }
 0xaff   :  { %v10395_v63 = vpop.f32.mrb[27].mxu0 }
 0xb00   :  { %v1174_v0 = vpop.f32.mrb[28].mxu1  ;;  %v11176_v63 = vld [vmem:[#allocation9 + $0x18] sm:$0xff]  }
 0xb01   :  { %v10412_v1 = vpop.f32.mrb[29].mxu1  ;;  %v1187_v12 = vsel %vm78_vm0, %v1174_v0, -inf }
 0xb02   :  { %v1177_v2 = vpop.f32.mrb[30].mxu1 }
 0xb03   :  { %v10413_v3 = vpop.f32.mrb[31].mxu1  ;;  %v1190_v13 = vsel %vm78_vm0, %v1177_v2, -inf }
 0xb04   :  { %v1123_v4 = vpop.f32.mrb[28].mxu0 }
 0xb05   :  { %v10406_v5 = vpop.f32.mrb[29].mxu0  ;;  %v1181_v7 = vsel %vm78_vm0, %v1123_v4, -inf }
 0xb06   :  { %1182 = vmax.xlane.f32.xlu0 %v1181_v7  ;;  %v1126_v8 = vpop.f32.mrb[30].mxu0 }
 0xb07   :  { %v10407_v10 = vpop.f32.mrb[31].mxu0  ;;  %v1184_v11 = vsel %vm78_vm0, %v1126_v8, -inf }
 0xb08   :  { %1185 = vmax.xlane.f32.xlu1 %v1184_v11 }
 0xb0a   :  { %1188 = vmax.xlane.f32.xlu0 %v1187_v12 }
 0xb0e   :  { %1191 = vmax.xlane.f32.xlu0 %v1190_v13 }
 0xb93   :  { %v1183_v14 = vpop.xlane.xlu0 %1182 }
 0xb94   :  { %v1193_v16 = vsub.f32 %v1123_v4, %v1183_v14 }
 0xb95   :  { %v1186_v17 = vpop.xlane.xlu1 %1185 }
 0xb96   :  { %v1197_v24 = vmul.f32 1.442695, %v1193_v16  ;;  %v1194_v25 = vsub.f32 %v1126_v8, %v1186_v17 }
 0xb97   :  { %v1189_v19 = vpop.xlane.xlu0 %1188 }
 0xb98   :  { %v1195_v21 = vsub.f32 %v1174_v0, %v1189_v19  ;;  %v1199_v29 = vmul.f32 1.442695, %v1194_v25  ;;  %v11177_v0 = vld [vmem:[#allocation9 + $0x20] sm:$0xff]  }
 0xb9a   :  { %v1201_v26 = vmul.f32 1.442695, %v1195_v21 }
 0xb9b   :  { %v1192_v27 = vpop.xlane.xlu0 %1191 }
 0xb9c   :  { %11298 = vpow2.f32 %v1201_v26  ;;  %v1196_v28 = vsub.f32 %v1177_v2, %v1192_v27  ;;  %v9749_v27 = vld [vmem:[#allocation10 + $0x1] ss:$0 sm:$0xff] }
 0xb9d   :  { %11300 = vpow2.f32 %v1197_v24 }
 0xb9e   :  { %v1203_v30 = vmul.f32 1.442695, %v1196_v28 }
 0xba0   :  { %11302 = vpow2.f32 %v1203_v30 }
 0xba1   :  { %11304 = vpow2.f32 %v1199_v29 }
 0xba6   :  { %v11299_v31 = vpop.eup %11298 }
 0xba7   :  { %v1211_v32 = vsel %vm78_vm0, %v11299_v31, 0.0  ;;  %v11301_v35 = vpop.eup %11300 }
 0xba8   :  { %1212 = vadd.xlane.f32.xlu0 %v1211_v32  ;;  %v1205_v37 = vsel %vm78_vm0, %v11301_v35, 0.0 }
 0xbaa   :  { %v11303_v36 = vpop.eup %11302 }
 0xbab   :  { %v1214_v38 = vsel %vm78_vm0, %v11303_v36, 0.0  ;;  %v11305_v39 = vpop.eup %11304 }
 0xbac   :  { %1206 = vadd.xlane.f32.xlu0 %v1205_v37  ;;  %1215 = vadd.xlane.f32.xlu1 %v1214_v38  ;;  %v1208_v40 = vsel %vm78_vm0, %v11305_v39, 0.0 }
 0xbb0   :  { %1209 = vadd.xlane.f32.xlu1 %v1208_v40 }
 0xbc1   :  { %1274 = vrot.lane.b32.xlu1 %v12015_v33, %s11869_s21 }
 0xbc2   :  { %1227 = vrot.lane.b32.xlu0 %v12017_v34, %s11869_s21 }
 0xbc5   :  { %799 = vrot.lane.b32.xlu1 %v12119_v49, %s11853_s28 }
 0xbc6   :  { %803 = vrot.lane.b32.xlu0 %v12115_v45, %s11853_s28 }
 0xbc9   :  { %801 = vrot.lane.b32.xlu1 %v12121_v51, %s11853_s28 }
 0xbca   :  { %1062 = vrot.lane.b32.xlu0 %v1004_v60, %s11870_s22 }
 0xbcd   :  { %805 = vrot.lane.b32.xlu1 %v12117_v47, %s11853_s28 }
 0xbce   :  { %1066 = vrot.lane.b32.xlu0 %v1051_v56, %s11870_s22 }
 0xbd1   :  { %1064 = vrot.lane.b32.xlu1 %v1007_v62, %s11870_s22 }
 0xbd5   :  { %1068 = vrot.lane.b32.xlu1 %v1054_v58, %s11870_s22 }
 0xc35   :  { %v1213_v33 = vpop.xlane.xlu0 %1212 }
 0xc36   :  { %11306 = vrcp.f32 %v1213_v33 }
 0xc39   :  { %v1207_v34 = vpop.xlane.xlu0 %1206  ;;  %v1216_v49 = vpop.xlane.xlu1 %1215 }
 0xc3a   :  { %11308 = vrcp.f32 %v1216_v49 }
 0xc3b   :  { %11310 = vrcp.f32 %v1207_v34 }
 0xc3d   :  { %v1228_v45 = vpop.permute.xlu0 %1227  ;;  %v1210_v51 = vpop.xlane.xlu1 %1209 }
 0xc3e   :  { %11312 = vrcp.f32 %v1210_v51  ;;  %10415 = vmatpush3.bf16.msra.mxu0 %v1228_v45 }
 0xc3f   :  { %10426 = vmatprep.subr.bf16.mxu0 %v11176_v63 }
 0xc40   :  { %v11307_v47 = vpop.eup %11306 }
 0xc41   :  { %v804_v41 = vpop.permute.xlu0 %803  ;;  %v1275_v42 = vpop.permute.xlu1 %1274  ;;  %v1223_v50 = vmul.f32 %v11307_v47, %v11299_v31 }
 0xc42   :  { %814 = vst.msk [vmem:[#allocation3 + $0x10] sm:$0xff] %vm811_vm5, %v804_v41  ;;  %10421 = vmatpush3.bf16.msra.mxu1 %v1275_v42 }
 0xc44   :  { %v11309_v43 = vpop.eup %11308 }
 0xc45   :  { %v1063_v44 = vpop.permute.xlu0 %1062  ;;  %v800_v46 = vpop.permute.xlu1 %799  ;;  %v1224_v52 = vmul.f32 %v11309_v43, %v11303_v36 }
 0xc46   :  { %v11311_v48 = vpop.eup %11310  ;;  %812 = vst.msk [vmem:[#allocation3] sm:$0xff] %vm811_vm5, %v800_v46 }
 0xc47   :  { %1075 = vst.msk [vmem:[#allocation3] sm:$0xff] %vm1074_vm6, %v1063_v44  ;;  %v1226_v54 = vpack.c.bf16 %v1224_v52, %v1223_v50  ;;  %v1221_v55 = vmul.f32 %v11311_v48, %v11301_v35 }
 0xc48   :  { %v11313_v53 = vpop.eup %11312 }
 0xc49   :  { %v1222_v56 = vmul.f32 %v11313_v53, %v11305_v39  ;;  %v1067_v57 = vpop.permute.xlu0 %1066  ;;  %v802_v58 = vpop.permute.xlu1 %801  ;;  %10423 = vmatmul.mubr.msk.bf16.vlgmr.msra.gmra.mrb[32].mxu1 %vm78_vm0, %v1226_v54 }
 0xc4a   :  { %1077 = vst.msk [vmem:[#allocation3 + $0x10] sm:$0xff] %vm1074_vm6, %v1067_v57 }
 0xc4b   :  { %813 = vst.msk [vmem:[#allocation3 + $0x8] sm:$0xff] %vm811_vm5, %v802_v58  ;;  %v1225_v59 = vpack.c.bf16 %v1222_v56, %v1221_v55 }
 0xc4d   :  { %10417 = vmatmul.mubr.msk.bf16.vlgmr.msra.gmra.mrb[32].mxu0 %vm78_vm0, %v1225_v59  ;;  %v806_v60 = vpop.permute.xlu1 %805  ;;  %v11178_v59 = vld [vmem:[#allocation9 + $0x28] sm:$0xff]  }
 0xc4e   :  { %815 = vst.msk [vmem:[#allocation3 + $0x18] sm:$0xff] %vm811_vm5, %v806_v60  ;;  %10427 = vmatpush3.bf16.msra.mxu0 %v11176_v63  ;;  %10434 = vmatprep.subr.bf16.mxu1 %v11178_v59  ;;  %v11179_v60 = vld [vmem:[#allocation9 + $0x30] sm:$0xff]  }
 0xc4f   :  { %10428 = vmatprep.subr.bf16.mxu0 %v11177_v0  ;;  %10435 = vmatpush3.bf16.msra.mxu1 %v11178_v59 }
 0xc50   :  { %10436 = vmatprep.subr.bf16.mxu1 %v11179_v60 }
 0xc51   :  { %v1065_v61 = vpop.permute.xlu1 %1064 }
 0xc52   :  { %1076 = vst.msk [vmem:[#allocation3 + $0x8] sm:$0xff] %vm1074_vm6, %v1065_v61  ;;  %10429 = vmatpush3.bf16.msra.mxu0 %v11177_v0  ;;  %v11180_v61 = vld [vmem:[#allocation9 + $0x38] sm:$0xff]  }
 0xc53   :  { %10437 = vmatpush3.bf16.msra.mxu1 %v11179_v60  ;;  %10442 = vmatprep.subr.bf16.mxu0 %v11180_v61 }
 0xc55   :  { %v1069_v62 = vpop.permute.xlu1 %1068 }
 0xc56   :  { %1078 = vst.msk [vmem:[#allocation3 + $0x18] sm:$0xff] %vm1074_vm6, %v1069_v62  ;;  %v11181_v62 = vld [vmem:[#allocation9 + $0x40] sm:$0xff]  }
 0xd1c   :  { %v1314_v1 = vpop.f32.mrb[32].mxu1 }
 0xd1d   :  { %v10424_v2 = vpop.f32.mrb[33].mxu1 }
 0xd1e   :  { %v1317_v3 = vpop.f32.mrb[34].mxu1 }
 0xd1f   :  { %v10425_v4 = vpop.f32.mrb[35].mxu1 }
 0xd20   :  { %v1267_v5 = vpop.f32.mrb[32].mxu0 }
 0xd21   :  { %1325 = vrot.lane.b32.xlu0 %v1267_v5, %s11871_s23  ;;  %v10418_v7 = vpop.f32.mrb[33].mxu0 }
 0xd22   :  { %v1270_v8 = vpop.f32.mrb[34].mxu0 }
 0xd23   :  { %1327 = vrot.lane.b32.xlu1 %v1270_v8, %s11871_s23  ;;  %v10419_v10 = vpop.f32.mrb[35].mxu0 }
 0xd25   :  { %1329 = vrot.lane.b32.xlu0 %v1314_v1, %s11871_s23 }
 0xd27   :  { %1331 = vrot.lane.b32.xlu1 %v1317_v3, %s11871_s23 }
 0xd93   :  { %v1326_v11 = vpop.permute.xlu0 %1325 }
 0xd94   :  { %1338 = vst.msk [vmem:[#allocation3] sm:$0xff] %vm1337_vm7, %v1326_v11 }
 0xd95   :  { %v1328_v12 = vpop.permute.xlu1 %1327 }
 0xd96   :  { %1339 = vst.msk [vmem:[#allocation3 + $0x8] sm:$0xff] %vm1337_vm7, %v1328_v12 }
 0xd97   :  { %v1330_v13 = vpop.permute.xlu0 %1329 }
 0xd98   :  { %1340 = vst.msk [vmem:[#allocation3 + $0x10] sm:$0xff] %vm1337_vm7, %v1330_v13 }
 0xd99   :  { %v1332_v14 = vpop.permute.xlu1 %1331 }
 0xd9a   :  { %1341 = vst.msk [vmem:[#allocation3 + $0x18] sm:$0xff] %vm1337_vm7, %v1332_v14  ;;  %v9750_v14 = vld [vmem:[#allocation10 + $0x6] ss:$0 sm:$0xff] }
 0xd9b   :  { %v1342_v16 = vld [vmem:[#allocation3] sm:$0xff] }
 0xd9d   :  { %v1343_v17 = vld [vmem:[#allocation3 + $0x8] sm:$0xff] }
 0xd9e   :  { %v1350_v19 = vpack.c.bf16 %v1343_v17, %v1342_v16 }
 0xd9f   :  { %v1344_v21 = vld [vmem:[#allocation3 + $0x10] sm:$0xff] }
 0xda0   :  { %10430 = vmatprep.mubr.msk.bf16.mxu0 %vm158_vm2, %v1350_v19 }
 0xda1   :  { %v1345_v24 = vld [vmem:[#allocation3 + $0x18] sm:$0xff] }
 0xda2   :  { %v1351_v25 = vpack.c.bf16 %v1345_v24, %v1344_v21 }
 0xda4   :  { %10431 = vmatmul.mubr.msk.bf16.vlgmr.msra.gmra.mrb[36].mxu0 %vm158_vm2, %v1351_v25  ;;  %v9751_v25 = vld [vmem:[#allocation10 + $0x7] ss:$0 sm:$0xff] }
 0xda5   :  { %10443 = vmatpush3.bf16.msra.mxu0 %v11180_v61 }
 0xda6   :  { %10444 = vmatprep.subr.bf16.mxu0 %v11181_v62 }
 0xda9   :  { %10445 = vmatpush3.bf16.msra.mxu0 %v11181_v62 }
 0xe77   :  { %v10432_v26 = vpop.f32.mrb[36].mxu0 }
 0xe78   :  { %v1404_v28 = vpop.f32.mrb[37].mxu0  ;;  %v1421_v29 = vadd.f32 %v10432_v26, %v11983_v15 }
 0xe79   :  { %v1419_v30 = vadd.f32 %v1404_v28, %v11985_v18  ;;  %v10433_v31 = vpop.f32.mrb[38].mxu0 }
 0xe7a   :  { %v1407_v32 = vpop.f32.mrb[39].mxu0  ;;  %v12210_v37 = vadd.f32 %v9749_v27, %v1421_v29  ;;  %v1422_v38 = vadd.f32 %v10433_v31, %v11987_v20 }
 0xe7b   :  { %v12207_v35 = vadd.f32 %v9749_v27, %v1419_v30  ;;  %v1420_v36 = vadd.f32 %v1407_v32, %v11991_v23 }
 0xe7c   :  { %v12219_v18 = vadd.f32 %v9749_v27, %v1422_v38  ;;  %v1440_v33 = vsel %vm158_vm2, %v12210_v37, 0.0 }
 0xe7d   :  { %v12213_v39 = vadd.f32 %v9749_v27, %v1420_v36  ;;  %v1434_v40 = vsel %vm158_vm2, %v12207_v35, 0.0 }
 0xe7e   :  { %1435 = vadd.xlane.f32.xlu0 %v1434_v40  ;;  %v1443_v23 = vsel %vm158_vm2, %v12219_v18, 0.0 }
 0xe7f   :  { %v1437_v15 = vsel %vm158_vm2, %v12213_v39, 0.0 }
 0xe80   :  { %1438 = vadd.xlane.f32.xlu1 %v1437_v15 }
 0xe82   :  { %1441 = vadd.xlane.f32.xlu0 %v1440_v33 }
 0xe86   :  { %1444 = vadd.xlane.f32.xlu0 %v1443_v23  ;;  %v11182_v23 = vld [vmem:[#allocation9 + $0x48] sm:$0xff]  }
 0xe87   :  { %10446 = vmatprep.subr.bf16.mxu0 %v11182_v23 }
 0xe88   :  { %10447 = vmatpush3.bf16.msra.mxu0 %v11182_v23 }
 0xf0b   :  { %v1436_v20 = vpop.xlane.xlu0 %1435 }
 0xf0c   :  { %v1446_v34 = vmul.f32 0.03125, %v1436_v20  ;;  %v11183_v20 = vld [vmem:[#allocation9 + $0x50] sm:$0xff]  }
 0xf0d   :  { %v1439_v49 = vpop.xlane.xlu1 %1438  ;;  %10448 = vmatprep.subr.bf16.mxu0 %v11183_v20 }
 0xf0e   :  { %v1450_v45 = vsub.f32 %v12207_v35, %v1446_v34  ;;  %v1447_v51 = vmul.f32 0.03125, %v1439_v49  ;;  %10449 = vmatpush3.bf16.msra.mxu0 %v11183_v20  ;;  %v9752_v34 = vld [vmem:[#allocation10 + $0x2] ss:$0 sm:$0xff] }
 0xf0f   :  { %v1442_v41 = vpop.xlane.xlu0 %1441  ;;  %10468 = vmatprep.subr.bf16.mxu0 %v11858_v22 }
 0xf10   :  { %v1451_v42 = vsub.f32 %v12213_v39, %v1447_v51  ;;  %v1448_v47 = vmul.f32 0.03125, %v1442_v41  ;;  %v1454_v43 = vmul.f32 %v1450_v45, %v1450_v45 }
 0xf12   :  { %v1452_v44 = vsub.f32 %v12210_v37, %v1448_v47  ;;  %v1458_v46 = vsel %vm158_vm2, %v1454_v43, 0.0  ;;  %v1455_v48 = vmul.f32 %v1451_v42, %v1451_v42 }
 0xf13   :  { %1459 = vadd.xlane.f32.xlu0 %v1458_v46  ;;  %v1445_v50 = vpop.xlane.xlu0 %1444 }
 0xf14   :  { %v1449_v52 = vmul.f32 0.03125, %v1445_v50  ;;  %v1461_v53 = vsel %vm158_vm2, %v1455_v48, 0.0  ;;  %v1456_v54 = vmul.f32 %v1452_v44, %v1452_v44 }
 0xf15   :  { %1462 = vadd.xlane.f32.xlu1 %v1461_v53 }
 0xf16   :  { %v1453_v55 = vsub.f32 %v12219_v18, %v1449_v52  ;;  %v1464_v56 = vsel %vm158_vm2, %v1456_v54, 0.0 }
 0xf17   :  { %1465 = vadd.xlane.f32.xlu0 %v1464_v56  ;;  %v9763_v56 = vld [vmem:[#allocation10 + $0x3] ss:$0 sm:$0xff] }
 0xf18   :  { %v1457_v57 = vmul.f32 %v1453_v55, %v1453_v55 }
 0xf1a   :  { %v1467_v58 = vsel %vm158_vm2, %v1457_v57, 0.0 }
 0xf1b   :  { %1468 = vadd.xlane.f32.xlu1 %v1467_v58 }
 0xfa0   :  { %v1460_v63 = vpop.xlane.xlu0 %1459 }
 0xfa1   :  { %v1470_v0 = vmul.f32 0.03125, %v1460_v63 }
 0xfa2   :  { %v1463_v1 = vpop.xlane.xlu1 %1462 }
 0xfa3   :  { %v1474_v2 = vadd.f32 1e-05, %v1470_v0  ;;  %v1471_v3 = vmul.f32 0.03125, %v1463_v1 }
 0xfa4   :  { %v1466_v4 = vpop.xlane.xlu0 %1465 }
 0xfa5   :  { %11314 = vrsqrt.f32 %v1474_v2  ;;  %v1475_v5 = vadd.f32 1e-05, %v1471_v3  ;;  %v1472_v7 = vmul.f32 0.03125, %v1466_v4 }
 0xfa7   :  { %11316 = vrsqrt.f32 %v1475_v5  ;;  %v1476_v8 = vadd.f32 1e-05, %v1472_v7 }
 0xfa8   :  { %v1469_v10 = vpop.xlane.xlu1 %1468 }
 0xfa9   :  { %11318 = vrsqrt.f32 %v1476_v8  ;;  %v1473_v11 = vmul.f32 0.03125, %v1469_v10 }
 0xfab   :  { %v1477_v12 = vadd.f32 1e-05, %v1473_v11 }
 0xfad   :  { %11320 = vrsqrt.f32 %v1477_v12 }
 0xfaf   :  { %v11315_v13 = vpop.eup %11314 }
 0xfb0   :  { %v1482_v16 = vmul.f32 %v11315_v13, %v1450_v45 }
 0xfb1   :  { %v11317_v17 = vpop.eup %11316 }
 0xfb2   :  { %v1483_v19 = vmul.f32 %v11317_v17, %v1451_v42  ;;  %v1490_v21 = vmul.f32 %v9750_v14, %v1482_v16 }
 0xfb3   :  { %v11319_v24 = vpop.eup %11318 }
 0xfb4   :  { %v1484_v26 = vmul.f32 %v11319_v24, %v1452_v44  ;;  %v1491_v27 = vmul.f32 %v9750_v14, %v1483_v19  ;;  %v1498_v28 = vadd.f32 %v9751_v25, %v1490_v21 }
 0xfb6   :  { %v1499_v29 = vadd.f32 %v9751_v25, %v1491_v27  ;;  %v1492_v36 = vmul.f32 %v9750_v14, %v1484_v26 }
 0xfb7   :  { %v11321_v30 = vpop.eup %11320 }
 0xfb8   :  { %v1485_v31 = vmul.f32 %v11321_v30, %v1453_v55  ;;  %v1506_v32 = vpack.c.bf16 %v1499_v29, %v1498_v28  ;;  %v1500_v40 = vadd.f32 %v9751_v25, %v1492_v36 }
 0xfba   :  { %10438 = vmatprep.mubr.msk.bf16.mxu1 %vm158_vm2, %v1506_v32  ;;  %v1493_v38 = vmul.f32 %v9750_v14, %v1485_v31  ;;  %v11184_v31 = vld [vmem:[#allocation9 + $0x58] sm:$0xff]   ;;  %v11185_v32 = vld [vmem:[#allocation9 + $0x60] sm:$0xff]  }
 0xfbb   :  { %10454 = vmatprep.subr.bf16.mxu1 %v11184_v31 }
 0xfbc   :  { %v1501_v15 = vadd.f32 %v9751_v25, %v1493_v38 }
 0xfbe   :  { %v1507_v33 = vpack.c.bf16 %v1501_v15, %v1500_v40 }
 0xfc0   :  { %10439 = vmatmul.mubr.msk.bf16.vlgmr.msra.gmra.mrb[36].mxu1 %vm158_vm2, %v1507_v33 }
 0xfc1   :  { %10455 = vmatpush3.bf16.msra.mxu1 %v11184_v31 }
 0xfc2   :  { %10456 = vmatprep.subr.bf16.mxu1 %v11185_v32 }
 0xfc5   :  { %10457 = vmatpush3.bf16.msra.mxu1 %v11185_v32 }
 0xfc6   :  { %10462 = vmatprep.subr.bf16.mxu1 %v11858_v22 }
0x1093   :  { %v10440_v49 = vpop.f32.mrb[36].mxu1 }
0x1094   :  { %v1574_v45 = vadd.f32 %v10440_v49, %v9752_v34  ;;  %v1565_v51 = vpop.f32.mrb[37].mxu1 }
0x1095   :  { %v1566_v41 = vadd.f32 %v9752_v34, %v1565_v51  ;;  %v10441_v42 = vpop.f32.mrb[38].mxu1 }
0x1096   :  { %v1577_v47 = vadd.f32 %v10441_v42, %v9752_v34  ;;  %v1568_v43 = vpop.f32.mrb[39].mxu1  ;;  %v1582_v46 = vmax.f32 %v1574_v45, 0.0 }
0x1097   :  { %v1569_v44 = vadd.f32 %v9752_v34, %v1568_v43  ;;  %v1580_v50 = vmax.f32 %v1566_v41, 0.0 }
0x1098   :  { %v1583_v48 = vmax.f32 %v1577_v47, 0.0  ;;  %v9764_v47 = vld [vmem:[#allocation10 + $0xc] ss:$0 sm:$0xff] }
0x1099   :  { %v1581_v52 = vmax.f32 %v1569_v44, 0.0 }
0x109a   :  { %v1593_v53 = vpack.c.bf16 %v1583_v48, %v1582_v46 }
0x109b   :  { %v1592_v54 = vpack.c.bf16 %v1581_v52, %v1580_v50  ;;  %v9765_v52 = vld [vmem:[#allocation10 + $0xd] ss:$0 sm:$0xff] }
0x109d   :  { %10450 = vmatprep.mubr.msk.bf16.mxu0 %vm1618_vm8, %v1592_v54 }
0x109e   :  { %10451 = vmatmul.mubr.msk.bf16.vlgmr.msra.gmra.mrb[40].mxu0 %vm1618_vm8, %v1593_v53 }
0x109f   :  { %10470 = vmatprep.mubr.msk.bf16.mxu0 %vm11859_vm3, %v11858_v22 }
0x1171   :  { %v10452_v55 = vpop.f32.mrb[40].mxu0 }
0x1172   :  { %v1659_v57 = vpop.f32.mrb[41].mxu0  ;;  %v1676_v58 = vadd.f32 %v10452_v55, %v12210_v37 }
0x1173   :  { %v1674_v59 = vadd.f32 %v1659_v57, %v12207_v35  ;;  %v10453_v60 = vpop.f32.mrb[42].mxu0 }
0x1174   :  { %v1662_v61 = vpop.f32.mrb[43].mxu0  ;;  %v1677_v63 = vadd.f32 %v10453_v60, %v12219_v18  ;;  %v12246_v1 = vadd.f32 %v9763_v56, %v1676_v58 }
0x1175   :  { %v12242_v62 = vadd.f32 %v9763_v56, %v1674_v59  ;;  %v1675_v0 = vadd.f32 %v1662_v61, %v12213_v39 }
0x1176   :  { %v12252_v4 = vadd.f32 %v9763_v56, %v1677_v63  ;;  %v1695_v37 = vsel %vm158_vm2, %v12246_v1, 0.0 }
0x1177   :  { %v12248_v2 = vadd.f32 %v9763_v56, %v1675_v0  ;;  %v1689_v3 = vsel %vm158_vm2, %v12242_v62, 0.0 }
0x1178   :  { %1690 = vadd.xlane.f32.xlu0 %v1689_v3  ;;  %v1698_v39 = vsel %vm158_vm2, %v12252_v4, 0.0 }
0x1179   :  { %v1692_v35 = vsel %vm158_vm2, %v12248_v2, 0.0 }
0x117a   :  { %1693 = vadd.xlane.f32.xlu1 %v1692_v35 }
0x117c   :  { %1696 = vadd.xlane.f32.xlu0 %v1695_v37  ;;  %v9766_v37 = vld [vmem:[#allocation10 + $0x8] ss:$0 sm:$0xff] }
0x117e   :  { %1699 = vadd.xlane.f32.xlu1 %v1698_v39 }
0x1205   :  { %v1691_v18 = vpop.xlane.xlu0 %1690 }
0x1206   :  { %v1701_v5 = vmul.f32 0.03125, %v1691_v18 }
0x1207   :  { %v1694_v7 = vpop.xlane.xlu1 %1693 }
0x1208   :  { %v1705_v8 = vsub.f32 %v12242_v62, %v1701_v5  ;;  %v1702_v10 = vmul.f32 0.03125, %v1694_v7 }
0x1209   :  { %v1697_v11 = vpop.xlane.xlu0 %1696 }
0x120a   :  { %v1706_v12 = vsub.f32 %v12248_v2, %v1702_v10  ;;  %v1703_v13 = vmul.f32 0.03125, %v1697_v11  ;;  %v1709_v14 = vmul.f32 %v1705_v8, %v1705_v8 }
0x120b   :  { %v1700_v16 = vpop.xlane.xlu1 %1699 }
0x120c   :  { %v1707_v17 = vsub.f32 %v12246_v1, %v1703_v13  ;;  %v1704_v19 = vmul.f32 0.03125, %v1700_v16  ;;  %v1713_v21 = vsel %vm158_vm2, %v1709_v14, 0.0  ;;  %v1710_v24 = vmul.f32 %v1706_v12, %v1706_v12 }
0x120d   :  { %1714 = vadd.xlane.f32.xlu0 %v1713_v21 }
0x120e   :  { %v1708_v25 = vsub.f32 %v12252_v4, %v1704_v19  ;;  %v1716_v26 = vsel %vm158_vm2, %v1710_v24, 0.0  ;;  %v1711_v27 = vmul.f32 %v1707_v17, %v1707_v17 }
0x120f   :  { %1717 = vadd.xlane.f32.xlu1 %v1716_v26 }
0x1210   :  { %v1719_v28 = vsel %vm158_vm2, %v1711_v27, 0.0  ;;  %v1712_v29 = vmul.f32 %v1708_v25, %v1708_v25 }
0x1211   :  { %1720 = vadd.xlane.f32.xlu0 %v1719_v28 }
0x1212   :  { %v1722_v30 = vsel %vm158_vm2, %v1712_v29, 0.0 }
0x1213   :  { %1723 = vadd.xlane.f32.xlu1 %v1722_v30 }
0x129a   :  { %v1715_v36 = vpop.xlane.xlu0 %1714 }
0x129b   :  { %v1725_v38 = vmul.f32 0.03125, %v1715_v36 }
0x129c   :  { %v1718_v40 = vpop.xlane.xlu1 %1717 }
0x129d   :  { %v1729_v15 = vadd.f32 1e-05, %v1725_v38  ;;  %v1726_v33 = vmul.f32 0.03125, %v1718_v40 }
0x129e   :  { %v1721_v23 = vpop.xlane.xlu0 %1720 }
0x129f   :  { %11322 = vrsqrt.f32 %v1729_v15  ;;  %v1730_v20 = vadd.f32 1e-05, %v1726_v33  ;;  %v1727_v34 = vmul.f32 0.03125, %v1721_v23 }
0x12a0   :  { %v1724_v49 = vpop.xlane.xlu1 %1723 }
0x12a1   :  { %11324 = vrsqrt.f32 %v1730_v20  ;;  %v1731_v45 = vadd.f32 1e-05, %v1727_v34  ;;  %v1728_v51 = vmul.f32 0.03125, %v1724_v49 }
0x12a3   :  { %11326 = vrsqrt.f32 %v1731_v45  ;;  %v1732_v41 = vadd.f32 1e-05, %v1728_v51 }
0x12a5   :  { %11328 = vrsqrt.f32 %v1732_v41 }
0x12a9   :  { %v11323_v42 = vpop.eup %11322 }
0x12aa   :  { %v1737_v43 = vmul.f32 %v11323_v42, %v1705_v8 }
0x12ab   :  { %v11325_v44 = vpop.eup %11324 }
0x12ac   :  { %v1738_v46 = vmul.f32 %v11325_v44, %v1706_v12  ;;  %v1745_v48 = vmul.f32 %v9764_v47, %v1737_v43 }
0x12ad   :  { %v11327_v50 = vpop.eup %11326 }
0x12ae   :  { %v1739_v53 = vmul.f32 %v11327_v50, %v1707_v17  ;;  %v1746_v54 = vmul.f32 %v9764_v47, %v1738_v46  ;;  %v1753_v57 = vadd.f32 %v9765_v52, %v1745_v48 }
0x12af   :  { %v11329_v55 = vpop.eup %11328 }
0x12b0   :  { %v1740_v56 = vmul.f32 %v11329_v55, %v1708_v25  ;;  %v1754_v58 = vadd.f32 %v9765_v52, %v1746_v54  ;;  %v1747_v59 = vmul.f32 %v9764_v47, %v1739_v53 }
0x12b2   :  { %v1761_v60 = vpack.c.bf16 %v1754_v58, %v1753_v57  ;;  %v1748_v61 = vmul.f32 %v9764_v47, %v1740_v56  ;;  %v1755_v63 = vadd.f32 %v9765_v52, %v1747_v59 }
0x12b4   :  { %10458 = vmatprep.mubr.msk.bf16.mxu1 %vm158_vm2, %v1761_v60  ;;  %v1756_v0 = vadd.f32 %v9765_v52, %v1748_v61 }
0x12b6   :  { %v1762_v3 = vpack.c.bf16 %v1756_v0, %v1755_v63 }
0x12b8   :  { %10459 = vmatmul.mubr.msk.bf16.vlgmr.msra.gmra.mrb[40].mxu1 %vm158_vm2, %v1762_v3 }
0x12b9   :  { %10464 = vmatprep.mubr.msk.bf16.mxu1 %vm11859_vm3, %v11858_v22 }
0x138b   :  { %v10460_v35 = vpop.f32.mrb[40].mxu1 }
0x138c   :  { %v1820_v39 = vpop.f32.mrb[41].mxu1  ;;  %v1829_v5 = vadd.f32 %v10460_v35, %v9766_v37 }
0x138d   :  { %v10461_v18 = vpop.f32.mrb[42].mxu1  ;;  %v1821_v10 = vadd.f32 %v9766_v37, %v1820_v39 }
0x138e   :  { %v1832_v7 = vadd.f32 %v10461_v18, %v9766_v37  ;;  %v1823_v8 = vpop.f32.mrb[43].mxu1 }
0x138f   :  { %v1824_v11 = vadd.f32 %v9766_v37, %v1823_v8 }
0x1390   :  { %v12273_v12 = vpack.c.bf16 %v1832_v7, %v1829_v5 }
0x1391   :  { %v12275_v13 = vpack.c.bf16 %v1824_v11, %v1821_v10 }
0x1392   :  { %1888 = vrot.lane.b32.xlu1 %v12273_v12, %s11860_s3 }
0x1393   :  { %1838 = vrot.lane.b32.xlu0 %v12275_v13, %s11860_s3 }
0x1404   :  { %v1889_v14 = vpop.permute.xlu1 %1888 }
0x1405   :  { %v1894_v16 = vsel %vm311_vm4, %v1889_v14, 0  ;;  %v1839_v17 = vpop.permute.xlu0 %1838 }
0x1406   :  { %v1844_v19 = vsel %vm311_vm4, %v1839_v17, 0  ;;  %10469 = vmatpush3.bf16.xpose.msra.mxu0 %v1894_v16 }
0x1407   :  { %10463 = vmatpush3.bf16.xpose.msra.mxu1 %v1844_v19  ;;  %10480 = vmatprep.subr.bf16.mxu0 %v11858_v22 }
0x1408   :  { %10474 = vmatprep.subr.bf16.mxu1 %v11858_v22 }
0x140d   :  { %10471 = vmatmul.mubr.msk.bf16.vlgmr.msra.gmra.mrb[44].mxu0 %vm311_vm4, %v12273_v12 }
0x140e   :  { %10465 = vmatmul.mubr.msk.bf16.vlgmr.msra.gmra.mrb[44].mxu1 %vm311_vm4, %v12275_v13  ;;  %10482 = vmatprep.mubr.msk.bf16.mxu0 %vm11859_vm3, %v11858_v22 }
0x140f   :  { %10476 = vmatprep.mubr.msk.bf16.mxu1 %vm11859_vm3, %v11858_v22 }
0x14e0   :  { %v1930_v21 = vpop.f32.mrb[44].mxu0 }
0x14e1   :  { %v1880_v24 = vpop.f32.mrb[44].mxu1  ;;  %v10472_v25 = vpop.f32.mrb[45].mxu0  ;;  %v1943_v38 = vsel %vm78_vm0, %v1930_v21, -inf }
0x14e2   :  { %v10466_v26 = vpop.f32.mrb[45].mxu1  ;;  %v1933_v27 = vpop.f32.mrb[46].mxu0  ;;  %v1937_v28 = vsel %vm78_vm0, %v1880_v24, -inf }
0x14e3   :  { %v10473_v29 = vpop.f32.mrb[47].mxu0  ;;  %1938 = vmax.xlane.f32.xlu1 %v1937_v28  ;;  %v1883_v30 = vpop.f32.mrb[46].mxu1  ;;  %v1946_v36 = vsel %vm78_vm0, %v1933_v27, -inf }
0x14e4   :  { %v10467_v31 = vpop.f32.mrb[47].mxu1  ;;  %v1940_v32 = vsel %vm78_vm0, %v1883_v30, -inf }
0x14e5   :  { %1941 = vmax.xlane.f32.xlu0 %v1940_v32 }
0x14e7   :  { %1947 = vmax.xlane.f32.xlu1 %v1946_v36 }
0x14e9   :  { %1944 = vmax.xlane.f32.xlu0 %v1943_v38 }
0x14f8   :  { %2030 = vrot.lane.b32.xlu1 %v12273_v12, %s11855_s0 }
0x14fc   :  { %2083 = vrot.lane.b32.xlu1 %v12275_v13, %s11861_s27 }
0x1570   :  { %v1939_v40 = vpop.xlane.xlu1 %1938 }
0x1571   :  { %v1949_v20 = vsub.f32 %v1880_v24, %v1939_v40 }
0x1572   :  { %v1942_v15 = vpop.xlane.xlu0 %1941 }
0x1573   :  { %v1950_v33 = vsub.f32 %v1883_v30, %v1942_v15  ;;  %v1953_v47 = vmul.f32 1.442695, %v1949_v20 }
0x1574   :  { %v1948_v23 = vpop.xlane.xlu1 %1947 }
0x1575   :  { %v1952_v34 = vsub.f32 %v1933_v27, %v1948_v23  ;;  %v1955_v49 = vmul.f32 1.442695, %v1950_v33 }
0x1576   :  { %v1945_v45 = vpop.xlane.xlu0 %1944 }
0x1577   :  { %v1959_v51 = vmul.f32 1.442695, %v1952_v34  ;;  %v1951_v41 = vsub.f32 %v1930_v21, %v1945_v45 }
0x1578   :  { %v2031_v42 = vpop.permute.xlu1 %2030 }
0x1579   :  { %11330 = vpow2.f32 %v1959_v51  ;;  %v1957_v43 = vmul.f32 1.442695, %v1951_v41  ;;  %10481 = vmatpush3.bf16.msra.mxu0 %v2031_v42 }
0x157a   :  { %11332 = vpow2.f32 %v1955_v49  ;;  %10492 = vmatprep.subr.bf16.mxu0 %v11858_v22 }
0x157b   :  { %11334 = vpow2.f32 %v1957_v43 }
0x157c   :  { %11336 = vpow2.f32 %v1953_v47  ;;  %v2084_v56 = vpop.permute.xlu1 %2083 }
0x157d   :  { %v2089_v14 = vsel %vm311_vm4, %v2084_v56, 0 }
0x1583   :  { %v11331_v44 = vpop.eup %11330 }
0x1584   :  { %v11333_v46 = vpop.eup %11332  ;;  %v1970_v48 = vsel %vm78_vm0, %v11331_v44, 0.0 }
0x1585   :  { %v11335_v50 = vpop.eup %11334  ;;  %1971 = vadd.xlane.f32.xlu1 %v1970_v48  ;;  %v1964_v54 = vsel %vm78_vm0, %v11333_v46, 0.0 }
0x1586   :  { %v1967_v52 = vsel %vm78_vm0, %v11335_v50, 0.0  ;;  %v11337_v53 = vpop.eup %11336 }
0x1587   :  { %1968 = vadd.xlane.f32.xlu0 %v1967_v52  ;;  %v1961_v55 = vsel %vm78_vm0, %v11337_v53, 0.0 }
0x1589   :  { %1965 = vadd.xlane.f32.xlu1 %v1964_v54 }
0x158b   :  { %1962 = vadd.xlane.f32.xlu0 %v1961_v55 }
0x159a   :  { %2134 = vrot.lane.b32.xlu1 %v12273_v12, %s11861_s27 }
0x159e   :  { %2132 = vrot.lane.b32.xlu1 %v12273_v12, %s11862_s13 }
0x15a1   :  { %1983 = vrot.lane.b32.xlu0 %v12275_v13, %s11855_s0 }
0x15a5   :  { %2081 = vrot.lane.b32.xlu0 %v12275_v13, %s11862_s13 }
0x1612   :  { %v1972_v57 = vpop.xlane.xlu1 %1971 }
0x1613   :  { %11338 = vrcp.f32 %v1972_v57 }
0x1614   :  { %v1969_v58 = vpop.xlane.xlu0 %1968 }
0x1615   :  { %11340 = vrcp.f32 %v1969_v58 }
0x1616   :  { %v1966_v59 = vpop.xlane.xlu1 %1965 }
0x1617   :  { %11342 = vrcp.f32 %v1966_v59 }
0x1618   :  { %v1963_v60 = vpop.xlane.xlu0 %1962 }
0x1619   :  { %11344 = vrcp.f32 %v1963_v60 }
0x161a   :  { %v2135_v39 = vpop.permute.xlu1 %2134 }
0x161b   :  { %v2140_v10 = vsel %vm311_vm4, %v2135_v39, 0 }
0x161c   :  { %v1984_v61 = vpop.permute.xlu0 %1983 }
0x161d   :  { %v11339_v63 = vpop.eup %11338  ;;  %10475 = vmatpush3.bf16.msra.mxu1 %v1984_v61 }
0x161e   :  { %10486 = vmatprep.subr.bf16.mxu1 %v11858_v22  ;;  %v1980_v3 = vmul.f32 %v11339_v63, %v11331_v44  ;;  %v2133_v16 = vpop.permute.xlu1 %2132 }
0x161f   :  { %v11341_v0 = vpop.eup %11340 }
0x1620   :  { %v1979_v35 = vmul.f32 %v11341_v0, %v11335_v50  ;;  %v2082_v17 = vpop.permute.xlu0 %2081 }
0x1621   :  { %v11343_v37 = vpop.eup %11342 }
0x1622   :  { %v1982_v18 = vpack.c.bf16 %v1980_v3, %v1979_v35  ;;  %v1978_v7 = vmul.f32 %v11343_v37, %v11333_v46 }
0x1623   :  { %v11345_v5 = vpop.eup %11344 }
0x1624   :  { %v1977_v8 = vmul.f32 %v11345_v5, %v11337_v53  ;;  %10483 = vmatmul.mubr.msk.bf16.vlgmr.msra.gmra.mrb[48].mxu0 %vm78_vm0, %v1982_v18 }
0x1625   :  { %10493 = vmatpush3.bf16.xpose.msra.mxu0 %v2140_v10  ;;  %10494 = vmatprep.mubr.msk.bf16.mxu0 %vm11859_vm3, %v11858_v22 }
0x1626   :  { %v1981_v11 = vpack.c.bf16 %v1978_v7, %v1977_v8  ;;  %10504 = vmatprep.subr.bf16.mxu0 %v11858_v22 }
0x1628   :  { %10477 = vmatmul.mubr.msk.bf16.vlgmr.msra.gmra.mrb[48].mxu1 %vm78_vm0, %v1981_v11 }
0x1629   :  { %10487 = vmatpush3.bf16.xpose.msra.mxu1 %v2089_v14  ;;  %10488 = vmatprep.mubr.msk.bf16.mxu1 %vm11859_vm3, %v11858_v22 }
0x162a   :  { %10498 = vmatprep.subr.bf16.mxu1 %v11858_v22 }
0x162c   :  { %10495 = vmatmul.mubr.msk.bf16.vlgmr.msra.gmra.mrb[52].mxu0 %vm311_vm4, %v2133_v16 }
0x162d   :  { %10506 = vmatprep.mubr.msk.bf16.mxu0 %vm11859_vm3, %v11858_v22 }
0x1630   :  { %10489 = vmatmul.mubr.msk.bf16.vlgmr.msra.gmra.mrb[52].mxu1 %vm311_vm4, %v2082_v17 }
0x1631   :  { %10500 = vmatprep.mubr.msk.bf16.mxu1 %vm11859_vm3, %v11858_v22 }
0x16f7   :  { %v2070_v19 = vpop.f32.mrb[48].mxu0 }
0x16f8   :  { %2079 = vst.msk [vmem:[#allocation3 + $0x10] sm:$0xff] %vm311_vm4, %v2070_v19  ;;  %v10484_v21 = vpop.f32.mrb[49].mxu0 }
0x16f9   :  { %v2073_v24 = vpop.f32.mrb[50].mxu0 }
0x16fa   :  { %2080 = vst.msk [vmem:[#allocation3 + $0x18] sm:$0xff] %vm311_vm4, %v2073_v24  ;;  %v10485_v25 = vpop.f32.mrb[51].mxu0 }
0x16fb   :  { %v2023_v26 = vpop.f32.mrb[48].mxu1 }
0x16fc   :  { %2077 = vst.msk [vmem:[#allocation3] sm:$0xff] %vm311_vm4, %v2023_v26  ;;  %v10478_v27 = vpop.f32.mrb[49].mxu1 }
0x16fd   :  { %v2026_v28 = vpop.f32.mrb[50].mxu1 }
0x16fe   :  { %2078 = vst.msk [vmem:[#allocation3 + $0x8] sm:$0xff] %vm311_vm4, %v2026_v28  ;;  %v10479_v29 = vpop.f32.mrb[51].mxu1 }
0x16ff   :  { %v2176_v30 = vpop.f32.mrb[52].mxu0 }
0x1700   :  { %v10496_v31 = vpop.f32.mrb[53].mxu0  ;;  %v2189_v34 = vsel %vm78_vm0, %v2176_v30, -inf }
0x1701   :  { %v2179_v32 = vpop.f32.mrb[54].mxu0 }
0x1702   :  { %v10497_v36 = vpop.f32.mrb[55].mxu0  ;;  %v2192_v49 = vsel %vm78_vm0, %v2179_v32, -inf }
0x1703   :  { %v2125_v38 = vpop.f32.mrb[52].mxu1 }
0x1704   :  { %v10490_v40 = vpop.f32.mrb[53].mxu1  ;;  %v2183_v15 = vsel %vm78_vm0, %v2125_v38, -inf }
0x1705   :  { %2184 = vmax.xlane.f32.xlu0 %v2183_v15  ;;  %v2128_v33 = vpop.f32.mrb[54].mxu1 }
0x1706   :  { %v10491_v23 = vpop.f32.mrb[55].mxu1  ;;  %v2186_v20 = vsel %vm78_vm0, %v2128_v33, -inf }
0x1707   :  { %2187 = vmax.xlane.f32.xlu1 %v2186_v20 }
0x1709   :  { %2190 = vmax.xlane.f32.xlu0 %v2189_v34 }
0x170d   :  { %2193 = vmax.xlane.f32.xlu0 %v2192_v49 }
0x1718   :  { %2276 = vrot.lane.b32.xlu1 %v12273_v12, %s11863_s14 }
0x171c   :  { %2345 = vrot.lane.b32.xlu1 %v12275_v13, %s11864_s15 }
0x1792   :  { %v2185_v45 = vpop.xlane.xlu0 %2184 }
0x1793   :  { %v2195_v41 = vsub.f32 %v2125_v38, %v2185_v45 }
0x1794   :  { %v2188_v51 = vpop.xlane.xlu1 %2187 }
0x1795   :  { %v2199_v44 = vmul.f32 1.442695, %v2195_v41  ;;  %v2196_v46 = vsub.f32 %v2128_v33, %v2188_v51 }
0x1796   :  { %v2191_v42 = vpop.xlane.xlu0 %2190 }
0x1797   :  { %v2197_v47 = vsub.f32 %v2176_v30, %v2191_v42  ;;  %v2201_v53 = vmul.f32 1.442695, %v2196_v46 }
0x1798   :  { %v2277_v43 = vpop.permute.xlu1 %2276 }
0x1799   :  { %v2203_v48 = vmul.f32 1.442695, %v2197_v47  ;;  %10505 = vmatpush3.bf16.msra.mxu0 %v2277_v43 }
0x179a   :  { %v2194_v50 = vpop.xlane.xlu0 %2193  ;;  %10516 = vmatprep.subr.bf16.mxu0 %v11858_v22 }
0x179b   :  { %11346 = vpow2.f32 %v2203_v48  ;;  %v2198_v52 = vsub.f32 %v2179_v32, %v2194_v50 }
0x179c   :  { %11348 = vpow2.f32 %v2199_v44  ;;  %v2346_v0 = vpop.permute.xlu1 %2345 }
0x179d   :  { %v2205_v54 = vmul.f32 1.442695, %v2198_v52  ;;  %v2351_v26 = vsel %vm311_vm4, %v2346_v0, 0 }
0x179f   :  { %11350 = vpow2.f32 %v2205_v54 }
0x17a0   :  { %11352 = vpow2.f32 %v2201_v53 }
0x17a5   :  { %v11347_v55 = vpop.eup %11346 }
0x17a6   :  { %v2213_v56 = vsel %vm78_vm0, %v11347_v55, 0.0  ;;  %v11349_v57 = vpop.eup %11348 }
0x17a7   :  { %2214 = vadd.xlane.f32.xlu0 %v2213_v56  ;;  %v2207_v59 = vsel %vm78_vm0, %v11349_v57, 0.0 }
0x17a9   :  { %v11351_v58 = vpop.eup %11350 }
0x17aa   :  { %v2216_v60 = vsel %vm78_vm0, %v11351_v58, 0.0  ;;  %v11353_v61 = vpop.eup %11352 }
0x17ab   :  { %2208 = vadd.xlane.f32.xlu0 %v2207_v59  ;;  %2217 = vadd.xlane.f32.xlu1 %v2216_v60  ;;  %v2210_v63 = vsel %vm78_vm0, %v11353_v61, 0.0 }
0x17af   :  { %2211 = vadd.xlane.f32.xlu1 %v2210_v63 }
0x17c0   :  { %2396 = vrot.lane.b32.xlu1 %v12273_v12, %s11864_s15 }
0x17c1   :  { %2229 = vrot.lane.b32.xlu0 %v12275_v13, %s11863_s14 }
0x17c4   :  { %2394 = vrot.lane.b32.xlu1 %v12273_v12, %s11865_s16 }
0x17c5   :  { %2343 = vrot.lane.b32.xlu0 %v12275_v13, %s11865_s16 }
0x1834   :  { %v2215_v3 = vpop.xlane.xlu0 %2214 }
0x1835   :  { %11354 = vrcp.f32 %v2215_v3 }
0x1838   :  { %v2209_v35 = vpop.xlane.xlu0 %2208  ;;  %v2218_v37 = vpop.xlane.xlu1 %2217 }
0x1839   :  { %11356 = vrcp.f32 %v2218_v37 }
0x183a   :  { %11358 = vrcp.f32 %v2209_v35 }
0x183c   :  { %v2230_v39 = vpop.permute.xlu0 %2229  ;;  %v2212_v18 = vpop.xlane.xlu1 %2211 }
0x183d   :  { %11360 = vrcp.f32 %v2212_v18  ;;  %10499 = vmatpush3.bf16.msra.mxu1 %v2230_v39 }
0x183e   :  { %10510 = vmatprep.subr.bf16.mxu1 %v11858_v22 }
0x183f   :  { %v11355_v5 = vpop.eup %11354 }
0x1840   :  { %v2225_v10 = vmul.f32 %v11355_v5, %v11347_v55  ;;  %v2397_v14 = vpop.permute.xlu1 %2396  ;;  %v2344_v28 = vpop.permute.xlu0 %2343 }
0x1841   :  { %v2402_v24 = vsel %vm311_vm4, %v2397_v14, 0 }
0x1843   :  { %v11357_v7 = vpop.eup %11356 }
0x1844   :  { %v11359_v8 = vpop.eup %11358  ;;  %v2226_v11 = vmul.f32 %v11357_v7, %v11351_v58  ;;  %v2395_v27 = vpop.permute.xlu1 %2394 }
0x1845   :  { %v2223_v19 = vmul.f32 %v11359_v8, %v11349_v57 }
0x1846   :  { %v2228_v17 = vpack.c.bf16 %v2226_v11, %v2225_v10 }
0x1847   :  { %v11361_v16 = vpop.eup %11360 }
0x1848   :  { %v2224_v21 = vmul.f32 %v11361_v16, %v11353_v61  ;;  %10507 = vmatmul.mubr.msk.bf16.vlgmr.msra.gmra.mrb[56].mxu0 %vm78_vm0, %v2228_v17 }
0x1849   :  { %10517 = vmatpush3.bf16.xpose.msra.mxu0 %v2402_v24  ;;  %10518 = vmatprep.mubr.msk.bf16.mxu0 %vm11859_vm3, %v11858_v22 }
0x184a   :  { %v2227_v25 = vpack.c.bf16 %v2224_v21, %v2223_v19  ;;  %10528 = vmatprep.subr.bf16.mxu0 %v11858_v22 }
0x184c   :  { %10501 = vmatmul.mubr.msk.bf16.vlgmr.msra.gmra.mrb[56].mxu1 %vm78_vm0, %v2227_v25 }
0x184d   :  { %10511 = vmatpush3.bf16.xpose.msra.mxu1 %v2351_v26  ;;  %10512 = vmatprep.mubr.msk.bf16.mxu1 %vm11859_vm3, %v11858_v22 }
0x184e   :  { %10522 = vmatprep.subr.bf16.mxu1 %v11858_v22 }
0x1850   :  { %10519 = vmatmul.mubr.msk.bf16.vlgmr.msra.gmra.mrb[60].mxu0 %vm311_vm4, %v2395_v27 }
0x1851   :  { %10530 = vmatprep.mubr.msk.bf16.mxu0 %vm11859_vm3, %v11858_v22 }
0x1854   :  { %10513 = vmatmul.mubr.msk.bf16.vlgmr.msra.gmra.mrb[60].mxu1 %vm311_vm4, %v2344_v28 }
0x1855   :  { %10524 = vmatprep.mubr.msk.bf16.mxu1 %vm11859_vm3, %v11858_v22 }
0x191b   :  { %v12373_v29 = vpop.f32.mrb[56].mxu0 }
0x191c   :  { %v10508_v30 = vpop.f32.mrb[57].mxu0 }
0x191d   :  { %v12375_v31 = vpop.f32.mrb[58].mxu0 }
0x191e   :  { %v10509_v32 = vpop.f32.mrb[59].mxu0 }
0x191f   :  { %v12377_v36 = vpop.f32.mrb[56].mxu1 }
0x1920   :  { %v10502_v38 = vpop.f32.mrb[57].mxu1 }
0x1921   :  { %v12379_v40 = vpop.f32.mrb[58].mxu1 }
0x1922   :  { %v10503_v15 = vpop.f32.mrb[59].mxu1 }
0x1923   :  { %v2438_v33 = vpop.f32.mrb[60].mxu0 }
0x1924   :  { %v10520_v23 = vpop.f32.mrb[61].mxu0  ;;  %v2451_v43 = vsel %vm78_vm0, %v2438_v33, -inf }
0x1925   :  { %v2441_v20 = vpop.f32.mrb[62].mxu0 }
0x1926   :  { %v10521_v34 = vpop.f32.mrb[63].mxu0  ;;  %v2454_v44 = vsel %vm78_vm0, %v2441_v20, -inf }
0x1927   :  { %v2387_v49 = vpop.f32.mrb[60].mxu1 }
0x1928   :  { %v10514_v45 = vpop.f32.mrb[61].mxu1  ;;  %v2445_v51 = vsel %vm78_vm0, %v2387_v49, -inf }
0x1929   :  { %2446 = vmax.xlane.f32.xlu0 %v2445_v51  ;;  %v2390_v41 = vpop.f32.mrb[62].mxu1 }
0x192a   :  { %v10515_v42 = vpop.f32.mrb[63].mxu1  ;;  %v2448_v47 = vsel %vm78_vm0, %v2390_v41, -inf }
0x192b   :  { %2449 = vmax.xlane.f32.xlu1 %v2448_v47 }
0x192d   :  { %2452 = vmax.xlane.f32.xlu0 %v2451_v43 }
0x1931   :  { %2455 = vmax.xlane.f32.xlu0 %v2454_v44 }
0x193c   :  { %2538 = vrot.lane.b32.xlu1 %v12273_v12, %s11866_s17 }
0x1940   :  { %2607 = vrot.lane.b32.xlu1 %v12275_v13, %s11867_s19 }
0x19b6   :  { %v2447_v46 = vpop.xlane.xlu0 %2446 }
0x19b7   :  { %v2457_v50 = vsub.f32 %v2387_v49, %v2447_v46 }
0x19b8   :  { %v2450_v48 = vpop.xlane.xlu1 %2449 }
0x19b9   :  { %v2461_v55 = vmul.f32 1.442695, %v2457_v50  ;;  %v2458_v56 = vsub.f32 %v2390_v41, %v2450_v48 }
0x19ba   :  { %v2453_v52 = vpop.xlane.xlu0 %2452 }
0x19bb   :  { %v2459_v53 = vsub.f32 %v2438_v33, %v2453_v52  ;;  %v2463_v60 = vmul.f32 1.442695, %v2458_v56 }
0x19bc   :  { %v2539_v54 = vpop.permute.xlu1 %2538 }
0x19bd   :  { %v2465_v57 = vmul.f32 1.442695, %v2459_v53  ;;  %10529 = vmatpush3.bf16.msra.mxu0 %v2539_v54 }
0x19be   :  { %v2456_v58 = vpop.xlane.xlu0 %2455  ;;  %10540 = vmatprep.subr.bf16.mxu0 %v11858_v22 }
0x19bf   :  { %11362 = vpow2.f32 %v2465_v57  ;;  %v2460_v59 = vsub.f32 %v2441_v20, %v2456_v58 }
0x19c0   :  { %11364 = vpow2.f32 %v2461_v55  ;;  %v2608_v7 = vpop.permute.xlu1 %2607 }
0x19c1   :  { %v2467_v61 = vmul.f32 1.442695, %v2460_v59  ;;  %v2613_v33 = vsel %vm311_vm4, %v2608_v7, 0 }
0x19c3   :  { %11366 = vpow2.f32 %v2467_v61 }
0x19c4   :  { %11368 = vpow2.f32 %v2463_v60 }
0x19c9   :  { %v11363_v63 = vpop.eup %11362 }
0x19ca   :  { %v2475_v0 = vsel %vm78_vm0, %v11363_v63, 0.0  ;;  %v11365_v3 = vpop.eup %11364 }
0x19cb   :  { %2476 = vadd.xlane.f32.xlu0 %v2475_v0  ;;  %v2469_v37 = vsel %vm78_vm0, %v11365_v3, 0.0 }
0x19cd   :  { %v11367_v35 = vpop.eup %11366 }
0x19ce   :  { %v2478_v39 = vsel %vm78_vm0, %v11367_v35, 0.0  ;;  %v11369_v18 = vpop.eup %11368 }
0x19cf   :  { %2470 = vadd.xlane.f32.xlu0 %v2469_v37  ;;  %2479 = vadd.xlane.f32.xlu1 %v2478_v39  ;;  %v2472_v5 = vsel %vm78_vm0, %v11369_v18, 0.0 }
0x19d3   :  { %2473 = vadd.xlane.f32.xlu1 %v2472_v5 }
0x19e4   :  { %2658 = vrot.lane.b32.xlu1 %v12273_v12, %s11867_s19 }
0x19e5   :  { %2491 = vrot.lane.b32.xlu0 %v12275_v13, %s11866_s17 }
0x19e8   :  { %2656 = vrot.lane.b32.xlu1 %v12273_v12, %s11868_s20 }
0x19e9   :  { %2605 = vrot.lane.b32.xlu0 %v12275_v13, %s11868_s20 }
0x1a58   :  { %v2477_v8 = vpop.xlane.xlu0 %2476 }
0x1a59   :  { %11370 = vrcp.f32 %v2477_v8 }
0x1a5c   :  { %v2471_v10 = vpop.xlane.xlu0 %2470  ;;  %v2480_v11 = vpop.xlane.xlu1 %2479 }
0x1a5d   :  { %11372 = vrcp.f32 %v2480_v11 }
0x1a5e   :  { %11374 = vrcp.f32 %v2471_v10 }
0x1a60   :  { %v2492_v14 = vpop.permute.xlu0 %2491  ;;  %v2474_v16 = vpop.xlane.xlu1 %2473 }
0x1a61   :  { %11376 = vrcp.f32 %v2474_v16  ;;  %10523 = vmatpush3.bf16.msra.mxu1 %v2492_v14 }
0x1a62   :  { %10534 = vmatprep.subr.bf16.mxu1 %v11858_v22 }
0x1a63   :  { %v11371_v17 = vpop.eup %11370 }
0x1a64   :  { %v2487_v24 = vmul.f32 %v11371_v17, %v11363_v63  ;;  %v2659_v26 = vpop.permute.xlu1 %2658  ;;  %v2606_v20 = vpop.permute.xlu0 %2605 }
0x1a65   :  { %v2664_v38 = vsel %vm311_vm4, %v2659_v26, 0 }
0x1a67   :  { %v11373_v19 = vpop.eup %11372 }
0x1a68   :  { %v11375_v21 = vpop.eup %11374  ;;  %v2488_v25 = vmul.f32 %v11373_v19, %v11367_v35  ;;  %v2657_v23 = vpop.permute.xlu1 %2656 }
0x1a69   :  { %v2485_v30 = vmul.f32 %v11375_v21, %v11365_v3 }
0x1a6a   :  { %v2490_v28 = vpack.c.bf16 %v2488_v25, %v2487_v24 }
0x1a6b   :  { %v11377_v27 = vpop.eup %11376 }
0x1a6c   :  { %v2486_v32 = vmul.f32 %v11377_v27, %v11369_v18  ;;  %10531 = vmatmul.mubr.msk.bf16.vlgmr.msra.gmra.mrb[64].mxu0 %vm78_vm0, %v2490_v28 }
0x1a6d   :  { %10541 = vmatpush3.bf16.xpose.msra.mxu0 %v2664_v38  ;;  %10542 = vmatprep.mubr.msk.bf16.mxu0 %vm11859_vm3, %v11858_v22 }
0x1a6e   :  { %v2489_v15 = vpack.c.bf16 %v2486_v32, %v2485_v30  ;;  %10552 = vmatprep.subr.bf16.mxu0 %v11858_v22 }
0x1a70   :  { %10525 = vmatmul.mubr.msk.bf16.vlgmr.msra.gmra.mrb[64].mxu1 %vm78_vm0, %v2489_v15 }
0x1a71   :  { %10535 = vmatpush3.bf16.xpose.msra.mxu1 %v2613_v33  ;;  %10536 = vmatprep.mubr.msk.bf16.mxu1 %vm11859_vm3, %v11858_v22 }
0x1a72   :  { %10546 = vmatprep.subr.bf16.mxu1 %v11858_v22 }
0x1a74   :  { %10543 = vmatmul.mubr.msk.bf16.vlgmr.msra.gmra.mrb[68].mxu0 %vm311_vm4, %v2657_v23 }
0x1a75   :  { %10554 = vmatprep.mubr.msk.bf16.mxu0 %vm11859_vm3, %v11858_v22 }
0x1a78   :  { %10537 = vmatmul.mubr.msk.bf16.vlgmr.msra.gmra.mrb[68].mxu1 %vm311_vm4, %v2606_v20 }
0x1a79   :  { %10548 = vmatprep.mubr.msk.bf16.mxu1 %vm11859_vm3, %v11858_v22 }
0x1b3f   :  { %v2578_v34 = vpop.f32.mrb[64].mxu0 }
0x1b40   :  { %v10532_v49 = vpop.f32.mrb[65].mxu0 }
0x1b41   :  { %v2581_v45 = vpop.f32.mrb[66].mxu0 }
0x1b42   :  { %v10533_v51 = vpop.f32.mrb[67].mxu0 }
0x1b43   :  { %v2531_v41 = vpop.f32.mrb[64].mxu1 }
0x1b44   :  { %v10526_v42 = vpop.f32.mrb[65].mxu1 }
0x1b45   :  { %v2534_v47 = vpop.f32.mrb[66].mxu1 }
0x1b46   :  { %v10527_v43 = vpop.f32.mrb[67].mxu1 }
0x1b47   :  { %v2700_v44 = vpop.f32.mrb[68].mxu0  ;;  %v11186_v43 = vld [vmem:[#allocation9 + $0x68] sm:$0xff]  }
0x1b48   :  { %v10544_v46 = vpop.f32.mrb[69].mxu0  ;;  %v2713_v58 = vsel %vm78_vm0, %v2700_v44, -inf }
0x1b49   :  { %v2703_v48 = vpop.f32.mrb[70].mxu0 }
0x1b4a   :  { %v10545_v50 = vpop.f32.mrb[71].mxu0  ;;  %v2716_v59 = vsel %vm78_vm0, %v2703_v48, -inf }
0x1b4b   :  { %v2649_v52 = vpop.f32.mrb[68].mxu1 }
0x1b4c   :  { %v10538_v53 = vpop.f32.mrb[69].mxu1  ;;  %v2707_v54 = vsel %vm78_vm0, %v2649_v52, -inf }
0x1b4d   :  { %2708 = vmax.xlane.f32.xlu0 %v2707_v54  ;;  %v2652_v55 = vpop.f32.mrb[70].mxu1 }
0x1b4e   :  { %v10539_v56 = vpop.f32.mrb[71].mxu1  ;;  %v2710_v57 = vsel %vm78_vm0, %v2652_v55, -inf }
0x1b4f   :  { %2711 = vmax.xlane.f32.xlu1 %v2710_v57 }
0x1b51   :  { %2714 = vmax.xlane.f32.xlu0 %v2713_v58 }
0x1b55   :  { %2717 = vmax.xlane.f32.xlu0 %v2716_v59 }
0x1bda   :  { %v2709_v60 = vpop.xlane.xlu0 %2708 }
0x1bdb   :  { %v2719_v61 = vsub.f32 %v2649_v52, %v2709_v60 }
0x1bdc   :  { %v2712_v63 = vpop.xlane.xlu1 %2711 }
0x1bdd   :  { %v2723_v35 = vmul.f32 1.442695, %v2719_v61  ;;  %v2720_v37 = vsub.f32 %v2652_v55, %v2712_v63 }
0x1bde   :  { %v2715_v0 = vpop.xlane.xlu0 %2714 }
0x1bdf   :  { %v2721_v3 = vsub.f32 %v2700_v44, %v2715_v0  ;;  %v2725_v7 = vmul.f32 1.442695, %v2720_v37  ;;  %v11187_v44 = vld [vmem:[#allocation9 + $0x70] sm:$0xff]  }
0x1be1   :  { %v2727_v39 = vmul.f32 1.442695, %v2721_v3 }
0x1be2   :  { %v2718_v18 = vpop.xlane.xlu0 %2717 }
0x1be3   :  { %11378 = vpow2.f32 %v2727_v39  ;;  %v2722_v5 = vsub.f32 %v2703_v48, %v2718_v18  ;;  %v9791_v18 = vld [vmem:[#allocation10 + $0x9] ss:$0 sm:$0xff] }
0x1be4   :  { %11380 = vpow2.f32 %v2723_v35 }
0x1be5   :  { %v2729_v8 = vmul.f32 1.442695, %v2722_v5 }
0x1be7   :  { %11382 = vpow2.f32 %v2729_v8 }
0x1be8   :  { %11384 = vpow2.f32 %v2725_v7 }
0x1bed   :  { %v11379_v10 = vpop.eup %11378 }
0x1bee   :  { %v2737_v11 = vsel %vm78_vm0, %v11379_v10, 0.0  ;;  %v11381_v14 = vpop.eup %11380 }
0x1bef   :  { %2738 = vadd.xlane.f32.xlu0 %v2737_v11  ;;  %v2731_v17 = vsel %vm78_vm0, %v11381_v14, 0.0 }
0x1bf1   :  { %v11383_v16 = vpop.eup %11382 }
0x1bf2   :  { %v2740_v19 = vsel %vm78_vm0, %v11383_v16, 0.0  ;;  %v11385_v21 = vpop.eup %11384 }
0x1bf3   :  { %2732 = vadd.xlane.f32.xlu0 %v2731_v17  ;;  %2741 = vadd.xlane.f32.xlu1 %v2740_v19  ;;  %v2734_v24 = vsel %vm78_vm0, %v11385_v21, 0.0 }
0x1bf7   :  { %2735 = vadd.xlane.f32.xlu1 %v2734_v24 }
0x1c08   :  { %2800 = vrot.lane.b32.xlu1 %v12273_v12, %s11869_s21 }
0x1c09   :  { %2753 = vrot.lane.b32.xlu0 %v12275_v13, %s11869_s21 }
0x1c0c   :  { %2327 = vrot.lane.b32.xlu1 %v12377_v36, %s11853_s28 }
0x1c0d   :  { %2331 = vrot.lane.b32.xlu0 %v12373_v29, %s11853_s28 }
0x1c10   :  { %2329 = vrot.lane.b32.xlu1 %v12379_v40, %s11853_s28 }
0x1c11   :  { %2589 = vrot.lane.b32.xlu0 %v2531_v41, %s11870_s22 }
0x1c14   :  { %2333 = vrot.lane.b32.xlu1 %v12375_v31, %s11853_s28 }
0x1c15   :  { %2593 = vrot.lane.b32.xlu0 %v2578_v34, %s11870_s22 }
0x1c18   :  { %2591 = vrot.lane.b32.xlu1 %v2534_v47, %s11870_s22 }
0x1c1c   :  { %2595 = vrot.lane.b32.xlu1 %v2581_v45, %s11870_s22 }
0x1c7c   :  { %v2739_v12 = vpop.xlane.xlu0 %2738 }
0x1c7d   :  { %11386 = vrcp.f32 %v2739_v12 }
0x1c80   :  { %v2733_v13 = vpop.xlane.xlu0 %2732  ;;  %v2742_v36 = vpop.xlane.xlu1 %2741 }
0x1c81   :  { %11388 = vrcp.f32 %v2742_v36 }
0x1c82   :  { %11390 = vrcp.f32 %v2733_v13 }
0x1c84   :  { %v2754_v29 = vpop.permute.xlu0 %2753  ;;  %v2736_v25 = vpop.xlane.xlu1 %2735 }
0x1c85   :  { %11392 = vrcp.f32 %v2736_v25  ;;  %10547 = vmatpush3.bf16.msra.mxu1 %v2754_v29 }
0x1c86   :  { %10558 = vmatprep.subr.bf16.mxu1 %v11186_v43 }
0x1c87   :  { %v11387_v31 = vpop.eup %11386 }
0x1c88   :  { %v2332_v40 = vpop.permute.xlu0 %2331  ;;  %v2801_v26 = vpop.permute.xlu1 %2800  ;;  %v2749_v38 = vmul.f32 %v11387_v31, %v11379_v10 }
0x1c89   :  { %2341 = vst.msk [vmem:[#allocation3 + $0x10] sm:$0xff] %vm811_vm5, %v2332_v40  ;;  %10553 = vmatpush3.bf16.msra.mxu0 %v2801_v26 }
0x1c8b   :  { %v11389_v27 = vpop.eup %11388 }
0x1c8c   :  { %v2590_v28 = vpop.permute.xlu0 %2589  ;;  %v2328_v30 = vpop.permute.xlu1 %2327  ;;  %v2750_v15 = vmul.f32 %v11389_v27, %v11383_v16 }
0x1c8d   :  { %v11391_v32 = vpop.eup %11390  ;;  %2339 = vst.msk [vmem:[#allocation3] sm:$0xff] %vm811_vm5, %v2328_v30 }
0x1c8e   :  { %2601 = vst.msk [vmem:[#allocation3] sm:$0xff] %vm1074_vm6, %v2590_v28  ;;  %v2752_v23 = vpack.c.bf16 %v2750_v15, %v2749_v38  ;;  %v2747_v20 = vmul.f32 %v11391_v32, %v11381_v14 }
0x1c8f   :  { %v11393_v33 = vpop.eup %11392 }
0x1c90   :  { %v2748_v34 = vmul.f32 %v11393_v33, %v11385_v21  ;;  %v2594_v49 = vpop.permute.xlu0 %2593  ;;  %v2330_v45 = vpop.permute.xlu1 %2329  ;;  %10555 = vmatmul.mubr.msk.bf16.vlgmr.msra.gmra.mrb[72].mxu0 %vm78_vm0, %v2752_v23 }
0x1c91   :  { %2603 = vst.msk [vmem:[#allocation3 + $0x10] sm:$0xff] %vm1074_vm6, %v2594_v49 }
0x1c92   :  { %2340 = vst.msk [vmem:[#allocation3 + $0x8] sm:$0xff] %vm811_vm5, %v2330_v45  ;;  %v2751_v51 = vpack.c.bf16 %v2748_v34, %v2747_v20 }
0x1c94   :  { %10549 = vmatmul.mubr.msk.bf16.vlgmr.msra.gmra.mrb[72].mxu1 %vm78_vm0, %v2751_v51  ;;  %v2334_v41 = vpop.permute.xlu1 %2333  ;;  %v11188_v51 = vld [vmem:[#allocation9 + $0x78] sm:$0xff]  }
0x1c95   :  { %2342 = vst.msk [vmem:[#allocation3 + $0x18] sm:$0xff] %vm811_vm5, %v2334_v41  ;;  %10559 = vmatpush3.bf16.msra.mxu1 %v11186_v43  ;;  %10566 = vmatprep.subr.bf16.mxu0 %v11188_v51  ;;  %v11189_v41 = vld [vmem:[#allocation9 + $0x80] sm:$0xff]  }
0x1c96   :  { %10560 = vmatprep.subr.bf16.mxu1 %v11187_v44  ;;  %10567 = vmatpush3.bf16.msra.mxu0 %v11188_v51 }
0x1c97   :  { %10568 = vmatprep.subr.bf16.mxu0 %v11189_v41 }
0x1c98   :  { %v2592_v42 = vpop.permute.xlu1 %2591 }
0x1c99   :  { %2602 = vst.msk [vmem:[#allocation3 + $0x8] sm:$0xff] %vm1074_vm6, %v2592_v42  ;;  %10561 = vmatpush3.bf16.msra.mxu1 %v11187_v44  ;;  %v11190_v42 = vld [vmem:[#allocation9 + $0x88] sm:$0xff]  }
0x1c9a   :  { %10569 = vmatpush3.bf16.msra.mxu0 %v11189_v41  ;;  %10574 = vmatprep.subr.bf16.mxu1 %v11190_v42  ;;  %v9805_v41 = vld [vmem:[#allocation10 + $0xb] ss:$0 sm:$0xff] }
0x1c9c   :  { %v2596_v47 = vpop.permute.xlu1 %2595 }
0x1c9d   :  { %2604 = vst.msk [vmem:[#allocation3 + $0x18] sm:$0xff] %vm1074_vm6, %v2596_v47  ;;  %v11191_v47 = vld [vmem:[#allocation9 + $0x90] sm:$0xff]  }
0x1d63   :  { %v2840_v46 = vpop.f32.mrb[72].mxu0 }
0x1d64   :  { %v10556_v48 = vpop.f32.mrb[73].mxu0 }
0x1d65   :  { %v2843_v50 = vpop.f32.mrb[74].mxu0 }
0x1d66   :  { %v10557_v52 = vpop.f32.mrb[75].mxu0 }
0x1d67   :  { %v2793_v53 = vpop.f32.mrb[72].mxu1 }
0x1d68   :  { %2851 = vrot.lane.b32.xlu0 %v2793_v53, %s11871_s23  ;;  %v10550_v54 = vpop.f32.mrb[73].mxu1 }
0x1d69   :  { %v2796_v55 = vpop.f32.mrb[74].mxu1 }
0x1d6a   :  { %2853 = vrot.lane.b32.xlu1 %v2796_v55, %s11871_s23  ;;  %v10551_v56 = vpop.f32.mrb[75].mxu1 }
0x1d6c   :  { %2855 = vrot.lane.b32.xlu0 %v2840_v46, %s11871_s23 }
0x1d6e   :  { %2857 = vrot.lane.b32.xlu1 %v2843_v50, %s11871_s23 }
0x1dda   :  { %v2852_v57 = vpop.permute.xlu0 %2851 }
0x1ddb   :  { %2863 = vst.msk [vmem:[#allocation3] sm:$0xff] %vm1337_vm7, %v2852_v57 }
0x1ddc   :  { %v2854_v58 = vpop.permute.xlu1 %2853 }
0x1ddd   :  { %2864 = vst.msk [vmem:[#allocation3 + $0x8] sm:$0xff] %vm1337_vm7, %v2854_v58 }
0x1dde   :  { %v2856_v59 = vpop.permute.xlu0 %2855 }
0x1ddf   :  { %2865 = vst.msk [vmem:[#allocation3 + $0x10] sm:$0xff] %vm1337_vm7, %v2856_v59 }
0x1de0   :  { %v2858_v60 = vpop.permute.xlu1 %2857 }
0x1de1   :  { %2866 = vst.msk [vmem:[#allocation3 + $0x18] sm:$0xff] %vm1337_vm7, %v2858_v60  ;;  %v9792_v60 = vld [vmem:[#allocation10 + $0xe] ss:$0 sm:$0xff] }
0x1de2   :  { %v2867_v61 = vld [vmem:[#allocation3] sm:$0xff] }
0x1de4   :  { %v2868_v63 = vld [vmem:[#allocation3 + $0x8] sm:$0xff] }
0x1de5   :  { %v2875_v0 = vpack.c.bf16 %v2868_v63, %v2867_v61 }
0x1de6   :  { %v2869_v3 = vld [vmem:[#allocation3 + $0x10] sm:$0xff] }
0x1de7   :  { %10562 = vmatprep.mubr.msk.bf16.mxu1 %vm158_vm2, %v2875_v0 }
0x1de8   :  { %v2870_v35 = vld [vmem:[#allocation3 + $0x18] sm:$0xff] }
0x1de9   :  { %v2876_v37 = vpack.c.bf16 %v2870_v35, %v2869_v3 }
0x1deb   :  { %10563 = vmatmul.mubr.msk.bf16.vlgmr.msra.gmra.mrb[76].mxu1 %vm158_vm2, %v2876_v37  ;;  %v9793_v37 = vld [vmem:[#allocation10 + $0xf] ss:$0 sm:$0xff] }
0x1dec   :  { %10575 = vmatpush3.bf16.msra.mxu1 %v11190_v42 }
0x1ded   :  { %10576 = vmatprep.subr.bf16.mxu1 %v11191_v47 }
0x1df0   :  { %10577 = vmatpush3.bf16.msra.mxu1 %v11191_v47 }
0x1ebe   :  { %v10564_v39 = vpop.f32.mrb[76].mxu1 }
0x1ebf   :  { %v2929_v5 = vpop.f32.mrb[77].mxu1  ;;  %v2946_v7 = vadd.f32 %v10564_v39, %v12246_v1 }
0x1ec0   :  { %v2944_v8 = vadd.f32 %v2929_v5, %v12242_v62  ;;  %v10565_v10 = vpop.f32.mrb[78].mxu1 }
0x1ec1   :  { %v2932_v11 = vpop.f32.mrb[79].mxu1  ;;  %v12468_v17 = vadd.f32 %v9791_v18, %v2946_v7  ;;  %v2947_v19 = vadd.f32 %v10565_v10, %v12252_v4 }
0x1ec2   :  { %v12465_v14 = vadd.f32 %v9791_v18, %v2944_v8  ;;  %v2945_v16 = vadd.f32 %v2932_v11, %v12248_v2 }
0x1ec3   :  { %v12477_v62 = vadd.f32 %v9791_v18, %v2947_v19  ;;  %v2965_v12 = vsel %vm158_vm2, %v12468_v17, 0.0 }
0x1ec4   :  { %v12471_v21 = vadd.f32 %v9791_v18, %v2945_v16  ;;  %v2959_v24 = vsel %vm158_vm2, %v12465_v14, 0.0 }
0x1ec5   :  { %2960 = vadd.xlane.f32.xlu0 %v2959_v24  ;;  %v2968_v2 = vsel %vm158_vm2, %v12477_v62, 0.0 }
0x1ec6   :  { %v2962_v1 = vsel %vm158_vm2, %v12471_v21, 0.0 }
0x1ec7   :  { %2963 = vadd.xlane.f32.xlu1 %v2962_v1 }
0x1ec9   :  { %2966 = vadd.xlane.f32.xlu0 %v2965_v12 }
0x1ecd   :  { %2969 = vadd.xlane.f32.xlu0 %v2968_v2  ;;  %v11192_v2 = vld [vmem:[#allocation9 + $0x98] sm:$0xff]  }
0x1ece   :  { %10578 = vmatprep.subr.bf16.mxu1 %v11192_v2 }
0x1ecf   :  { %10579 = vmatpush3.bf16.msra.mxu1 %v11192_v2 }
0x1f52   :  { %v2961_v4 = vpop.xlane.xlu0 %2960 }
0x1f53   :  { %v2971_v13 = vmul.f32 0.03125, %v2961_v4  ;;  %v11193_v4 = vld [vmem:[#allocation9 + $0xa0] sm:$0xff]  }
0x1f54   :  { %v2964_v36 = vpop.xlane.xlu1 %2963  ;;  %10580 = vmatprep.subr.bf16.mxu1 %v11193_v4 }
0x1f55   :  { %v2975_v29 = vsub.f32 %v12465_v14, %v2971_v13  ;;  %v2972_v25 = vmul.f32 0.03125, %v2964_v36  ;;  %10581 = vmatpush3.bf16.msra.mxu1 %v11193_v4  ;;  %v9794_v13 = vld [vmem:[#allocation10 + $0xa] ss:$0 sm:$0xff] }
0x1f56   :  { %v2967_v40 = vpop.xlane.xlu0 %2966 }
0x1f57   :  { %v2976_v26 = vsub.f32 %v12471_v21, %v2972_v25  ;;  %v2973_v31 = vmul.f32 0.03125, %v2967_v40  ;;  %v2979_v27 = vmul.f32 %v2975_v29, %v2975_v29 }
0x1f59   :  { %v2977_v28 = vsub.f32 %v12468_v17, %v2973_v31  ;;  %v2983_v30 = vsel %vm158_vm2, %v2979_v27, 0.0  ;;  %v2980_v32 = vmul.f32 %v2976_v26, %v2976_v26 }
0x1f5a   :  { %2984 = vadd.xlane.f32.xlu0 %v2983_v30  ;;  %v2970_v38 = vpop.xlane.xlu0 %2969 }
0x1f5b   :  { %v2974_v15 = vmul.f32 0.03125, %v2970_v38  ;;  %v2986_v33 = vsel %vm158_vm2, %v2980_v32, 0.0  ;;  %v2981_v23 = vmul.f32 %v2977_v28, %v2977_v28 }
0x1f5c   :  { %2987 = vadd.xlane.f32.xlu1 %v2986_v33 }
0x1f5d   :  { %v2978_v20 = vsub.f32 %v12477_v62, %v2974_v15  ;;  %v2989_v34 = vsel %vm158_vm2, %v2981_v23, 0.0 }
0x1f5e   :  { %2990 = vadd.xlane.f32.xlu0 %v2989_v34  ;;  %v11195_v34 = vld [vmem:[#allocation9 + $0xb0] sm:$0xff]  }
0x1f5f   :  { %v2982_v49 = vmul.f32 %v2978_v20, %v2978_v20 }
0x1f61   :  { %v2992_v45 = vsel %vm158_vm2, %v2982_v49, 0.0 }
0x1f62   :  { %2993 = vadd.xlane.f32.xlu1 %v2992_v45 }
0x1fe7   :  { %v2985_v43 = vpop.xlane.xlu0 %2984 }
0x1fe8   :  { %v2995_v44 = vmul.f32 0.03125, %v2985_v43 }
0x1fe9   :  { %v2988_v46 = vpop.xlane.xlu1 %2987 }
0x1fea   :  { %v2999_v48 = vadd.f32 1e-05, %v2995_v44  ;;  %v2996_v50 = vmul.f32 0.03125, %v2988_v46 }
0x1feb   :  { %v2991_v52 = vpop.xlane.xlu0 %2990 }
0x1fec   :  { %11394 = vrsqrt.f32 %v2999_v48  ;;  %v3000_v53 = vadd.f32 1e-05, %v2996_v50  ;;  %v2997_v54 = vmul.f32 0.03125, %v2991_v52 }
0x1fee   :  { %11396 = vrsqrt.f32 %v3000_v53  ;;  %v3001_v55 = vadd.f32 1e-05, %v2997_v54 }
0x1fef   :  { %v2994_v56 = vpop.xlane.xlu1 %2993 }
0x1ff0   :  { %11398 = vrsqrt.f32 %v3001_v55  ;;  %v2998_v57 = vmul.f32 0.03125, %v2994_v56  ;;  %v3298_v56 = vld [vmem:[#allocation2] sm:$0xff] }
0x1ff1   :  { %6496 = vst.msk [vmem:[#allocation2 - $0x4] sm:$0xf0] %vm3289_vm1, %v3298_v56 }
0x1ff2   :  { %v3002_v58 = vadd.f32 1e-05, %v2998_v57 }
0x1ff4   :  { %11400 = vrsqrt.f32 %v3002_v58 }
0x1ff6   :  { %v11395_v59 = vpop.eup %11394 }
0x1ff7   :  { %v3007_v61 = vmul.f32 %v11395_v59, %v2975_v29 }
0x1ff8   :  { %v11397_v63 = vpop.eup %11396 }
0x1ff9   :  { %v3008_v0 = vmul.f32 %v11397_v63, %v2976_v26  ;;  %v3015_v3 = vmul.f32 %v9792_v60, %v3007_v61 }
0x1ffa   :  { %v11399_v35 = vpop.eup %11398 }
0x1ffb   :  { %v3009_v39 = vmul.f32 %v11399_v35, %v2977_v28  ;;  %v3016_v18 = vmul.f32 %v9792_v60, %v3008_v0  ;;  %v3023_v5 = vadd.f32 %v9793_v37, %v3015_v3 }
0x1ffd   :  { %v3024_v7 = vadd.f32 %v9793_v37, %v3016_v18  ;;  %v3017_v16 = vmul.f32 %v9792_v60, %v3009_v39  ;;  %v11722_v18 = vld [vmem:[#allocation7] sm:$0xff] }
0x1ffe   :  { %v11401_v8 = vpop.eup %11400 }
0x1fff   :  { %v3010_v10 = vmul.f32 %v11401_v8, %v2978_v20  ;;  %v3031_v11 = vpack.c.bf16 %v3024_v7, %v3023_v5  ;;  %v3025_v24 = vadd.f32 %v9793_v37, %v3017_v16  ;;  %v11194_v20 = vld [vmem:[#allocation9 + $0xa8] sm:$0xff]  }
0x2000   :  { %10586 = vmatprep.subr.bf16.mxu0 %v11194_v20  ;;  %v11724_v16 = vld [vmem:[#allocation7 + $0x8] sm:$0xff] }
0x2001   :  { %10570 = vmatprep.mubr.msk.bf16.mxu0 %vm158_vm2, %v3031_v11  ;;  %v3018_v19 = vmul.f32 %v9792_v60, %v3010_v10  ;;  %v11723_v10 = vld [vmem:[#allocation7 + $0x10] sm:$0xff] }
0x2003   :  { %v3026_v1 = vadd.f32 %v9793_v37, %v3018_v19 }
0x2005   :  { %v3032_v12 = vpack.c.bf16 %v3026_v1, %v3025_v24  ;;  %v11725_v1 = vld [vmem:[#allocation7 + $0x18] sm:$0xff] }
0x2007   :  { %10571 = vmatmul.mubr.msk.bf16.vlgmr.msra.gmra.mrb[76].mxu0 %vm158_vm2, %v3032_v12 }
0x2008   :  { %10587 = vmatpush3.bf16.msra.mxu0 %v11194_v20 }
0x2009   :  { %10588 = vmatprep.subr.bf16.mxu0 %v11195_v34 }
0x200c   :  { %10589 = vmatpush3.bf16.msra.mxu0 %v11195_v34 }
0x20da   :  { %v10572_v36 = vpop.f32.mrb[76].mxu0 }
0x20db   :  { %v3099_v29 = vadd.f32 %v10572_v36, %v9794_v13  ;;  %v3090_v25 = vpop.f32.mrb[77].mxu0 }
0x20dc   :  { %v3091_v40 = vadd.f32 %v9794_v13, %v3090_v25  ;;  %v10573_v26 = vpop.f32.mrb[78].mxu0 }
0x20dd   :  { %v3102_v31 = vadd.f32 %v10573_v26, %v9794_v13  ;;  %v3093_v27 = vpop.f32.mrb[79].mxu0  ;;  %v3107_v30 = vmax.f32 %v3099_v29, 0.0 }
0x20de   :  { %v3094_v28 = vadd.f32 %v9794_v13, %v3093_v27  ;;  %v3105_v38 = vmax.f32 %v3091_v40, 0.0 }
0x20df   :  { %v3108_v32 = vmax.f32 %v3102_v31, 0.0 }
0x20e0   :  { %v3106_v15 = vmax.f32 %v3094_v28, 0.0 }
0x20e1   :  { %v3118_v33 = vpack.c.bf16 %v3108_v32, %v3107_v30 }
0x20e2   :  { %v3117_v23 = vpack.c.bf16 %v3106_v15, %v3105_v38 }
0x20e4   :  { %10582 = vmatprep.mubr.msk.bf16.mxu1 %vm1618_vm8, %v3117_v23 }
0x20e5   :  { %10583 = vmatmul.mubr.msk.bf16.vlgmr.msra.gmra.mrb[80].mxu1 %vm1618_vm8, %v3118_v33 }
0x21b8   :  { %v10584_v49 = vpop.f32.mrb[80].mxu1 }
0x21b9   :  { %v3200_v45 = vadd.f32 %v10584_v49, %v12468_v17  ;;  %v3183_v51 = vpop.f32.mrb[81].mxu1  ;;  %v11196_v17 = vld [vmem:[#allocation9] sm:$0xff]  }
0x21ba   :  { %v3198_v42 = vadd.f32 %v3183_v51, %v12465_v14  ;;  %v10585_v47 = vpop.f32.mrb[82].mxu1  ;;  %10594 = vmatprep.subr.bf16.mxu0 %v11196_v17  ;;  %v3300_v14 = vld [vmem:[#allocation2 + $0x10] sm:$0xff] }
0x21bb   :  { %v3201_v43 = vadd.f32 %v10585_v47, %v12477_v62  ;;  %v3186_v44 = vpop.f32.mrb[83].mxu1  ;;  %v3209_v48 = vadd.f32 %v9805_v41, %v3200_v45  ;;  %6498 = vst.msk [vmem:[#allocation2 + $0xc] sm:$0xf0] %vm3289_vm1, %v3300_v14  ;;  %v9806_v62 = vld [vmem:[#allocation10 + $0x10] ss:$0 sm:$0xff]  ;;  %v11198_v47 = vld [vmem:[#allocation9 + $0x10] sm:$0xff]  }
0x21bc   :  { %v3199_v46 = vadd.f32 %v3186_v44, %v12471_v21  ;;  %v3207_v52 = vadd.f32 %v9805_v41, %v3198_v42  ;;  %v11197_v42 = vld [vmem:[#allocation9 + $0x8] sm:$0xff]  }
0x21bd   :  { %v3210_v50 = vadd.f32 %v9805_v41, %v3201_v43  ;;  %10600 = vmatprep.subr.bf16.mxu1 %v11197_v42 }
0x21be   :  { %v3208_v53 = vadd.f32 %v9805_v41, %v3199_v46  ;;  %10601 = vmatpush3.bf16.msra.mxu1 %v11197_v42 }
0x21bf   :  { %v3216_v54 = vpack.c.bf16 %v3210_v50, %v3209_v48  ;;  %10602 = vmatprep.subr.bf16.mxu1 %v11198_v47 }
0x21c0   :  { %v3215_v55 = vpack.c.bf16 %v3208_v53, %v3207_v52 }
0x21c2   :  { %10590 = vmatprep.mubr.msk.bf16.mxu0 %vm158_vm2, %v3215_v55  ;;  %10603 = vmatpush3.bf16.msra.mxu1 %v11198_v47 }
0x21c3   :  { %10591 = vmatmul.mubr.msk.bf16.vlgmr.msra.gmra.mrb[80].mxu0 %vm158_vm2, %v3216_v54  ;;  %10614 = vmatprep.subr.bf16.mxu1 %v11858_v22 }
0x21c4   :  { %10595 = vmatpush3.bf16.msra.mxu0 %v11196_v17 }
0x21c5   :  { %10608 = vmatprep.subr.bf16.mxu0 %v11858_v22 }
0x2296   :  { %v10592_v21 = vpop.f32.mrb[80].mxu0 }
0x2297   :  { %v3274_v57 = vpop.f32.mrb[81].mxu0 }
0x2298   :  { %v10593_v58 = vpop.f32.mrb[82].mxu0 }
0x2299   :  { %v3284_v59 = vadd.f32 %v10593_v58, %v9806_v62  ;;  %v3276_v60 = vpop.f32.mrb[83].mxu0 }
0x229a   :  { %v3277_v61 = vadd.f32 %v9806_v62, %v3276_v60  ;;  %v9814_v62 = vld [vmem:[#allocation10 + $0x4] ss:$0 sm:$0xff] }
0x229b   :  { %v3288_v63 = vadd.f32 %v3284_v59, %v11975_v9 }
0x229c   :  { %v3287_v0 = vadd.f32 %v3277_v61, %v11969_v6 }
0x229d   :  { %3291 = vst.msk [vmem:[#allocation12 + $0x8] sm:$0xf0] %vm3289_vm1, %v3288_v63  ;;  %3297 = vst.msk [vmem:[#allocation2 + $0x18] sm:$0xf0] %vm3289_vm1, %v3288_v63  ;;  %v9815_v63 = vld [vmem:[#allocation10 + $0x5] ss:$0 sm:$0xff] }
0x229e   :  { %3290 = vst.msk [vmem:[#allocation12 - $0x4] sm:$0xf0] %vm3289_vm1, %v3287_v0  ;;  %3296 = vst.msk [vmem:[#allocation2 + $0x8] sm:$0xf0] %vm3289_vm1, %v3287_v0 }
0x22a4   :  { %v12510_v3 = vld [vmem:[#allocation2 + $0x18] sm:$0xff] }
0x22a5   :  { %v12512_v35 = vld [vmem:[#allocation2 + $0x8] sm:$0xff]  ;;  %6499 = vst.msk [vmem:[#allocation2 + $0x14] sm:$0xff] %vm78_vm0, %v12510_v3  ;;  %v3305_v6 = vpack.c.bf16 %v12510_v3, %v3300_v14 }
0x22a6   :  { %v3304_v37 = vpack.c.bf16 %v12512_v35, %v3298_v56  ;;  %6497 = vst.msk [vmem:[#allocation2 + $0x4] sm:$0xff] %vm78_vm0, %v12512_v35 }
0x22a8   :  { %10596 = vmatprep.mubr.msk.bf16.mxu0 %vm78_vm0, %v3304_v37 }
0x22a9   :  { %10597 = vmatmul.mubr.msk.bf16.vlgmr.msra.gmra.mrb[84].mxu0 %vm78_vm0, %v3305_v6 }
0x22aa   :  { %10610 = vmatprep.mubr.msk.bf16.mxu0 %vm11859_vm3, %v11858_v22 }
0x237c   :  { %v10598_v9 = vpop.f32.mrb[84].mxu0 }
0x237d   :  { %v3352_v39 = vpop.f32.mrb[85].mxu0  ;;  %v12526_v11 = vadd.f32 %v11723_v10, %v10598_v9 }
0x237e   :  { %v12524_v5 = vadd.f32 %v11722_v18, %v3352_v39  ;;  %v10599_v7 = vpop.f32.mrb[86].mxu0 }
0x237f   :  { %v3355_v8 = vpop.f32.mrb[87].mxu0  ;;  %v12532_v12 = vadd.f32 %v11725_v1, %v10599_v7  ;;  %v3375_v4 = vsel %vm158_vm2, %v12526_v11, 0.0 }
0x2380   :  { %v12528_v19 = vadd.f32 %v11724_v16, %v3355_v8  ;;  %v3369_v24 = vsel %vm158_vm2, %v12524_v5, 0.0 }
0x2381   :  { %3370 = vadd.xlane.f32.xlu0 %v3369_v24  ;;  %v3378_v13 = vsel %vm158_vm2, %v12532_v12, 0.0 }
0x2382   :  { %v3372_v2 = vsel %vm158_vm2, %v12528_v19, 0.0 }
0x2383   :  { %3373 = vadd.xlane.f32.xlu1 %v3372_v2 }
0x2385   :  { %3376 = vadd.xlane.f32.xlu0 %v3375_v4  ;;  %v9816_v4 = vld [vmem:[#allocation10] ss:$0 sm:$0xff] }
0x2387   :  { %3379 = vadd.xlane.f32.xlu1 %v3378_v13 }
0x240e   :  { %v3371_v36 = vpop.xlane.xlu0 %3370 }
0x240f   :  { %v3381_v29 = vmul.f32 0.03125, %v3371_v36 }
0x2410   :  { %v3374_v25 = vpop.xlane.xlu1 %3373 }
0x2411   :  { %v3385_v40 = vsub.f32 %v12524_v5, %v3381_v29  ;;  %v3382_v26 = vmul.f32 0.03125, %v3374_v25 }
0x2412   :  { %v3377_v31 = vpop.xlane.xlu0 %3376 }
0x2413   :  { %v3386_v27 = vsub.f32 %v12528_v19, %v3382_v26  ;;  %v3383_v28 = vmul.f32 0.03125, %v3377_v31  ;;  %v3389_v30 = vmul.f32 %v3385_v40, %v3385_v40 }
0x2414   :  { %v3380_v32 = vpop.xlane.xlu1 %3379 }
0x2415   :  { %v3387_v38 = vsub.f32 %v12526_v11, %v3383_v28  ;;  %v3384_v15 = vmul.f32 0.03125, %v3380_v32  ;;  %v3393_v33 = vsel %vm158_vm2, %v3389_v30, 0.0  ;;  %v3390_v23 = vmul.f32 %v3386_v27, %v3386_v27 }
0x2416   :  { %3394 = vadd.xlane.f32.xlu0 %v3393_v33 }
0x2417   :  { %v3388_v20 = vsub.f32 %v12532_v12, %v3384_v15  ;;  %v3396_v34 = vsel %vm158_vm2, %v3390_v23, 0.0  ;;  %v3391_v49 = vmul.f32 %v3387_v38, %v3387_v38 }
0x2418   :  { %3397 = vadd.xlane.f32.xlu1 %v3396_v34 }
0x2419   :  { %v3399_v45 = vsel %vm158_vm2, %v3391_v49, 0.0  ;;  %v3392_v51 = vmul.f32 %v3388_v20, %v3388_v20 }
0x241a   :  { %3400 = vadd.xlane.f32.xlu0 %v3399_v45 }
0x241b   :  { %v3402_v41 = vsel %vm158_vm2, %v3392_v51, 0.0 }
0x241c   :  { %3403 = vadd.xlane.f32.xlu1 %v3402_v41 }
0x24a3   :  { %v3395_v43 = vpop.xlane.xlu0 %3394 }
0x24a4   :  { %v3405_v44 = vmul.f32 0.03125, %v3395_v43 }
0x24a5   :  { %v3398_v46 = vpop.xlane.xlu1 %3397 }
0x24a6   :  { %v3409_v48 = vadd.f32 1e-05, %v3405_v44  ;;  %v3406_v50 = vmul.f32 0.03125, %v3398_v46 }
0x24a7   :  { %v3401_v52 = vpop.xlane.xlu0 %3400 }
0x24a8   :  { %11402 = vrsqrt.f32 %v3409_v48  ;;  %v3410_v53 = vadd.f32 1e-05, %v3406_v50  ;;  %v3407_v54 = vmul.f32 0.03125, %v3401_v52 }
0x24a9   :  { %v3404_v55 = vpop.xlane.xlu1 %3403 }
0x24aa   :  { %11404 = vrsqrt.f32 %v3410_v53  ;;  %v3411_v17 = vadd.f32 1e-05, %v3407_v54  ;;  %v3408_v56 = vmul.f32 0.03125, %v3404_v55 }
0x24ac   :  { %11406 = vrsqrt.f32 %v3411_v17  ;;  %v3412_v14 = vadd.f32 1e-05, %v3408_v56 }
0x24ae   :  { %11408 = vrsqrt.f32 %v3412_v14 }
0x24b2   :  { %v11403_v21 = vpop.eup %11402 }
0x24b3   :  { %v3417_v57 = vmul.f32 %v11403_v21, %v3385_v40 }
0x24b4   :  { %v11405_v58 = vpop.eup %11404 }
0x24b5   :  { %v3418_v59 = vmul.f32 %v11405_v58, %v3386_v27  ;;  %v3425_v60 = vmul.f32 %v9814_v62, %v3417_v57 }
0x24b6   :  { %v11407_v61 = vpop.eup %11406 }
0x24b7   :  { %v3419_v0 = vmul.f32 %v11407_v61, %v3387_v38  ;;  %v3426_v37 = vmul.f32 %v9814_v62, %v3418_v59  ;;  %v3433_v39 = vadd.f32 %v9815_v63, %v3425_v60 }
0x24b8   :  { %v11409_v6 = vpop.eup %11408 }
0x24b9   :  { %v3420_v9 = vmul.f32 %v11409_v6, %v3388_v20  ;;  %v3434_v18 = vadd.f32 %v9815_v63, %v3426_v37  ;;  %v3427_v7 = vmul.f32 %v9814_v62, %v3419_v0 }
0x24bb   :  { %v3441_v8 = vpack.c.bf16 %v3434_v18, %v3433_v39  ;;  %v3428_v10 = vmul.f32 %v9814_v62, %v3420_v9  ;;  %v3435_v16 = vadd.f32 %v9815_v63, %v3427_v7 }
0x24bd   :  { %10604 = vmatprep.mubr.msk.bf16.mxu1 %vm158_vm2, %v3441_v8  ;;  %v3436_v24 = vadd.f32 %v9815_v63, %v3428_v10 }
0x24bf   :  { %v3442_v1 = vpack.c.bf16 %v3436_v24, %v3435_v16 }
0x24c1   :  { %10605 = vmatmul.mubr.msk.bf16.vlgmr.msra.gmra.mrb[84].mxu1 %vm158_vm2, %v3442_v1 }
0x24c2   :  { %10616 = vmatprep.mubr.msk.bf16.mxu1 %vm11859_vm3, %v11858_v22 }
0x2594   :  { %v10606_v2 = vpop.f32.mrb[84].mxu1 }
0x2595   :  { %v3500_v13 = vpop.f32.mrb[85].mxu1  ;;  %v3509_v29 = vadd.f32 %v10606_v2, %v9816_v4 }
0x2596   :  { %v10607_v36 = vpop.f32.mrb[86].mxu1  ;;  %v3501_v26 = vadd.f32 %v9816_v4, %v3500_v13 }
0x2597   :  { %v3512_v25 = vadd.f32 %v10607_v36, %v9816_v4  ;;  %v3503_v40 = vpop.f32.mrb[87].mxu1 }
0x2598   :  { %v3504_v31 = vadd.f32 %v9816_v4, %v3503_v40 }
0x2599   :  { %v12553_v27 = vpack.c.bf16 %v3512_v25, %v3509_v29 }
0x259a   :  { %v12555_v28 = vpack.c.bf16 %v3504_v31, %v3501_v26 }
0x259b   :  { %3568 = vrot.lane.b32.xlu1 %v12553_v27, %s11860_s3 }
0x259c   :  { %3518 = vrot.lane.b32.xlu0 %v12555_v28, %s11860_s3 }
0x260d   :  { %v3569_v30 = vpop.permute.xlu1 %3568 }
0x260e   :  { %v3574_v32 = vsel %vm311_vm4, %v3569_v30, 0  ;;  %v3519_v38 = vpop.permute.xlu0 %3518 }
0x260f   :  { %v3524_v15 = vsel %vm311_vm4, %v3519_v38, 0  ;;  %10615 = vmatpush3.bf16.xpose.msra.mxu1 %v3574_v32 }
0x2610   :  { %10609 = vmatpush3.bf16.xpose.msra.mxu0 %v3524_v15  ;;  %10626 = vmatprep.subr.bf16.mxu1 %v11858_v22 }
0x2611   :  { %10620 = vmatprep.subr.bf16.mxu0 %v11858_v22 }
0x2616   :  { %10617 = vmatmul.mubr.msk.bf16.vlgmr.msra.gmra.mrb[88].mxu1 %vm311_vm4, %v12553_v27 }
0x2617   :  { %10611 = vmatmul.mubr.msk.bf16.vlgmr.msra.gmra.mrb[88].mxu0 %vm311_vm4, %v12555_v28  ;;  %10628 = vmatprep.mubr.msk.bf16.mxu1 %vm11859_vm3, %v11858_v22 }
0x2618   :  { %10622 = vmatprep.mubr.msk.bf16.mxu0 %vm11859_vm3, %v11858_v22 }
0x26e9   :  { %v3610_v33 = vpop.f32.mrb[88].mxu1 }
0x26ea   :  { %v3560_v23 = vpop.f32.mrb[88].mxu0  ;;  %v10618_v20 = vpop.f32.mrb[89].mxu1  ;;  %v3623_v44 = vsel %vm78_vm0, %v3610_v33, -inf }
0x26eb   :  { %v10612_v34 = vpop.f32.mrb[89].mxu0  ;;  %v3613_v49 = vpop.f32.mrb[90].mxu1  ;;  %v3617_v45 = vsel %vm78_vm0, %v3560_v23, -inf }
0x26ec   :  { %v10619_v51 = vpop.f32.mrb[91].mxu1  ;;  %3618 = vmax.xlane.f32.xlu1 %v3617_v45  ;;  %v3563_v41 = vpop.f32.mrb[90].mxu0  ;;  %v3626_v43 = vsel %vm78_vm0, %v3613_v49, -inf }
0x26ed   :  { %v10613_v42 = vpop.f32.mrb[91].mxu0  ;;  %v3620_v47 = vsel %vm78_vm0, %v3563_v41, -inf }
0x26ee   :  { %3621 = vmax.xlane.f32.xlu0 %v3620_v47 }
0x26f0   :  { %3627 = vmax.xlane.f32.xlu1 %v3626_v43 }
0x26f2   :  { %3624 = vmax.xlane.f32.xlu0 %v3623_v44 }
0x2701   :  { %3710 = vrot.lane.b32.xlu1 %v12553_v27, %s11855_s0 }
0x2705   :  { %3763 = vrot.lane.b32.xlu1 %v12555_v28, %s11861_s27 }
0x2779   :  { %v3619_v46 = vpop.xlane.xlu1 %3618 }
0x277a   :  { %v3629_v53 = vsub.f32 %v3560_v23, %v3619_v46 }
0x277b   :  { %v3622_v48 = vpop.xlane.xlu0 %3621 }
0x277c   :  { %v3630_v50 = vsub.f32 %v3563_v41, %v3622_v48  ;;  %v3633_v62 = vmul.f32 1.442695, %v3629_v53 }
0x277d   :  { %v3628_v52 = vpop.xlane.xlu1 %3627 }
0x277e   :  { %v3632_v54 = vsub.f32 %v3613_v49, %v3628_v52  ;;  %v3635_v55 = vmul.f32 1.442695, %v3630_v50 }
0x277f   :  { %v3625_v17 = vpop.xlane.xlu0 %3624 }
0x2780   :  { %v3639_v56 = vmul.f32 1.442695, %v3632_v54  ;;  %v3631_v14 = vsub.f32 %v3610_v33, %v3625_v17 }
0x2781   :  { %v3711_v21 = vpop.permute.xlu1 %3710 }
0x2782   :  { %11410 = vpow2.f32 %v3639_v56  ;;  %v3637_v57 = vmul.f32 1.442695, %v3631_v14  ;;  %10627 = vmatpush3.bf16.msra.mxu1 %v3711_v21 }
0x2783   :  { %11412 = vpow2.f32 %v3635_v55  ;;  %10638 = vmatprep.subr.bf16.mxu1 %v11858_v22 }
0x2784   :  { %11414 = vpow2.f32 %v3637_v57 }
0x2785   :  { %11416 = vpow2.f32 %v3633_v62  ;;  %v3764_v9 = vpop.permute.xlu1 %3763 }
0x2786   :  { %v3769_v30 = vsel %vm311_vm4, %v3764_v9, 0 }
0x278c   :  { %v11411_v58 = vpop.eup %11410 }
0x278d   :  { %v11413_v59 = vpop.eup %11412  ;;  %v3650_v60 = vsel %vm78_vm0, %v11411_v58, 0.0 }
0x278e   :  { %v11415_v61 = vpop.eup %11414  ;;  %3651 = vadd.xlane.f32.xlu1 %v3650_v60  ;;  %v3644_v37 = vsel %vm78_vm0, %v11413_v59, 0.0 }
0x278f   :  { %v3647_v63 = vsel %vm78_vm0, %v11415_v61, 0.0  ;;  %v11417_v0 = vpop.eup %11416 }
0x2790   :  { %3648 = vadd.xlane.f32.xlu0 %v3647_v63  ;;  %v3641_v6 = vsel %vm78_vm0, %v11417_v0, 0.0 }
0x2792   :  { %3645 = vadd.xlane.f32.xlu1 %v3644_v37 }
0x2794   :  { %3642 = vadd.xlane.f32.xlu0 %v3641_v6 }
0x27a3   :  { %3814 = vrot.lane.b32.xlu1 %v12553_v27, %s11861_s27 }
0x27a7   :  { %3812 = vrot.lane.b32.xlu1 %v12553_v27, %s11862_s13 }
0x27aa   :  { %3663 = vrot.lane.b32.xlu0 %v12555_v28, %s11855_s0 }
0x27ae   :  { %3761 = vrot.lane.b32.xlu0 %v12555_v28, %s11862_s13 }
0x281b   :  { %v3652_v39 = vpop.xlane.xlu1 %3651 }
0x281c   :  { %11418 = vrcp.f32 %v3652_v39 }
0x281d   :  { %v3649_v18 = vpop.xlane.xlu0 %3648 }
0x281e   :  { %11420 = vrcp.f32 %v3649_v18 }
0x281f   :  { %v3646_v7 = vpop.xlane.xlu1 %3645 }
0x2820   :  { %11422 = vrcp.f32 %v3646_v7 }
0x2821   :  { %v3643_v8 = vpop.xlane.xlu0 %3642 }
0x2822   :  { %11424 = vrcp.f32 %v3643_v8 }
0x2823   :  { %v3815_v13 = vpop.permute.xlu1 %3814 }
0x2824   :  { %v3820_v26 = vsel %vm311_vm4, %v3815_v13, 0 }
0x2825   :  { %v3664_v10 = vpop.permute.xlu0 %3663 }
0x2826   :  { %v11419_v16 = vpop.eup %11418  ;;  %10621 = vmatpush3.bf16.msra.mxu0 %v3664_v10 }
0x2827   :  { %10632 = vmatprep.subr.bf16.mxu0 %v11858_v22  ;;  %v3660_v1 = vmul.f32 %v11419_v16, %v11411_v58  ;;  %v3813_v32 = vpop.permute.xlu1 %3812 }
0x2828   :  { %v11421_v24 = vpop.eup %11420 }
0x2829   :  { %v3659_v2 = vmul.f32 %v11421_v24, %v11415_v61  ;;  %v3762_v38 = vpop.permute.xlu0 %3761 }
0x282a   :  { %v11423_v4 = vpop.eup %11422 }
0x282b   :  { %v3662_v36 = vpack.c.bf16 %v3660_v1, %v3659_v2  ;;  %v3658_v25 = vmul.f32 %v11423_v4, %v11413_v59 }
0x282c   :  { %v11425_v29 = vpop.eup %11424 }
0x282d   :  { %v3657_v40 = vmul.f32 %v11425_v29, %v11417_v0  ;;  %10629 = vmatmul.mubr.msk.bf16.vlgmr.msra.gmra.mrb[92].mxu1 %vm78_vm0, %v3662_v36 }
0x282e   :  { %10639 = vmatpush3.bf16.xpose.msra.mxu1 %v3820_v26  ;;  %10640 = vmatprep.mubr.msk.bf16.mxu1 %vm11859_vm3, %v11858_v22 }
0x282f   :  { %v3661_v31 = vpack.c.bf16 %v3658_v25, %v3657_v40  ;;  %10650 = vmatprep.subr.bf16.mxu1 %v11858_v22 }
0x2831   :  { %10623 = vmatmul.mubr.msk.bf16.vlgmr.msra.gmra.mrb[92].mxu0 %vm78_vm0, %v3661_v31 }
0x2832   :  { %10633 = vmatpush3.bf16.xpose.msra.mxu0 %v3769_v30  ;;  %10634 = vmatprep.mubr.msk.bf16.mxu0 %vm11859_vm3, %v11858_v22 }
0x2833   :  { %10644 = vmatprep.subr.bf16.mxu0 %v11858_v22 }
0x2835   :  { %10641 = vmatmul.mubr.msk.bf16.vlgmr.msra.gmra.mrb[96].mxu1 %vm311_vm4, %v3813_v32 }
0x2836   :  { %10652 = vmatprep.mubr.msk.bf16.mxu1 %vm11859_vm3, %v11858_v22 }
0x2839   :  { %10635 = vmatmul.mubr.msk.bf16.vlgmr.msra.gmra.mrb[96].mxu0 %vm311_vm4, %v3762_v38 }
0x283a   :  { %10646 = vmatprep.mubr.msk.bf16.mxu0 %vm11859_vm3, %v11858_v22 }
0x2900   :  { %v3750_v15 = vpop.f32.mrb[92].mxu1 }
0x2901   :  { %3759 = vst.msk [vmem:[#allocation3 + $0x10] sm:$0xff] %vm311_vm4, %v3750_v15  ;;  %v10630_v33 = vpop.f32.mrb[93].mxu1 }
0x2902   :  { %v3753_v23 = vpop.f32.mrb[94].mxu1 }
0x2903   :  { %3760 = vst.msk [vmem:[#allocation3 + $0x18] sm:$0xff] %vm311_vm4, %v3753_v23  ;;  %v10631_v20 = vpop.f32.mrb[95].mxu1 }
0x2904   :  { %v3703_v34 = vpop.f32.mrb[92].mxu0 }
0x2905   :  { %3757 = vst.msk [vmem:[#allocation3] sm:$0xff] %vm311_vm4, %v3703_v34  ;;  %v10624_v49 = vpop.f32.mrb[93].mxu0 }
0x2906   :  { %v3706_v45 = vpop.f32.mrb[94].mxu0 }
0x2907   :  { %3758 = vst.msk [vmem:[#allocation3 + $0x8] sm:$0xff] %vm311_vm4, %v3706_v45  ;;  %v10625_v51 = vpop.f32.mrb[95].mxu0 }
0x2908   :  { %v3856_v41 = vpop.f32.mrb[96].mxu1 }
0x2909   :  { %v10642_v42 = vpop.f32.mrb[97].mxu1  ;;  %v3869_v54 = vsel %vm78_vm0, %v3856_v41, -inf }
0x290a   :  { %v3859_v47 = vpop.f32.mrb[98].mxu1 }
0x290b   :  { %v10643_v43 = vpop.f32.mrb[99].mxu1  ;;  %v3872_v55 = vsel %vm78_vm0, %v3859_v47, -inf }
0x290c   :  { %v3805_v44 = vpop.f32.mrb[96].mxu0 }
0x290d   :  { %v10636_v46 = vpop.f32.mrb[97].mxu0  ;;  %v3863_v48 = vsel %vm78_vm0, %v3805_v44, -inf }
0x290e   :  { %3864 = vmax.xlane.f32.xlu0 %v3863_v48  ;;  %v3808_v50 = vpop.f32.mrb[98].mxu0 }
0x290f   :  { %v10637_v52 = vpop.f32.mrb[99].mxu0  ;;  %v3866_v53 = vsel %vm78_vm0, %v3808_v50, -inf }
0x2910   :  { %3867 = vmax.xlane.f32.xlu1 %v3866_v53 }
0x2912   :  { %3870 = vmax.xlane.f32.xlu0 %v3869_v54 }
0x2916   :  { %3873 = vmax.xlane.f32.xlu0 %v3872_v55 }
0x2921   :  { %3956 = vrot.lane.b32.xlu1 %v12553_v27, %s11863_s14 }
0x2925   :  { %4025 = vrot.lane.b32.xlu1 %v12555_v28, %s11864_s15 }
0x299b   :  { %v3865_v17 = vpop.xlane.xlu0 %3864 }
0x299c   :  { %v3875_v14 = vsub.f32 %v3805_v44, %v3865_v17 }
0x299d   :  { %v3868_v56 = vpop.xlane.xlu1 %3867 }
0x299e   :  { %v3879_v58 = vmul.f32 1.442695, %v3875_v14  ;;  %v3876_v59 = vsub.f32 %v3808_v50, %v3868_v56 }
0x299f   :  { %v3871_v21 = vpop.xlane.xlu0 %3870 }
0x29a0   :  { %v3877_v62 = vsub.f32 %v3856_v41, %v3871_v21  ;;  %v3881_v0 = vmul.f32 1.442695, %v3876_v59 }
0x29a1   :  { %v3957_v57 = vpop.permute.xlu1 %3956 }
0x29a2   :  { %v3883_v60 = vmul.f32 1.442695, %v3877_v62  ;;  %10651 = vmatpush3.bf16.msra.mxu1 %v3957_v57 }
0x29a3   :  { %v3874_v61 = vpop.xlane.xlu0 %3873  ;;  %10662 = vmatprep.subr.bf16.mxu1 %v11858_v22 }
0x29a4   :  { %11426 = vpow2.f32 %v3883_v60  ;;  %v3878_v63 = vsub.f32 %v3859_v47, %v3874_v61 }
0x29a5   :  { %11428 = vpow2.f32 %v3879_v58  ;;  %v4026_v24 = vpop.permute.xlu1 %4025 }
0x29a6   :  { %v3885_v37 = vmul.f32 1.442695, %v3878_v63  ;;  %v4031_v34 = vsel %vm311_vm4, %v4026_v24, 0 }
0x29a8   :  { %11430 = vpow2.f32 %v3885_v37 }
0x29a9   :  { %11432 = vpow2.f32 %v3881_v0 }
0x29ae   :  { %v11427_v6 = vpop.eup %11426 }
0x29af   :  { %v3893_v9 = vsel %vm78_vm0, %v11427_v6, 0.0  ;;  %v11429_v39 = vpop.eup %11428 }
0x29b0   :  { %3894 = vadd.xlane.f32.xlu0 %v3893_v9  ;;  %v3887_v7 = vsel %vm78_vm0, %v11429_v39, 0.0 }
0x29b2   :  { %v11431_v18 = vpop.eup %11430 }
0x29b3   :  { %v3896_v8 = vsel %vm78_vm0, %v11431_v18, 0.0  ;;  %v11433_v10 = vpop.eup %11432 }
0x29b4   :  { %3888 = vadd.xlane.f32.xlu0 %v3887_v7  ;;  %3897 = vadd.xlane.f32.xlu1 %v3896_v8  ;;  %v3890_v16 = vsel %vm78_vm0, %v11433_v10, 0.0 }
0x29b8   :  { %3891 = vadd.xlane.f32.xlu1 %v3890_v16 }
0x29c9   :  { %4076 = vrot.lane.b32.xlu1 %v12553_v27, %s11864_s15 }
0x29ca   :  { %3909 = vrot.lane.b32.xlu0 %v12555_v28, %s11863_s14 }
0x29cd   :  { %4074 = vrot.lane.b32.xlu1 %v12553_v27, %s11865_s16 }
0x29ce   :  { %4023 = vrot.lane.b32.xlu0 %v12555_v28, %s11865_s16 }
0x2a3d   :  { %v3895_v1 = vpop.xlane.xlu0 %3894 }
0x2a3e   :  { %11434 = vrcp.f32 %v3895_v1 }
0x2a41   :  { %v3889_v2 = vpop.xlane.xlu0 %3888  ;;  %v3898_v4 = vpop.xlane.xlu1 %3897 }
0x2a42   :  { %11436 = vrcp.f32 %v3898_v4 }
0x2a43   :  { %11438 = vrcp.f32 %v3889_v2 }
0x2a45   :  { %v3910_v13 = vpop.permute.xlu0 %3909  ;;  %v3892_v36 = vpop.xlane.xlu1 %3891 }
0x2a46   :  { %11440 = vrcp.f32 %v3892_v36  ;;  %10645 = vmatpush3.bf16.msra.mxu0 %v3910_v13 }
0x2a47   :  { %10656 = vmatprep.subr.bf16.mxu0 %v11858_v22 }
0x2a48   :  { %v11435_v29 = vpop.eup %11434 }
0x2a49   :  { %v3905_v26 = vmul.f32 %v11435_v29, %v11427_v6  ;;  %v4077_v30 = vpop.permute.xlu1 %4076  ;;  %v4024_v45 = vpop.permute.xlu0 %4023 }
0x2a4a   :  { %v4082_v23 = vsel %vm311_vm4, %v4077_v30, 0 }
0x2a4c   :  { %v11437_v25 = vpop.eup %11436 }
0x2a4d   :  { %v11439_v40 = vpop.eup %11438  ;;  %v3906_v31 = vmul.f32 %v11437_v25, %v11431_v18  ;;  %v4075_v49 = vpop.permute.xlu1 %4074 }
0x2a4e   :  { %v3903_v15 = vmul.f32 %v11439_v40, %v11429_v39 }
0x2a4f   :  { %v3908_v38 = vpack.c.bf16 %v3906_v31, %v3905_v26 }
0x2a50   :  { %v11441_v32 = vpop.eup %11440 }
0x2a51   :  { %v3904_v33 = vmul.f32 %v11441_v32, %v11433_v10  ;;  %10653 = vmatmul.mubr.msk.bf16.vlgmr.msra.gmra.mrb[100].mxu1 %vm78_vm0, %v3908_v38 }
0x2a52   :  { %10663 = vmatpush3.bf16.xpose.msra.mxu1 %v4082_v23  ;;  %10664 = vmatprep.mubr.msk.bf16.mxu1 %vm11859_vm3, %v11858_v22 }
0x2a53   :  { %v3907_v20 = vpack.c.bf16 %v3904_v33, %v3903_v15  ;;  %10674 = vmatprep.subr.bf16.mxu1 %v11858_v22 }
0x2a55   :  { %10647 = vmatmul.mubr.msk.bf16.vlgmr.msra.gmra.mrb[100].mxu0 %vm78_vm0, %v3907_v20 }
0x2a56   :  { %10657 = vmatpush3.bf16.xpose.msra.mxu0 %v4031_v34  ;;  %10658 = vmatprep.mubr.msk.bf16.mxu0 %vm11859_vm3, %v11858_v22 }
0x2a57   :  { %10668 = vmatprep.subr.bf16.mxu0 %v11858_v22 }
0x2a59   :  { %10665 = vmatmul.mubr.msk.bf16.vlgmr.msra.gmra.mrb[104].mxu1 %vm311_vm4, %v4075_v49 }
0x2a5a   :  { %10676 = vmatprep.mubr.msk.bf16.mxu1 %vm11859_vm3, %v11858_v22 }
0x2a5d   :  { %10659 = vmatmul.mubr.msk.bf16.vlgmr.msra.gmra.mrb[104].mxu0 %vm311_vm4, %v4024_v45 }
0x2a5e   :  { %10670 = vmatprep.mubr.msk.bf16.mxu0 %vm11859_vm3, %v11858_v22 }
0x2b24   :  { %v12653_v51 = vpop.f32.mrb[100].mxu1 }
0x2b25   :  { %v10654_v41 = vpop.f32.mrb[101].mxu1 }
0x2b26   :  { %v12655_v42 = vpop.f32.mrb[102].mxu1 }
0x2b27   :  { %v10655_v47 = vpop.f32.mrb[103].mxu1 }
0x2b28   :  { %v12657_v43 = vpop.f32.mrb[100].mxu0 }
0x2b29   :  { %v10648_v44 = vpop.f32.mrb[101].mxu0 }
0x2b2a   :  { %v12659_v46 = vpop.f32.mrb[102].mxu0 }
0x2b2b   :  { %v10649_v48 = vpop.f32.mrb[103].mxu0 }
0x2b2c   :  { %v4118_v50 = vpop.f32.mrb[104].mxu1 }
0x2b2d   :  { %v10666_v52 = vpop.f32.mrb[105].mxu1  ;;  %v4131_v57 = vsel %vm78_vm0, %v4118_v50, -inf }
0x2b2e   :  { %v4121_v53 = vpop.f32.mrb[106].mxu1 }
0x2b2f   :  { %v10667_v54 = vpop.f32.mrb[107].mxu1  ;;  %v4134_v58 = vsel %vm78_vm0, %v4121_v53, -inf }
0x2b30   :  { %v4067_v55 = vpop.f32.mrb[104].mxu0 }
0x2b31   :  { %v10660_v17 = vpop.f32.mrb[105].mxu0  ;;  %v4125_v56 = vsel %vm78_vm0, %v4067_v55, -inf }
0x2b32   :  { %4126 = vmax.xlane.f32.xlu0 %v4125_v56  ;;  %v4070_v14 = vpop.f32.mrb[106].mxu0 }
0x2b33   :  { %v10661_v21 = vpop.f32.mrb[107].mxu0  ;;  %v4128_v62 = vsel %vm78_vm0, %v4070_v14, -inf }
0x2b34   :  { %4129 = vmax.xlane.f32.xlu1 %v4128_v62 }
0x2b36   :  { %4132 = vmax.xlane.f32.xlu0 %v4131_v57 }
0x2b3a   :  { %4135 = vmax.xlane.f32.xlu0 %v4134_v58 }
0x2b45   :  { %4218 = vrot.lane.b32.xlu1 %v12553_v27, %s11866_s17 }
0x2b49   :  { %4287 = vrot.lane.b32.xlu1 %v12555_v28, %s11867_s19 }
0x2bbf   :  { %v4127_v59 = vpop.xlane.xlu0 %4126 }
0x2bc0   :  { %v4137_v61 = vsub.f32 %v4067_v55, %v4127_v59 }
0x2bc1   :  { %v4130_v60 = vpop.xlane.xlu1 %4129 }
0x2bc2   :  { %v4141_v6 = vmul.f32 1.442695, %v4137_v61  ;;  %v4138_v9 = vsub.f32 %v4070_v14, %v4130_v60 }
0x2bc3   :  { %v4133_v63 = vpop.xlane.xlu0 %4132 }
0x2bc4   :  { %v4139_v0 = vsub.f32 %v4118_v50, %v4133_v63  ;;  %v4143_v8 = vmul.f32 1.442695, %v4138_v9 }
0x2bc5   :  { %v4219_v37 = vpop.permute.xlu1 %4218 }
0x2bc6   :  { %v4145_v39 = vmul.f32 1.442695, %v4139_v0  ;;  %10675 = vmatpush3.bf16.msra.mxu1 %v4219_v37 }
0x2bc7   :  { %v4136_v18 = vpop.xlane.xlu0 %4135  ;;  %10686 = vmatprep.subr.bf16.mxu1 %v11858_v22 }
0x2bc8   :  { %11442 = vpow2.f32 %v4145_v39  ;;  %v4140_v7 = vsub.f32 %v4121_v53, %v4136_v18 }
0x2bc9   :  { %11444 = vpow2.f32 %v4141_v6  ;;  %v4288_v25 = vpop.permute.xlu1 %4287 }
0x2bca   :  { %v4147_v10 = vmul.f32 1.442695, %v4140_v7  ;;  %v4293_v50 = vsel %vm311_vm4, %v4288_v25, 0 }
0x2bcc   :  { %11446 = vpow2.f32 %v4147_v10 }
0x2bcd   :  { %11448 = vpow2.f32 %v4143_v8 }
0x2bd2   :  { %v11443_v16 = vpop.eup %11442 }
0x2bd3   :  { %v4155_v24 = vsel %vm78_vm0, %v11443_v16, 0.0  ;;  %v11445_v1 = vpop.eup %11444 }
0x2bd4   :  { %4156 = vadd.xlane.f32.xlu0 %v4155_v24  ;;  %v4149_v4 = vsel %vm78_vm0, %v11445_v1, 0.0 }
0x2bd6   :  { %v11447_v2 = vpop.eup %11446 }
0x2bd7   :  { %v4158_v13 = vsel %vm78_vm0, %v11447_v2, 0.0  ;;  %v11449_v36 = vpop.eup %11448 }
0x2bd8   :  { %4150 = vadd.xlane.f32.xlu0 %v4149_v4  ;;  %4159 = vadd.xlane.f32.xlu1 %v4158_v13  ;;  %v4152_v29 = vsel %vm78_vm0, %v11449_v36, 0.0 }
0x2bdc   :  { %4153 = vadd.xlane.f32.xlu1 %v4152_v29 }
0x2bed   :  { %4338 = vrot.lane.b32.xlu1 %v12553_v27, %s11867_s19 }
0x2bee   :  { %4171 = vrot.lane.b32.xlu0 %v12555_v28, %s11866_s17 }
0x2bf1   :  { %4336 = vrot.lane.b32.xlu1 %v12553_v27, %s11868_s20 }
0x2bf2   :  { %4285 = vrot.lane.b32.xlu0 %v12555_v28, %s11868_s20 }
0x2c61   :  { %v4157_v40 = vpop.xlane.xlu0 %4156 }
0x2c62   :  { %11450 = vrcp.f32 %v4157_v40 }
0x2c65   :  { %v4151_v26 = vpop.xlane.xlu0 %4150  ;;  %v4160_v31 = vpop.xlane.xlu1 %4159 }
0x2c66   :  { %11452 = vrcp.f32 %v4160_v31 }
0x2c67   :  { %11454 = vrcp.f32 %v4151_v26 }
0x2c69   :  { %v4172_v30 = vpop.permute.xlu0 %4171  ;;  %v4154_v32 = vpop.xlane.xlu1 %4153 }
0x2c6a   :  { %11456 = vrcp.f32 %v4154_v32  ;;  %10669 = vmatpush3.bf16.msra.mxu0 %v4172_v30 }
0x2c6b   :  { %10680 = vmatprep.subr.bf16.mxu0 %v11858_v22 }
0x2c6c   :  { %v11451_v38 = vpop.eup %11450 }
0x2c6d   :  { %v4167_v23 = vmul.f32 %v11451_v38, %v11443_v16  ;;  %v4339_v34 = vpop.permute.xlu1 %4338  ;;  %v4286_v53 = vpop.permute.xlu0 %4285 }
0x2c6e   :  { %v4344_v44 = vsel %vm311_vm4, %v4339_v34, 0 }
0x2c70   :  { %v11453_v15 = vpop.eup %11452 }
0x2c71   :  { %v11455_v33 = vpop.eup %11454  ;;  %v4168_v20 = vmul.f32 %v11453_v15, %v11447_v2  ;;  %v4337_v52 = vpop.permute.xlu1 %4336 }
0x2c72   :  { %v4165_v41 = vmul.f32 %v11455_v33, %v11445_v1 }
0x2c73   :  { %v4170_v45 = vpack.c.bf16 %v4168_v20, %v4167_v23 }
0x2c74   :  { %v11457_v49 = vpop.eup %11456 }
0x2c75   :  { %v4166_v47 = vmul.f32 %v11457_v49, %v11449_v36  ;;  %10677 = vmatmul.mubr.msk.bf16.vlgmr.msra.gmra.mrb[108].mxu1 %vm78_vm0, %v4170_v45 }
0x2c76   :  { %10687 = vmatpush3.bf16.xpose.msra.mxu1 %v4344_v44  ;;  %10688 = vmatprep.mubr.msk.bf16.mxu1 %vm11859_vm3, %v11858_v22 }
0x2c77   :  { %v4169_v48 = vpack.c.bf16 %v4166_v47, %v4165_v41  ;;  %10698 = vmatprep.subr.bf16.mxu1 %v11858_v22 }
0x2c79   :  { %10671 = vmatmul.mubr.msk.bf16.vlgmr.msra.gmra.mrb[108].mxu0 %vm78_vm0, %v4169_v48 }
0x2c7a   :  { %10681 = vmatpush3.bf16.xpose.msra.mxu0 %v4293_v50  ;;  %10682 = vmatprep.mubr.msk.bf16.mxu0 %vm11859_vm3, %v11858_v22 }
0x2c7b   :  { %10692 = vmatprep.subr.bf16.mxu0 %v11858_v22 }
0x2c7d   :  { %10689 = vmatmul.mubr.msk.bf16.vlgmr.msra.gmra.mrb[112].mxu1 %vm311_vm4, %v4337_v52 }
0x2c7e   :  { %10700 = vmatprep.mubr.msk.bf16.mxu1 %vm11859_vm3, %v11858_v22 }
0x2c81   :  { %10683 = vmatmul.mubr.msk.bf16.vlgmr.msra.gmra.mrb[112].mxu0 %vm311_vm4, %v4286_v53 }
0x2c82   :  { %10694 = vmatprep.mubr.msk.bf16.mxu0 %vm11859_vm3, %v11858_v22 }
0x2d48   :  { %v4258_v54 = vpop.f32.mrb[108].mxu1 }
0x2d49   :  { %v10678_v55 = vpop.f32.mrb[109].mxu1 }
0x2d4a   :  { %v4261_v17 = vpop.f32.mrb[110].mxu1 }
0x2d4b   :  { %v10679_v56 = vpop.f32.mrb[111].mxu1 }
0x2d4c   :  { %v4211_v14 = vpop.f32.mrb[108].mxu0 }
0x2d4d   :  { %v10672_v21 = vpop.f32.mrb[109].mxu0 }
0x2d4e   :  { %v4214_v62 = vpop.f32.mrb[110].mxu0 }
0x2d4f   :  { %v10673_v57 = vpop.f32.mrb[111].mxu0 }
0x2d50   :  { %v4380_v58 = vpop.f32.mrb[112].mxu1  ;;  %v11199_v57 = vld [vmem:[#allocation9 + $0x18] sm:$0xff]  }
0x2d51   :  { %v10690_v59 = vpop.f32.mrb[113].mxu1  ;;  %v4393_v18 = vsel %vm78_vm0, %v4380_v58, -inf }
0x2d52   :  { %v4383_v60 = vpop.f32.mrb[114].mxu1 }
0x2d53   :  { %v10691_v61 = vpop.f32.mrb[115].mxu1  ;;  %v4396_v7 = vsel %vm78_vm0, %v4383_v60, -inf }
0x2d54   :  { %v4329_v63 = vpop.f32.mrb[112].mxu0 }
0x2d55   :  { %v10684_v0 = vpop.f32.mrb[113].mxu0  ;;  %v4387_v37 = vsel %vm78_vm0, %v4329_v63, -inf }
0x2d56   :  { %4388 = vmax.xlane.f32.xlu0 %v4387_v37  ;;  %v4332_v6 = vpop.f32.mrb[114].mxu0 }
0x2d57   :  { %v10685_v9 = vpop.f32.mrb[115].mxu0  ;;  %v4390_v39 = vsel %vm78_vm0, %v4332_v6, -inf }
0x2d58   :  { %4391 = vmax.xlane.f32.xlu1 %v4390_v39 }
0x2d5a   :  { %4394 = vmax.xlane.f32.xlu0 %v4393_v18 }
0x2d5e   :  { %4397 = vmax.xlane.f32.xlu0 %v4396_v7 }
0x2de3   :  { %v4389_v8 = vpop.xlane.xlu0 %4388 }
0x2de4   :  { %v4399_v10 = vsub.f32 %v4329_v63, %v4389_v8 }
0x2de5   :  { %v4392_v16 = vpop.xlane.xlu1 %4391 }
0x2de6   :  { %v4403_v2 = vmul.f32 1.442695, %v4399_v10  ;;  %v4400_v4 = vsub.f32 %v4332_v6, %v4392_v16 }
0x2de7   :  { %v4395_v24 = vpop.xlane.xlu0 %4394 }
0x2de8   :  { %v4401_v1 = vsub.f32 %v4380_v58, %v4395_v24  ;;  %v4405_v25 = vmul.f32 1.442695, %v4400_v4  ;;  %v11200_v58 = vld [vmem:[#allocation9 + $0x20] sm:$0xff]  }
0x2dea   :  { %v4407_v13 = vmul.f32 1.442695, %v4401_v1 }
0x2deb   :  { %v4398_v36 = vpop.xlane.xlu0 %4397 }
0x2dec   :  { %11458 = vpow2.f32 %v4407_v13  ;;  %v4402_v29 = vsub.f32 %v4383_v60, %v4398_v36  ;;  %v9841_v36 = vld [vmem:[#allocation10 + $0x1] ss:$0 sm:$0xff] }
0x2ded   :  { %11460 = vpow2.f32 %v4403_v2 }
0x2dee   :  { %v4409_v40 = vmul.f32 1.442695, %v4402_v29 }
0x2df0   :  { %11462 = vpow2.f32 %v4409_v40 }
0x2df1   :  { %11464 = vpow2.f32 %v4405_v25 }
0x2df6   :  { %v11459_v26 = vpop.eup %11458 }
0x2df7   :  { %v4417_v31 = vsel %vm78_vm0, %v11459_v26, 0.0  ;;  %v11461_v30 = vpop.eup %11460 }
0x2df8   :  { %4418 = vadd.xlane.f32.xlu0 %v4417_v31  ;;  %v4411_v38 = vsel %vm78_vm0, %v11461_v30, 0.0 }
0x2dfa   :  { %v11463_v32 = vpop.eup %11462 }
0x2dfb   :  { %v4420_v15 = vsel %vm78_vm0, %v11463_v32, 0.0  ;;  %v11465_v33 = vpop.eup %11464 }
0x2dfc   :  { %4412 = vadd.xlane.f32.xlu0 %v4411_v38  ;;  %4421 = vadd.xlane.f32.xlu1 %v4420_v15  ;;  %v4414_v23 = vsel %vm78_vm0, %v11465_v33, 0.0 }
0x2e00   :  { %4415 = vadd.xlane.f32.xlu1 %v4414_v23 }
0x2e11   :  { %4480 = vrot.lane.b32.xlu1 %v12553_v27, %s11869_s21 }
0x2e12   :  { %4433 = vrot.lane.b32.xlu0 %v12555_v28, %s11869_s21 }
0x2e15   :  { %4007 = vrot.lane.b32.xlu1 %v12657_v43, %s11853_s28 }
0x2e16   :  { %4011 = vrot.lane.b32.xlu0 %v12653_v51, %s11853_s28 }
0x2e19   :  { %4009 = vrot.lane.b32.xlu1 %v12659_v46, %s11853_s28 }
0x2e1a   :  { %4269 = vrot.lane.b32.xlu0 %v4211_v14, %s11870_s22 }
0x2e1d   :  { %4013 = vrot.lane.b32.xlu1 %v12655_v42, %s11853_s28 }
0x2e1e   :  { %4273 = vrot.lane.b32.xlu0 %v4258_v54, %s11870_s22 }
0x2e21   :  { %4271 = vrot.lane.b32.xlu1 %v4214_v62, %s11870_s22 }
0x2e25   :  { %4275 = vrot.lane.b32.xlu1 %v4261_v17, %s11870_s22 }
0x2e85   :  { %v4419_v27 = vpop.xlane.xlu0 %4418 }
0x2e86   :  { %11466 = vrcp.f32 %v4419_v27 }
0x2e89   :  { %v4413_v28 = vpop.xlane.xlu0 %4412  ;;  %v4422_v43 = vpop.xlane.xlu1 %4421 }
0x2e8a   :  { %11468 = vrcp.f32 %v4422_v43 }
0x2e8b   :  { %11470 = vrcp.f32 %v4413_v28 }
0x2e8d   :  { %v4434_v51 = vpop.permute.xlu0 %4433  ;;  %v4416_v20 = vpop.xlane.xlu1 %4415 }
0x2e8e   :  { %11472 = vrcp.f32 %v4416_v20  ;;  %10693 = vmatpush3.bf16.msra.mxu0 %v4434_v51 }
0x2e8f   :  { %10704 = vmatprep.subr.bf16.mxu0 %v11199_v57 }
0x2e90   :  { %v11467_v42 = vpop.eup %11466 }
0x2e91   :  { %v4012_v46 = vpop.permute.xlu0 %4011  ;;  %v4481_v34 = vpop.permute.xlu1 %4480  ;;  %v4429_v44 = vmul.f32 %v11467_v42, %v11459_v26 }
0x2e92   :  { %4021 = vst.msk [vmem:[#allocation3 + $0x10] sm:$0xff] %vm811_vm5, %v4012_v46  ;;  %10699 = vmatpush3.bf16.msra.mxu1 %v4481_v34 }
0x2e94   :  { %v11469_v49 = vpop.eup %11468 }
0x2e95   :  { %v4270_v45 = vpop.permute.xlu0 %4269  ;;  %v4008_v41 = vpop.permute.xlu1 %4007  ;;  %v4430_v48 = vmul.f32 %v11469_v49, %v11463_v32 }
0x2e96   :  { %v11471_v47 = vpop.eup %11470  ;;  %4019 = vst.msk [vmem:[#allocation3] sm:$0xff] %vm811_vm5, %v4008_v41 }
0x2e97   :  { %4281 = vst.msk [vmem:[#allocation3] sm:$0xff] %vm1074_vm6, %v4270_v45  ;;  %v4432_v52 = vpack.c.bf16 %v4430_v48, %v4429_v44  ;;  %v4427_v53 = vmul.f32 %v11471_v47, %v11461_v30 }
0x2e98   :  { %v11473_v50 = vpop.eup %11472 }
0x2e99   :  { %v4428_v54 = vmul.f32 %v11473_v50, %v11465_v33  ;;  %v4274_v55 = vpop.permute.xlu0 %4273  ;;  %v4010_v17 = vpop.permute.xlu1 %4009  ;;  %10701 = vmatmul.mubr.msk.bf16.vlgmr.msra.gmra.mrb[116].mxu1 %vm78_vm0, %v4432_v52 }
0x2e9a   :  { %4283 = vst.msk [vmem:[#allocation3 + $0x10] sm:$0xff] %vm1074_vm6, %v4274_v55 }
0x2e9b   :  { %4020 = vst.msk [vmem:[#allocation3 + $0x8] sm:$0xff] %vm811_vm5, %v4010_v17  ;;  %v4431_v56 = vpack.c.bf16 %v4428_v54, %v4427_v53 }
0x2e9d   :  { %10695 = vmatmul.mubr.msk.bf16.vlgmr.msra.gmra.mrb[116].mxu0 %vm78_vm0, %v4431_v56  ;;  %v4014_v14 = vpop.permute.xlu1 %4013  ;;  %v11201_v56 = vld [vmem:[#allocation9 + $0x28] sm:$0xff]  }
0x2e9e   :  { %4022 = vst.msk [vmem:[#allocation3 + $0x18] sm:$0xff] %vm811_vm5, %v4014_v14  ;;  %10705 = vmatpush3.bf16.msra.mxu0 %v11199_v57  ;;  %10712 = vmatprep.subr.bf16.mxu1 %v11201_v56  ;;  %v11202_v14 = vld [vmem:[#allocation9 + $0x30] sm:$0xff]  }
0x2e9f   :  { %10706 = vmatprep.subr.bf16.mxu0 %v11200_v58  ;;  %10713 = vmatpush3.bf16.msra.mxu1 %v11201_v56 }
0x2ea0   :  { %10714 = vmatprep.subr.bf16.mxu1 %v11202_v14 }
0x2ea1   :  { %v4272_v21 = vpop.permute.xlu1 %4271 }
0x2ea2   :  { %4282 = vst.msk [vmem:[#allocation3 + $0x8] sm:$0xff] %vm1074_vm6, %v4272_v21  ;;  %10707 = vmatpush3.bf16.msra.mxu0 %v11200_v58  ;;  %v11203_v21 = vld [vmem:[#allocation9 + $0x38] sm:$0xff]  }
0x2ea3   :  { %10715 = vmatpush3.bf16.msra.mxu1 %v11202_v14  ;;  %10720 = vmatprep.subr.bf16.mxu0 %v11203_v21 }
0x2ea5   :  { %v4276_v62 = vpop.permute.xlu1 %4275 }
0x2ea6   :  { %4284 = vst.msk [vmem:[#allocation3 + $0x18] sm:$0xff] %vm1074_vm6, %v4276_v62  ;;  %v11204_v62 = vld [vmem:[#allocation9 + $0x40] sm:$0xff]  }
0x2f6c   :  { %v4520_v59 = vpop.f32.mrb[116].mxu1 }
0x2f6d   :  { %v10702_v60 = vpop.f32.mrb[117].mxu1 }
0x2f6e   :  { %v4523_v61 = vpop.f32.mrb[118].mxu1 }
0x2f6f   :  { %v10703_v63 = vpop.f32.mrb[119].mxu1 }
0x2f70   :  { %v4473_v0 = vpop.f32.mrb[116].mxu0 }
0x2f71   :  { %4531 = vrot.lane.b32.xlu0 %v4473_v0, %s11871_s23  ;;  %v10696_v37 = vpop.f32.mrb[117].mxu0 }
0x2f72   :  { %v4476_v6 = vpop.f32.mrb[118].mxu0 }
0x2f73   :  { %4533 = vrot.lane.b32.xlu1 %v4476_v6, %s11871_s23  ;;  %v10697_v9 = vpop.f32.mrb[119].mxu0 }
0x2f75   :  { %4535 = vrot.lane.b32.xlu0 %v4520_v59, %s11871_s23 }
0x2f77   :  { %4537 = vrot.lane.b32.xlu1 %v4523_v61, %s11871_s23 }
0x2fe3   :  { %v4532_v39 = vpop.permute.xlu0 %4531 }
0x2fe4   :  { %4543 = vst.msk [vmem:[#allocation3] sm:$0xff] %vm1337_vm7, %v4532_v39 }
0x2fe5   :  { %v4534_v18 = vpop.permute.xlu1 %4533 }
0x2fe6   :  { %4544 = vst.msk [vmem:[#allocation3 + $0x8] sm:$0xff] %vm1337_vm7, %v4534_v18 }
0x2fe7   :  { %v4536_v7 = vpop.permute.xlu0 %4535 }
0x2fe8   :  { %4545 = vst.msk [vmem:[#allocation3 + $0x10] sm:$0xff] %vm1337_vm7, %v4536_v7 }
0x2fe9   :  { %v4538_v8 = vpop.permute.xlu1 %4537 }
0x2fea   :  { %4546 = vst.msk [vmem:[#allocation3 + $0x18] sm:$0xff] %vm1337_vm7, %v4538_v8  ;;  %v9842_v8 = vld [vmem:[#allocation10 + $0x6] ss:$0 sm:$0xff] }
0x2feb   :  { %v4547_v10 = vld [vmem:[#allocation3] sm:$0xff] }
0x2fed   :  { %v4548_v16 = vld [vmem:[#allocation3 + $0x8] sm:$0xff] }
0x2fee   :  { %v4555_v24 = vpack.c.bf16 %v4548_v16, %v4547_v10 }
0x2fef   :  { %v4549_v1 = vld [vmem:[#allocation3 + $0x10] sm:$0xff] }
0x2ff0   :  { %10708 = vmatprep.mubr.msk.bf16.mxu0 %vm158_vm2, %v4555_v24 }
0x2ff1   :  { %v4550_v2 = vld [vmem:[#allocation3 + $0x18] sm:$0xff] }
0x2ff2   :  { %v4556_v4 = vpack.c.bf16 %v4550_v2, %v4549_v1 }
0x2ff4   :  { %10709 = vmatmul.mubr.msk.bf16.vlgmr.msra.gmra.mrb[120].mxu0 %vm158_vm2, %v4556_v4  ;;  %v9843_v4 = vld [vmem:[#allocation10 + $0x7] ss:$0 sm:$0xff] }
0x2ff5   :  { %10721 = vmatpush3.bf16.msra.mxu0 %v11203_v21 }
0x2ff6   :  { %10722 = vmatprep.subr.bf16.mxu0 %v11204_v62 }
0x2ff9   :  { %10723 = vmatpush3.bf16.msra.mxu0 %v11204_v62 }
0x30c7   :  { %v10710_v13 = vpop.f32.mrb[120].mxu0 }
0x30c8   :  { %v4609_v29 = vpop.f32.mrb[121].mxu0  ;;  %v4626_v25 = vadd.f32 %v10710_v13, %v12526_v11 }
0x30c9   :  { %v4624_v40 = vadd.f32 %v4609_v29, %v12524_v5  ;;  %v10711_v26 = vpop.f32.mrb[122].mxu0 }
0x30ca   :  { %v4612_v31 = vpop.f32.mrb[123].mxu0  ;;  %v12748_v38 = vadd.f32 %v9841_v36, %v4626_v25  ;;  %v4627_v15 = vadd.f32 %v10711_v26, %v12532_v12 }
0x30cb   :  { %v12745_v30 = vadd.f32 %v9841_v36, %v4624_v40  ;;  %v4625_v32 = vadd.f32 %v4612_v31, %v12528_v19 }
0x30cc   :  { %v12757_v5 = vadd.f32 %v9841_v36, %v4627_v15  ;;  %v4645_v27 = vsel %vm158_vm2, %v12748_v38, 0.0 }
0x30cd   :  { %v12751_v33 = vadd.f32 %v9841_v36, %v4625_v32  ;;  %v4639_v23 = vsel %vm158_vm2, %v12745_v30, 0.0 }
0x30ce   :  { %4640 = vadd.xlane.f32.xlu0 %v4639_v23  ;;  %v4648_v19 = vsel %vm158_vm2, %v12757_v5, 0.0 }
0x30cf   :  { %v4642_v11 = vsel %vm158_vm2, %v12751_v33, 0.0 }
0x30d0   :  { %4643 = vadd.xlane.f32.xlu1 %v4642_v11 }
0x30d2   :  { %4646 = vadd.xlane.f32.xlu0 %v4645_v27 }
0x30d6   :  { %4649 = vadd.xlane.f32.xlu0 %v4648_v19  ;;  %v11205_v19 = vld [vmem:[#allocation9 + $0x48] sm:$0xff]  }
0x30d7   :  { %10724 = vmatprep.subr.bf16.mxu0 %v11205_v19 }
0x30d8   :  { %10725 = vmatpush3.bf16.msra.mxu0 %v11205_v19 }
0x315b   :  { %v4641_v12 = vpop.xlane.xlu0 %4640 }
0x315c   :  { %v4651_v28 = vmul.f32 0.03125, %v4641_v12  ;;  %v11206_v12 = vld [vmem:[#allocation9 + $0x50] sm:$0xff]  }
0x315d   :  { %v4644_v43 = vpop.xlane.xlu1 %4643  ;;  %10726 = vmatprep.subr.bf16.mxu0 %v11206_v12 }
0x315e   :  { %v4655_v51 = vsub.f32 %v12745_v30, %v4651_v28  ;;  %v4652_v20 = vmul.f32 0.03125, %v4644_v43  ;;  %10727 = vmatpush3.bf16.msra.mxu0 %v11206_v12  ;;  %v9844_v28 = vld [vmem:[#allocation10 + $0x2] ss:$0 sm:$0xff] }
0x315f   :  { %v4647_v46 = vpop.xlane.xlu0 %4646  ;;  %10746 = vmatprep.subr.bf16.mxu0 %v11858_v22 }
0x3160   :  { %v4656_v34 = vsub.f32 %v12751_v33, %v4652_v20  ;;  %v4653_v42 = vmul.f32 0.03125, %v4647_v46  ;;  %v4659_v49 = vmul.f32 %v4655_v51, %v4655_v51 }
0x3162   :  { %v4657_v45 = vsub.f32 %v12748_v38, %v4653_v42  ;;  %v4663_v41 = vsel %vm158_vm2, %v4659_v49, 0.0  ;;  %v4660_v47 = vmul.f32 %v4656_v34, %v4656_v34 }
0x3163   :  { %4664 = vadd.xlane.f32.xlu0 %v4663_v41  ;;  %v4650_v44 = vpop.xlane.xlu0 %4649 }
0x3164   :  { %v4654_v48 = vmul.f32 0.03125, %v4650_v44  ;;  %v4666_v50 = vsel %vm158_vm2, %v4660_v47, 0.0  ;;  %v4661_v52 = vmul.f32 %v4657_v45, %v4657_v45 }
0x3165   :  { %4667 = vadd.xlane.f32.xlu1 %v4666_v50 }
0x3166   :  { %v4658_v53 = vsub.f32 %v12757_v5, %v4654_v48  ;;  %v4669_v54 = vsel %vm158_vm2, %v4661_v52, 0.0 }
0x3167   :  { %4670 = vadd.xlane.f32.xlu0 %v4669_v54  ;;  %v9855_v54 = vld [vmem:[#allocation10 + $0x3] ss:$0 sm:$0xff] }
0x3168   :  { %v4662_v55 = vmul.f32 %v4658_v53, %v4658_v53 }
0x316a   :  { %v4672_v17 = vsel %vm158_vm2, %v4662_v55, 0.0 }
0x316b   :  { %4673 = vadd.xlane.f32.xlu1 %v4672_v17 }
0x31f0   :  { %v4665_v57 = vpop.xlane.xlu0 %4664 }
0x31f1   :  { %v4675_v58 = vmul.f32 0.03125, %v4665_v57 }
0x31f2   :  { %v4668_v59 = vpop.xlane.xlu1 %4667 }
0x31f3   :  { %v4679_v60 = vadd.f32 1e-05, %v4675_v58  ;;  %v4676_v61 = vmul.f32 0.03125, %v4668_v59 }
0x31f4   :  { %v4671_v63 = vpop.xlane.xlu0 %4670 }
0x31f5   :  { %11474 = vrsqrt.f32 %v4679_v60  ;;  %v4680_v0 = vadd.f32 1e-05, %v4676_v61  ;;  %v4677_v37 = vmul.f32 0.03125, %v4671_v63 }
0x31f7   :  { %11476 = vrsqrt.f32 %v4680_v0  ;;  %v4681_v6 = vadd.f32 1e-05, %v4677_v37 }
0x31f8   :  { %v4674_v9 = vpop.xlane.xlu1 %4673 }
0x31f9   :  { %11478 = vrsqrt.f32 %v4681_v6  ;;  %v4678_v39 = vmul.f32 0.03125, %v4674_v9 }
0x31fb   :  { %v4682_v18 = vadd.f32 1e-05, %v4678_v39 }
0x31fd   :  { %11480 = vrsqrt.f32 %v4682_v18 }
0x31ff   :  { %v11475_v7 = vpop.eup %11474 }
0x3200   :  { %v4687_v10 = vmul.f32 %v11475_v7, %v4655_v51 }
0x3201   :  { %v11477_v16 = vpop.eup %11476 }
0x3202   :  { %v4688_v24 = vmul.f32 %v11477_v16, %v4656_v34  ;;  %v4695_v1 = vmul.f32 %v9842_v8, %v4687_v10 }
0x3203   :  { %v11479_v2 = vpop.eup %11478 }
0x3204   :  { %v4689_v13 = vmul.f32 %v11479_v2, %v4657_v45  ;;  %v4696_v36 = vmul.f32 %v9842_v8, %v4688_v24  ;;  %v4703_v29 = vadd.f32 %v9843_v4, %v4695_v1 }
0x3206   :  { %v4704_v25 = vadd.f32 %v9843_v4, %v4696_v36  ;;  %v4697_v32 = vmul.f32 %v9842_v8, %v4689_v13 }
0x3207   :  { %v11481_v40 = vpop.eup %11480 }
0x3208   :  { %v4690_v26 = vmul.f32 %v11481_v40, %v4658_v53  ;;  %v4711_v31 = vpack.c.bf16 %v4704_v25, %v4703_v29  ;;  %v4705_v23 = vadd.f32 %v9843_v4, %v4697_v32 }
0x320a   :  { %10716 = vmatprep.mubr.msk.bf16.mxu1 %vm158_vm2, %v4711_v31  ;;  %v4698_v15 = vmul.f32 %v9842_v8, %v4690_v26  ;;  %v11207_v26 = vld [vmem:[#allocation9 + $0x58] sm:$0xff]   ;;  %v11208_v31 = vld [vmem:[#allocation9 + $0x60] sm:$0xff]  }
0x320b   :  { %10732 = vmatprep.subr.bf16.mxu1 %v11207_v26 }
0x320c   :  { %v4706_v11 = vadd.f32 %v9843_v4, %v4698_v15 }
0x320e   :  { %v4712_v27 = vpack.c.bf16 %v4706_v11, %v4705_v23 }
0x3210   :  { %10717 = vmatmul.mubr.msk.bf16.vlgmr.msra.gmra.mrb[120].mxu1 %vm158_vm2, %v4712_v27 }
0x3211   :  { %10733 = vmatpush3.bf16.msra.mxu1 %v11207_v26 }
0x3212   :  { %10734 = vmatprep.subr.bf16.mxu1 %v11208_v31 }
0x3215   :  { %10735 = vmatpush3.bf16.msra.mxu1 %v11208_v31 }
0x3216   :  { %10740 = vmatprep.subr.bf16.mxu1 %v11858_v22 }
0x32e3   :  { %v10718_v43 = vpop.f32.mrb[120].mxu1 }
0x32e4   :  { %v4779_v51 = vadd.f32 %v10718_v43, %v9844_v28  ;;  %v4770_v20 = vpop.f32.mrb[121].mxu1 }
0x32e5   :  { %v4771_v46 = vadd.f32 %v9844_v28, %v4770_v20  ;;  %v10719_v34 = vpop.f32.mrb[122].mxu1 }
0x32e6   :  { %v4782_v42 = vadd.f32 %v10719_v34, %v9844_v28  ;;  %v4773_v49 = vpop.f32.mrb[123].mxu1  ;;  %v4787_v41 = vmax.f32 %v4779_v51, 0.0 }
0x32e7   :  { %v4774_v45 = vadd.f32 %v9844_v28, %v4773_v49  ;;  %v4785_v44 = vmax.f32 %v4771_v46, 0.0 }
0x32e8   :  { %v4788_v47 = vmax.f32 %v4782_v42, 0.0  ;;  %v9856_v42 = vld [vmem:[#allocation10 + $0xc] ss:$0 sm:$0xff] }
0x32e9   :  { %v4786_v48 = vmax.f32 %v4774_v45, 0.0 }
0x32ea   :  { %v4798_v50 = vpack.c.bf16 %v4788_v47, %v4787_v41 }
0x32eb   :  { %v4797_v52 = vpack.c.bf16 %v4786_v48, %v4785_v44  ;;  %v9857_v48 = vld [vmem:[#allocation10 + $0xd] ss:$0 sm:$0xff] }
0x32ed   :  { %10728 = vmatprep.mubr.msk.bf16.mxu0 %vm1618_vm8, %v4797_v52 }
0x32ee   :  { %10729 = vmatmul.mubr.msk.bf16.vlgmr.msra.gmra.mrb[124].mxu0 %vm1618_vm8, %v4798_v50 }
0x32ef   :  { %10748 = vmatprep.mubr.msk.bf16.mxu0 %vm11859_vm3, %v11858_v22 }
0x33c1   :  { %v10730_v53 = vpop.f32.mrb[124].mxu0 }
0x33c2   :  { %v4863_v55 = vpop.f32.mrb[125].mxu0  ;;  %v4880_v17 = vadd.f32 %v10730_v53, %v12748_v38 }
0x33c3   :  { %v4878_v56 = vadd.f32 %v4863_v55, %v12745_v30  ;;  %v10731_v14 = vpop.f32.mrb[126].mxu0 }
0x33c4   :  { %v4866_v21 = vpop.f32.mrb[127].mxu0  ;;  %v4881_v57 = vadd.f32 %v10731_v14, %v12757_v5  ;;  %v12784_v59 = vadd.f32 %v9855_v54, %v4880_v17 }
0x33c5   :  { %v12780_v62 = vadd.f32 %v9855_v54, %v4878_v56  ;;  %v4879_v58 = vadd.f32 %v4866_v21, %v12751_v33 }
0x33c6   :  { %v12790_v63 = vadd.f32 %v9855_v54, %v4881_v57  ;;  %v4899_v38 = vsel %vm158_vm2, %v12784_v59, 0.0 }
0x33c7   :  { %v12786_v60 = vadd.f32 %v9855_v54, %v4879_v58  ;;  %v4893_v61 = vsel %vm158_vm2, %v12780_v62, 0.0 }
0x33c8   :  { %4894 = vadd.xlane.f32.xlu0 %v4893_v61  ;;  %v4902_v33 = vsel %vm158_vm2, %v12790_v63, 0.0 }
0x33c9   :  { %v4896_v30 = vsel %vm158_vm2, %v12786_v60, 0.0 }
0x33ca   :  { %4897 = vadd.xlane.f32.xlu1 %v4896_v30 }
0x33cc   :  { %4900 = vadd.xlane.f32.xlu0 %v4899_v38  ;;  %v9858_v38 = vld [vmem:[#allocation10 + $0x8] ss:$0 sm:$0xff] }
0x33ce   :  { %4903 = vadd.xlane.f32.xlu1 %v4902_v33 }
0x3455   :  { %v4895_v5 = vpop.xlane.xlu0 %4894 }
0x3456   :  { %v4905_v0 = vmul.f32 0.03125, %v4895_v5 }
0x3457   :  { %v4898_v37 = vpop.xlane.xlu1 %4897 }
0x3458   :  { %v4909_v6 = vsub.f32 %v12780_v62, %v4905_v0  ;;  %v4906_v9 = vmul.f32 0.03125, %v4898_v37 }
0x3459   :  { %v4901_v39 = vpop.xlane.xlu0 %4900 }
0x345a   :  { %v4910_v18 = vsub.f32 %v12786_v60, %v4906_v9  ;;  %v4907_v7 = vmul.f32 0.03125, %v4901_v39  ;;  %v4913_v8 = vmul.f32 %v4909_v6, %v4909_v6 }
0x345b   :  { %v4904_v10 = vpop.xlane.xlu1 %4903 }
0x345c   :  { %v4911_v16 = vsub.f32 %v12784_v59, %v4907_v7  ;;  %v4908_v24 = vmul.f32 0.03125, %v4904_v10  ;;  %v4917_v1 = vsel %vm158_vm2, %v4913_v8, 0.0  ;;  %v4914_v2 = vmul.f32 %v4910_v18, %v4910_v18 }
0x345d   :  { %4918 = vadd.xlane.f32.xlu0 %v4917_v1 }
0x345e   :  { %v4912_v4 = vsub.f32 %v12790_v63, %v4908_v24  ;;  %v4920_v13 = vsel %vm158_vm2, %v4914_v2, 0.0  ;;  %v4915_v36 = vmul.f32 %v4911_v16, %v4911_v16 }
0x345f   :  { %4921 = vadd.xlane.f32.xlu1 %v4920_v13 }
0x3460   :  { %v4923_v29 = vsel %vm158_vm2, %v4915_v36, 0.0  ;;  %v4916_v25 = vmul.f32 %v4912_v4, %v4912_v4 }
0x3461   :  { %4924 = vadd.xlane.f32.xlu0 %v4923_v29 }
0x3462   :  { %v4926_v40 = vsel %vm158_vm2, %v4916_v25, 0.0 }
0x3463   :  { %4927 = vadd.xlane.f32.xlu1 %v4926_v40 }
0x34ea   :  { %v4919_v32 = vpop.xlane.xlu0 %4918 }
0x34eb   :  { %v4929_v15 = vmul.f32 0.03125, %v4919_v32 }
0x34ec   :  { %v4922_v23 = vpop.xlane.xlu1 %4921 }
0x34ed   :  { %v4933_v11 = vadd.f32 1e-05, %v4929_v15  ;;  %v4930_v27 = vmul.f32 0.03125, %v4922_v23 }
0x34ee   :  { %v4925_v19 = vpop.xlane.xlu0 %4924 }
0x34ef   :  { %11482 = vrsqrt.f32 %v4933_v11  ;;  %v4934_v12 = vadd.f32 1e-05, %v4930_v27  ;;  %v4931_v28 = vmul.f32 0.03125, %v4925_v19 }
0x34f0   :  { %v4928_v43 = vpop.xlane.xlu1 %4927 }
0x34f1   :  { %11484 = vrsqrt.f32 %v4934_v12  ;;  %v4935_v51 = vadd.f32 1e-05, %v4931_v28  ;;  %v4932_v20 = vmul.f32 0.03125, %v4928_v43 }
0x34f3   :  { %11486 = vrsqrt.f32 %v4935_v51  ;;  %v4936_v46 = vadd.f32 1e-05, %v4932_v20 }
0x34f5   :  { %11488 = vrsqrt.f32 %v4936_v46 }
0x34f9   :  { %v11483_v34 = vpop.eup %11482 }
0x34fa   :  { %v4941_v49 = vmul.f32 %v11483_v34, %v4909_v6 }
0x34fb   :  { %v11485_v45 = vpop.eup %11484 }
0x34fc   :  { %v4942_v41 = vmul.f32 %v11485_v45, %v4910_v18  ;;  %v4949_v47 = vmul.f32 %v9856_v42, %v4941_v49 }
0x34fd   :  { %v11487_v44 = vpop.eup %11486 }
0x34fe   :  { %v4943_v50 = vmul.f32 %v11487_v44, %v4911_v16  ;;  %v4950_v52 = vmul.f32 %v9856_v42, %v4942_v41  ;;  %v4957_v55 = vadd.f32 %v9857_v48, %v4949_v47 }
0x34ff   :  { %v11489_v53 = vpop.eup %11488 }
0x3500   :  { %v4944_v54 = vmul.f32 %v11489_v53, %v4912_v4  ;;  %v4958_v17 = vadd.f32 %v9857_v48, %v4950_v52  ;;  %v4951_v56 = vmul.f32 %v9856_v42, %v4943_v50 }
0x3502   :  { %v4965_v14 = vpack.c.bf16 %v4958_v17, %v4957_v55  ;;  %v4952_v21 = vmul.f32 %v9856_v42, %v4944_v54  ;;  %v4959_v57 = vadd.f32 %v9857_v48, %v4951_v56 }
0x3504   :  { %10736 = vmatprep.mubr.msk.bf16.mxu1 %vm158_vm2, %v4965_v14  ;;  %v4960_v58 = vadd.f32 %v9857_v48, %v4952_v21 }
0x3506   :  { %v4966_v61 = vpack.c.bf16 %v4960_v58, %v4959_v57 }
0x3508   :  { %10737 = vmatmul.mubr.msk.bf16.vlgmr.msra.gmra.mrb[124].mxu1 %vm158_vm2, %v4966_v61 }
0x3509   :  { %10742 = vmatprep.mubr.msk.bf16.mxu1 %vm11859_vm3, %v11858_v22 }
0x35db   :  { %v10738_v30 = vpop.f32.mrb[124].mxu1 }
0x35dc   :  { %v5024_v33 = vpop.f32.mrb[125].mxu1  ;;  %v5033_v0 = vadd.f32 %v10738_v30, %v9858_v38 }
0x35dd   :  { %v10739_v5 = vpop.f32.mrb[126].mxu1  ;;  %v5025_v9 = vadd.f32 %v9858_v38, %v5024_v33 }
0x35de   :  { %v5036_v37 = vadd.f32 %v10739_v5, %v9858_v38  ;;  %v5027_v6 = vpop.f32.mrb[127].mxu1 }
0x35df   :  { %v5028_v39 = vadd.f32 %v9858_v38, %v5027_v6 }
0x35e0   :  { %v12811_v18 = vpack.c.bf16 %v5036_v37, %v5033_v0 }
0x35e1   :  { %v12813_v7 = vpack.c.bf16 %v5028_v39, %v5025_v9 }
0x35e2   :  { %5092 = vrot.lane.b32.xlu1 %v12811_v18, %s11860_s3 }
0x35e3   :  { %5042 = vrot.lane.b32.xlu0 %v12813_v7, %s11860_s3 }
0x3654   :  { %v5093_v8 = vpop.permute.xlu1 %5092 }
0x3655   :  { %v5098_v10 = vsel %vm311_vm4, %v5093_v8, 0  ;;  %v5043_v16 = vpop.permute.xlu0 %5042 }
0x3656   :  { %v5048_v24 = vsel %vm311_vm4, %v5043_v16, 0  ;;  %10747 = vmatpush3.bf16.xpose.msra.mxu0 %v5098_v10 }
0x3657   :  { %10741 = vmatpush3.bf16.xpose.msra.mxu1 %v5048_v24  ;;  %10758 = vmatprep.subr.bf16.mxu0 %v11858_v22 }
0x3658   :  { %10752 = vmatprep.subr.bf16.mxu1 %v11858_v22 }
0x365d   :  { %10749 = vmatmul.mubr.msk.bf16.vlgmr.msra.gmra.mrb[128].mxu0 %vm311_vm4, %v12811_v18 }
0x365e   :  { %10743 = vmatmul.mubr.msk.bf16.vlgmr.msra.gmra.mrb[128].mxu1 %vm311_vm4, %v12813_v7  ;;  %10760 = vmatprep.mubr.msk.bf16.mxu0 %vm11859_vm3, %v11858_v22 }
0x365f   :  { %10754 = vmatprep.mubr.msk.bf16.mxu1 %vm11859_vm3, %v11858_v22 }
0x3730   :  { %v5134_v1 = vpop.f32.mrb[128].mxu0 }
0x3731   :  { %v5084_v2 = vpop.f32.mrb[128].mxu1  ;;  %v10750_v4 = vpop.f32.mrb[129].mxu0  ;;  %v5147_v15 = vsel %vm78_vm0, %v5134_v1, -inf }
0x3732   :  { %v10744_v13 = vpop.f32.mrb[129].mxu1  ;;  %v5137_v36 = vpop.f32.mrb[130].mxu0  ;;  %v5141_v29 = vsel %vm78_vm0, %v5084_v2, -inf }
0x3733   :  { %v10751_v25 = vpop.f32.mrb[131].mxu0  ;;  %5142 = vmax.xlane.f32.xlu1 %v5141_v29  ;;  %v5087_v40 = vpop.f32.mrb[130].mxu1  ;;  %v5150_v32 = vsel %vm78_vm0, %v5137_v36, -inf }
0x3734   :  { %v10745_v26 = vpop.f32.mrb[131].mxu1  ;;  %v5144_v31 = vsel %vm78_vm0, %v5087_v40, -inf }
0x3735   :  { %5145 = vmax.xlane.f32.xlu0 %v5144_v31 }
0x3737   :  { %5151 = vmax.xlane.f32.xlu1 %v5150_v32 }
0x3739   :  { %5148 = vmax.xlane.f32.xlu0 %v5147_v15 }
0x3748   :  { %5234 = vrot.lane.b32.xlu1 %v12811_v18, %s11855_s0 }
0x374c   :  { %5287 = vrot.lane.b32.xlu1 %v12813_v7, %s11861_s27 }
0x37c0   :  { %v5143_v23 = vpop.xlane.xlu1 %5142 }
0x37c1   :  { %v5153_v12 = vsub.f32 %v5084_v2, %v5143_v23 }
0x37c2   :  { %v5146_v11 = vpop.xlane.xlu0 %5145 }
0x37c3   :  { %v5154_v27 = vsub.f32 %v5087_v40, %v5146_v11  ;;  %v5157_v42 = vmul.f32 1.442695, %v5153_v12 }
0x37c4   :  { %v5152_v19 = vpop.xlane.xlu1 %5151 }
0x37c5   :  { %v5156_v28 = vsub.f32 %v5137_v36, %v5152_v19  ;;  %v5159_v43 = vmul.f32 1.442695, %v5154_v27 }
0x37c6   :  { %v5149_v51 = vpop.xlane.xlu0 %5148 }
0x37c7   :  { %v5163_v20 = vmul.f32 1.442695, %v5156_v28  ;;  %v5155_v46 = vsub.f32 %v5134_v1, %v5149_v51 }
0x37c8   :  { %v5235_v34 = vpop.permute.xlu1 %5234 }
0x37c9   :  { %11490 = vpow2.f32 %v5163_v20  ;;  %v5161_v49 = vmul.f32 1.442695, %v5155_v46  ;;  %10759 = vmatpush3.bf16.msra.mxu0 %v5235_v34 }
0x37ca   :  { %11492 = vpow2.f32 %v5159_v43  ;;  %10770 = vmatprep.subr.bf16.mxu0 %v11858_v22 }
0x37cb   :  { %11494 = vpow2.f32 %v5161_v49 }
0x37cc   :  { %11496 = vpow2.f32 %v5157_v42  ;;  %v5288_v54 = vpop.permute.xlu1 %5287 }
0x37cd   :  { %v5293_v8 = vsel %vm311_vm4, %v5288_v54, 0 }
0x37d3   :  { %v11491_v45 = vpop.eup %11490 }
0x37d4   :  { %v11493_v41 = vpop.eup %11492  ;;  %v5174_v47 = vsel %vm78_vm0, %v11491_v45, 0.0 }
0x37d5   :  { %v11495_v44 = vpop.eup %11494  ;;  %5175 = vadd.xlane.f32.xlu1 %v5174_v47  ;;  %v5168_v52 = vsel %vm78_vm0, %v11493_v41, 0.0 }
0x37d6   :  { %v5171_v48 = vsel %vm78_vm0, %v11495_v44, 0.0  ;;  %v11497_v50 = vpop.eup %11496 }
0x37d7   :  { %5172 = vadd.xlane.f32.xlu0 %v5171_v48  ;;  %v5165_v53 = vsel %vm78_vm0, %v11497_v50, 0.0 }
0x37d9   :  { %5169 = vadd.xlane.f32.xlu1 %v5168_v52 }
0x37db   :  { %5166 = vadd.xlane.f32.xlu0 %v5165_v53 }
0x37ea   :  { %5338 = vrot.lane.b32.xlu1 %v12811_v18, %s11861_s27 }
0x37ee   :  { %5336 = vrot.lane.b32.xlu1 %v12811_v18, %s11862_s13 }
0x37f1   :  { %5187 = vrot.lane.b32.xlu0 %v12813_v7, %s11855_s0 }
0x37f5   :  { %5285 = vrot.lane.b32.xlu0 %v12813_v7, %s11862_s13 }
0x3862   :  { %v5176_v55 = vpop.xlane.xlu1 %5175 }
0x3863   :  { %11498 = vrcp.f32 %v5176_v55 }
0x3864   :  { %v5173_v17 = vpop.xlane.xlu0 %5172 }
0x3865   :  { %11500 = vrcp.f32 %v5173_v17 }
0x3866   :  { %v5170_v56 = vpop.xlane.xlu1 %5169 }
0x3867   :  { %11502 = vrcp.f32 %v5170_v56 }
0x3868   :  { %v5167_v14 = vpop.xlane.xlu0 %5166 }
0x3869   :  { %11504 = vrcp.f32 %v5167_v14 }
0x386a   :  { %v5339_v33 = vpop.permute.xlu1 %5338 }
0x386b   :  { %v5344_v9 = vsel %vm311_vm4, %v5339_v33, 0 }
0x386c   :  { %v5188_v21 = vpop.permute.xlu0 %5187 }
0x386d   :  { %v11499_v57 = vpop.eup %11498  ;;  %10753 = vmatpush3.bf16.msra.mxu1 %v5188_v21 }
0x386e   :  { %10764 = vmatprep.subr.bf16.mxu1 %v11858_v22  ;;  %v5184_v61 = vmul.f32 %v11499_v57, %v11491_v45  ;;  %v5337_v10 = vpop.permute.xlu1 %5336 }
0x386f   :  { %v11501_v58 = vpop.eup %11500 }
0x3870   :  { %v5183_v30 = vmul.f32 %v11501_v58, %v11495_v44  ;;  %v5286_v16 = vpop.permute.xlu0 %5285 }
0x3871   :  { %v11503_v38 = vpop.eup %11502 }
0x3872   :  { %v5186_v5 = vpack.c.bf16 %v5184_v61, %v5183_v30  ;;  %v5182_v37 = vmul.f32 %v11503_v38, %v11493_v41 }
0x3873   :  { %v11505_v0 = vpop.eup %11504 }
0x3874   :  { %v5181_v6 = vmul.f32 %v11505_v0, %v11497_v50  ;;  %10761 = vmatmul.mubr.msk.bf16.vlgmr.msra.gmra.mrb[132].mxu0 %vm78_vm0, %v5186_v5 }
0x3875   :  { %10771 = vmatpush3.bf16.xpose.msra.mxu0 %v5344_v9  ;;  %10772 = vmatprep.mubr.msk.bf16.mxu0 %vm11859_vm3, %v11858_v22 }
0x3876   :  { %v5185_v39 = vpack.c.bf16 %v5182_v37, %v5181_v6  ;;  %10782 = vmatprep.subr.bf16.mxu0 %v11858_v22 }
0x3878   :  { %10755 = vmatmul.mubr.msk.bf16.vlgmr.msra.gmra.mrb[132].mxu1 %vm78_vm0, %v5185_v39 }
0x3879   :  { %10765 = vmatpush3.bf16.xpose.msra.mxu1 %v5293_v8  ;;  %10766 = vmatprep.mubr.msk.bf16.mxu1 %vm11859_vm3, %v11858_v22 }
0x387a   :  { %10776 = vmatprep.subr.bf16.mxu1 %v11858_v22 }
0x387c   :  { %10773 = vmatmul.mubr.msk.bf16.vlgmr.msra.gmra.mrb[136].mxu0 %vm311_vm4, %v5337_v10 }
0x387d   :  { %10784 = vmatprep.mubr.msk.bf16.mxu0 %vm11859_vm3, %v11858_v22 }
0x3880   :  { %10767 = vmatmul.mubr.msk.bf16.vlgmr.msra.gmra.mrb[136].mxu1 %vm311_vm4, %v5286_v16 }
0x3881   :  { %10778 = vmatprep.mubr.msk.bf16.mxu1 %vm11859_vm3, %v11858_v22 }
0x3947   :  { %v5274_v24 = vpop.f32.mrb[132].mxu0 }
0x3948   :  { %5283 = vst.msk [vmem:[#allocation3 + $0x10] sm:$0xff] %vm311_vm4, %v5274_v24  ;;  %v10762_v1 = vpop.f32.mrb[133].mxu0 }
0x3949   :  { %v5277_v2 = vpop.f32.mrb[134].mxu0 }
0x394a   :  { %5284 = vst.msk [vmem:[#allocation3 + $0x18] sm:$0xff] %vm311_vm4, %v5277_v2  ;;  %v10763_v4 = vpop.f32.mrb[135].mxu0 }
0x394b   :  { %v5227_v13 = vpop.f32.mrb[132].mxu1 }
0x394c   :  { %5281 = vst.msk [vmem:[#allocation3] sm:$0xff] %vm311_vm4, %v5227_v13  ;;  %v10756_v36 = vpop.f32.mrb[133].mxu1 }
0x394d   :  { %v5230_v29 = vpop.f32.mrb[134].mxu1 }
0x394e   :  { %5282 = vst.msk [vmem:[#allocation3 + $0x8] sm:$0xff] %vm311_vm4, %v5230_v29  ;;  %v10757_v25 = vpop.f32.mrb[135].mxu1 }
0x394f   :  { %v5380_v40 = vpop.f32.mrb[136].mxu0 }
0x3950   :  { %v10774_v26 = vpop.f32.mrb[137].mxu0  ;;  %v5393_v28 = vsel %vm78_vm0, %v5380_v40, -inf }
0x3951   :  { %v5383_v31 = vpop.f32.mrb[138].mxu0 }
0x3952   :  { %v10775_v32 = vpop.f32.mrb[139].mxu0  ;;  %v5396_v43 = vsel %vm78_vm0, %v5383_v31, -inf }
0x3953   :  { %v5329_v15 = vpop.f32.mrb[136].mxu1 }
0x3954   :  { %v10768_v23 = vpop.f32.mrb[137].mxu1  ;;  %v5387_v11 = vsel %vm78_vm0, %v5329_v15, -inf }
0x3955   :  { %5388 = vmax.xlane.f32.xlu0 %v5387_v11  ;;  %v5332_v27 = vpop.f32.mrb[138].mxu1 }
0x3956   :  { %v10769_v19 = vpop.f32.mrb[139].mxu1  ;;  %v5390_v12 = vsel %vm78_vm0, %v5332_v27, -inf }
0x3957   :  { %5391 = vmax.xlane.f32.xlu1 %v5390_v12 }
0x3959   :  { %5394 = vmax.xlane.f32.xlu0 %v5393_v28 }
0x395d   :  { %5397 = vmax.xlane.f32.xlu0 %v5396_v43 }
0x3968   :  { %5480 = vrot.lane.b32.xlu1 %v12811_v18, %s11863_s14 }
0x396c   :  { %5549 = vrot.lane.b32.xlu1 %v12813_v7, %s11864_s15 }
0x39e2   :  { %v5389_v51 = vpop.xlane.xlu0 %5388 }
0x39e3   :  { %v5399_v46 = vsub.f32 %v5329_v15, %v5389_v51 }
0x39e4   :  { %v5392_v20 = vpop.xlane.xlu1 %5391 }
0x39e5   :  { %v5403_v45 = vmul.f32 1.442695, %v5399_v46  ;;  %v5400_v41 = vsub.f32 %v5332_v27, %v5392_v20 }
0x39e6   :  { %v5395_v34 = vpop.xlane.xlu0 %5394 }
0x39e7   :  { %v5401_v42 = vsub.f32 %v5380_v40, %v5395_v34  ;;  %v5405_v50 = vmul.f32 1.442695, %v5400_v41 }
0x39e8   :  { %v5481_v49 = vpop.permute.xlu1 %5480 }
0x39e9   :  { %v5407_v47 = vmul.f32 1.442695, %v5401_v42  ;;  %10783 = vmatpush3.bf16.msra.mxu0 %v5481_v49 }
0x39ea   :  { %v5398_v44 = vpop.xlane.xlu0 %5397  ;;  %10794 = vmatprep.subr.bf16.mxu0 %v11858_v22 }
0x39eb   :  { %11506 = vpow2.f32 %v5407_v47  ;;  %v5402_v48 = vsub.f32 %v5383_v31, %v5398_v44 }
0x39ec   :  { %11508 = vpow2.f32 %v5403_v45  ;;  %v5550_v58 = vpop.permute.xlu1 %5549 }
0x39ed   :  { %v5409_v52 = vmul.f32 1.442695, %v5402_v48  ;;  %v5555_v13 = vsel %vm311_vm4, %v5550_v58, 0 }
0x39ef   :  { %11510 = vpow2.f32 %v5409_v52 }
0x39f0   :  { %11512 = vpow2.f32 %v5405_v50 }
0x39f5   :  { %v11507_v53 = vpop.eup %11506 }
0x39f6   :  { %v5417_v54 = vsel %vm78_vm0, %v11507_v53, 0.0  ;;  %v11509_v55 = vpop.eup %11508 }
0x39f7   :  { %5418 = vadd.xlane.f32.xlu0 %v5417_v54  ;;  %v5411_v56 = vsel %vm78_vm0, %v11509_v55, 0.0 }
0x39f9   :  { %v11511_v17 = vpop.eup %11510 }
0x39fa   :  { %v5420_v14 = vsel %vm78_vm0, %v11511_v17, 0.0  ;;  %v11513_v21 = vpop.eup %11512 }
0x39fb   :  { %5412 = vadd.xlane.f32.xlu0 %v5411_v56  ;;  %5421 = vadd.xlane.f32.xlu1 %v5420_v14  ;;  %v5414_v57 = vsel %vm78_vm0, %v11513_v21, 0.0 }
0x39ff   :  { %5415 = vadd.xlane.f32.xlu1 %v5414_v57 }
0x3a10   :  { %5600 = vrot.lane.b32.xlu1 %v12811_v18, %s11864_s15 }
0x3a11   :  { %5433 = vrot.lane.b32.xlu0 %v12813_v7, %s11863_s14 }
0x3a14   :  { %5598 = vrot.lane.b32.xlu1 %v12811_v18, %s11865_s16 }
0x3a15   :  { %5547 = vrot.lane.b32.xlu0 %v12813_v7, %s11865_s16 }
0x3a84   :  { %v5419_v61 = vpop.xlane.xlu0 %5418 }
0x3a85   :  { %11514 = vrcp.f32 %v5419_v61 }
0x3a88   :  { %v5413_v30 = vpop.xlane.xlu0 %5412  ;;  %v5422_v38 = vpop.xlane.xlu1 %5421 }
0x3a89   :  { %11516 = vrcp.f32 %v5422_v38 }
0x3a8a   :  { %11518 = vrcp.f32 %v5413_v30 }
0x3a8c   :  { %v5434_v33 = vpop.permute.xlu0 %5433  ;;  %v5416_v5 = vpop.xlane.xlu1 %5415 }
0x3a8d   :  { %11520 = vrcp.f32 %v5416_v5  ;;  %10777 = vmatpush3.bf16.msra.mxu1 %v5434_v33 }
0x3a8e   :  { %10788 = vmatprep.subr.bf16.mxu1 %v11858_v22 }
0x3a8f   :  { %v11515_v0 = vpop.eup %11514 }
0x3a90   :  { %v5429_v9 = vmul.f32 %v11515_v0, %v11507_v53  ;;  %v5601_v8 = vpop.permute.xlu1 %5600  ;;  %v5548_v29 = vpop.permute.xlu0 %5547 }
0x3a91   :  { %v5606_v2 = vsel %vm311_vm4, %v5601_v8, 0 }
0x3a93   :  { %v11517_v37 = vpop.eup %11516 }
0x3a94   :  { %v11519_v6 = vpop.eup %11518  ;;  %v5430_v39 = vmul.f32 %v11517_v37, %v11511_v17  ;;  %v5599_v36 = vpop.permute.xlu1 %5598 }
0x3a95   :  { %v5427_v24 = vmul.f32 %v11519_v6, %v11509_v55 }
0x3a96   :  { %v5432_v16 = vpack.c.bf16 %v5430_v39, %v5429_v9 }
0x3a97   :  { %v11521_v10 = vpop.eup %11520 }
0x3a98   :  { %v5428_v1 = vmul.f32 %v11521_v10, %v11513_v21  ;;  %10785 = vmatmul.mubr.msk.bf16.vlgmr.msra.gmra.mrb[140].mxu0 %vm78_vm0, %v5432_v16 }
0x3a99   :  { %10795 = vmatpush3.bf16.xpose.msra.mxu0 %v5606_v2  ;;  %10796 = vmatprep.mubr.msk.bf16.mxu0 %vm11859_vm3, %v11858_v22 }
0x3a9a   :  { %v5431_v4 = vpack.c.bf16 %v5428_v1, %v5427_v24  ;;  %10806 = vmatprep.subr.bf16.mxu0 %v11858_v22 }
0x3a9c   :  { %10779 = vmatmul.mubr.msk.bf16.vlgmr.msra.gmra.mrb[140].mxu1 %vm78_vm0, %v5431_v4 }
0x3a9d   :  { %10789 = vmatpush3.bf16.xpose.msra.mxu1 %v5555_v13  ;;  %10790 = vmatprep.mubr.msk.bf16.mxu1 %vm11859_vm3, %v11858_v22 }
0x3a9e   :  { %10800 = vmatprep.subr.bf16.mxu1 %v11858_v22 }
0x3aa0   :  { %10797 = vmatmul.mubr.msk.bf16.vlgmr.msra.gmra.mrb[144].mxu0 %vm311_vm4, %v5599_v36 }
0x3aa1   :  { %10808 = vmatprep.mubr.msk.bf16.mxu0 %vm11859_vm3, %v11858_v22 }
0x3aa4   :  { %10791 = vmatmul.mubr.msk.bf16.vlgmr.msra.gmra.mrb[144].mxu1 %vm311_vm4, %v5548_v29 }
0x3aa5   :  { %10802 = vmatprep.mubr.msk.bf16.mxu1 %vm11859_vm3, %v11858_v22 }
0x3b6b   :  { %v12911_v25 = vpop.f32.mrb[140].mxu0 }
0x3b6c   :  { %v10786_v40 = vpop.f32.mrb[141].mxu0 }
0x3b6d   :  { %v12913_v26 = vpop.f32.mrb[142].mxu0 }
0x3b6e   :  { %v10787_v31 = vpop.f32.mrb[143].mxu0 }
0x3b6f   :  { %v12915_v32 = vpop.f32.mrb[140].mxu1 }
0x3b70   :  { %v10780_v15 = vpop.f32.mrb[141].mxu1 }
0x3b71   :  { %v12917_v23 = vpop.f32.mrb[142].mxu1 }
0x3b72   :  { %v10781_v11 = vpop.f32.mrb[143].mxu1 }
0x3b73   :  { %v5642_v27 = vpop.f32.mrb[144].mxu0 }
0x3b74   :  { %v10798_v19 = vpop.f32.mrb[145].mxu0  ;;  %v5655_v49 = vsel %vm78_vm0, %v5642_v27, -inf }
0x3b75   :  { %v5645_v12 = vpop.f32.mrb[146].mxu0 }
0x3b76   :  { %v10799_v28 = vpop.f32.mrb[147].mxu0  ;;  %v5658_v45 = vsel %vm78_vm0, %v5645_v12, -inf }
0x3b77   :  { %v5591_v43 = vpop.f32.mrb[144].mxu1 }
0x3b78   :  { %v10792_v51 = vpop.f32.mrb[145].mxu1  ;;  %v5649_v20 = vsel %vm78_vm0, %v5591_v43, -inf }
0x3b79   :  { %5650 = vmax.xlane.f32.xlu0 %v5649_v20  ;;  %v5594_v46 = vpop.f32.mrb[146].mxu1 }
0x3b7a   :  { %v10793_v34 = vpop.f32.mrb[147].mxu1  ;;  %v5652_v42 = vsel %vm78_vm0, %v5594_v46, -inf }
0x3b7b   :  { %5653 = vmax.xlane.f32.xlu1 %v5652_v42 }
0x3b7d   :  { %5656 = vmax.xlane.f32.xlu0 %v5655_v49 }
0x3b81   :  { %5659 = vmax.xlane.f32.xlu0 %v5658_v45 }
0x3b8c   :  { %5742 = vrot.lane.b32.xlu1 %v12811_v18, %s11866_s17 }
0x3b90   :  { %5811 = vrot.lane.b32.xlu1 %v12813_v7, %s11867_s19 }
0x3c06   :  { %v5651_v41 = vpop.xlane.xlu0 %5650 }
0x3c07   :  { %v5661_v44 = vsub.f32 %v5591_v43, %v5651_v41 }
0x3c08   :  { %v5654_v47 = vpop.xlane.xlu1 %5653 }
0x3c09   :  { %v5665_v53 = vmul.f32 1.442695, %v5661_v44  ;;  %v5662_v54 = vsub.f32 %v5594_v46, %v5654_v47 }
0x3c0a   :  { %v5657_v48 = vpop.xlane.xlu0 %5656 }
0x3c0b   :  { %v5663_v50 = vsub.f32 %v5642_v27, %v5657_v48  ;;  %v5667_v14 = vmul.f32 1.442695, %v5662_v54 }
0x3c0c   :  { %v5743_v52 = vpop.permute.xlu1 %5742 }
0x3c0d   :  { %v5669_v55 = vmul.f32 1.442695, %v5663_v50  ;;  %10807 = vmatpush3.bf16.msra.mxu0 %v5743_v52 }
0x3c0e   :  { %v5660_v17 = vpop.xlane.xlu0 %5659  ;;  %10818 = vmatprep.subr.bf16.mxu0 %v11858_v22 }
0x3c0f   :  { %11522 = vpow2.f32 %v5669_v55  ;;  %v5664_v56 = vsub.f32 %v5645_v12, %v5660_v17 }
0x3c10   :  { %11524 = vpow2.f32 %v5665_v53  ;;  %v5812_v37 = vpop.permute.xlu1 %5811 }
0x3c11   :  { %v5671_v21 = vmul.f32 1.442695, %v5664_v56  ;;  %v5817_v27 = vsel %vm311_vm4, %v5812_v37, 0 }
0x3c13   :  { %11526 = vpow2.f32 %v5671_v21 }
0x3c14   :  { %11528 = vpow2.f32 %v5667_v14 }
0x3c19   :  { %v11523_v57 = vpop.eup %11522 }
0x3c1a   :  { %v5679_v58 = vsel %vm78_vm0, %v11523_v57, 0.0  ;;  %v11525_v61 = vpop.eup %11524 }
0x3c1b   :  { %5680 = vadd.xlane.f32.xlu0 %v5679_v58  ;;  %v5673_v38 = vsel %vm78_vm0, %v11525_v61, 0.0 }
0x3c1d   :  { %v11527_v30 = vpop.eup %11526 }
0x3c1e   :  { %v5682_v33 = vsel %vm78_vm0, %v11527_v30, 0.0  ;;  %v11529_v5 = vpop.eup %11528 }
0x3c1f   :  { %5674 = vadd.xlane.f32.xlu0 %v5673_v38  ;;  %5683 = vadd.xlane.f32.xlu1 %v5682_v33  ;;  %v5676_v0 = vsel %vm78_vm0, %v11529_v5, 0.0 }
0x3c23   :  { %5677 = vadd.xlane.f32.xlu1 %v5676_v0 }
0x3c34   :  { %5862 = vrot.lane.b32.xlu1 %v12811_v18, %s11867_s19 }
0x3c35   :  { %5695 = vrot.lane.b32.xlu0 %v12813_v7, %s11866_s17 }
0x3c38   :  { %5860 = vrot.lane.b32.xlu1 %v12811_v18, %s11868_s20 }
0x3c39   :  { %5809 = vrot.lane.b32.xlu0 %v12813_v7, %s11868_s20 }
0x3ca8   :  { %v5681_v6 = vpop.xlane.xlu0 %5680 }
0x3ca9   :  { %11530 = vrcp.f32 %v5681_v6 }
0x3cac   :  { %v5675_v9 = vpop.xlane.xlu0 %5674  ;;  %v5684_v39 = vpop.xlane.xlu1 %5683 }
0x3cad   :  { %11532 = vrcp.f32 %v5684_v39 }
0x3cae   :  { %11534 = vrcp.f32 %v5675_v9 }
0x3cb0   :  { %v5696_v8 = vpop.permute.xlu0 %5695  ;;  %v5678_v10 = vpop.xlane.xlu1 %5677 }
0x3cb1   :  { %11536 = vrcp.f32 %v5678_v10  ;;  %10801 = vmatpush3.bf16.msra.mxu1 %v5696_v8 }
0x3cb2   :  { %10812 = vmatprep.subr.bf16.mxu1 %v11858_v22 }
0x3cb3   :  { %v11531_v16 = vpop.eup %11530 }
0x3cb4   :  { %v5691_v2 = vmul.f32 %v11531_v16, %v11523_v57  ;;  %v5863_v13 = vpop.permute.xlu1 %5862  ;;  %v5810_v12 = vpop.permute.xlu0 %5809 }
0x3cb5   :  { %v5868_v15 = vsel %vm311_vm4, %v5863_v13, 0 }
0x3cb7   :  { %v11533_v24 = vpop.eup %11532 }
0x3cb8   :  { %v11535_v1 = vpop.eup %11534  ;;  %v5692_v4 = vmul.f32 %v11533_v24, %v11527_v30  ;;  %v5861_v19 = vpop.permute.xlu1 %5860 }
0x3cb9   :  { %v5689_v40 = vmul.f32 %v11535_v1, %v11525_v61 }
0x3cba   :  { %v5694_v29 = vpack.c.bf16 %v5692_v4, %v5691_v2 }
0x3cbb   :  { %v11537_v36 = vpop.eup %11536 }
0x3cbc   :  { %v5690_v31 = vmul.f32 %v11537_v36, %v11529_v5  ;;  %10809 = vmatmul.mubr.msk.bf16.vlgmr.msra.gmra.mrb[148].mxu0 %vm78_vm0, %v5694_v29 }
0x3cbd   :  { %10819 = vmatpush3.bf16.xpose.msra.mxu0 %v5868_v15  ;;  %10820 = vmatprep.mubr.msk.bf16.mxu0 %vm11859_vm3, %v11858_v22 }
0x3cbe   :  { %v5693_v11 = vpack.c.bf16 %v5690_v31, %v5689_v40  ;;  %10830 = vmatprep.subr.bf16.mxu0 %v11858_v22 }
0x3cc0   :  { %10803 = vmatmul.mubr.msk.bf16.vlgmr.msra.gmra.mrb[148].mxu1 %vm78_vm0, %v5693_v11 }
0x3cc1   :  { %10813 = vmatpush3.bf16.xpose.msra.mxu1 %v5817_v27  ;;  %10814 = vmatprep.mubr.msk.bf16.mxu1 %vm11859_vm3, %v11858_v22 }
0x3cc2   :  { %10824 = vmatprep.subr.bf16.mxu1 %v11858_v22 }
0x3cc4   :  { %10821 = vmatmul.mubr.msk.bf16.vlgmr.msra.gmra.mrb[152].mxu0 %vm311_vm4, %v5861_v19 }
0x3cc5   :  { %10832 = vmatprep.mubr.msk.bf16.mxu0 %vm11859_vm3, %v11858_v22 }
0x3cc8   :  { %10815 = vmatmul.mubr.msk.bf16.vlgmr.msra.gmra.mrb[152].mxu1 %vm311_vm4, %v5810_v12 }
0x3cc9   :  { %10826 = vmatprep.mubr.msk.bf16.mxu1 %vm11859_vm3, %v11858_v22 }
0x3d8f   :  { %v5782_v28 = vpop.f32.mrb[148].mxu0 }
0x3d90   :  { %v10810_v43 = vpop.f32.mrb[149].mxu0 }
0x3d91   :  { %v5785_v51 = vpop.f32.mrb[150].mxu0 }
0x3d92   :  { %v10811_v20 = vpop.f32.mrb[151].mxu0 }
0x3d93   :  { %v5735_v46 = vpop.f32.mrb[148].mxu1 }
0x3d94   :  { %v10804_v34 = vpop.f32.mrb[149].mxu1 }
0x3d95   :  { %v5738_v42 = vpop.f32.mrb[150].mxu1 }
0x3d96   :  { %v10805_v49 = vpop.f32.mrb[151].mxu1 }
0x3d97   :  { %v5904_v45 = vpop.f32.mrb[152].mxu0  ;;  %v11209_v49 = vld [vmem:[#allocation9 + $0x68] sm:$0xff]  }
0x3d98   :  { %v10822_v41 = vpop.f32.mrb[153].mxu0  ;;  %v5917_v17 = vsel %vm78_vm0, %v5904_v45, -inf }
0x3d99   :  { %v5907_v47 = vpop.f32.mrb[154].mxu0 }
0x3d9a   :  { %v10823_v44 = vpop.f32.mrb[155].mxu0  ;;  %v5920_v56 = vsel %vm78_vm0, %v5907_v47, -inf }
0x3d9b   :  { %v5853_v48 = vpop.f32.mrb[152].mxu1 }
0x3d9c   :  { %v10816_v50 = vpop.f32.mrb[153].mxu1  ;;  %v5911_v52 = vsel %vm78_vm0, %v5853_v48, -inf }
0x3d9d   :  { %5912 = vmax.xlane.f32.xlu0 %v5911_v52  ;;  %v5856_v53 = vpop.f32.mrb[154].mxu1 }
0x3d9e   :  { %v10817_v54 = vpop.f32.mrb[155].mxu1  ;;  %v5914_v55 = vsel %vm78_vm0, %v5856_v53, -inf }
0x3d9f   :  { %5915 = vmax.xlane.f32.xlu1 %v5914_v55 }
0x3da1   :  { %5918 = vmax.xlane.f32.xlu0 %v5917_v17 }
0x3da5   :  { %5921 = vmax.xlane.f32.xlu0 %v5920_v56 }
0x3e2a   :  { %v5913_v14 = vpop.xlane.xlu0 %5912 }
0x3e2b   :  { %v5923_v21 = vsub.f32 %v5853_v48, %v5913_v14 }
0x3e2c   :  { %v5916_v57 = vpop.xlane.xlu1 %5915 }
0x3e2d   :  { %v5927_v30 = vmul.f32 1.442695, %v5923_v21  ;;  %v5924_v38 = vsub.f32 %v5856_v53, %v5916_v57 }
0x3e2e   :  { %v5919_v58 = vpop.xlane.xlu0 %5918 }
0x3e2f   :  { %v5925_v61 = vsub.f32 %v5904_v45, %v5919_v58  ;;  %v5929_v37 = vmul.f32 1.442695, %v5924_v38  ;;  %v11210_v45 = vld [vmem:[#allocation9 + $0x70] sm:$0xff]  }
0x3e31   :  { %v5931_v33 = vmul.f32 1.442695, %v5925_v61 }
0x3e32   :  { %v5922_v5 = vpop.xlane.xlu0 %5921 }
0x3e33   :  { %11538 = vpow2.f32 %v5931_v33  ;;  %v5926_v0 = vsub.f32 %v5907_v47, %v5922_v5  ;;  %v9883_v5 = vld [vmem:[#allocation10 + $0x9] ss:$0 sm:$0xff] }
0x3e34   :  { %11540 = vpow2.f32 %v5927_v30 }
0x3e35   :  { %v5933_v6 = vmul.f32 1.442695, %v5926_v0 }
0x3e37   :  { %11542 = vpow2.f32 %v5933_v6 }
0x3e38   :  { %11544 = vpow2.f32 %v5929_v37 }
0x3e3d   :  { %v11539_v9 = vpop.eup %11538 }
0x3e3e   :  { %v5941_v39 = vsel %vm78_vm0, %v11539_v9, 0.0  ;;  %v11541_v8 = vpop.eup %11540 }
0x3e3f   :  { %5942 = vadd.xlane.f32.xlu0 %v5941_v39  ;;  %v5935_v16 = vsel %vm78_vm0, %v11541_v8, 0.0 }
0x3e41   :  { %v11543_v10 = vpop.eup %11542 }
0x3e42   :  { %v5944_v24 = vsel %vm78_vm0, %v11543_v10, 0.0  ;;  %v11545_v1 = vpop.eup %11544 }
0x3e43   :  { %5936 = vadd.xlane.f32.xlu0 %v5935_v16  ;;  %5945 = vadd.xlane.f32.xlu1 %v5944_v24  ;;  %v5938_v2 = vsel %vm78_vm0, %v11545_v1, 0.0 }
0x3e47   :  { %5939 = vadd.xlane.f32.xlu1 %v5938_v2 }
0x3e58   :  { %6004 = vrot.lane.b32.xlu1 %v12811_v18, %s11869_s21 }
0x3e59   :  { %5957 = vrot.lane.b32.xlu0 %v12813_v7, %s11869_s21 }
0x3e5c   :  { %5531 = vrot.lane.b32.xlu1 %v12915_v32, %s11853_s28 }
0x3e5d   :  { %5535 = vrot.lane.b32.xlu0 %v12911_v25, %s11853_s28 }
0x3e60   :  { %5533 = vrot.lane.b32.xlu1 %v12917_v23, %s11853_s28 }
0x3e61   :  { %5793 = vrot.lane.b32.xlu0 %v5735_v46, %s11870_s22 }
0x3e64   :  { %5537 = vrot.lane.b32.xlu1 %v12913_v26, %s11853_s28 }
0x3e65   :  { %5797 = vrot.lane.b32.xlu0 %v5782_v28, %s11870_s22 }
0x3e68   :  { %5795 = vrot.lane.b32.xlu1 %v5738_v42, %s11870_s22 }
0x3e6c   :  { %5799 = vrot.lane.b32.xlu1 %v5785_v51, %s11870_s22 }
0x3ecc   :  { %v5943_v18 = vpop.xlane.xlu0 %5942 }
0x3ecd   :  { %11546 = vrcp.f32 %v5943_v18 }
0x3ed0   :  { %v5937_v7 = vpop.xlane.xlu0 %5936  ;;  %v5946_v32 = vpop.xlane.xlu1 %5945 }
0x3ed1   :  { %11548 = vrcp.f32 %v5946_v32 }
0x3ed2   :  { %11550 = vrcp.f32 %v5937_v7 }
0x3ed4   :  { %v5958_v25 = vpop.permute.xlu0 %5957  ;;  %v5940_v4 = vpop.xlane.xlu1 %5939 }
0x3ed5   :  { %11552 = vrcp.f32 %v5940_v4  ;;  %10825 = vmatpush3.bf16.msra.mxu1 %v5958_v25 }
0x3ed6   :  { %10836 = vmatprep.subr.bf16.mxu1 %v11209_v49 }
0x3ed7   :  { %v11547_v26 = vpop.eup %11546 }
0x3ed8   :  { %v5536_v23 = vpop.permute.xlu0 %5535  ;;  %v6005_v13 = vpop.permute.xlu1 %6004  ;;  %v5953_v15 = vmul.f32 %v11547_v26, %v11539_v9 }
0x3ed9   :  { %5545 = vst.msk [vmem:[#allocation3 + $0x10] sm:$0xff] %vm811_vm5, %v5536_v23  ;;  %10831 = vmatpush3.bf16.msra.mxu0 %v6005_v13 }
0x3edb   :  { %v11549_v36 = vpop.eup %11548 }
0x3edc   :  { %v5794_v29 = vpop.permute.xlu0 %5793  ;;  %v5532_v40 = vpop.permute.xlu1 %5531  ;;  %v5954_v11 = vmul.f32 %v11549_v36, %v11543_v10 }
0x3edd   :  { %v11551_v31 = vpop.eup %11550  ;;  %5543 = vst.msk [vmem:[#allocation3] sm:$0xff] %vm811_vm5, %v5532_v40 }
0x3ede   :  { %5805 = vst.msk [vmem:[#allocation3] sm:$0xff] %vm1074_vm6, %v5794_v29  ;;  %v5956_v19 = vpack.c.bf16 %v5954_v11, %v5953_v15  ;;  %v5951_v12 = vmul.f32 %v11551_v31, %v11541_v8 }
0x3edf   :  { %v11553_v27 = vpop.eup %11552 }
0x3ee0   :  { %v5952_v28 = vmul.f32 %v11553_v27, %v11545_v1  ;;  %v5798_v43 = vpop.permute.xlu0 %5797  ;;  %v5534_v51 = vpop.permute.xlu1 %5533  ;;  %10833 = vmatmul.mubr.msk.bf16.vlgmr.msra.gmra.mrb[156].mxu0 %vm78_vm0, %v5956_v19 }
0x3ee1   :  { %5807 = vst.msk [vmem:[#allocation3 + $0x10] sm:$0xff] %vm1074_vm6, %v5798_v43 }
0x3ee2   :  { %5544 = vst.msk [vmem:[#allocation3 + $0x8] sm:$0xff] %vm811_vm5, %v5534_v51  ;;  %v5955_v20 = vpack.c.bf16 %v5952_v28, %v5951_v12 }
0x3ee4   :  { %10827 = vmatmul.mubr.msk.bf16.vlgmr.msra.gmra.mrb[156].mxu1 %vm78_vm0, %v5955_v20  ;;  %v5538_v46 = vpop.permute.xlu1 %5537  ;;  %v11211_v20 = vld [vmem:[#allocation9 + $0x78] sm:$0xff]  }
0x3ee5   :  { %5546 = vst.msk [vmem:[#allocation3 + $0x18] sm:$0xff] %vm811_vm5, %v5538_v46  ;;  %10837 = vmatpush3.bf16.msra.mxu1 %v11209_v49  ;;  %10844 = vmatprep.subr.bf16.mxu0 %v11211_v20  ;;  %v11212_v46 = vld [vmem:[#allocation9 + $0x80] sm:$0xff]  }
0x3ee6   :  { %10838 = vmatprep.subr.bf16.mxu1 %v11210_v45  ;;  %10845 = vmatpush3.bf16.msra.mxu0 %v11211_v20 }
0x3ee7   :  { %10846 = vmatprep.subr.bf16.mxu0 %v11212_v46 }
0x3ee8   :  { %v5796_v34 = vpop.permute.xlu1 %5795 }
0x3ee9   :  { %5806 = vst.msk [vmem:[#allocation3 + $0x8] sm:$0xff] %vm1074_vm6, %v5796_v34  ;;  %10839 = vmatpush3.bf16.msra.mxu1 %v11210_v45  ;;  %v11213_v34 = vld [vmem:[#allocation9 + $0x88] sm:$0xff]  }
0x3eea   :  { %10847 = vmatpush3.bf16.msra.mxu0 %v11212_v46  ;;  %10852 = vmatprep.subr.bf16.mxu1 %v11213_v34  ;;  %v9897_v46 = vld [vmem:[#allocation10 + $0xb] ss:$0 sm:$0xff] }
0x3eec   :  { %v5800_v42 = vpop.permute.xlu1 %5799 }
0x3eed   :  { %5808 = vst.msk [vmem:[#allocation3 + $0x18] sm:$0xff] %vm1074_vm6, %v5800_v42  ;;  %v11214_v42 = vld [vmem:[#allocation9 + $0x90] sm:$0xff]  }
0x3fb3   :  { %v6044_v41 = vpop.f32.mrb[156].mxu0 }
0x3fb4   :  { %v10834_v47 = vpop.f32.mrb[157].mxu0 }
0x3fb5   :  { %v6047_v44 = vpop.f32.mrb[158].mxu0 }
0x3fb6   :  { %v10835_v48 = vpop.f32.mrb[159].mxu0 }
0x3fb7   :  { %v5997_v50 = vpop.f32.mrb[156].mxu1 }
0x3fb8   :  { %6055 = vrot.lane.b32.xlu0 %v5997_v50, %s11871_s23  ;;  %v10828_v52 = vpop.f32.mrb[157].mxu1 }
0x3fb9   :  { %v6000_v53 = vpop.f32.mrb[158].mxu1 }
0x3fba   :  { %6057 = vrot.lane.b32.xlu1 %v6000_v53, %s11871_s23  ;;  %v10829_v54 = vpop.f32.mrb[159].mxu1 }
0x3fbc   :  { %6059 = vrot.lane.b32.xlu0 %v6044_v41, %s11871_s23 }
0x3fbe   :  { %6061 = vrot.lane.b32.xlu1 %v6047_v44, %s11871_s23 }
0x402a   :  { %v6056_v55 = vpop.permute.xlu0 %6055 }
0x402b   :  { %6067 = vst.msk [vmem:[#allocation3] sm:$0xff] %vm1337_vm7, %v6056_v55 }
0x402c   :  { %v6058_v17 = vpop.permute.xlu1 %6057 }
0x402d   :  { %6068 = vst.msk [vmem:[#allocation3 + $0x8] sm:$0xff] %vm1337_vm7, %v6058_v17 }
0x402e   :  { %v6060_v56 = vpop.permute.xlu0 %6059 }
0x402f   :  { %6069 = vst.msk [vmem:[#allocation3 + $0x10] sm:$0xff] %vm1337_vm7, %v6060_v56 }
0x4030   :  { %v6062_v14 = vpop.permute.xlu1 %6061 }
0x4031   :  { %6070 = vst.msk [vmem:[#allocation3 + $0x18] sm:$0xff] %vm1337_vm7, %v6062_v14  ;;  %v9884_v14 = vld [vmem:[#allocation10 + $0xe] ss:$0 sm:$0xff] }
0x4032   :  { %v6071_v21 = vld [vmem:[#allocation3] sm:$0xff] }
0x4034   :  { %v6072_v57 = vld [vmem:[#allocation3 + $0x8] sm:$0xff] }
0x4035   :  { %v6079_v58 = vpack.c.bf16 %v6072_v57, %v6071_v21 }
0x4036   :  { %v6073_v61 = vld [vmem:[#allocation3 + $0x10] sm:$0xff] }
0x4037   :  { %10840 = vmatprep.mubr.msk.bf16.mxu1 %vm158_vm2, %v6079_v58 }
0x4038   :  { %v6074_v30 = vld [vmem:[#allocation3 + $0x18] sm:$0xff] }
0x4039   :  { %v6080_v38 = vpack.c.bf16 %v6074_v30, %v6073_v61 }
0x403b   :  { %10841 = vmatmul.mubr.msk.bf16.vlgmr.msra.gmra.mrb[160].mxu1 %vm158_vm2, %v6080_v38  ;;  %v9885_v38 = vld [vmem:[#allocation10 + $0xf] ss:$0 sm:$0xff] }
0x403c   :  { %10853 = vmatpush3.bf16.msra.mxu1 %v11213_v34 }
0x403d   :  { %10854 = vmatprep.subr.bf16.mxu1 %v11214_v42 }
0x4040   :  { %10855 = vmatpush3.bf16.msra.mxu1 %v11214_v42 }
0x410e   :  { %v10842_v33 = vpop.f32.mrb[160].mxu1 }
0x410f   :  { %v6133_v0 = vpop.f32.mrb[161].mxu1  ;;  %v6150_v37 = vadd.f32 %v10842_v33, %v12784_v59 }
0x4110   :  { %v6148_v6 = vadd.f32 %v6133_v0, %v12780_v62  ;;  %v10843_v9 = vpop.f32.mrb[162].mxu1 }
0x4111   :  { %v6136_v39 = vpop.f32.mrb[163].mxu1  ;;  %v13006_v16 = vadd.f32 %v9883_v5, %v6150_v37  ;;  %v6151_v24 = vadd.f32 %v10843_v9, %v12790_v63 }
0x4112   :  { %v13003_v8 = vadd.f32 %v9883_v5, %v6148_v6  ;;  %v6149_v10 = vadd.f32 %v6136_v39, %v12786_v60 }
0x4113   :  { %v13015_v62 = vadd.f32 %v9883_v5, %v6151_v24  ;;  %v6169_v18 = vsel %vm158_vm2, %v13006_v16, 0.0 }
0x4114   :  { %v13009_v1 = vadd.f32 %v9883_v5, %v6149_v10  ;;  %v6163_v2 = vsel %vm158_vm2, %v13003_v8, 0.0 }
0x4115   :  { %6164 = vadd.xlane.f32.xlu0 %v6163_v2  ;;  %v6172_v60 = vsel %vm158_vm2, %v13015_v62, 0.0 }
0x4116   :  { %v6166_v59 = vsel %vm158_vm2, %v13009_v1, 0.0 }
0x4117   :  { %6167 = vadd.xlane.f32.xlu1 %v6166_v59 }
0x4119   :  { %6170 = vadd.xlane.f32.xlu0 %v6169_v18 }
0x411d   :  { %6173 = vadd.xlane.f32.xlu0 %v6172_v60  ;;  %v11215_v60 = vld [vmem:[#allocation9 + $0x98] sm:$0xff]  }
0x411e   :  { %10856 = vmatprep.subr.bf16.mxu1 %v11215_v60 }
0x411f   :  { %10857 = vmatpush3.bf16.msra.mxu1 %v11215_v60 }
0x41a2   :  { %v6165_v63 = vpop.xlane.xlu0 %6164 }
0x41a3   :  { %v6175_v7 = vmul.f32 0.03125, %v6165_v63  ;;  %v11216_v63 = vld [vmem:[#allocation9 + $0xa0] sm:$0xff]  }
0x41a4   :  { %v6168_v32 = vpop.xlane.xlu1 %6167  ;;  %10858 = vmatprep.subr.bf16.mxu1 %v11216_v63 }
0x41a5   :  { %v6179_v25 = vsub.f32 %v13003_v8, %v6175_v7  ;;  %v6176_v4 = vmul.f32 0.03125, %v6168_v32  ;;  %10859 = vmatpush3.bf16.msra.mxu1 %v11216_v63  ;;  %v9886_v7 = vld [vmem:[#allocation10 + $0xa] ss:$0 sm:$0xff] }
0x41a6   :  { %v6171_v23 = vpop.xlane.xlu0 %6170 }
0x41a7   :  { %v6180_v13 = vsub.f32 %v13009_v1, %v6176_v4  ;;  %v6177_v26 = vmul.f32 0.03125, %v6171_v23  ;;  %v6183_v36 = vmul.f32 %v6179_v25, %v6179_v25 }
0x41a9   :  { %v6181_v29 = vsub.f32 %v13006_v16, %v6177_v26  ;;  %v6187_v40 = vsel %vm158_vm2, %v6183_v36, 0.0  ;;  %v6184_v31 = vmul.f32 %v6180_v13, %v6180_v13 }
0x41aa   :  { %6188 = vadd.xlane.f32.xlu0 %v6187_v40  ;;  %v6174_v15 = vpop.xlane.xlu0 %6173 }
0x41ab   :  { %v6178_v11 = vmul.f32 0.03125, %v6174_v15  ;;  %v6190_v27 = vsel %vm158_vm2, %v6184_v31, 0.0  ;;  %v6185_v19 = vmul.f32 %v6181_v29, %v6181_v29 }
0x41ac   :  { %6191 = vadd.xlane.f32.xlu1 %v6190_v27 }
0x41ad   :  { %v6182_v12 = vsub.f32 %v13015_v62, %v6178_v11  ;;  %v6193_v28 = vsel %vm158_vm2, %v6185_v19, 0.0 }
0x41ae   :  { %6194 = vadd.xlane.f32.xlu0 %v6193_v28  ;;  %v11218_v28 = vld [vmem:[#allocation9 + $0xb0] sm:$0xff]  }
0x41af   :  { %v6186_v43 = vmul.f32 %v6182_v12, %v6182_v12 }
0x41b1   :  { %v6196_v51 = vsel %vm158_vm2, %v6186_v43, 0.0 }
0x41b2   :  { %6197 = vadd.xlane.f32.xlu1 %v6196_v51 }
0x4237   :  { %v6189_v49 = vpop.xlane.xlu0 %6188 }
0x4238   :  { %v6199_v45 = vmul.f32 0.03125, %v6189_v49 }
0x4239   :  { %v6192_v41 = vpop.xlane.xlu1 %6191 }
0x423a   :  { %v6203_v47 = vadd.f32 1e-05, %v6199_v45  ;;  %v6200_v44 = vmul.f32 0.03125, %v6192_v41 }
0x423b   :  { %v6195_v48 = vpop.xlane.xlu0 %6194 }
0x423c   :  { %11554 = vrsqrt.f32 %v6203_v47  ;;  %v6204_v50 = vadd.f32 1e-05, %v6200_v44  ;;  %v6201_v52 = vmul.f32 0.03125, %v6195_v48 }
0x423e   :  { %11556 = vrsqrt.f32 %v6204_v50  ;;  %v6205_v53 = vadd.f32 1e-05, %v6201_v52 }
0x423f   :  { %v6198_v54 = vpop.xlane.xlu1 %6197 }
0x4240   :  { %11558 = vrsqrt.f32 %v6205_v53  ;;  %v6202_v55 = vmul.f32 0.03125, %v6198_v54 }
0x4242   :  { %v6206_v17 = vadd.f32 1e-05, %v6202_v55 }
0x4244   :  { %11560 = vrsqrt.f32 %v6206_v17 }
0x4246   :  { %v11555_v56 = vpop.eup %11554 }
0x4247   :  { %v6211_v21 = vmul.f32 %v11555_v56, %v6179_v25 }
0x4248   :  { %v11557_v57 = vpop.eup %11556 }
0x4249   :  { %v6212_v58 = vmul.f32 %v11557_v57, %v6180_v13  ;;  %v6219_v61 = vmul.f32 %v9884_v14, %v6211_v21 }
0x424a   :  { %v11559_v30 = vpop.eup %11558 }
0x424b   :  { %v6213_v33 = vmul.f32 %v11559_v30, %v6181_v29  ;;  %v6220_v5 = vmul.f32 %v9884_v14, %v6212_v58  ;;  %v6227_v0 = vadd.f32 %v9885_v38, %v6219_v61  ;;  %v6502_v58 = vld [vmem:[#allocation2] sm:$0xff] }
0x424d   :  { %v6228_v37 = vadd.f32 %v9885_v38, %v6220_v5  ;;  %v6221_v10 = vmul.f32 %v9884_v14, %v6213_v33  ;;  %v11726_v5 = vld [vmem:[#allocation7] sm:$0xff] }
0x424e   :  { %v11561_v6 = vpop.eup %11560 }
0x424f   :  { %v6214_v9 = vmul.f32 %v11561_v6, %v6182_v12  ;;  %v6235_v39 = vpack.c.bf16 %v6228_v37, %v6227_v0  ;;  %v6229_v2 = vadd.f32 %v9885_v38, %v6221_v10  ;;  %v11217_v12 = vld [vmem:[#allocation9 + $0xa8] sm:$0xff]  }
0x4250   :  { %10864 = vmatprep.subr.bf16.mxu0 %v11217_v12  ;;  %v11728_v10 = vld [vmem:[#allocation7 + $0x8] sm:$0xff] }
0x4251   :  { %10848 = vmatprep.mubr.msk.bf16.mxu0 %vm158_vm2, %v6235_v39  ;;  %v6222_v24 = vmul.f32 %v9884_v14, %v6214_v9  ;;  %v11727_v9 = vld [vmem:[#allocation7 + $0x10] sm:$0xff] }
0x4253   :  { %v6230_v59 = vadd.f32 %v9885_v38, %v6222_v24  ;;  %v6504_v38 = vld [vmem:[#allocation2 + $0x10] sm:$0xff] }
0x4255   :  { %v6236_v18 = vpack.c.bf16 %v6230_v59, %v6229_v2  ;;  %v11729_v59 = vld [vmem:[#allocation7 + $0x18] sm:$0xff] }
0x4257   :  { %10849 = vmatmul.mubr.msk.bf16.vlgmr.msra.gmra.mrb[160].mxu0 %vm158_vm2, %v6236_v18 }
0x4258   :  { %10865 = vmatpush3.bf16.msra.mxu0 %v11217_v12 }
0x4259   :  { %10866 = vmatprep.subr.bf16.mxu0 %v11218_v28 }
0x425c   :  { %10867 = vmatpush3.bf16.msra.mxu0 %v11218_v28 }
0x432a   :  { %v10850_v32 = vpop.f32.mrb[160].mxu0 }
0x432b   :  { %v6303_v25 = vadd.f32 %v10850_v32, %v9886_v7  ;;  %v6294_v4 = vpop.f32.mrb[161].mxu0 }
0x432c   :  { %v6295_v23 = vadd.f32 %v9886_v7, %v6294_v4  ;;  %v10851_v13 = vpop.f32.mrb[162].mxu0 }
0x432d   :  { %v6306_v26 = vadd.f32 %v10851_v13, %v9886_v7  ;;  %v6297_v36 = vpop.f32.mrb[163].mxu0  ;;  %v6311_v40 = vmax.f32 %v6303_v25, 0.0 }
0x432e   :  { %v6298_v29 = vadd.f32 %v9886_v7, %v6297_v36  ;;  %v6309_v15 = vmax.f32 %v6295_v23, 0.0 }
0x432f   :  { %v6312_v31 = vmax.f32 %v6306_v26, 0.0 }
0x4330   :  { %v6310_v11 = vmax.f32 %v6298_v29, 0.0 }
0x4331   :  { %v6322_v27 = vpack.c.bf16 %v6312_v31, %v6311_v40 }
0x4332   :  { %v6321_v19 = vpack.c.bf16 %v6310_v11, %v6309_v15 }
0x4334   :  { %10860 = vmatprep.mubr.msk.bf16.mxu1 %vm1618_vm8, %v6321_v19 }
0x4335   :  { %10861 = vmatmul.mubr.msk.bf16.vlgmr.msra.gmra.mrb[164].mxu1 %vm1618_vm8, %v6322_v27 }
0x4408   :  { %v10862_v43 = vpop.f32.mrb[164].mxu1 }
0x4409   :  { %v6404_v51 = vadd.f32 %v10862_v43, %v13006_v16  ;;  %v6387_v20 = vpop.f32.mrb[165].mxu1  ;;  %v11219_v16 = vld [vmem:[#allocation9] sm:$0xff]  }
0x440a   :  { %v6402_v34 = vadd.f32 %v6387_v20, %v13003_v8  ;;  %v10863_v42 = vpop.f32.mrb[166].mxu1  ;;  %10872 = vmatprep.subr.bf16.mxu0 %v11219_v16 }
0x440b   :  { %v6405_v49 = vadd.f32 %v10863_v42, %v13015_v62  ;;  %v6390_v45 = vpop.f32.mrb[167].mxu1  ;;  %v6413_v47 = vadd.f32 %v9897_v46, %v6404_v51  ;;  %v9898_v62 = vld [vmem:[#allocation10 + $0x10] ss:$0 sm:$0xff]  ;;  %v11221_v42 = vld [vmem:[#allocation9 + $0x10] sm:$0xff]  }
0x440c   :  { %v6403_v41 = vadd.f32 %v6390_v45, %v13009_v1  ;;  %v6411_v48 = vadd.f32 %v9897_v46, %v6402_v34  ;;  %v11220_v34 = vld [vmem:[#allocation9 + $0x8] sm:$0xff]  }
0x440d   :  { %v6414_v44 = vadd.f32 %v9897_v46, %v6405_v49  ;;  %10878 = vmatprep.subr.bf16.mxu1 %v11220_v34 }
0x440e   :  { %v6412_v50 = vadd.f32 %v9897_v46, %v6403_v41  ;;  %10879 = vmatpush3.bf16.msra.mxu1 %v11220_v34 }
0x440f   :  { %v6420_v52 = vpack.c.bf16 %v6414_v44, %v6413_v47  ;;  %10880 = vmatprep.subr.bf16.mxu1 %v11221_v42 }
0x4410   :  { %v6419_v53 = vpack.c.bf16 %v6412_v50, %v6411_v48 }
0x4412   :  { %10868 = vmatprep.mubr.msk.bf16.mxu0 %vm158_vm2, %v6419_v53  ;;  %10881 = vmatpush3.bf16.msra.mxu1 %v11221_v42 }
0x4413   :  { %10869 = vmatmul.mubr.msk.bf16.vlgmr.msra.gmra.mrb[164].mxu0 %vm158_vm2, %v6420_v52  ;;  %10892 = vmatprep.subr.bf16.mxu1 %v11858_v22 }
0x4414   :  { %10873 = vmatpush3.bf16.msra.mxu0 %v11219_v16 }
0x4415   :  { %10886 = vmatprep.subr.bf16.mxu0 %v11858_v22 }
0x44e6   :  { %v10870_v8 = vpop.f32.mrb[164].mxu0 }
0x44e7   :  { %v6478_v54 = vpop.f32.mrb[165].mxu0 }
0x44e8   :  { %v10871_v55 = vpop.f32.mrb[166].mxu0 }
0x44e9   :  { %v6488_v1 = vadd.f32 %v10871_v55, %v9898_v62  ;;  %v6480_v17 = vpop.f32.mrb[167].mxu0  ;;  %v9906_v55 = vld [vmem:[#allocation10 + $0x4] ss:$0 sm:$0xff] }
0x44ea   :  { %v6481_v56 = vadd.f32 %v9898_v62, %v6480_v17 }
0x44eb   :  { %v6492_v14 = vadd.f32 %v6488_v1, %v12510_v3 }
0x44ec   :  { %v6491_v21 = vadd.f32 %v6481_v56, %v12512_v35 }
0x44ed   :  { %6495 = vst.msk [vmem:[#allocation12 + $0xc] sm:$0xf0] %vm3289_vm1, %v6492_v14  ;;  %6501 = vst.msk [vmem:[#allocation2 + $0x18] sm:$0xf0] %vm3289_vm1, %v6492_v14 }
0x44ee   :  { %6494 = vst.msk [vmem:[#allocation12] sm:$0xf0] %vm3289_vm1, %v6491_v21  ;;  %6500 = vst.msk [vmem:[#allocation2 + $0x8] sm:$0xf0] %vm3289_vm1, %v6491_v21 }
0x44f4   :  { %v6505_v57 = vld [vmem:[#allocation2 + $0x18] sm:$0xff] }
0x44f5   :  { %v6503_v61 = vld [vmem:[#allocation2 + $0x8] sm:$0xff]  ;;  %v6509_v33 = vpack.c.bf16 %v6505_v57, %v6504_v38  ;;  %v9907_v57 = vld [vmem:[#allocation10 + $0x5] ss:$0 sm:$0xff] }
0x44f6   :  { %v6508_v30 = vpack.c.bf16 %v6503_v61, %v6502_v58 }
0x44f8   :  { %10874 = vmatprep.mubr.msk.bf16.mxu0 %vm78_vm0, %v6508_v30 }
0x44f9   :  { %10875 = vmatmul.mubr.msk.bf16.vlgmr.msra.gmra.mrb[168].mxu0 %vm78_vm0, %v6509_v33 }
0x44fa   :  { %10888 = vmatprep.mubr.msk.bf16.mxu0 %vm11859_vm3, %v11858_v22 }
0x45cc   :  { %v10876_v3 = vpop.f32.mrb[168].mxu0 }
0x45cd   :  { %v6556_v35 = vpop.f32.mrb[169].mxu0  ;;  %v13052_v39 = vadd.f32 %v11727_v9, %v10876_v3 }
0x45ce   :  { %v13050_v0 = vadd.f32 %v11726_v5, %v6556_v35  ;;  %v10877_v37 = vpop.f32.mrb[170].mxu0 }
0x45cf   :  { %v6559_v6 = vpop.f32.mrb[171].mxu0  ;;  %v13058_v18 = vadd.f32 %v11729_v59, %v10877_v37  ;;  %v6579_v63 = vsel %vm158_vm2, %v13052_v39, 0.0  ;;  %v9908_v59 = vld [vmem:[#allocation10] ss:$0 sm:$0xff] }
0x45d0   :  { %v13054_v24 = vadd.f32 %v11728_v10, %v6559_v6  ;;  %v6573_v2 = vsel %vm158_vm2, %v13050_v0, 0.0 }
0x45d1   :  { %6574 = vadd.xlane.f32.xlu0 %v6573_v2  ;;  %v6582_v7 = vsel %vm158_vm2, %v13058_v18, 0.0 }
0x45d2   :  { %v6576_v60 = vsel %vm158_vm2, %v13054_v24, 0.0 }
0x45d3   :  { %6577 = vadd.xlane.f32.xlu1 %v6576_v60 }
0x45d5   :  { %6580 = vadd.xlane.f32.xlu0 %v6579_v63 }
0x45d7   :  { %6583 = vadd.xlane.f32.xlu1 %v6582_v7 }
0x465e   :  { %v6575_v32 = vpop.xlane.xlu0 %6574 }
0x465f   :  { %v6585_v25 = vmul.f32 0.03125, %v6575_v32 }
0x4660   :  { %v6578_v4 = vpop.xlane.xlu1 %6577 }
0x4661   :  { %v6589_v23 = vsub.f32 %v13050_v0, %v6585_v25  ;;  %v6586_v13 = vmul.f32 0.03125, %v6578_v4 }
0x4662   :  { %v6581_v26 = vpop.xlane.xlu0 %6580 }
0x4663   :  { %v6590_v36 = vsub.f32 %v13054_v24, %v6586_v13  ;;  %v6587_v29 = vmul.f32 0.03125, %v6581_v26  ;;  %v6593_v40 = vmul.f32 %v6589_v23, %v6589_v23 }
0x4664   :  { %v6584_v31 = vpop.xlane.xlu1 %6583 }
0x4665   :  { %v6591_v15 = vsub.f32 %v13052_v39, %v6587_v29  ;;  %v6588_v11 = vmul.f32 0.03125, %v6584_v31  ;;  %v6597_v27 = vsel %vm158_vm2, %v6593_v40, 0.0  ;;  %v6594_v19 = vmul.f32 %v6590_v36, %v6590_v36 }
0x4666   :  { %6598 = vadd.xlane.f32.xlu0 %v6597_v27 }
0x4667   :  { %v6592_v12 = vsub.f32 %v13058_v18, %v6588_v11  ;;  %v6600_v28 = vsel %vm158_vm2, %v6594_v19, 0.0  ;;  %v6595_v43 = vmul.f32 %v6591_v15, %v6591_v15 }
0x4668   :  { %6601 = vadd.xlane.f32.xlu1 %v6600_v28 }
0x4669   :  { %v6603_v51 = vsel %vm158_vm2, %v6595_v43, 0.0  ;;  %v6596_v20 = vmul.f32 %v6592_v12, %v6592_v12 }
0x466a   :  { %6604 = vadd.xlane.f32.xlu0 %v6603_v51 }
0x466b   :  { %v6606_v46 = vsel %vm158_vm2, %v6596_v20, 0.0 }
0x466c   :  { %6607 = vadd.xlane.f32.xlu1 %v6606_v46 }
0x46f3   :  { %v6599_v49 = vpop.xlane.xlu0 %6598 }
0x46f4   :  { %v6609_v45 = vmul.f32 0.03125, %v6599_v49 }
0x46f5   :  { %v6602_v41 = vpop.xlane.xlu1 %6601 }
0x46f6   :  { %v6613_v47 = vadd.f32 1e-05, %v6609_v45  ;;  %v6610_v44 = vmul.f32 0.03125, %v6602_v41 }
0x46f7   :  { %v6605_v48 = vpop.xlane.xlu0 %6604 }
0x46f8   :  { %11562 = vrsqrt.f32 %v6613_v47  ;;  %v6614_v50 = vadd.f32 1e-05, %v6610_v44  ;;  %v6611_v52 = vmul.f32 0.03125, %v6605_v48 }
0x46f9   :  { %v6608_v53 = vpop.xlane.xlu1 %6607 }
0x46fa   :  { %11564 = vrsqrt.f32 %v6614_v50  ;;  %v6615_v16 = vadd.f32 1e-05, %v6611_v52  ;;  %v6612_v8 = vmul.f32 0.03125, %v6608_v53 }
0x46fc   :  { %11566 = vrsqrt.f32 %v6615_v16  ;;  %v6616_v62 = vadd.f32 1e-05, %v6612_v8 }
0x46fe   :  { %11568 = vrsqrt.f32 %v6616_v62 }
0x4702   :  { %v11563_v54 = vpop.eup %11562 }
0x4703   :  { %v6621_v1 = vmul.f32 %v11563_v54, %v6589_v23 }
0x4704   :  { %v11565_v17 = vpop.eup %11564 }
0x4705   :  { %v6622_v56 = vmul.f32 %v11565_v17, %v6590_v36  ;;  %v6629_v14 = vmul.f32 %v9906_v55, %v6621_v1 }
0x4706   :  { %v11567_v21 = vpop.eup %11566 }
0x4707   :  { %v6623_v58 = vmul.f32 %v11567_v21, %v6591_v15  ;;  %v6630_v61 = vmul.f32 %v9906_v55, %v6622_v56  ;;  %v6637_v33 = vadd.f32 %v9907_v57, %v6629_v14 }
0x4708   :  { %v11569_v30 = vpop.eup %11568 }
0x4709   :  { %v6624_v38 = vmul.f32 %v11569_v30, %v6592_v12  ;;  %v6638_v3 = vadd.f32 %v9907_v57, %v6630_v61  ;;  %v6631_v35 = vmul.f32 %v9906_v55, %v6623_v58 }
0x470b   :  { %v6645_v5 = vpack.c.bf16 %v6638_v3, %v6637_v33  ;;  %v6632_v37 = vmul.f32 %v9906_v55, %v6624_v38  ;;  %v6639_v6 = vadd.f32 %v9907_v57, %v6631_v35 }
0x470d   :  { %10882 = vmatprep.mubr.msk.bf16.mxu1 %vm158_vm2, %v6645_v5  ;;  %v6640_v9 = vadd.f32 %v9907_v57, %v6632_v37 }
0x470f   :  { %v6646_v10 = vpack.c.bf16 %v6640_v9, %v6639_v6 }
0x4711   :  { %10883 = vmatmul.mubr.msk.bf16.vlgmr.msra.gmra.mrb[168].mxu1 %vm158_vm2, %v6646_v10 }
0x4712   :  { %10894 = vmatprep.mubr.msk.bf16.mxu1 %vm11859_vm3, %v11858_v22 }
0x47e4   :  { %v10884_v2 = vpop.f32.mrb[168].mxu1 }
0x47e5   :  { %v6704_v60 = vpop.f32.mrb[169].mxu1  ;;  %v6713_v7 = vadd.f32 %v10884_v2, %v9908_v59 }
0x47e6   :  { %v10885_v63 = vpop.f32.mrb[170].mxu1  ;;  %v6705_v4 = vadd.f32 %v9908_v59, %v6704_v60 }
0x47e7   :  { %v6716_v32 = vadd.f32 %v10885_v63, %v9908_v59  ;;  %v6707_v25 = vpop.f32.mrb[171].mxu1 }
0x47e8   :  { %v6708_v23 = vadd.f32 %v9908_v59, %v6707_v25 }
0x47e9   :  { %v13079_v13 = vpack.c.bf16 %v6716_v32, %v6713_v7 }
0x47ea   :  { %v13081_v26 = vpack.c.bf16 %v6708_v23, %v6705_v4 }
0x47eb   :  { %6772 = vrot.lane.b32.xlu1 %v13079_v13, %s11860_s3 }
0x47ec   :  { %6722 = vrot.lane.b32.xlu0 %v13081_v26, %s11860_s3 }
0x485d   :  { %v6773_v36 = vpop.permute.xlu1 %6772 }
0x485e   :  { %v6778_v29 = vsel %vm311_vm4, %v6773_v36, 0  ;;  %v6723_v40 = vpop.permute.xlu0 %6722 }
0x485f   :  { %v6728_v31 = vsel %vm311_vm4, %v6723_v40, 0  ;;  %10893 = vmatpush3.bf16.xpose.msra.mxu1 %v6778_v29 }
0x4860   :  { %10887 = vmatpush3.bf16.xpose.msra.mxu0 %v6728_v31  ;;  %10904 = vmatprep.subr.bf16.mxu1 %v11858_v22 }
0x4861   :  { %10898 = vmatprep.subr.bf16.mxu0 %v11858_v22 }
0x4866   :  { %10895 = vmatmul.mubr.msk.bf16.vlgmr.msra.gmra.mrb[172].mxu1 %vm311_vm4, %v13079_v13 }
0x4867   :  { %10889 = vmatmul.mubr.msk.bf16.vlgmr.msra.gmra.mrb[172].mxu0 %vm311_vm4, %v13081_v26  ;;  %10906 = vmatprep.mubr.msk.bf16.mxu1 %vm11859_vm3, %v11858_v22 }
0x4868   :  { %10900 = vmatprep.mubr.msk.bf16.mxu0 %vm11859_vm3, %v11858_v22 }
0x4939   :  { %v6814_v15 = vpop.f32.mrb[172].mxu1 }
0x493a   :  { %v6764_v11 = vpop.f32.mrb[172].mxu0  ;;  %v10896_v27 = vpop.f32.mrb[173].mxu1  ;;  %v6827_v42 = vsel %vm78_vm0, %v6814_v15, -inf }
0x493b   :  { %v10890_v19 = vpop.f32.mrb[173].mxu0  ;;  %v6817_v12 = vpop.f32.mrb[174].mxu1  ;;  %v6821_v28 = vsel %vm78_vm0, %v6764_v11, -inf }
0x493c   :  { %v10897_v43 = vpop.f32.mrb[175].mxu1  ;;  %6822 = vmax.xlane.f32.xlu1 %v6821_v28  ;;  %v6767_v51 = vpop.f32.mrb[174].mxu0  ;;  %v6830_v34 = vsel %vm78_vm0, %v6817_v12, -inf }
0x493d   :  { %v10891_v20 = vpop.f32.mrb[175].mxu0  ;;  %v6824_v46 = vsel %vm78_vm0, %v6767_v51, -inf }
0x493e   :  { %6825 = vmax.xlane.f32.xlu0 %v6824_v46 }
0x4940   :  { %6831 = vmax.xlane.f32.xlu1 %v6830_v34 }
0x4942   :  { %6828 = vmax.xlane.f32.xlu0 %v6827_v42 }
0x4951   :  { %6914 = vrot.lane.b32.xlu1 %v13079_v13, %s11855_s0 }
0x4955   :  { %6967 = vrot.lane.b32.xlu1 %v13081_v26, %s11861_s27 }
0x49c9   :  { %v6823_v49 = vpop.xlane.xlu1 %6822 }
0x49ca   :  { %v6833_v44 = vsub.f32 %v6764_v11, %v6823_v49 }
0x49cb   :  { %v6826_v45 = vpop.xlane.xlu0 %6825 }
0x49cc   :  { %v6834_v41 = vsub.f32 %v6767_v51, %v6826_v45  ;;  %v6837_v62 = vmul.f32 1.442695, %v6833_v44 }
0x49cd   :  { %v6832_v47 = vpop.xlane.xlu1 %6831 }
0x49ce   :  { %v6836_v48 = vsub.f32 %v6817_v12, %v6832_v47  ;;  %v6839_v50 = vmul.f32 1.442695, %v6834_v41 }
0x49cf   :  { %v6829_v52 = vpop.xlane.xlu0 %6828 }
0x49d0   :  { %v6843_v53 = vmul.f32 1.442695, %v6836_v48  ;;  %v6835_v16 = vsub.f32 %v6814_v15, %v6829_v52 }
0x49d1   :  { %v6915_v8 = vpop.permute.xlu1 %6914 }
0x49d2   :  { %11570 = vpow2.f32 %v6843_v53  ;;  %v6841_v54 = vmul.f32 1.442695, %v6835_v16  ;;  %10905 = vmatpush3.bf16.msra.mxu1 %v6915_v8 }
0x49d3   :  { %11572 = vpow2.f32 %v6839_v50  ;;  %10916 = vmatprep.subr.bf16.mxu1 %v11858_v22 }
0x49d4   :  { %11574 = vpow2.f32 %v6841_v54 }
0x49d5   :  { %11576 = vpow2.f32 %v6837_v62  ;;  %v6968_v61 = vpop.permute.xlu1 %6967 }
0x49d6   :  { %v6973_v4 = vsel %vm311_vm4, %v6968_v61, 0 }
0x49dc   :  { %v11571_v55 = vpop.eup %11570 }
0x49dd   :  { %v11573_v1 = vpop.eup %11572  ;;  %v6854_v17 = vsel %vm78_vm0, %v11571_v55, 0.0 }
0x49de   :  { %v11575_v56 = vpop.eup %11574  ;;  %6855 = vadd.xlane.f32.xlu1 %v6854_v17  ;;  %v6848_v57 = vsel %vm78_vm0, %v11573_v1, 0.0 }
0x49df   :  { %v6851_v14 = vsel %vm78_vm0, %v11575_v56, 0.0  ;;  %v11577_v21 = vpop.eup %11576 }
0x49e0   :  { %6852 = vadd.xlane.f32.xlu0 %v6851_v14  ;;  %v6845_v58 = vsel %vm78_vm0, %v11577_v21, 0.0 }
0x49e2   :  { %6849 = vadd.xlane.f32.xlu1 %v6848_v57 }
0x49e4   :  { %6846 = vadd.xlane.f32.xlu0 %v6845_v58 }
0x49f3   :  { %7018 = vrot.lane.b32.xlu1 %v13079_v13, %s11861_s27 }
0x49f7   :  { %7016 = vrot.lane.b32.xlu1 %v13079_v13, %s11862_s13 }
0x49fa   :  { %6867 = vrot.lane.b32.xlu0 %v13081_v26, %s11855_s0 }
0x49fe   :  { %6965 = vrot.lane.b32.xlu0 %v13081_v26, %s11862_s13 }
0x4a6b   :  { %v6856_v30 = vpop.xlane.xlu1 %6855 }
0x4a6c   :  { %11578 = vrcp.f32 %v6856_v30 }
0x4a6d   :  { %v6853_v38 = vpop.xlane.xlu0 %6852 }
0x4a6e   :  { %11580 = vrcp.f32 %v6853_v38 }
0x4a6f   :  { %v6850_v33 = vpop.xlane.xlu1 %6849 }
0x4a70   :  { %11582 = vrcp.f32 %v6850_v33 }
0x4a71   :  { %v6847_v3 = vpop.xlane.xlu0 %6846 }
0x4a72   :  { %11584 = vrcp.f32 %v6847_v3 }
0x4a73   :  { %v7019_v2 = vpop.permute.xlu1 %7018 }
0x4a74   :  { %v7024_v32 = vsel %vm311_vm4, %v7019_v2, 0 }
0x4a75   :  { %v6868_v35 = vpop.permute.xlu0 %6867 }
0x4a76   :  { %v11579_v5 = vpop.eup %11578  ;;  %10899 = vmatpush3.bf16.msra.mxu0 %v6868_v35 }
0x4a77   :  { %10910 = vmatprep.subr.bf16.mxu0 %v11858_v22  ;;  %v6864_v6 = vmul.f32 %v11579_v5, %v11571_v55  ;;  %v7017_v23 = vpop.permute.xlu1 %7016 }
0x4a78   :  { %v11581_v37 = vpop.eup %11580 }
0x4a79   :  { %v6863_v9 = vmul.f32 %v11581_v37, %v11575_v56  ;;  %v6966_v36 = vpop.permute.xlu0 %6965 }
0x4a7a   :  { %v11583_v10 = vpop.eup %11582 }
0x4a7b   :  { %v6866_v59 = vpack.c.bf16 %v6864_v6, %v6863_v9  ;;  %v6862_v63 = vmul.f32 %v11583_v10, %v11573_v1 }
0x4a7c   :  { %v11585_v60 = vpop.eup %11584 }
0x4a7d   :  { %v6861_v7 = vmul.f32 %v11585_v60, %v11577_v21  ;;  %10907 = vmatmul.mubr.msk.bf16.vlgmr.msra.gmra.mrb[176].mxu1 %vm78_vm0, %v6866_v59 }
0x4a7e   :  { %10917 = vmatpush3.bf16.xpose.msra.mxu1 %v7024_v32  ;;  %10918 = vmatprep.mubr.msk.bf16.mxu1 %vm11859_vm3, %v11858_v22 }
0x4a7f   :  { %v6865_v25 = vpack.c.bf16 %v6862_v63, %v6861_v7  ;;  %10928 = vmatprep.subr.bf16.mxu1 %v11858_v22 }
0x4a81   :  { %10901 = vmatmul.mubr.msk.bf16.vlgmr.msra.gmra.mrb[176].mxu0 %vm78_vm0, %v6865_v25 }
0x4a82   :  { %10911 = vmatpush3.bf16.xpose.msra.mxu0 %v6973_v4  ;;  %10912 = vmatprep.mubr.msk.bf16.mxu0 %vm11859_vm3, %v11858_v22 }
0x4a83   :  { %10922 = vmatprep.subr.bf16.mxu0 %v11858_v22 }
0x4a85   :  { %10919 = vmatmul.mubr.msk.bf16.vlgmr.msra.gmra.mrb[180].mxu1 %vm311_vm4, %v7017_v23 }
0x4a86   :  { %10930 = vmatprep.mubr.msk.bf16.mxu1 %vm11859_vm3, %v11858_v22 }
0x4a89   :  { %10913 = vmatmul.mubr.msk.bf16.vlgmr.msra.gmra.mrb[180].mxu0 %vm311_vm4, %v6966_v36 }
0x4a8a   :  { %10924 = vmatprep.mubr.msk.bf16.mxu0 %vm11859_vm3, %v11858_v22 }
0x4b50   :  { %v6954_v29 = vpop.f32.mrb[176].mxu1 }
0x4b51   :  { %6963 = vst.msk [vmem:[#allocation3 + $0x10] sm:$0xff] %vm311_vm4, %v6954_v29  ;;  %v10908_v40 = vpop.f32.mrb[177].mxu1 }
0x4b52   :  { %v6957_v31 = vpop.f32.mrb[178].mxu1 }
0x4b53   :  { %6964 = vst.msk [vmem:[#allocation3 + $0x18] sm:$0xff] %vm311_vm4, %v6957_v31  ;;  %v10909_v15 = vpop.f32.mrb[179].mxu1 }
0x4b54   :  { %v6907_v11 = vpop.f32.mrb[176].mxu0 }
0x4b55   :  { %6961 = vst.msk [vmem:[#allocation3] sm:$0xff] %vm311_vm4, %v6907_v11  ;;  %v10902_v27 = vpop.f32.mrb[177].mxu0 }
0x4b56   :  { %v6910_v19 = vpop.f32.mrb[178].mxu0 }
0x4b57   :  { %6962 = vst.msk [vmem:[#allocation3 + $0x8] sm:$0xff] %vm311_vm4, %v6910_v19  ;;  %v10903_v12 = vpop.f32.mrb[179].mxu0 }
0x4b58   :  { %v7060_v28 = vpop.f32.mrb[180].mxu1 }
0x4b59   :  { %v10920_v43 = vpop.f32.mrb[181].mxu1  ;;  %v7073_v47 = vsel %vm78_vm0, %v7060_v28, -inf }
0x4b5a   :  { %v7063_v51 = vpop.f32.mrb[182].mxu1 }
0x4b5b   :  { %v10921_v20 = vpop.f32.mrb[183].mxu1  ;;  %v7076_v44 = vsel %vm78_vm0, %v7063_v51, -inf }
0x4b5c   :  { %v7009_v46 = vpop.f32.mrb[180].mxu0 }
0x4b5d   :  { %v10914_v34 = vpop.f32.mrb[181].mxu0  ;;  %v7067_v42 = vsel %vm78_vm0, %v7009_v46, -inf }
0x4b5e   :  { %7068 = vmax.xlane.f32.xlu0 %v7067_v42  ;;  %v7012_v49 = vpop.f32.mrb[182].mxu0 }
0x4b5f   :  { %v10915_v45 = vpop.f32.mrb[183].mxu0  ;;  %v7070_v41 = vsel %vm78_vm0, %v7012_v49, -inf }
0x4b60   :  { %7071 = vmax.xlane.f32.xlu1 %v7070_v41 }
0x4b62   :  { %7074 = vmax.xlane.f32.xlu0 %v7073_v47 }
0x4b66   :  { %7077 = vmax.xlane.f32.xlu0 %v7076_v44 }
0x4b71   :  { %7160 = vrot.lane.b32.xlu1 %v13079_v13, %s11863_s14 }
0x4b75   :  { %7229 = vrot.lane.b32.xlu1 %v13081_v26, %s11864_s15 }
0x4beb   :  { %v7069_v48 = vpop.xlane.xlu0 %7068 }
0x4bec   :  { %v7079_v52 = vsub.f32 %v7009_v46, %v7069_v48 }
0x4bed   :  { %v7072_v50 = vpop.xlane.xlu1 %7071 }
0x4bee   :  { %v7083_v62 = vmul.f32 1.442695, %v7079_v52  ;;  %v7080_v54 = vsub.f32 %v7012_v49, %v7072_v50 }
0x4bef   :  { %v7075_v53 = vpop.xlane.xlu0 %7074 }
0x4bf0   :  { %v7081_v16 = vsub.f32 %v7060_v28, %v7075_v53  ;;  %v7085_v56 = vmul.f32 1.442695, %v7080_v54 }
0x4bf1   :  { %v7161_v8 = vpop.permute.xlu1 %7160 }
0x4bf2   :  { %v7087_v55 = vmul.f32 1.442695, %v7081_v16  ;;  %10929 = vmatpush3.bf16.msra.mxu1 %v7161_v8 }
0x4bf3   :  { %v7078_v1 = vpop.xlane.xlu0 %7077  ;;  %10940 = vmatprep.subr.bf16.mxu1 %v11858_v22 }
0x4bf4   :  { %11586 = vpow2.f32 %v7087_v55  ;;  %v7082_v17 = vsub.f32 %v7063_v51, %v7078_v1 }
0x4bf5   :  { %11588 = vpow2.f32 %v7083_v62  ;;  %v7230_v35 = vpop.permute.xlu1 %7229 }
0x4bf6   :  { %v7089_v14 = vmul.f32 1.442695, %v7082_v17  ;;  %v7235_v31 = vsel %vm311_vm4, %v7230_v35, 0 }
0x4bf8   :  { %11590 = vpow2.f32 %v7089_v14 }
0x4bf9   :  { %11592 = vpow2.f32 %v7085_v56 }
0x4bfe   :  { %v11587_v21 = vpop.eup %11586 }
0x4bff   :  { %v7097_v57 = vsel %vm78_vm0, %v11587_v21, 0.0  ;;  %v11589_v58 = vpop.eup %11588 }
0x4c00   :  { %7098 = vadd.xlane.f32.xlu0 %v7097_v57  ;;  %v7091_v30 = vsel %vm78_vm0, %v11589_v58, 0.0 }
0x4c02   :  { %v11591_v61 = vpop.eup %11590 }
0x4c03   :  { %v7100_v38 = vsel %vm78_vm0, %v11591_v61, 0.0  ;;  %v11593_v33 = vpop.eup %11592 }
0x4c04   :  { %7092 = vadd.xlane.f32.xlu0 %v7091_v30  ;;  %7101 = vadd.xlane.f32.xlu1 %v7100_v38  ;;  %v7094_v3 = vsel %vm78_vm0, %v11593_v33, 0.0 }
0x4c08   :  { %7095 = vadd.xlane.f32.xlu1 %v7094_v3 }
0x4c19   :  { %7280 = vrot.lane.b32.xlu1 %v13079_v13, %s11864_s15 }
0x4c1a   :  { %7113 = vrot.lane.b32.xlu0 %v13081_v26, %s11863_s14 }
0x4c1d   :  { %7278 = vrot.lane.b32.xlu1 %v13079_v13, %s11865_s16 }
0x4c1e   :  { %7227 = vrot.lane.b32.xlu0 %v13081_v26, %s11865_s16 }
0x4c8d   :  { %v7099_v5 = vpop.xlane.xlu0 %7098 }
0x4c8e   :  { %11594 = vrcp.f32 %v7099_v5 }
0x4c91   :  { %v7093_v37 = vpop.xlane.xlu0 %7092  ;;  %v7102_v6 = vpop.xlane.xlu1 %7101 }
0x4c92   :  { %11596 = vrcp.f32 %v7102_v6 }
0x4c93   :  { %11598 = vrcp.f32 %v7093_v37 }
0x4c95   :  { %v7114_v9 = vpop.permute.xlu0 %7113  ;;  %v7096_v10 = vpop.xlane.xlu1 %7095 }
0x4c96   :  { %11600 = vrcp.f32 %v7096_v10  ;;  %10923 = vmatpush3.bf16.msra.mxu0 %v7114_v9 }
0x4c97   :  { %10934 = vmatprep.subr.bf16.mxu0 %v11858_v22 }
0x4c98   :  { %v11595_v2 = vpop.eup %11594 }
0x4c99   :  { %v7109_v63 = vmul.f32 %v11595_v2, %v11587_v21  ;;  %v7281_v32 = vpop.permute.xlu1 %7280  ;;  %v7228_v11 = vpop.permute.xlu0 %7227 }
0x4c9a   :  { %v7286_v29 = vsel %vm311_vm4, %v7281_v32, 0 }
0x4c9c   :  { %v11597_v59 = vpop.eup %11596 }
0x4c9d   :  { %v11599_v60 = vpop.eup %11598  ;;  %v7110_v7 = vmul.f32 %v11597_v59, %v11591_v61  ;;  %v7279_v15 = vpop.permute.xlu1 %7278 }
0x4c9e   :  { %v7107_v23 = vmul.f32 %v11599_v60, %v11589_v58 }
0x4c9f   :  { %v7112_v4 = vpack.c.bf16 %v7110_v7, %v7109_v63 }
0x4ca0   :  { %v11601_v25 = vpop.eup %11600 }
0x4ca1   :  { %v7108_v36 = vmul.f32 %v11601_v25, %v11593_v33  ;;  %10931 = vmatmul.mubr.msk.bf16.vlgmr.msra.gmra.mrb[184].mxu1 %vm78_vm0, %v7112_v4 }
0x4ca2   :  { %10941 = vmatpush3.bf16.xpose.msra.mxu1 %v7286_v29  ;;  %10942 = vmatprep.mubr.msk.bf16.mxu1 %vm11859_vm3, %v11858_v22 }
0x4ca3   :  { %v7111_v40 = vpack.c.bf16 %v7108_v36, %v7107_v23  ;;  %10952 = vmatprep.subr.bf16.mxu1 %v11858_v22 }
0x4ca5   :  { %10925 = vmatmul.mubr.msk.bf16.vlgmr.msra.gmra.mrb[184].mxu0 %vm78_vm0, %v7111_v40 }
0x4ca6   :  { %10935 = vmatpush3.bf16.xpose.msra.mxu0 %v7235_v31  ;;  %10936 = vmatprep.mubr.msk.bf16.mxu0 %vm11859_vm3, %v11858_v22 }
0x4ca7   :  { %10946 = vmatprep.subr.bf16.mxu0 %v11858_v22 }
0x4ca9   :  { %10943 = vmatmul.mubr.msk.bf16.vlgmr.msra.gmra.mrb[188].mxu1 %vm311_vm4, %v7279_v15 }
0x4caa   :  { %10954 = vmatprep.mubr.msk.bf16.mxu1 %vm11859_vm3, %v11858_v22 }
0x4cad   :  { %10937 = vmatmul.mubr.msk.bf16.vlgmr.msra.gmra.mrb[188].mxu0 %vm311_vm4, %v7228_v11 }
0x4cae   :  { %10948 = vmatprep.mubr.msk.bf16.mxu0 %vm11859_vm3, %v11858_v22 }
0x4d74   :  { %v13179_v27 = vpop.f32.mrb[184].mxu1 }
0x4d75   :  { %v10932_v19 = vpop.f32.mrb[185].mxu1 }
0x4d76   :  { %v13181_v12 = vpop.f32.mrb[186].mxu1 }
0x4d77   :  { %v10933_v28 = vpop.f32.mrb[187].mxu1 }
0x4d78   :  { %v13183_v43 = vpop.f32.mrb[184].mxu0 }
0x4d79   :  { %v10926_v51 = vpop.f32.mrb[185].mxu0 }
0x4d7a   :  { %v13185_v20 = vpop.f32.mrb[186].mxu0 }
0x4d7b   :  { %v10927_v46 = vpop.f32.mrb[187].mxu0 }
0x4d7c   :  { %v7322_v34 = vpop.f32.mrb[188].mxu1 }
0x4d7d   :  { %v10944_v42 = vpop.f32.mrb[189].mxu1  ;;  %v7335_v53 = vsel %vm78_vm0, %v7322_v34, -inf }
0x4d7e   :  { %v7325_v49 = vpop.f32.mrb[190].mxu1 }
0x4d7f   :  { %v10945_v45 = vpop.f32.mrb[191].mxu1  ;;  %v7338_v16 = vsel %vm78_vm0, %v7325_v49, -inf }
0x4d80   :  { %v7271_v41 = vpop.f32.mrb[188].mxu0 }
0x4d81   :  { %v10938_v47 = vpop.f32.mrb[189].mxu0  ;;  %v7329_v44 = vsel %vm78_vm0, %v7271_v41, -inf }
0x4d82   :  { %7330 = vmax.xlane.f32.xlu0 %v7329_v44  ;;  %v7274_v48 = vpop.f32.mrb[190].mxu0 }
0x4d83   :  { %v10939_v50 = vpop.f32.mrb[191].mxu0  ;;  %v7332_v52 = vsel %vm78_vm0, %v7274_v48, -inf }
0x4d84   :  { %7333 = vmax.xlane.f32.xlu1 %v7332_v52 }
0x4d86   :  { %7336 = vmax.xlane.f32.xlu0 %v7335_v53 }
0x4d8a   :  { %7339 = vmax.xlane.f32.xlu0 %v7338_v16 }
0x4d95   :  { %7422 = vrot.lane.b32.xlu1 %v13079_v13, %s11866_s17 }
0x4d99   :  { %7491 = vrot.lane.b32.xlu1 %v13081_v26, %s11867_s19 }
0x4e0f   :  { %v7331_v8 = vpop.xlane.xlu0 %7330 }
0x4e10   :  { %v7341_v54 = vsub.f32 %v7271_v41, %v7331_v8 }
0x4e11   :  { %v7334_v62 = vpop.xlane.xlu1 %7333 }
0x4e12   :  { %v7345_v56 = vmul.f32 1.442695, %v7341_v54  ;;  %v7342_v14 = vsub.f32 %v7274_v48, %v7334_v62 }
0x4e13   :  { %v7337_v55 = vpop.xlane.xlu0 %7336 }
0x4e14   :  { %v7343_v1 = vsub.f32 %v7322_v34, %v7337_v55  ;;  %v7347_v61 = vmul.f32 1.442695, %v7342_v14 }
0x4e15   :  { %v7423_v17 = vpop.permute.xlu1 %7422 }
0x4e16   :  { %v7349_v21 = vmul.f32 1.442695, %v7343_v1  ;;  %10953 = vmatpush3.bf16.msra.mxu1 %v7423_v17 }
0x4e17   :  { %v7340_v57 = vpop.xlane.xlu0 %7339  ;;  %10964 = vmatprep.subr.bf16.mxu1 %v11858_v22 }
0x4e18   :  { %11602 = vpow2.f32 %v7349_v21  ;;  %v7344_v58 = vsub.f32 %v7325_v49, %v7340_v57 }
0x4e19   :  { %11604 = vpow2.f32 %v7345_v56  ;;  %v7492_v10 = vpop.permute.xlu1 %7491 }
0x4e1a   :  { %v7351_v30 = vmul.f32 1.442695, %v7344_v58  ;;  %v7497_v51 = vsel %vm311_vm4, %v7492_v10, 0 }
0x4e1c   :  { %11606 = vpow2.f32 %v7351_v30 }
0x4e1d   :  { %11608 = vpow2.f32 %v7347_v61 }
0x4e22   :  { %v11603_v38 = vpop.eup %11602 }
0x4e23   :  { %v7359_v33 = vsel %vm78_vm0, %v11603_v38, 0.0  ;;  %v11605_v3 = vpop.eup %11604 }
0x4e24   :  { %7360 = vadd.xlane.f32.xlu0 %v7359_v33  ;;  %v7353_v5 = vsel %vm78_vm0, %v11605_v3, 0.0 }
0x4e26   :  { %v11607_v35 = vpop.eup %11606 }
0x4e27   :  { %v7362_v37 = vsel %vm78_vm0, %v11607_v35, 0.0  ;;  %v11609_v6 = vpop.eup %11608 }
0x4e28   :  { %7354 = vadd.xlane.f32.xlu0 %v7353_v5  ;;  %7363 = vadd.xlane.f32.xlu1 %v7362_v37  ;;  %v7356_v9 = vsel %vm78_vm0, %v11609_v6, 0.0 }
0x4e2c   :  { %7357 = vadd.xlane.f32.xlu1 %v7356_v9 }
0x4e3d   :  { %7542 = vrot.lane.b32.xlu1 %v13079_v13, %s11867_s19 }
0x4e3e   :  { %7375 = vrot.lane.b32.xlu0 %v13081_v26, %s11866_s17 }
0x4e41   :  { %7540 = vrot.lane.b32.xlu1 %v13079_v13, %s11868_s20 }
0x4e42   :  { %7489 = vrot.lane.b32.xlu0 %v13081_v26, %s11868_s20 }
0x4eb1   :  { %v7361_v2 = vpop.xlane.xlu0 %7360 }
0x4eb2   :  { %11610 = vrcp.f32 %v7361_v2 }
0x4eb5   :  { %v7355_v59 = vpop.xlane.xlu0 %7354  ;;  %v7364_v60 = vpop.xlane.xlu1 %7363 }
0x4eb6   :  { %11612 = vrcp.f32 %v7364_v60 }
0x4eb7   :  { %11614 = vrcp.f32 %v7355_v59 }
0x4eb9   :  { %v7376_v63 = vpop.permute.xlu0 %7375  ;;  %v7358_v7 = vpop.xlane.xlu1 %7357 }
0x4eba   :  { %11616 = vrcp.f32 %v7358_v7  ;;  %10947 = vmatpush3.bf16.msra.mxu0 %v7376_v63 }
0x4ebb   :  { %10958 = vmatprep.subr.bf16.mxu0 %v11858_v22 }
0x4ebc   :  { %v11611_v32 = vpop.eup %11610 }
0x4ebd   :  { %v7371_v23 = vmul.f32 %v11611_v32, %v11603_v38  ;;  %v7543_v29 = vpop.permute.xlu1 %7542  ;;  %v7490_v34 = vpop.permute.xlu0 %7489 }
0x4ebe   :  { %v7548_v19 = vsel %vm311_vm4, %v7543_v29, 0 }
0x4ec0   :  { %v11613_v25 = vpop.eup %11612 }
0x4ec1   :  { %v11615_v4 = vpop.eup %11614  ;;  %v7372_v36 = vmul.f32 %v11613_v25, %v11607_v35  ;;  %v7541_v46 = vpop.permute.xlu1 %7540 }
0x4ec2   :  { %v7369_v15 = vmul.f32 %v11615_v4, %v11605_v3 }
0x4ec3   :  { %v7374_v31 = vpack.c.bf16 %v7372_v36, %v7371_v23 }
0x4ec4   :  { %v11617_v40 = vpop.eup %11616 }
0x4ec5   :  { %v7370_v11 = vmul.f32 %v11617_v40, %v11609_v6  ;;  %10955 = vmatmul.mubr.msk.bf16.vlgmr.msra.gmra.mrb[192].mxu1 %vm78_vm0, %v7374_v31 }
0x4ec6   :  { %10965 = vmatpush3.bf16.xpose.msra.mxu1 %v7548_v19  ;;  %10966 = vmatprep.mubr.msk.bf16.mxu1 %vm11859_vm3, %v11858_v22 }
0x4ec7   :  { %v7373_v28 = vpack.c.bf16 %v7370_v11, %v7369_v15  ;;  %10976 = vmatprep.subr.bf16.mxu1 %v11858_v22 }
0x4ec9   :  { %10949 = vmatmul.mubr.msk.bf16.vlgmr.msra.gmra.mrb[192].mxu0 %vm78_vm0, %v7373_v28 }
0x4eca   :  { %10959 = vmatpush3.bf16.xpose.msra.mxu0 %v7497_v51  ;;  %10960 = vmatprep.mubr.msk.bf16.mxu0 %vm11859_vm3, %v11858_v22 }
0x4ecb   :  { %10970 = vmatprep.subr.bf16.mxu0 %v11858_v22 }
0x4ecd   :  { %10967 = vmatmul.mubr.msk.bf16.vlgmr.msra.gmra.mrb[196].mxu1 %vm311_vm4, %v7541_v46 }
0x4ece   :  { %10978 = vmatprep.mubr.msk.bf16.mxu1 %vm11859_vm3, %v11858_v22 }
0x4ed1   :  { %10961 = vmatmul.mubr.msk.bf16.vlgmr.msra.gmra.mrb[196].mxu0 %vm311_vm4, %v7490_v34 }
0x4ed2   :  { %10972 = vmatprep.mubr.msk.bf16.mxu0 %vm11859_vm3, %v11858_v22 }
0x4f98   :  { %v7462_v42 = vpop.f32.mrb[192].mxu1 }
0x4f99   :  { %v10956_v49 = vpop.f32.mrb[193].mxu1 }
0x4f9a   :  { %v7465_v45 = vpop.f32.mrb[194].mxu1 }
0x4f9b   :  { %v10957_v41 = vpop.f32.mrb[195].mxu1 }
0x4f9c   :  { %v7415_v47 = vpop.f32.mrb[192].mxu0 }
0x4f9d   :  { %v10950_v44 = vpop.f32.mrb[193].mxu0 }
0x4f9e   :  { %v7418_v48 = vpop.f32.mrb[194].mxu0  ;;  %v11222_v44 = vld [vmem:[#allocation9 + $0x18] sm:$0xff]  }
0x4f9f   :  { %v10951_v50 = vpop.f32.mrb[195].mxu0 }
0x4fa0   :  { %v7584_v52 = vpop.f32.mrb[196].mxu1 }
0x4fa1   :  { %v10968_v53 = vpop.f32.mrb[197].mxu1  ;;  %v7597_v14 = vsel %vm78_vm0, %v7584_v52, -inf }
0x4fa2   :  { %v7587_v16 = vpop.f32.mrb[198].mxu1 }
0x4fa3   :  { %v10969_v8 = vpop.f32.mrb[199].mxu1  ;;  %v7600_v21 = vsel %vm78_vm0, %v7587_v16, -inf }
0x4fa4   :  { %v7533_v62 = vpop.f32.mrb[196].mxu0 }
0x4fa5   :  { %v10962_v54 = vpop.f32.mrb[197].mxu0  ;;  %v7591_v55 = vsel %vm78_vm0, %v7533_v62, -inf }
0x4fa6   :  { %7592 = vmax.xlane.f32.xlu0 %v7591_v55  ;;  %v7536_v1 = vpop.f32.mrb[198].mxu0 }
0x4fa7   :  { %v10963_v17 = vpop.f32.mrb[199].mxu0  ;;  %v7594_v56 = vsel %vm78_vm0, %v7536_v1, -inf }
0x4fa8   :  { %7595 = vmax.xlane.f32.xlu1 %v7594_v56 }
0x4faa   :  { %7598 = vmax.xlane.f32.xlu0 %v7597_v14 }
0x4fae   :  { %7601 = vmax.xlane.f32.xlu0 %v7600_v21 }
0x5033   :  { %v7593_v57 = vpop.xlane.xlu0 %7592 }
0x5034   :  { %v7603_v58 = vsub.f32 %v7533_v62, %v7593_v57 }
0x5035   :  { %v7596_v61 = vpop.xlane.xlu1 %7595 }
0x5036   :  { %v7607_v33 = vmul.f32 1.442695, %v7603_v58  ;;  %v7604_v3 = vsub.f32 %v7536_v1, %v7596_v61 }
0x5037   :  { %v7599_v30 = vpop.xlane.xlu0 %7598 }
0x5038   :  { %v7605_v38 = vsub.f32 %v7584_v52, %v7599_v30  ;;  %v7609_v6 = vmul.f32 1.442695, %v7604_v3  ;;  %v9933_v3 = vld [vmem:[#allocation10 + $0x1] ss:$0 sm:$0xff] }
0x503a   :  { %v7611_v35 = vmul.f32 1.442695, %v7605_v38 }
0x503b   :  { %v7602_v5 = vpop.xlane.xlu0 %7601 }
0x503c   :  { %11618 = vpow2.f32 %v7611_v35  ;;  %v7606_v37 = vsub.f32 %v7587_v16, %v7602_v5 }
0x503d   :  { %11620 = vpow2.f32 %v7607_v33 }
0x503e   :  { %v7613_v9 = vmul.f32 1.442695, %v7606_v37 }
0x5040   :  { %11622 = vpow2.f32 %v7613_v9 }
0x5041   :  { %11624 = vpow2.f32 %v7609_v6 }
0x5046   :  { %v11619_v10 = vpop.eup %11618 }
0x5047   :  { %v7621_v2 = vsel %vm78_vm0, %v11619_v10, 0.0  ;;  %v11621_v59 = vpop.eup %11620 }
0x5048   :  { %7622 = vadd.xlane.f32.xlu0 %v7621_v2  ;;  %v7615_v63 = vsel %vm78_vm0, %v11621_v59, 0.0 }
0x504a   :  { %v11623_v60 = vpop.eup %11622 }
0x504b   :  { %v7624_v7 = vsel %vm78_vm0, %v11623_v60, 0.0  ;;  %v11625_v32 = vpop.eup %11624 }
0x504c   :  { %7616 = vadd.xlane.f32.xlu0 %v7615_v63  ;;  %7625 = vadd.xlane.f32.xlu1 %v7624_v7  ;;  %v7618_v25 = vsel %vm78_vm0, %v11625_v32, 0.0 }
0x5050   :  { %7619 = vadd.xlane.f32.xlu1 %v7618_v25 }
0x5061   :  { %7684 = vrot.lane.b32.xlu1 %v13079_v13, %s11869_s21 }
0x5062   :  { %7637 = vrot.lane.b32.xlu0 %v13081_v26, %s11869_s21 }
0x5065   :  { %7211 = vrot.lane.b32.xlu1 %v13183_v43, %s11853_s28 }
0x5066   :  { %7215 = vrot.lane.b32.xlu0 %v13179_v27, %s11853_s28 }
0x5069   :  { %7213 = vrot.lane.b32.xlu1 %v13185_v20, %s11853_s28 }
0x506a   :  { %7473 = vrot.lane.b32.xlu0 %v7415_v47, %s11870_s22 }
0x506d   :  { %7217 = vrot.lane.b32.xlu1 %v13181_v12, %s11853_s28 }
0x506e   :  { %7477 = vrot.lane.b32.xlu0 %v7462_v42, %s11870_s22 }
0x5071   :  { %7475 = vrot.lane.b32.xlu1 %v7418_v48, %s11870_s22  ;;  %v11223_v48 = vld [vmem:[#allocation9 + $0x20] sm:$0xff]  }
0x5075   :  { %7479 = vrot.lane.b32.xlu1 %v7465_v45, %s11870_s22 }
0x50d5   :  { %v7623_v13 = vpop.xlane.xlu0 %7622 }
0x50d6   :  { %11626 = vrcp.f32 %v7623_v13 }
0x50d9   :  { %v7617_v26 = vpop.xlane.xlu0 %7616  ;;  %v7626_v43 = vpop.xlane.xlu1 %7625 }
0x50da   :  { %11628 = vrcp.f32 %v7626_v43 }
0x50db   :  { %11630 = vrcp.f32 %v7617_v26 }
0x50dd   :  { %v7638_v27 = vpop.permute.xlu0 %7637  ;;  %v7620_v4 = vpop.xlane.xlu1 %7619 }
0x50de   :  { %11632 = vrcp.f32 %v7620_v4  ;;  %10971 = vmatpush3.bf16.msra.mxu0 %v7638_v27 }
0x50df   :  { %10982 = vmatprep.subr.bf16.mxu0 %v11222_v44 }
0x50e0   :  { %v11627_v12 = vpop.eup %11626 }
0x50e1   :  { %v7216_v20 = vpop.permute.xlu0 %7215  ;;  %v7685_v23 = vpop.permute.xlu1 %7684  ;;  %v7633_v15 = vmul.f32 %v11627_v12, %v11619_v10 }
0x50e2   :  { %7225 = vst.msk [vmem:[#allocation3 + $0x10] sm:$0xff] %vm811_vm5, %v7216_v20  ;;  %10977 = vmatpush3.bf16.msra.mxu1 %v7685_v23 }
0x50e4   :  { %v11629_v36 = vpop.eup %11628 }
0x50e5   :  { %v7474_v29 = vpop.permute.xlu0 %7473  ;;  %v7212_v40 = vpop.permute.xlu1 %7211  ;;  %v7634_v11 = vmul.f32 %v11629_v36, %v11623_v60 }
0x50e6   :  { %v11631_v31 = vpop.eup %11630  ;;  %7223 = vst.msk [vmem:[#allocation3] sm:$0xff] %vm811_vm5, %v7212_v40 }
0x50e7   :  { %7485 = vst.msk [vmem:[#allocation3] sm:$0xff] %vm1074_vm6, %v7474_v29  ;;  %v7636_v28 = vpack.c.bf16 %v7634_v11, %v7633_v15  ;;  %v7631_v51 = vmul.f32 %v11631_v31, %v11621_v59 }
0x50e8   :  { %v11633_v19 = vpop.eup %11632 }
0x50e9   :  { %v7632_v46 = vmul.f32 %v11633_v19, %v11625_v32  ;;  %v7478_v34 = vpop.permute.xlu0 %7477  ;;  %v7214_v42 = vpop.permute.xlu1 %7213  ;;  %10979 = vmatmul.mubr.msk.bf16.vlgmr.msra.gmra.mrb[200].mxu1 %vm78_vm0, %v7636_v28 }
0x50ea   :  { %7487 = vst.msk [vmem:[#allocation3 + $0x10] sm:$0xff] %vm1074_vm6, %v7478_v34  ;;  %v11224_v34 = vld [vmem:[#allocation9 + $0x28] sm:$0xff]  }
0x50eb   :  { %7224 = vst.msk [vmem:[#allocation3 + $0x8] sm:$0xff] %vm811_vm5, %v7214_v42  ;;  %v7635_v49 = vpack.c.bf16 %v7632_v46, %v7631_v51  ;;  %10990 = vmatprep.subr.bf16.mxu1 %v11224_v34  ;;  %v11225_v42 = vld [vmem:[#allocation9 + $0x30] sm:$0xff]  }
0x50ec   :  { %10991 = vmatpush3.bf16.msra.mxu1 %v11224_v34 }
0x50ed   :  { %10973 = vmatmul.mubr.msk.bf16.vlgmr.msra.gmra.mrb[200].mxu0 %vm78_vm0, %v7635_v49  ;;  %v7218_v45 = vpop.permute.xlu1 %7217  ;;  %10992 = vmatprep.subr.bf16.mxu1 %v11225_v42  ;;  %v11226_v49 = vld [vmem:[#allocation9 + $0x38] sm:$0xff]  }
0x50ee   :  { %7226 = vst.msk [vmem:[#allocation3 + $0x18] sm:$0xff] %vm811_vm5, %v7218_v45  ;;  %10983 = vmatpush3.bf16.msra.mxu0 %v11222_v44  ;;  %v11227_v45 = vld [vmem:[#allocation9 + $0x40] sm:$0xff]  }
0x50ef   :  { %10984 = vmatprep.subr.bf16.mxu0 %v11223_v48 }
0x50f0   :  { %10993 = vmatpush3.bf16.msra.mxu1 %v11225_v42 }
0x50f1   :  { %v7476_v41 = vpop.permute.xlu1 %7475 }
0x50f2   :  { %7486 = vst.msk [vmem:[#allocation3 + $0x8] sm:$0xff] %vm1074_vm6, %v7476_v41  ;;  %10985 = vmatpush3.bf16.msra.mxu0 %v11223_v48 }
0x50f3   :  { %10998 = vmatprep.subr.bf16.mxu0 %v11226_v49 }
0x50f5   :  { %v7480_v47 = vpop.permute.xlu1 %7479 }
0x50f6   :  { %7488 = vst.msk [vmem:[#allocation3 + $0x18] sm:$0xff] %vm1074_vm6, %v7480_v47 }
0x51bc   :  { %v7724_v50 = vpop.f32.mrb[200].mxu1 }
0x51bd   :  { %v10980_v52 = vpop.f32.mrb[201].mxu1 }
0x51be   :  { %v7727_v53 = vpop.f32.mrb[202].mxu1 }
0x51bf   :  { %v10981_v16 = vpop.f32.mrb[203].mxu1 }
0x51c0   :  { %v7677_v8 = vpop.f32.mrb[200].mxu0 }
0x51c1   :  { %7735 = vrot.lane.b32.xlu0 %v7677_v8, %s11871_s23  ;;  %v10974_v62 = vpop.f32.mrb[201].mxu0 }
0x51c2   :  { %v7680_v54 = vpop.f32.mrb[202].mxu0 }
0x51c3   :  { %7737 = vrot.lane.b32.xlu1 %v7680_v54, %s11871_s23  ;;  %v10975_v55 = vpop.f32.mrb[203].mxu0 }
0x51c5   :  { %7739 = vrot.lane.b32.xlu0 %v7724_v50, %s11871_s23 }
0x51c7   :  { %7741 = vrot.lane.b32.xlu1 %v7727_v53, %s11871_s23 }
0x5233   :  { %v7736_v1 = vpop.permute.xlu0 %7735 }
0x5234   :  { %7747 = vst.msk [vmem:[#allocation3] sm:$0xff] %vm1337_vm7, %v7736_v1 }
0x5235   :  { %v7738_v17 = vpop.permute.xlu1 %7737 }
0x5236   :  { %7748 = vst.msk [vmem:[#allocation3 + $0x8] sm:$0xff] %vm1337_vm7, %v7738_v17  ;;  %v9934_v17 = vld [vmem:[#allocation10 + $0x6] ss:$0 sm:$0xff] }
0x5237   :  { %v7740_v56 = vpop.permute.xlu0 %7739 }
0x5238   :  { %7749 = vst.msk [vmem:[#allocation3 + $0x10] sm:$0xff] %vm1337_vm7, %v7740_v56 }
0x5239   :  { %v7742_v14 = vpop.permute.xlu1 %7741 }
0x523a   :  { %7750 = vst.msk [vmem:[#allocation3 + $0x18] sm:$0xff] %vm1337_vm7, %v7742_v14 }
0x523b   :  { %v7751_v21 = vld [vmem:[#allocation3] sm:$0xff] }
0x523d   :  { %v7752_v57 = vld [vmem:[#allocation3 + $0x8] sm:$0xff] }
0x523e   :  { %v7759_v58 = vpack.c.bf16 %v7752_v57, %v7751_v21 }
0x523f   :  { %v7753_v61 = vld [vmem:[#allocation3 + $0x10] sm:$0xff] }
0x5240   :  { %10986 = vmatprep.mubr.msk.bf16.mxu0 %vm158_vm2, %v7759_v58 }
0x5241   :  { %v7754_v30 = vld [vmem:[#allocation3 + $0x18] sm:$0xff] }
0x5242   :  { %v7760_v38 = vpack.c.bf16 %v7754_v30, %v7753_v61  ;;  %v9935_v61 = vld [vmem:[#allocation10 + $0x7] ss:$0 sm:$0xff] }
0x5244   :  { %10987 = vmatmul.mubr.msk.bf16.vlgmr.msra.gmra.mrb[204].mxu0 %vm158_vm2, %v7760_v38 }
0x5245   :  { %10999 = vmatpush3.bf16.msra.mxu0 %v11226_v49 }
0x5246   :  { %11000 = vmatprep.subr.bf16.mxu0 %v11227_v45 }
0x5249   :  { %11001 = vmatpush3.bf16.msra.mxu0 %v11227_v45 }
0x5317   :  { %v10988_v33 = vpop.f32.mrb[204].mxu0 }
0x5318   :  { %v7813_v35 = vpop.f32.mrb[205].mxu0  ;;  %v7830_v5 = vadd.f32 %v10988_v33, %v13052_v39 }
0x5319   :  { %v7828_v37 = vadd.f32 %v7813_v35, %v13050_v0  ;;  %v10989_v6 = vpop.f32.mrb[206].mxu0 }
0x531a   :  { %v7816_v9 = vpop.f32.mrb[207].mxu0  ;;  %v13274_v59 = vadd.f32 %v9933_v3, %v7830_v5  ;;  %v7831_v60 = vadd.f32 %v10989_v6, %v13058_v18 }
0x531b   :  { %v13271_v10 = vadd.f32 %v9933_v3, %v7828_v37  ;;  %v7829_v2 = vadd.f32 %v7816_v9, %v13054_v24 }
0x531c   :  { %v13283_v0 = vadd.f32 %v9933_v3, %v7831_v60  ;;  %v7849_v32 = vsel %vm158_vm2, %v13274_v59, 0.0 }
0x531d   :  { %v13277_v63 = vadd.f32 %v9933_v3, %v7829_v2  ;;  %v7843_v7 = vsel %vm158_vm2, %v13271_v10, 0.0 }
0x531e   :  { %7844 = vadd.xlane.f32.xlu0 %v7843_v7  ;;  %v7852_v24 = vsel %vm158_vm2, %v13283_v0, 0.0 }
0x531f   :  { %v7846_v39 = vsel %vm158_vm2, %v13277_v63, 0.0 }
0x5320   :  { %7847 = vadd.xlane.f32.xlu1 %v7846_v39  ;;  %v11228_v39 = vld [vmem:[#allocation9 + $0x48] sm:$0xff]  }
0x5321   :  { %11002 = vmatprep.subr.bf16.mxu0 %v11228_v39 }
0x5322   :  { %7850 = vadd.xlane.f32.xlu0 %v7849_v32  ;;  %11003 = vmatpush3.bf16.msra.mxu0 %v11228_v39  ;;  %v11229_v32 = vld [vmem:[#allocation9 + $0x50] sm:$0xff]  }
0x5323   :  { %11004 = vmatprep.subr.bf16.mxu0 %v11229_v32 }
0x5326   :  { %7853 = vadd.xlane.f32.xlu0 %v7852_v24  ;;  %11005 = vmatpush3.bf16.msra.mxu0 %v11229_v32  ;;  %v9936_v24 = vld [vmem:[#allocation10 + $0x2] ss:$0 sm:$0xff] }
0x5327   :  { %11024 = vmatprep.subr.bf16.mxu0 %v11858_v22 }
0x53ab   :  { %v7845_v18 = vpop.xlane.xlu0 %7844 }
0x53ac   :  { %v7855_v25 = vmul.f32 0.03125, %v7845_v18 }
0x53ad   :  { %v7848_v13 = vpop.xlane.xlu1 %7847 }
0x53ae   :  { %v7859_v26 = vsub.f32 %v13271_v10, %v7855_v25  ;;  %v7856_v43 = vmul.f32 0.03125, %v7848_v13 }
0x53af   :  { %v7851_v27 = vpop.xlane.xlu0 %7850 }
0x53b0   :  { %v7860_v4 = vsub.f32 %v13277_v63, %v7856_v43  ;;  %v7857_v20 = vmul.f32 0.03125, %v7851_v27  ;;  %v7863_v23 = vmul.f32 %v7859_v26, %v7859_v26 }
0x53b2   :  { %v7861_v12 = vsub.f32 %v13274_v59, %v7857_v20  ;;  %v7867_v36 = vsel %vm158_vm2, %v7863_v23, 0.0  ;;  %v7864_v29 = vmul.f32 %v7860_v4, %v7860_v4 }
0x53b3   :  { %7868 = vadd.xlane.f32.xlu0 %v7867_v36  ;;  %v7854_v40 = vpop.xlane.xlu0 %7853 }
0x53b4   :  { %v7858_v31 = vmul.f32 0.03125, %v7854_v40  ;;  %v7870_v15 = vsel %vm158_vm2, %v7864_v29, 0.0  ;;  %v7865_v11 = vmul.f32 %v7861_v12, %v7861_v12 }
0x53b5   :  { %7871 = vadd.xlane.f32.xlu1 %v7870_v15 }
0x53b6   :  { %v7862_v19 = vsub.f32 %v13283_v0, %v7858_v31  ;;  %v7873_v28 = vsel %vm158_vm2, %v7865_v11, 0.0  ;;  %v9947_v11 = vld [vmem:[#allocation10 + $0x3] ss:$0 sm:$0xff] }
0x53b7   :  { %7874 = vadd.xlane.f32.xlu0 %v7873_v28 }
0x53b8   :  { %v7866_v51 = vmul.f32 %v7862_v19, %v7862_v19 }
0x53ba   :  { %v7876_v46 = vsel %vm158_vm2, %v7866_v51, 0.0 }
0x53bb   :  { %7877 = vadd.xlane.f32.xlu1 %v7876_v46 }
0x5440   :  { %v7869_v41 = vpop.xlane.xlu0 %7868 }
0x5441   :  { %v7879_v47 = vmul.f32 0.03125, %v7869_v41 }
0x5442   :  { %v7872_v44 = vpop.xlane.xlu1 %7871 }
0x5443   :  { %v7883_v48 = vadd.f32 1e-05, %v7879_v47  ;;  %v7880_v50 = vmul.f32 0.03125, %v7872_v44 }
0x5444   :  { %v7875_v52 = vpop.xlane.xlu0 %7874 }
0x5445   :  { %11634 = vrsqrt.f32 %v7883_v48  ;;  %v7884_v53 = vadd.f32 1e-05, %v7880_v50  ;;  %v7881_v16 = vmul.f32 0.03125, %v7875_v52 }
0x5447   :  { %11636 = vrsqrt.f32 %v7884_v53  ;;  %v7885_v8 = vadd.f32 1e-05, %v7881_v16 }
0x5448   :  { %v7878_v62 = vpop.xlane.xlu1 %7877 }
0x5449   :  { %11638 = vrsqrt.f32 %v7885_v8  ;;  %v7882_v54 = vmul.f32 0.03125, %v7878_v62 }
0x544b   :  { %v7886_v55 = vadd.f32 1e-05, %v7882_v54 }
0x544d   :  { %11640 = vrsqrt.f32 %v7886_v55 }
0x544f   :  { %v11635_v1 = vpop.eup %11634 }
0x5450   :  { %v7891_v56 = vmul.f32 %v11635_v1, %v7859_v26 }
0x5451   :  { %v11637_v14 = vpop.eup %11636 }
0x5452   :  { %v7892_v21 = vmul.f32 %v11637_v14, %v7860_v4  ;;  %v7899_v57 = vmul.f32 %v9934_v17, %v7891_v56 }
0x5453   :  { %v11639_v58 = vpop.eup %11638 }
0x5454   :  { %v7893_v30 = vmul.f32 %v11639_v58, %v7861_v12  ;;  %v7900_v38 = vmul.f32 %v9934_v17, %v7892_v21  ;;  %v7907_v33 = vadd.f32 %v9935_v61, %v7899_v57 }
0x5456   :  { %v7908_v3 = vadd.f32 %v9935_v61, %v7900_v38  ;;  %v7901_v5 = vmul.f32 %v9934_v17, %v7893_v30 }
0x5457   :  { %v11641_v35 = vpop.eup %11640 }
0x5458   :  { %v7894_v37 = vmul.f32 %v11641_v35, %v7862_v19  ;;  %v7915_v6 = vpack.c.bf16 %v7908_v3, %v7907_v33  ;;  %v7909_v2 = vadd.f32 %v9935_v61, %v7901_v5  ;;  %v11230_v3 = vld [vmem:[#allocation9 + $0x58] sm:$0xff]   ;;  %v11231_v35 = vld [vmem:[#allocation9 + $0x60] sm:$0xff]  }
0x5459   :  { %11010 = vmatprep.subr.bf16.mxu1 %v11230_v3 }
0x545a   :  { %v7902_v9 = vmul.f32 %v9934_v17, %v7894_v37  ;;  %10994 = vmatprep.mubr.msk.bf16.mxu1 %vm158_vm2, %v7915_v6 }
0x545c   :  { %v7910_v60 = vadd.f32 %v9935_v61, %v7902_v9 }
0x545e   :  { %v7916_v7 = vpack.c.bf16 %v7910_v60, %v7909_v2 }
0x5460   :  { %10995 = vmatmul.mubr.msk.bf16.vlgmr.msra.gmra.mrb[204].mxu1 %vm158_vm2, %v7916_v7 }
0x5461   :  { %11011 = vmatpush3.bf16.msra.mxu1 %v11230_v3 }
0x5462   :  { %11012 = vmatprep.subr.bf16.mxu1 %v11231_v35 }
0x5465   :  { %11013 = vmatpush3.bf16.msra.mxu1 %v11231_v35 }
0x5466   :  { %11018 = vmatprep.subr.bf16.mxu1 %v11858_v22 }
0x5533   :  { %v10996_v18 = vpop.f32.mrb[204].mxu1 }
0x5534   :  { %v7983_v25 = vadd.f32 %v10996_v18, %v9936_v24  ;;  %v7974_v13 = vpop.f32.mrb[205].mxu1 }
0x5535   :  { %v7975_v26 = vadd.f32 %v9936_v24, %v7974_v13  ;;  %v10997_v43 = vpop.f32.mrb[206].mxu1 }
0x5536   :  { %v7986_v27 = vadd.f32 %v10997_v43, %v9936_v24  ;;  %v7977_v4 = vpop.f32.mrb[207].mxu1  ;;  %v7991_v23 = vmax.f32 %v7983_v25, 0.0 }
0x5537   :  { %v7978_v20 = vadd.f32 %v9936_v24, %v7977_v4  ;;  %v7989_v36 = vmax.f32 %v7975_v26, 0.0  ;;  %v9948_v26 = vld [vmem:[#allocation10 + $0xc] ss:$0 sm:$0xff] }
0x5538   :  { %v7992_v12 = vmax.f32 %v7986_v27, 0.0 }
0x5539   :  { %v7990_v29 = vmax.f32 %v7978_v20, 0.0 }
0x553a   :  { %v8002_v40 = vpack.c.bf16 %v7992_v12, %v7991_v23  ;;  %v9949_v12 = vld [vmem:[#allocation10 + $0xd] ss:$0 sm:$0xff] }
0x553b   :  { %v8001_v31 = vpack.c.bf16 %v7990_v29, %v7989_v36 }
0x553d   :  { %11006 = vmatprep.mubr.msk.bf16.mxu0 %vm1618_vm8, %v8001_v31 }
0x553e   :  { %11007 = vmatmul.mubr.msk.bf16.vlgmr.msra.gmra.mrb[208].mxu0 %vm1618_vm8, %v8002_v40 }
0x553f   :  { %11026 = vmatprep.mubr.msk.bf16.mxu0 %vm11859_vm3, %v11858_v22 }
0x5611   :  { %v11008_v15 = vpop.f32.mrb[208].mxu0 }
0x5612   :  { %v8067_v19 = vpop.f32.mrb[209].mxu0  ;;  %v8084_v28 = vadd.f32 %v11008_v15, %v13274_v59 }
0x5613   :  { %v8082_v51 = vadd.f32 %v8067_v19, %v13271_v10  ;;  %v11009_v46 = vpop.f32.mrb[210].mxu0 }
0x5614   :  { %v8070_v34 = vpop.f32.mrb[211].mxu0  ;;  %v8085_v49 = vadd.f32 %v11009_v46, %v13283_v0  ;;  %v13310_v41 = vadd.f32 %v9947_v11, %v8084_v28 }
0x5615   :  { %v13306_v42 = vadd.f32 %v9947_v11, %v8082_v51  ;;  %v8083_v45 = vadd.f32 %v8070_v34, %v13277_v63 }
0x5616   :  { %v13316_v48 = vadd.f32 %v9947_v11, %v8085_v49  ;;  %v8103_v59 = vsel %vm158_vm2, %v13310_v41, 0.0 }
0x5617   :  { %v13312_v47 = vadd.f32 %v9947_v11, %v8083_v45  ;;  %v8097_v44 = vsel %vm158_vm2, %v13306_v42, 0.0 }
0x5618   :  { %8098 = vadd.xlane.f32.xlu0 %v8097_v44  ;;  %v8106_v63 = vsel %vm158_vm2, %v13316_v48, 0.0  ;;  %v9950_v44 = vld [vmem:[#allocation10 + $0x8] ss:$0 sm:$0xff] }
0x5619   :  { %v8100_v10 = vsel %vm158_vm2, %v13312_v47, 0.0 }
0x561a   :  { %8101 = vadd.xlane.f32.xlu1 %v8100_v10 }
0x561c   :  { %8104 = vadd.xlane.f32.xlu0 %v8103_v59 }
0x561e   :  { %8107 = vadd.xlane.f32.xlu1 %v8106_v63 }
0x56a5   :  { %v8099_v0 = vpop.xlane.xlu0 %8098 }
0x56a6   :  { %v8109_v50 = vmul.f32 0.03125, %v8099_v0 }
0x56a7   :  { %v8102_v52 = vpop.xlane.xlu1 %8101 }
0x56a8   :  { %v8113_v53 = vsub.f32 %v13306_v42, %v8109_v50  ;;  %v8110_v16 = vmul.f32 0.03125, %v8102_v52 }
0x56a9   :  { %v8105_v8 = vpop.xlane.xlu0 %8104 }
0x56aa   :  { %v8114_v62 = vsub.f32 %v13312_v47, %v8110_v16  ;;  %v8111_v54 = vmul.f32 0.03125, %v8105_v8  ;;  %v8117_v55 = vmul.f32 %v8113_v53, %v8113_v53 }
0x56ab   :  { %v8108_v1 = vpop.xlane.xlu1 %8107 }
0x56ac   :  { %v8115_v17 = vsub.f32 %v13310_v41, %v8111_v54  ;;  %v8112_v56 = vmul.f32 0.03125, %v8108_v1  ;;  %v8121_v14 = vsel %vm158_vm2, %v8117_v55, 0.0  ;;  %v8118_v21 = vmul.f32 %v8114_v62, %v8114_v62 }
0x56ad   :  { %8122 = vadd.xlane.f32.xlu0 %v8121_v14 }
0x56ae   :  { %v8116_v57 = vsub.f32 %v13316_v48, %v8112_v56  ;;  %v8124_v58 = vsel %vm158_vm2, %v8118_v21, 0.0  ;;  %v8119_v61 = vmul.f32 %v8115_v17, %v8115_v17 }
0x56af   :  { %8125 = vadd.xlane.f32.xlu1 %v8124_v58 }
0x56b0   :  { %v8127_v30 = vsel %vm158_vm2, %v8119_v61, 0.0  ;;  %v8120_v38 = vmul.f32 %v8116_v57, %v8116_v57 }
0x56b1   :  { %8128 = vadd.xlane.f32.xlu0 %v8127_v30 }
0x56b2   :  { %v8130_v33 = vsel %vm158_vm2, %v8120_v38, 0.0 }
0x56b3   :  { %8131 = vadd.xlane.f32.xlu1 %v8130_v33 }
0x573a   :  { %v8123_v5 = vpop.xlane.xlu0 %8122 }
0x573b   :  { %v8133_v37 = vmul.f32 0.03125, %v8123_v5 }
0x573c   :  { %v8126_v6 = vpop.xlane.xlu1 %8125 }
0x573d   :  { %v8137_v9 = vadd.f32 1e-05, %v8133_v37  ;;  %v8134_v2 = vmul.f32 0.03125, %v8126_v6 }
0x573e   :  { %v8129_v60 = vpop.xlane.xlu0 %8128 }
0x573f   :  { %11642 = vrsqrt.f32 %v8137_v9  ;;  %v8138_v7 = vadd.f32 1e-05, %v8134_v2  ;;  %v8135_v39 = vmul.f32 0.03125, %v8129_v60 }
0x5740   :  { %v8132_v32 = vpop.xlane.xlu1 %8131 }
0x5741   :  { %11644 = vrsqrt.f32 %v8138_v7  ;;  %v8139_v24 = vadd.f32 1e-05, %v8135_v39  ;;  %v8136_v18 = vmul.f32 0.03125, %v8132_v32 }
0x5743   :  { %11646 = vrsqrt.f32 %v8139_v24  ;;  %v8140_v25 = vadd.f32 1e-05, %v8136_v18 }
0x5745   :  { %11648 = vrsqrt.f32 %v8140_v25 }
0x5749   :  { %v11643_v13 = vpop.eup %11642 }
0x574a   :  { %v8145_v43 = vmul.f32 %v11643_v13, %v8113_v53 }
0x574b   :  { %v11645_v27 = vpop.eup %11644 }
0x574c   :  { %v8146_v4 = vmul.f32 %v11645_v27, %v8114_v62  ;;  %v8153_v20 = vmul.f32 %v9948_v26, %v8145_v43 }
0x574d   :  { %v11647_v23 = vpop.eup %11646 }
0x574e   :  { %v8147_v36 = vmul.f32 %v11647_v23, %v8115_v17  ;;  %v8154_v29 = vmul.f32 %v9948_v26, %v8146_v4  ;;  %v8161_v11 = vadd.f32 %v9949_v12, %v8153_v20 }
0x574f   :  { %v11649_v40 = vpop.eup %11648 }
0x5750   :  { %v8155_v31 = vmul.f32 %v9948_v26, %v8147_v36  ;;  %v8148_v15 = vmul.f32 %v11649_v40, %v8116_v57  ;;  %v8162_v19 = vadd.f32 %v9949_v12, %v8154_v29 }
0x5752   :  { %v8156_v28 = vmul.f32 %v9948_v26, %v8148_v15  ;;  %v8169_v51 = vpack.c.bf16 %v8162_v19, %v8161_v11  ;;  %v8163_v46 = vadd.f32 %v9949_v12, %v8155_v31 }
0x5754   :  { %11014 = vmatprep.mubr.msk.bf16.mxu1 %vm158_vm2, %v8169_v51  ;;  %v8164_v34 = vadd.f32 %v9949_v12, %v8156_v28 }
0x5756   :  { %v8170_v49 = vpack.c.bf16 %v8164_v34, %v8163_v46 }
0x5758   :  { %11015 = vmatmul.mubr.msk.bf16.vlgmr.msra.gmra.mrb[208].mxu1 %vm158_vm2, %v8170_v49 }
0x5759   :  { %11020 = vmatprep.mubr.msk.bf16.mxu1 %vm11859_vm3, %v11858_v22 }
0x582b   :  { %v11016_v45 = vpop.f32.mrb[208].mxu1 }
0x582c   :  { %v8228_v10 = vpop.f32.mrb[209].mxu1  ;;  %v8237_v63 = vadd.f32 %v11016_v45, %v9950_v44 }
0x582d   :  { %v11017_v59 = vpop.f32.mrb[210].mxu1  ;;  %v8229_v52 = vadd.f32 %v9950_v44, %v8228_v10 }
0x582e   :  { %v8240_v0 = vadd.f32 %v11017_v59, %v9950_v44  ;;  %v8231_v50 = vpop.f32.mrb[211].mxu1 }
0x582f   :  { %v8232_v53 = vadd.f32 %v9950_v44, %v8231_v50 }
0x5830   :  { %v13337_v16 = vpack.c.bf16 %v8240_v0, %v8237_v63 }
0x5831   :  { %v13339_v8 = vpack.c.bf16 %v8232_v53, %v8229_v52 }
0x5832   :  { %8296 = vrot.lane.b32.xlu1 %v13337_v16, %s11860_s3 }
0x5833   :  { %8246 = vrot.lane.b32.xlu0 %v13339_v8, %s11860_s3 }
0x58a4   :  { %v8297_v62 = vpop.permute.xlu1 %8296 }
0x58a5   :  { %v8302_v54 = vsel %vm311_vm4, %v8297_v62, 0  ;;  %v8247_v55 = vpop.permute.xlu0 %8246 }
0x58a6   :  { %v8252_v1 = vsel %vm311_vm4, %v8247_v55, 0  ;;  %11025 = vmatpush3.bf16.xpose.msra.mxu0 %v8302_v54 }
0x58a7   :  { %11019 = vmatpush3.bf16.xpose.msra.mxu1 %v8252_v1  ;;  %11036 = vmatprep.subr.bf16.mxu0 %v11858_v22 }
0x58a8   :  { %11030 = vmatprep.subr.bf16.mxu1 %v11858_v22 }
0x58ad   :  { %11027 = vmatmul.mubr.msk.bf16.vlgmr.msra.gmra.mrb[212].mxu0 %vm311_vm4, %v13337_v16 }
0x58ae   :  { %11021 = vmatmul.mubr.msk.bf16.vlgmr.msra.gmra.mrb[212].mxu1 %vm311_vm4, %v13339_v8  ;;  %11038 = vmatprep.mubr.msk.bf16.mxu0 %vm11859_vm3, %v11858_v22 }
0x58af   :  { %11032 = vmatprep.mubr.msk.bf16.mxu1 %vm11859_vm3, %v11858_v22 }
0x5980   :  { %v8338_v17 = vpop.f32.mrb[212].mxu0 }
0x5981   :  { %v8288_v56 = vpop.f32.mrb[212].mxu1  ;;  %v11028_v14 = vpop.f32.mrb[213].mxu0  ;;  %v8351_v35 = vsel %vm78_vm0, %v8338_v17, -inf }
0x5982   :  { %v11022_v21 = vpop.f32.mrb[213].mxu1  ;;  %v8341_v57 = vpop.f32.mrb[214].mxu0  ;;  %v8345_v58 = vsel %vm78_vm0, %v8288_v56, -inf }
0x5983   :  { %v11029_v61 = vpop.f32.mrb[215].mxu0  ;;  %8346 = vmax.xlane.f32.xlu1 %v8345_v58  ;;  %v8291_v30 = vpop.f32.mrb[214].mxu1  ;;  %v8354_v3 = vsel %vm78_vm0, %v8341_v57, -inf }
0x5984   :  { %v11023_v38 = vpop.f32.mrb[215].mxu1  ;;  %v8348_v33 = vsel %vm78_vm0, %v8291_v30, -inf }
0x5985   :  { %8349 = vmax.xlane.f32.xlu0 %v8348_v33 }
0x5987   :  { %8355 = vmax.xlane.f32.xlu1 %v8354_v3 }
0x5989   :  { %8352 = vmax.xlane.f32.xlu0 %v8351_v35 }
0x5998   :  { %8438 = vrot.lane.b32.xlu1 %v13337_v16, %s11855_s0 }
0x599c   :  { %8491 = vrot.lane.b32.xlu1 %v13339_v8, %s11861_s27 }
0x5a10   :  { %v8347_v5 = vpop.xlane.xlu1 %8346 }
0x5a11   :  { %v8357_v2 = vsub.f32 %v8288_v56, %v8347_v5 }
0x5a12   :  { %v8350_v37 = vpop.xlane.xlu0 %8349 }
0x5a13   :  { %v8358_v6 = vsub.f32 %v8291_v30, %v8350_v37  ;;  %v8361_v25 = vmul.f32 1.442695, %v8357_v2 }
0x5a14   :  { %v8356_v9 = vpop.xlane.xlu1 %8355 }
0x5a15   :  { %v8360_v60 = vsub.f32 %v8341_v57, %v8356_v9  ;;  %v8363_v7 = vmul.f32 1.442695, %v8358_v6 }
0x5a16   :  { %v8353_v39 = vpop.xlane.xlu0 %8352 }
0x5a17   :  { %v8367_v32 = vmul.f32 1.442695, %v8360_v60  ;;  %v8359_v24 = vsub.f32 %v8338_v17, %v8353_v39 }
0x5a18   :  { %v8439_v18 = vpop.permute.xlu1 %8438 }
0x5a19   :  { %11650 = vpow2.f32 %v8367_v32  ;;  %v8365_v13 = vmul.f32 1.442695, %v8359_v24  ;;  %11037 = vmatpush3.bf16.msra.mxu0 %v8439_v18 }
0x5a1a   :  { %11652 = vpow2.f32 %v8363_v7  ;;  %11048 = vmatprep.subr.bf16.mxu0 %v11858_v22 }
0x5a1b   :  { %11654 = vpow2.f32 %v8365_v13 }
0x5a1c   :  { %11656 = vpow2.f32 %v8361_v25  ;;  %v8492_v29 = vpop.permute.xlu1 %8491 }
0x5a1d   :  { %v8497_v52 = vsel %vm311_vm4, %v8492_v29, 0 }
0x5a23   :  { %v11651_v26 = vpop.eup %11650 }
0x5a24   :  { %v11653_v43 = vpop.eup %11652  ;;  %v8378_v27 = vsel %vm78_vm0, %v11651_v26, 0.0 }
0x5a25   :  { %v11655_v4 = vpop.eup %11654  ;;  %8379 = vadd.xlane.f32.xlu1 %v8378_v27  ;;  %v8372_v12 = vsel %vm78_vm0, %v11653_v43, 0.0 }
0x5a26   :  { %v8375_v20 = vsel %vm78_vm0, %v11655_v4, 0.0  ;;  %v11657_v23 = vpop.eup %11656 }
0x5a27   :  { %8376 = vadd.xlane.f32.xlu0 %v8375_v20  ;;  %v8369_v36 = vsel %vm78_vm0, %v11657_v23, 0.0 }
0x5a29   :  { %8373 = vadd.xlane.f32.xlu1 %v8372_v12 }
0x5a2b   :  { %8370 = vadd.xlane.f32.xlu0 %v8369_v36 }
0x5a3a   :  { %8542 = vrot.lane.b32.xlu1 %v13337_v16, %s11861_s27 }
0x5a3e   :  { %8540 = vrot.lane.b32.xlu1 %v13337_v16, %s11862_s13 }
0x5a41   :  { %8391 = vrot.lane.b32.xlu0 %v13339_v8, %s11855_s0 }
0x5a45   :  { %8489 = vrot.lane.b32.xlu0 %v13339_v8, %s11862_s13 }
0x5ab2   :  { %v8380_v40 = vpop.xlane.xlu1 %8379 }
0x5ab3   :  { %11658 = vrcp.f32 %v8380_v40 }
0x5ab4   :  { %v8377_v31 = vpop.xlane.xlu0 %8376 }
0x5ab5   :  { %11660 = vrcp.f32 %v8377_v31 }
0x5ab6   :  { %v8374_v15 = vpop.xlane.xlu1 %8373 }
0x5ab7   :  { %11662 = vrcp.f32 %v8374_v15 }
0x5ab8   :  { %v8371_v11 = vpop.xlane.xlu0 %8370 }
0x5ab9   :  { %11664 = vrcp.f32 %v8371_v11 }
0x5aba   :  { %v8543_v45 = vpop.permute.xlu1 %8542 }
0x5abb   :  { %v8548_v0 = vsel %vm311_vm4, %v8543_v45, 0 }
0x5abc   :  { %v8392_v19 = vpop.permute.xlu0 %8391 }
0x5abd   :  { %v11659_v28 = vpop.eup %11658  ;;  %11031 = vmatpush3.bf16.msra.mxu1 %v8392_v19 }
0x5abe   :  { %11042 = vmatprep.subr.bf16.mxu1 %v11858_v22  ;;  %v8388_v46 = vmul.f32 %v11659_v28, %v11651_v26  ;;  %v8541_v53 = vpop.permute.xlu1 %8540 }
0x5abf   :  { %v11661_v51 = vpop.eup %11660 }
0x5ac0   :  { %v8387_v34 = vmul.f32 %v11661_v51, %v11655_v4  ;;  %v8490_v62 = vpop.permute.xlu0 %8489 }
0x5ac1   :  { %v11663_v49 = vpop.eup %11662 }
0x5ac2   :  { %v8390_v44 = vpack.c.bf16 %v8388_v46, %v8387_v34  ;;  %v8386_v59 = vmul.f32 %v11663_v49, %v11653_v43 }
0x5ac3   :  { %v11665_v10 = vpop.eup %11664 }
0x5ac4   :  { %v8385_v63 = vmul.f32 %v11665_v10, %v11657_v23  ;;  %11039 = vmatmul.mubr.msk.bf16.vlgmr.msra.gmra.mrb[216].mxu0 %vm78_vm0, %v8390_v44 }
0x5ac5   :  { %11049 = vmatpush3.bf16.xpose.msra.mxu0 %v8548_v0  ;;  %11050 = vmatprep.mubr.msk.bf16.mxu0 %vm11859_vm3, %v11858_v22 }
0x5ac6   :  { %v8389_v50 = vpack.c.bf16 %v8386_v59, %v8385_v63  ;;  %11060 = vmatprep.subr.bf16.mxu0 %v11858_v22 }
0x5ac8   :  { %11033 = vmatmul.mubr.msk.bf16.vlgmr.msra.gmra.mrb[216].mxu1 %vm78_vm0, %v8389_v50 }
0x5ac9   :  { %11043 = vmatpush3.bf16.xpose.msra.mxu1 %v8497_v52  ;;  %11044 = vmatprep.mubr.msk.bf16.mxu1 %vm11859_vm3, %v11858_v22 }
0x5aca   :  { %11054 = vmatprep.subr.bf16.mxu1 %v11858_v22 }
0x5acc   :  { %11051 = vmatmul.mubr.msk.bf16.vlgmr.msra.gmra.mrb[220].mxu0 %vm311_vm4, %v8541_v53 }
0x5acd   :  { %11062 = vmatprep.mubr.msk.bf16.mxu0 %vm11859_vm3, %v11858_v22 }
0x5ad0   :  { %11045 = vmatmul.mubr.msk.bf16.vlgmr.msra.gmra.mrb[220].mxu1 %vm311_vm4, %v8490_v62 }
0x5ad1   :  { %11056 = vmatprep.mubr.msk.bf16.mxu1 %vm11859_vm3, %v11858_v22 }
0x5b97   :  { %v8478_v54 = vpop.f32.mrb[216].mxu0 }
0x5b98   :  { %8487 = vst.msk [vmem:[#allocation3 + $0x10] sm:$0xff] %vm311_vm4, %v8478_v54  ;;  %v11040_v55 = vpop.f32.mrb[217].mxu0 }
0x5b99   :  { %v8481_v1 = vpop.f32.mrb[218].mxu0 }
0x5b9a   :  { %8488 = vst.msk [vmem:[#allocation3 + $0x18] sm:$0xff] %vm311_vm4, %v8481_v1  ;;  %v11041_v17 = vpop.f32.mrb[219].mxu0 }
0x5b9b   :  { %v8431_v56 = vpop.f32.mrb[216].mxu1 }
0x5b9c   :  { %8485 = vst.msk [vmem:[#allocation3] sm:$0xff] %vm311_vm4, %v8431_v56  ;;  %v11034_v14 = vpop.f32.mrb[217].mxu1 }
0x5b9d   :  { %v8434_v21 = vpop.f32.mrb[218].mxu1 }
0x5b9e   :  { %8486 = vst.msk [vmem:[#allocation3 + $0x8] sm:$0xff] %vm311_vm4, %v8434_v21  ;;  %v11035_v57 = vpop.f32.mrb[219].mxu1 }
0x5b9f   :  { %v8584_v58 = vpop.f32.mrb[220].mxu0 }
0x5ba0   :  { %v11052_v61 = vpop.f32.mrb[221].mxu0  ;;  %v8597_v9 = vsel %vm78_vm0, %v8584_v58, -inf }
0x5ba1   :  { %v8587_v30 = vpop.f32.mrb[222].mxu0 }
0x5ba2   :  { %v11053_v38 = vpop.f32.mrb[223].mxu0  ;;  %v8600_v2 = vsel %vm78_vm0, %v8587_v30, -inf }
0x5ba3   :  { %v8533_v33 = vpop.f32.mrb[220].mxu1 }
0x5ba4   :  { %v11046_v3 = vpop.f32.mrb[221].mxu1  ;;  %v8591_v35 = vsel %vm78_vm0, %v8533_v33, -inf }
0x5ba5   :  { %8592 = vmax.xlane.f32.xlu0 %v8591_v35  ;;  %v8536_v5 = vpop.f32.mrb[222].mxu1 }
0x5ba6   :  { %v11047_v37 = vpop.f32.mrb[223].mxu1  ;;  %v8594_v6 = vsel %vm78_vm0, %v8536_v5, -inf }
0x5ba7   :  { %8595 = vmax.xlane.f32.xlu1 %v8594_v6 }
0x5ba9   :  { %8598 = vmax.xlane.f32.xlu0 %v8597_v9 }
0x5bad   :  { %8601 = vmax.xlane.f32.xlu0 %v8600_v2 }
0x5bb8   :  { %8684 = vrot.lane.b32.xlu1 %v13337_v16, %s11863_s14 }
0x5bbc   :  { %8753 = vrot.lane.b32.xlu1 %v13339_v8, %s11864_s15 }
0x5c32   :  { %v8593_v60 = vpop.xlane.xlu0 %8592 }
0x5c33   :  { %v8603_v39 = vsub.f32 %v8533_v33, %v8593_v60 }
0x5c34   :  { %v8596_v7 = vpop.xlane.xlu1 %8595 }
0x5c35   :  { %v8607_v25 = vmul.f32 1.442695, %v8603_v39  ;;  %v8604_v13 = vsub.f32 %v8536_v5, %v8596_v7 }
0x5c36   :  { %v8599_v32 = vpop.xlane.xlu0 %8598 }
0x5c37   :  { %v8605_v24 = vsub.f32 %v8584_v58, %v8599_v32  ;;  %v8609_v4 = vmul.f32 1.442695, %v8604_v13 }
0x5c38   :  { %v8685_v18 = vpop.permute.xlu1 %8684 }
0x5c39   :  { %v8611_v26 = vmul.f32 1.442695, %v8605_v24  ;;  %11061 = vmatpush3.bf16.msra.mxu0 %v8685_v18 }
0x5c3a   :  { %v8602_v43 = vpop.xlane.xlu0 %8601  ;;  %11072 = vmatprep.subr.bf16.mxu0 %v11858_v22 }
0x5c3b   :  { %11666 = vpow2.f32 %v8611_v26  ;;  %v8606_v27 = vsub.f32 %v8587_v30, %v8602_v43 }
0x5c3c   :  { %11668 = vpow2.f32 %v8607_v25  ;;  %v8754_v19 = vpop.permute.xlu1 %8753 }
0x5c3d   :  { %v8613_v20 = vmul.f32 1.442695, %v8606_v27  ;;  %v8759_v1 = vsel %vm311_vm4, %v8754_v19, 0 }
0x5c3f   :  { %11670 = vpow2.f32 %v8613_v20 }
0x5c40   :  { %11672 = vpow2.f32 %v8609_v4 }
0x5c45   :  { %v11667_v23 = vpop.eup %11666 }
0x5c46   :  { %v8621_v12 = vsel %vm78_vm0, %v11667_v23, 0.0  ;;  %v11669_v36 = vpop.eup %11668 }
0x5c47   :  { %8622 = vadd.xlane.f32.xlu0 %v8621_v12  ;;  %v8615_v40 = vsel %vm78_vm0, %v11669_v36, 0.0 }
0x5c49   :  { %v11671_v29 = vpop.eup %11670 }
0x5c4a   :  { %v8624_v31 = vsel %vm78_vm0, %v11671_v29, 0.0  ;;  %v11673_v15 = vpop.eup %11672 }
0x5c4b   :  { %8616 = vadd.xlane.f32.xlu0 %v8615_v40  ;;  %8625 = vadd.xlane.f32.xlu1 %v8624_v31  ;;  %v8618_v11 = vsel %vm78_vm0, %v11673_v15, 0.0 }
0x5c4f   :  { %8619 = vadd.xlane.f32.xlu1 %v8618_v11 }
0x5c60   :  { %8804 = vrot.lane.b32.xlu1 %v13337_v16, %s11864_s15 }
0x5c61   :  { %8637 = vrot.lane.b32.xlu0 %v13339_v8, %s11863_s14 }
0x5c64   :  { %8802 = vrot.lane.b32.xlu1 %v13337_v16, %s11865_s16 }
0x5c65   :  { %8751 = vrot.lane.b32.xlu0 %v13339_v8, %s11865_s16 }
0x5cd4   :  { %v8623_v28 = vpop.xlane.xlu0 %8622 }
0x5cd5   :  { %11674 = vrcp.f32 %v8623_v28 }
0x5cd8   :  { %v8617_v51 = vpop.xlane.xlu0 %8616  ;;  %v8626_v46 = vpop.xlane.xlu1 %8625 }
0x5cd9   :  { %11676 = vrcp.f32 %v8626_v46 }
0x5cda   :  { %11678 = vrcp.f32 %v8617_v51 }
0x5cdc   :  { %v8638_v34 = vpop.permute.xlu0 %8637  ;;  %v8620_v49 = vpop.xlane.xlu1 %8619 }
0x5cdd   :  { %11680 = vrcp.f32 %v8620_v49  ;;  %11055 = vmatpush3.bf16.msra.mxu1 %v8638_v34 }
0x5cde   :  { %11066 = vmatprep.subr.bf16.mxu1 %v11858_v22 }
0x5cdf   :  { %v11675_v45 = vpop.eup %11674 }
0x5ce0   :  { %v8633_v59 = vmul.f32 %v11675_v45, %v11667_v23  ;;  %v8805_v0 = vpop.permute.xlu1 %8804  ;;  %v8752_v56 = vpop.permute.xlu0 %8751 }
0x5ce1   :  { %v8810_v54 = vsel %vm311_vm4, %v8805_v0, 0 }
0x5ce3   :  { %v11677_v44 = vpop.eup %11676 }
0x5ce4   :  { %v11679_v10 = vpop.eup %11678  ;;  %v8634_v63 = vmul.f32 %v11677_v44, %v11671_v29  ;;  %v8803_v17 = vpop.permute.xlu1 %8802 }
0x5ce5   :  { %v8631_v53 = vmul.f32 %v11679_v10, %v11669_v36 }
0x5ce6   :  { %v8636_v52 = vpack.c.bf16 %v8634_v63, %v8633_v59 }
0x5ce7   :  { %v11681_v50 = vpop.eup %11680 }
0x5ce8   :  { %v8632_v62 = vmul.f32 %v11681_v50, %v11673_v15  ;;  %11063 = vmatmul.mubr.msk.bf16.vlgmr.msra.gmra.mrb[224].mxu0 %vm78_vm0, %v8636_v52 }
0x5ce9   :  { %11073 = vmatpush3.bf16.xpose.msra.mxu0 %v8810_v54  ;;  %11074 = vmatprep.mubr.msk.bf16.mxu0 %vm11859_vm3, %v11858_v22 }
0x5cea   :  { %v8635_v55 = vpack.c.bf16 %v8632_v62, %v8631_v53  ;;  %11084 = vmatprep.subr.bf16.mxu0 %v11858_v22 }
0x5cec   :  { %11057 = vmatmul.mubr.msk.bf16.vlgmr.msra.gmra.mrb[224].mxu1 %vm78_vm0, %v8635_v55 }
0x5ced   :  { %11067 = vmatpush3.bf16.xpose.msra.mxu1 %v8759_v1  ;;  %11068 = vmatprep.mubr.msk.bf16.mxu1 %vm11859_vm3, %v11858_v22 }
0x5cee   :  { %11078 = vmatprep.subr.bf16.mxu1 %v11858_v22 }
0x5cf0   :  { %11075 = vmatmul.mubr.msk.bf16.vlgmr.msra.gmra.mrb[228].mxu0 %vm311_vm4, %v8803_v17 }
0x5cf1   :  { %11086 = vmatprep.mubr.msk.bf16.mxu0 %vm11859_vm3, %v11858_v22 }
0x5cf4   :  { %11069 = vmatmul.mubr.msk.bf16.vlgmr.msra.gmra.mrb[228].mxu1 %vm311_vm4, %v8752_v56 }
0x5cf5   :  { %11080 = vmatprep.mubr.msk.bf16.mxu1 %vm11859_vm3, %v11858_v22 }
0x5dbb   :  { %v13437_v14 = vpop.f32.mrb[224].mxu0 }
0x5dbc   :  { %v11064_v21 = vpop.f32.mrb[225].mxu0 }
0x5dbd   :  { %v13439_v57 = vpop.f32.mrb[226].mxu0 }
0x5dbe   :  { %v11065_v58 = vpop.f32.mrb[227].mxu0 }
0x5dbf   :  { %v13441_v61 = vpop.f32.mrb[224].mxu1 }
0x5dc0   :  { %v11058_v30 = vpop.f32.mrb[225].mxu1 }
0x5dc1   :  { %v13443_v38 = vpop.f32.mrb[226].mxu1 }
0x5dc2   :  { %v11059_v33 = vpop.f32.mrb[227].mxu1 }
0x5dc3   :  { %v8846_v3 = vpop.f32.mrb[228].mxu0 }
0x5dc4   :  { %v11076_v35 = vpop.f32.mrb[229].mxu0  ;;  %v8859_v32 = vsel %vm78_vm0, %v8846_v3, -inf }
0x5dc5   :  { %v8849_v5 = vpop.f32.mrb[230].mxu0 }
0x5dc6   :  { %v11077_v37 = vpop.f32.mrb[231].mxu0  ;;  %v8862_v24 = vsel %vm78_vm0, %v8849_v5, -inf }
0x5dc7   :  { %v8795_v6 = vpop.f32.mrb[228].mxu1 }
0x5dc8   :  { %v11070_v9 = vpop.f32.mrb[229].mxu1  ;;  %v8853_v2 = vsel %vm78_vm0, %v8795_v6, -inf }
0x5dc9   :  { %8854 = vmax.xlane.f32.xlu0 %v8853_v2  ;;  %v8798_v60 = vpop.f32.mrb[230].mxu1 }
0x5dca   :  { %v11071_v7 = vpop.f32.mrb[231].mxu1  ;;  %v8856_v39 = vsel %vm78_vm0, %v8798_v60, -inf }
0x5dcb   :  { %8857 = vmax.xlane.f32.xlu1 %v8856_v39 }
0x5dcd   :  { %8860 = vmax.xlane.f32.xlu0 %v8859_v32 }
0x5dd1   :  { %8863 = vmax.xlane.f32.xlu0 %v8862_v24 }
0x5ddc   :  { %8946 = vrot.lane.b32.xlu1 %v13337_v16, %s11866_s17 }
0x5de0   :  { %9015 = vrot.lane.b32.xlu1 %v13339_v8, %s11867_s19 }
0x5e56   :  { %v8855_v18 = vpop.xlane.xlu0 %8854 }
0x5e57   :  { %v8865_v13 = vsub.f32 %v8795_v6, %v8855_v18 }
0x5e58   :  { %v8858_v25 = vpop.xlane.xlu1 %8857 }
0x5e59   :  { %v8869_v4 = vmul.f32 1.442695, %v8865_v13  ;;  %v8866_v20 = vsub.f32 %v8798_v60, %v8858_v25 }
0x5e5a   :  { %v8861_v26 = vpop.xlane.xlu0 %8860 }
0x5e5b   :  { %v8867_v43 = vsub.f32 %v8846_v3, %v8861_v26  ;;  %v8871_v29 = vmul.f32 1.442695, %v8866_v20 }
0x5e5c   :  { %v8947_v27 = vpop.permute.xlu1 %8946 }
0x5e5d   :  { %v8873_v23 = vmul.f32 1.442695, %v8867_v43  ;;  %11085 = vmatpush3.bf16.msra.mxu0 %v8947_v27 }
0x5e5e   :  { %v8864_v12 = vpop.xlane.xlu0 %8863  ;;  %11096 = vmatprep.subr.bf16.mxu0 %v11858_v22 }
0x5e5f   :  { %11682 = vpow2.f32 %v8873_v23  ;;  %v8868_v36 = vsub.f32 %v8849_v5, %v8864_v12 }
0x5e60   :  { %11684 = vpow2.f32 %v8869_v4  ;;  %v9016_v49 = vpop.permute.xlu1 %9015 }
0x5e61   :  { %v8875_v40 = vmul.f32 1.442695, %v8868_v36  ;;  %v9021_v30 = vsel %vm311_vm4, %v9016_v49, 0 }
0x5e63   :  { %11686 = vpow2.f32 %v8875_v40 }
0x5e64   :  { %11688 = vpow2.f32 %v8871_v29 }
0x5e69   :  { %v11683_v31 = vpop.eup %11682 }
0x5e6a   :  { %v8883_v15 = vsel %vm78_vm0, %v11683_v31, 0.0  ;;  %v11685_v11 = vpop.eup %11684 }
0x5e6b   :  { %8884 = vadd.xlane.f32.xlu0 %v8883_v15  ;;  %v8877_v28 = vsel %vm78_vm0, %v11685_v11, 0.0 }
0x5e6d   :  { %v11687_v19 = vpop.eup %11686 }
0x5e6e   :  { %v8886_v51 = vsel %vm78_vm0, %v11687_v19, 0.0  ;;  %v11689_v46 = vpop.eup %11688 }
0x5e6f   :  { %8878 = vadd.xlane.f32.xlu0 %v8877_v28  ;;  %8887 = vadd.xlane.f32.xlu1 %v8886_v51  ;;  %v8880_v34 = vsel %vm78_vm0, %v11689_v46, 0.0 }
0x5e73   :  { %8881 = vadd.xlane.f32.xlu1 %v8880_v34 }
0x5e84   :  { %9066 = vrot.lane.b32.xlu1 %v13337_v16, %s11867_s19 }
0x5e85   :  { %8899 = vrot.lane.b32.xlu0 %v13339_v8, %s11866_s17 }
0x5e88   :  { %9064 = vrot.lane.b32.xlu1 %v13337_v16, %s11868_s20 }
0x5e89   :  { %9013 = vrot.lane.b32.xlu0 %v13339_v8, %s11868_s20 }
0x5ef8   :  { %v8885_v45 = vpop.xlane.xlu0 %8884 }
0x5ef9   :  { %11690 = vrcp.f32 %v8885_v45 }
0x5efc   :  { %v8879_v44 = vpop.xlane.xlu0 %8878  ;;  %v8888_v10 = vpop.xlane.xlu1 %8887 }
0x5efd   :  { %11692 = vrcp.f32 %v8888_v10 }
0x5efe   :  { %11694 = vrcp.f32 %v8879_v44 }
0x5f00   :  { %v8900_v59 = vpop.permute.xlu0 %8899  ;;  %v8882_v63 = vpop.xlane.xlu1 %8881 }
0x5f01   :  { %11696 = vrcp.f32 %v8882_v63  ;;  %11079 = vmatpush3.bf16.msra.mxu1 %v8900_v59 }
0x5f02   :  { %11090 = vmatprep.subr.bf16.mxu1 %v11858_v22 }
0x5f03   :  { %v11691_v0 = vpop.eup %11690 }
0x5f04   :  { %v8895_v53 = vmul.f32 %v11691_v0, %v11683_v31  ;;  %v9067_v54 = vpop.permute.xlu1 %9066  ;;  %v9014_v3 = vpop.permute.xlu0 %9013 }
0x5f05   :  { %v9072_v21 = vsel %vm311_vm4, %v9067_v54, 0 }
0x5f07   :  { %v11693_v50 = vpop.eup %11692 }
0x5f08   :  { %v11695_v52 = vpop.eup %11694  ;;  %v8896_v62 = vmul.f32 %v11693_v50, %v11687_v19  ;;  %v9065_v33 = vpop.permute.xlu1 %9064 }
0x5f09   :  { %v8893_v17 = vmul.f32 %v11695_v52, %v11685_v11 }
0x5f0a   :  { %v8898_v1 = vpack.c.bf16 %v8896_v62, %v8895_v53 }
0x5f0b   :  { %v11697_v55 = vpop.eup %11696 }
0x5f0c   :  { %v8894_v56 = vmul.f32 %v11697_v55, %v11689_v46  ;;  %11087 = vmatmul.mubr.msk.bf16.vlgmr.msra.gmra.mrb[232].mxu0 %vm78_vm0, %v8898_v1 }
0x5f0d   :  { %11097 = vmatpush3.bf16.xpose.msra.mxu0 %v9072_v21  ;;  %11098 = vmatprep.mubr.msk.bf16.mxu0 %vm11859_vm3, %v11858_v22 }
0x5f0e   :  { %v8897_v58 = vpack.c.bf16 %v8894_v56, %v8893_v17  ;;  %11108 = vmatprep.subr.bf16.mxu0 %v11858_v22 }
0x5f10   :  { %11081 = vmatmul.mubr.msk.bf16.vlgmr.msra.gmra.mrb[232].mxu1 %vm78_vm0, %v8897_v58 }
0x5f11   :  { %11091 = vmatpush3.bf16.xpose.msra.mxu1 %v9021_v30  ;;  %11092 = vmatprep.mubr.msk.bf16.mxu1 %vm11859_vm3, %v11858_v22 }
0x5f12   :  { %11102 = vmatprep.subr.bf16.mxu1 %v11858_v22 }
0x5f14   :  { %11099 = vmatmul.mubr.msk.bf16.vlgmr.msra.gmra.mrb[236].mxu0 %vm311_vm4, %v9065_v33 }
0x5f15   :  { %11110 = vmatprep.mubr.msk.bf16.mxu0 %vm11859_vm3, %v11858_v22 }
0x5f18   :  { %11093 = vmatmul.mubr.msk.bf16.vlgmr.msra.gmra.mrb[236].mxu1 %vm311_vm4, %v9014_v3 }
0x5f19   :  { %11104 = vmatprep.mubr.msk.bf16.mxu1 %vm11859_vm3, %v11858_v22 }
0x5fdf   :  { %v8986_v35 = vpop.f32.mrb[232].mxu0 }
0x5fe0   :  { %v11088_v5 = vpop.f32.mrb[233].mxu0 }
0x5fe1   :  { %v8989_v37 = vpop.f32.mrb[234].mxu0 }
0x5fe2   :  { %v11089_v6 = vpop.f32.mrb[235].mxu0 }
0x5fe3   :  { %v8939_v9 = vpop.f32.mrb[232].mxu1 }
0x5fe4   :  { %v11082_v2 = vpop.f32.mrb[233].mxu1 }
0x5fe5   :  { %v8942_v60 = vpop.f32.mrb[234].mxu1  ;;  %v11233_v2 = vld [vmem:[#allocation9 + $0x70] sm:$0xff]  }
0x5fe6   :  { %v11083_v7 = vpop.f32.mrb[235].mxu1 }
0x5fe7   :  { %v9108_v39 = vpop.f32.mrb[236].mxu0 }
0x5fe8   :  { %v11100_v32 = vpop.f32.mrb[237].mxu0  ;;  %v9121_v4 = vsel %vm78_vm0, %v9108_v39, -inf }
0x5fe9   :  { %v9111_v24 = vpop.f32.mrb[238].mxu0 }
0x5fea   :  { %v11101_v18 = vpop.f32.mrb[239].mxu0  ;;  %v9124_v20 = vsel %vm78_vm0, %v9111_v24, -inf }
0x5feb   :  { %v9057_v25 = vpop.f32.mrb[236].mxu1 }
0x5fec   :  { %v11094_v13 = vpop.f32.mrb[237].mxu1  ;;  %v9115_v26 = vsel %vm78_vm0, %v9057_v25, -inf }
0x5fed   :  { %9116 = vmax.xlane.f32.xlu0 %v9115_v26  ;;  %v9060_v43 = vpop.f32.mrb[238].mxu1 }
0x5fee   :  { %v11095_v27 = vpop.f32.mrb[239].mxu1  ;;  %v9118_v22 = vsel %vm78_vm0, %v9060_v43, -inf }
0x5fef   :  { %9119 = vmax.xlane.f32.xlu1 %v9118_v22 }
0x5ff1   :  { %9122 = vmax.xlane.f32.xlu0 %v9121_v4 }
0x5ff5   :  { %9125 = vmax.xlane.f32.xlu0 %v9124_v20 }
0x607a   :  { %v9117_v23 = vpop.xlane.xlu0 %9116 }
0x607b   :  { %v9127_v12 = vsub.f32 %v9057_v25, %v9117_v23 }
0x607c   :  { %v9120_v36 = vpop.xlane.xlu1 %9119 }
0x607d   :  { %v9131_v31 = vmul.f32 1.442695, %v9127_v12  ;;  %v9128_v15 = vsub.f32 %v9060_v43, %v9120_v36 }
0x607e   :  { %v9123_v29 = vpop.xlane.xlu0 %9122 }
0x607f   :  { %v9129_v40 = vsub.f32 %v9108_v39, %v9123_v29  ;;  %v9133_v51 = vmul.f32 1.442695, %v9128_v15 }
0x6081   :  { %v9135_v11 = vmul.f32 1.442695, %v9129_v40 }
0x6082   :  { %v9126_v19 = vpop.xlane.xlu0 %9125 }
0x6083   :  { %11698 = vpow2.f32 %v9135_v11  ;;  %v9130_v28 = vsub.f32 %v9111_v24, %v9126_v19 }
0x6084   :  { %11700 = vpow2.f32 %v9131_v31  ;;  %v9975_v31 = vld [vmem:[#allocation10 + $0x9] ss:$0 sm:$0xff] }
0x6085   :  { %v9137_v46 = vmul.f32 1.442695, %v9130_v28 }
0x6087   :  { %11702 = vpow2.f32 %v9137_v46 }
0x6088   :  { %11704 = vpow2.f32 %v9133_v51 }
0x608d   :  { %v11699_v34 = vpop.eup %11698 }
0x608e   :  { %v9145_v49 = vsel %vm78_vm0, %v11699_v34, 0.0  ;;  %v11701_v45 = vpop.eup %11700 }
0x608f   :  { %9146 = vadd.xlane.f32.xlu0 %v9145_v49  ;;  %v9139_v10 = vsel %vm78_vm0, %v11701_v45, 0.0 }
0x6091   :  { %v11703_v44 = vpop.eup %11702 }
0x6092   :  { %v9148_v59 = vsel %vm78_vm0, %v11703_v44, 0.0  ;;  %v11705_v63 = vpop.eup %11704 }
0x6093   :  { %9140 = vadd.xlane.f32.xlu0 %v9139_v10  ;;  %9149 = vadd.xlane.f32.xlu1 %v9148_v59  ;;  %v9142_v0 = vsel %vm78_vm0, %v11705_v63, 0.0 }
0x6097   :  { %9143 = vadd.xlane.f32.xlu1 %v9142_v0 }
0x60a8   :  { %9208 = vrot.lane.b32.xlu1 %v13337_v16, %s11869_s21 }
0x60a9   :  { %9161 = vrot.lane.b32.xlu0 %v13339_v8, %s11869_s21 }
0x60ac   :  { %8735 = vrot.lane.b32.xlu1 %v13441_v61, %s11853_s28 }
0x60ad   :  { %8739 = vrot.lane.b32.xlu0 %v13437_v14, %s11853_s28 }
0x60b0   :  { %8737 = vrot.lane.b32.xlu1 %v13443_v38, %s11853_s28 }
0x60b1   :  { %8997 = vrot.lane.b32.xlu0 %v8939_v9, %s11870_s22  ;;  %v11232_v9 = vld [vmem:[#allocation9 + $0x68] sm:$0xff]  }
0x60b4   :  { %8741 = vrot.lane.b32.xlu1 %v13439_v57, %s11853_s28  ;;  %s11872_s28 = smov [#allocation12]  }
0x60b5   :  { %9001 = vrot.lane.b32.xlu0 %v8986_v35, %s11870_s22  ;;  %s9705_s24 = sshll.u32 %s11872_s28, 4  ;;  %s9706_s24 = int_to_ptr.vmem [resolvable:$true] %s9705_s24 }
0x60b6   :  { %s11820_s25 = scalar_lea.vmem %s9706_s24, 384  ;;  %p11825_p5 = scmp.lt.s32.totalorder %s9706_s24, %s9706_s24 }
0x60b7   :  { %p11821_p4 = scmp.ne.s32.totalorder %s9706_s24, %s11820_s25  ;;  %p11826_p6 = scmp.lt.s32.totalorder %s11820_s25, %s11820_s25 }
0x60b8   :  { %8999 = vrot.lane.b32.xlu1 %v8942_v60, %s11870_s22 }
0x60b9   :  { %p11827_p7 = por %p11826_p6, %p11825_p5 }
0x60bb   :  { %p11828_p8 = pnand %p11827_p7, %p11821_p4 }
0x60bc   :  { %9003 = vrot.lane.b32.xlu1 %v8989_v37, %s11870_s22 }
0x611c   :  { %v9147_v16 = vpop.xlane.xlu0 %9146 }
0x611d   :  { %11706 = vrcp.f32 %v9147_v16 }
0x6120   :  { %v9141_v8 = vpop.xlane.xlu0 %9140  ;;  %v9150_v61 = vpop.xlane.xlu1 %9149 }
0x6121   :  { %11708 = vrcp.f32 %v9150_v61 }
0x6122   :  { %11710 = vrcp.f32 %v9141_v8 }
0x6124   :  { %v9162_v14 = vpop.permute.xlu0 %9161  ;;  %v9144_v50 = vpop.xlane.xlu1 %9143 }
0x6125   :  { %11712 = vrcp.f32 %v9144_v50  ;;  %11103 = vmatpush3.bf16.msra.mxu1 %v9162_v14 }
0x6126   :  { %11114 = vmatprep.subr.bf16.mxu1 %v11232_v9 }
0x6127   :  { %v11707_v57 = vpop.eup %11706 }
0x6128   :  { %v8740_v38 = vpop.permute.xlu0 %8739  ;;  %v9209_v52 = vpop.permute.xlu1 %9208  ;;  %v9157_v1 = vmul.f32 %v11707_v57, %v11699_v34 }
0x6129   :  { %8749 = vst.msk [vmem:[#allocation3 + $0x10] sm:$0xff] %vm811_vm5, %v8740_v38  ;;  %11109 = vmatpush3.bf16.msra.mxu0 %v9209_v52 }
0x612b   :  { %v11709_v53 = vpop.eup %11708 }
0x612c   :  { %v8998_v62 = vpop.permute.xlu0 %8997  ;;  %v8736_v54 = vpop.permute.xlu1 %8735  ;;  %v9158_v17 = vmul.f32 %v11709_v53, %v11703_v44 }
0x612d   :  { %v11711_v55 = vpop.eup %11710  ;;  %8747 = vst.msk [vmem:[#allocation3] sm:$0xff] %vm811_vm5, %v8736_v54 }
0x612e   :  { %9009 = vst.msk [vmem:[#allocation3] sm:$0xff] %vm1074_vm6, %v8998_v62  ;;  %v9160_v21 = vpack.c.bf16 %v9158_v17, %v9157_v1  ;;  %v9155_v58 = vmul.f32 %v11711_v55, %v11701_v45 }
0x612f   :  { %v11713_v56 = vpop.eup %11712 }
0x6130   :  { %v9156_v30 = vmul.f32 %v11713_v56, %v11705_v63  ;;  %v9002_v33 = vpop.permute.xlu0 %9001  ;;  %v8738_v3 = vpop.permute.xlu1 %8737  ;;  %11111 = vmatmul.mubr.msk.bf16.vlgmr.msra.gmra.mrb[240].mxu0 %vm78_vm0, %v9160_v21 }
0x6131   :  { %9011 = vst.msk [vmem:[#allocation3 + $0x10] sm:$0xff] %vm1074_vm6, %v9002_v33  ;;  %v11235_v33 = vld [vmem:[#allocation9 + $0x80] sm:$0xff]  }
0x6132   :  { %8748 = vst.msk [vmem:[#allocation3 + $0x8] sm:$0xff] %vm811_vm5, %v8738_v3  ;;  %v9159_v35 = vpack.c.bf16 %v9156_v30, %v9155_v58  ;;  %v11234_v30 = vld [vmem:[#allocation9 + $0x78] sm:$0xff]   ;;  %v11236_v3 = vld [vmem:[#allocation9 + $0x88] sm:$0xff]  }
0x6133   :  { %11122 = vmatprep.subr.bf16.mxu0 %v11234_v30 }
0x6134   :  { %11105 = vmatmul.mubr.msk.bf16.vlgmr.msra.gmra.mrb[240].mxu1 %vm78_vm0, %v9159_v35  ;;  %v8742_v5 = vpop.permute.xlu1 %8741  ;;  %11123 = vmatpush3.bf16.msra.mxu0 %v11234_v30  ;;  %v11237_v35 = vld [vmem:[#allocation9 + $0x90] sm:$0xff]  }
0x6135   :  { %8750 = vst.msk [vmem:[#allocation3 + $0x18] sm:$0xff] %vm811_vm5, %v8742_v5  ;;  %11115 = vmatpush3.bf16.msra.mxu1 %v11232_v9  ;;  %11124 = vmatprep.subr.bf16.mxu0 %v11235_v33 }
0x6136   :  { %11116 = vmatprep.subr.bf16.mxu1 %v11233_v2 }
0x6138   :  { %v9000_v37 = vpop.permute.xlu1 %8999  ;;  %11125 = vmatpush3.bf16.msra.mxu0 %v11235_v33 }
0x6139   :  { %9010 = vst.msk [vmem:[#allocation3 + $0x8] sm:$0xff] %vm1074_vm6, %v9000_v37  ;;  %11117 = vmatpush3.bf16.msra.mxu1 %v11233_v2 }
0x613a   :  { %11130 = vmatprep.subr.bf16.mxu1 %v11236_v3 }
0x613c   :  { %v9004_v6 = vpop.permute.xlu1 %9003 }
0x613d   :  { %9012 = vst.msk [vmem:[#allocation3 + $0x18] sm:$0xff] %vm1074_vm6, %v9004_v6 }
0x6203   :  { %v9248_v60 = vpop.f32.mrb[240].mxu0 }
0x6204   :  { %v11112_v7 = vpop.f32.mrb[241].mxu0 }
0x6205   :  { %v9251_v39 = vpop.f32.mrb[242].mxu0 }
0x6206   :  { %v11113_v32 = vpop.f32.mrb[243].mxu0 }
0x6207   :  { %v9201_v24 = vpop.f32.mrb[240].mxu1 }
0x6208   :  { %9259 = vrot.lane.b32.xlu0 %v9201_v24, %s11871_s23  ;;  %v11106_v18 = vpop.f32.mrb[241].mxu1 }
0x6209   :  { %v9204_v25 = vpop.f32.mrb[242].mxu1 }
0x620a   :  { %9261 = vrot.lane.b32.xlu1 %v9204_v25, %s11871_s23  ;;  %v11107_v13 = vpop.f32.mrb[243].mxu1 }
0x620c   :  { %9263 = vrot.lane.b32.xlu0 %v9248_v60, %s11871_s23 }
0x620e   :  { %9265 = vrot.lane.b32.xlu1 %v9251_v39, %s11871_s23 }
0x627a   :  { %v9260_v26 = vpop.permute.xlu0 %9259 }
0x627b   :  { %9271 = vst.msk [vmem:[#allocation3] sm:$0xff] %vm1337_vm7, %v9260_v26  ;;  %v9976_v26 = vld [vmem:[#allocation10 + $0xe] ss:$0 sm:$0xff] }
0x627c   :  { %v9262_v43 = vpop.permute.xlu1 %9261 }
0x627d   :  { %9272 = vst.msk [vmem:[#allocation3 + $0x8] sm:$0xff] %vm1337_vm7, %v9262_v43 }
0x627e   :  { %v9264_v27 = vpop.permute.xlu0 %9263 }
0x627f   :  { %9273 = vst.msk [vmem:[#allocation3 + $0x10] sm:$0xff] %vm1337_vm7, %v9264_v27 }
0x6280   :  { %v9266_v22 = vpop.permute.xlu1 %9265 }
0x6281   :  { %9274 = vst.msk [vmem:[#allocation3 + $0x18] sm:$0xff] %vm1337_vm7, %v9266_v22 }
0x6282   :  { %v9275_v4 = vld [vmem:[#allocation3] sm:$0xff] }
0x6284   :  { %v9276_v20 = vld [vmem:[#allocation3 + $0x8] sm:$0xff] }
0x6285   :  { %v9283_v23 = vpack.c.bf16 %v9276_v20, %v9275_v4 }
0x6286   :  { %v9277_v12 = vld [vmem:[#allocation3 + $0x10] sm:$0xff] }
0x6287   :  { %11118 = vmatprep.mubr.msk.bf16.mxu1 %vm158_vm2, %v9283_v23  ;;  %v9977_v23 = vld [vmem:[#allocation10 + $0xf] ss:$0 sm:$0xff] }
0x6288   :  { %v9278_v36 = vld [vmem:[#allocation3 + $0x18] sm:$0xff] }
0x6289   :  { %v9284_v29 = vpack.c.bf16 %v9278_v36, %v9277_v12 }
0x628b   :  { %11119 = vmatmul.mubr.msk.bf16.vlgmr.msra.gmra.mrb[244].mxu1 %vm158_vm2, %v9284_v29 }
0x628c   :  { %11131 = vmatpush3.bf16.msra.mxu1 %v11236_v3 }
0x628d   :  { %11132 = vmatprep.subr.bf16.mxu1 %v11237_v35 }
0x6290   :  { %11133 = vmatpush3.bf16.msra.mxu1 %v11237_v35 }
0x635e   :  { %v11120_v40 = vpop.f32.mrb[244].mxu1 }
0x635f   :  { %v9337_v15 = vpop.f32.mrb[245].mxu1  ;;  %v9354_v11 = vadd.f32 %v11120_v40, %v13310_v41 }
0x6360   :  { %v9352_v19 = vadd.f32 %v9337_v15, %v13306_v42  ;;  %v11121_v28 = vpop.f32.mrb[246].mxu1 }
0x6361   :  { %v9340_v51 = vpop.f32.mrb[247].mxu1  ;;  %v13532_v49 = vadd.f32 %v9975_v31, %v9354_v11  ;;  %v9355_v45 = vadd.f32 %v11121_v28, %v13316_v48 }
0x6362   :  { %v13529_v46 = vadd.f32 %v9975_v31, %v9352_v19  ;;  %v9353_v34 = vadd.f32 %v9340_v51, %v13312_v47 }
0x6363   :  { %v13541_v42 = vadd.f32 %v9975_v31, %v9355_v45  ;;  %v9373_v59 = vsel %vm158_vm2, %v13532_v49, 0.0 }
0x6364   :  { %v13535_v44 = vadd.f32 %v9975_v31, %v9353_v34  ;;  %v9367_v10 = vsel %vm158_vm2, %v13529_v46, 0.0 }
0x6365   :  { %9368 = vadd.xlane.f32.xlu0 %v9367_v10  ;;  %v9376_v47 = vsel %vm158_vm2, %v13541_v42, 0.0  ;;  %v11238_v10 = vld [vmem:[#allocation9 + $0x98] sm:$0xff]  }
0x6366   :  { %v9370_v41 = vsel %vm158_vm2, %v13535_v44, 0.0  ;;  %11134 = vmatprep.subr.bf16.mxu1 %v11238_v10 }
0x6367   :  { %9371 = vadd.xlane.f32.xlu1 %v9370_v41  ;;  %11135 = vmatpush3.bf16.msra.mxu1 %v11238_v10  ;;  %v11239_v41 = vld [vmem:[#allocation9 + $0xa0] sm:$0xff]  }
0x6368   :  { %11136 = vmatprep.subr.bf16.mxu1 %v11239_v41 }
0x6369   :  { %9374 = vadd.xlane.f32.xlu0 %v9373_v59  ;;  %v9978_v59 = vld [vmem:[#allocation10 + $0xa] ss:$0 sm:$0xff] }
0x636b   :  { %11137 = vmatpush3.bf16.msra.mxu1 %v11239_v41 }
0x636d   :  { %9377 = vadd.xlane.f32.xlu0 %v9376_v47 }
0x63f2   :  { %v9369_v48 = vpop.xlane.xlu0 %9368 }
0x63f3   :  { %v9379_v63 = vmul.f32 0.03125, %v9369_v48 }
0x63f4   :  { %v9372_v0 = vpop.xlane.xlu1 %9371 }
0x63f5   :  { %v9383_v16 = vsub.f32 %v13529_v46, %v9379_v63  ;;  %v9380_v8 = vmul.f32 0.03125, %v9372_v0 }
0x63f6   :  { %v9375_v61 = vpop.xlane.xlu0 %9374 }
0x63f7   :  { %v9384_v14 = vsub.f32 %v13535_v44, %v9380_v8  ;;  %v9381_v50 = vmul.f32 0.03125, %v9375_v61  ;;  %v9387_v38 = vmul.f32 %v9383_v16, %v9383_v16 }
0x63f9   :  { %v9385_v52 = vsub.f32 %v13532_v49, %v9381_v50  ;;  %v9391_v57 = vsel %vm158_vm2, %v9387_v38, 0.0  ;;  %v9388_v53 = vmul.f32 %v9384_v14, %v9384_v14 }
0x63fa   :  { %9392 = vadd.xlane.f32.xlu0 %v9391_v57  ;;  %v9378_v62 = vpop.xlane.xlu0 %9377 }
0x63fb   :  { %v9382_v54 = vmul.f32 0.03125, %v9378_v62  ;;  %v9394_v55 = vsel %vm158_vm2, %v9388_v53, 0.0  ;;  %v9389_v1 = vmul.f32 %v9385_v52, %v9385_v52 }
0x63fc   :  { %9395 = vadd.xlane.f32.xlu1 %v9394_v55  ;;  %v11241_v55 = vld [vmem:[#allocation9 + $0xb0] sm:$0xff]  }
0x63fd   :  { %v9386_v17 = vsub.f32 %v13541_v42, %v9382_v54  ;;  %v9397_v56 = vsel %vm158_vm2, %v9389_v1, 0.0  ;;  %v11240_v54 = vld [vmem:[#allocation9 + $0xa8] sm:$0xff]  }
0x63fe   :  { %9398 = vadd.xlane.f32.xlu0 %v9397_v56  ;;  %11142 = vmatprep.subr.bf16.mxu0 %v11240_v54 }
0x63ff   :  { %v9390_v21 = vmul.f32 %v9386_v17, %v9386_v17 }
0x6401   :  { %v9400_v58 = vsel %vm158_vm2, %v9390_v21, 0.0  ;;  %v9989_v21 = vld [vmem:[#allocation10 + $0xb] ss:$0 sm:$0xff] }
0x6402   :  { %9401 = vadd.xlane.f32.xlu1 %v9400_v58 }
0x6487   :  { %v9393_v5 = vpop.xlane.xlu0 %9392 }
0x6488   :  { %v9403_v37 = vmul.f32 0.03125, %v9393_v5 }
0x6489   :  { %v9396_v6 = vpop.xlane.xlu1 %9395 }
0x648a   :  { %v9407_v9 = vadd.f32 1e-05, %v9403_v37  ;;  %v9404_v2 = vmul.f32 0.03125, %v9396_v6 }
0x648b   :  { %v9399_v60 = vpop.xlane.xlu0 %9398 }
0x648c   :  { %11714 = vrsqrt.f32 %v9407_v9  ;;  %v9408_v7 = vadd.f32 1e-05, %v9404_v2  ;;  %v9405_v39 = vmul.f32 0.03125, %v9399_v60 }
0x648e   :  { %11716 = vrsqrt.f32 %v9408_v7  ;;  %v9409_v32 = vadd.f32 1e-05, %v9405_v39  ;;  %v9990_v7 = vld [vmem:[#allocation10 + $0x10] ss:$0 sm:$0xff] }
0x648f   :  { %v9402_v24 = vpop.xlane.xlu1 %9401 }
0x6490   :  { %11718 = vrsqrt.f32 %v9409_v32  ;;  %v9406_v18 = vmul.f32 0.03125, %v9402_v24 }
0x6492   :  { %v9410_v25 = vadd.f32 1e-05, %v9406_v18 }
0x6494   :  { %11720 = vrsqrt.f32 %v9410_v25  ;;  %v11731_v25 = vld [vmem:[#allocation2 + $0x8] sm:$0xff] }
0x6496   :  { %v11715_v13 = vpop.eup %11714 }
0x6497   :  { %v9415_v43 = vmul.f32 %v11715_v13, %v9383_v16 }
0x6498   :  { %v11717_v27 = vpop.eup %11716 }
0x6499   :  { %v9416_v22 = vmul.f32 %v11717_v27, %v9384_v14  ;;  %v9423_v4 = vmul.f32 %v9976_v26, %v9415_v43 }
0x649a   :  { %v11719_v20 = vpop.eup %11718 }
0x649b   :  { %v9417_v12 = vmul.f32 %v11719_v20, %v9385_v52  ;;  %v9424_v36 = vmul.f32 %v9976_v26, %v9416_v22  ;;  %v9431_v29 = vadd.f32 %v9977_v23, %v9423_v4 }
0x649d   :  { %v9432_v40 = vadd.f32 %v9977_v23, %v9424_v36  ;;  %v9425_v15 = vmul.f32 %v9976_v26, %v9417_v12 }
0x649e   :  { %v11721_v31 = vpop.eup %11720 }
0x649f   :  { %v9418_v11 = vmul.f32 %v11721_v31, %v9386_v17  ;;  %v9439_v19 = vpack.c.bf16 %v9432_v40, %v9431_v29  ;;  %v9433_v51 = vadd.f32 %v9977_v23, %v9425_v15 }
0x64a1   :  { %v9426_v28 = vmul.f32 %v9976_v26, %v9418_v11  ;;  %11126 = vmatprep.mubr.msk.bf16.mxu0 %vm158_vm2, %v9439_v19 }
0x64a3   :  { %v9434_v34 = vadd.f32 %v9977_v23, %v9426_v28 }
0x64a5   :  { %v9440_v45 = vpack.c.bf16 %v9434_v34, %v9433_v51 }
0x64a7   :  { %11127 = vmatmul.mubr.msk.bf16.vlgmr.msra.gmra.mrb[244].mxu0 %vm158_vm2, %v9440_v45 }
0x64a8   :  { %11143 = vmatpush3.bf16.msra.mxu0 %v11240_v54 }
0x64a9   :  { %11144 = vmatprep.subr.bf16.mxu0 %v11241_v55 }
0x64ac   :  { %11145 = vmatpush3.bf16.msra.mxu0 %v11241_v55 }
0x657a   :  { %v11128_v47 = vpop.f32.mrb[244].mxu0 }
0x657b   :  { %v9507_v48 = vadd.f32 %v11128_v47, %v9978_v59  ;;  %v9498_v63 = vpop.f32.mrb[245].mxu0 }
0x657c   :  { %v9499_v0 = vadd.f32 %v9978_v59, %v9498_v63  ;;  %v11129_v16 = vpop.f32.mrb[246].mxu0 }
0x657d   :  { %v9510_v8 = vadd.f32 %v11129_v16, %v9978_v59  ;;  %v9501_v61 = vpop.f32.mrb[247].mxu0  ;;  %v9515_v50 = vmax.f32 %v9507_v48, 0.0 }
0x657e   :  { %v9502_v14 = vadd.f32 %v9978_v59, %v9501_v61  ;;  %v9513_v52 = vmax.f32 %v9499_v0, 0.0 }
0x657f   :  { %v9516_v38 = vmax.f32 %v9510_v8, 0.0 }
0x6580   :  { %v9514_v57 = vmax.f32 %v9502_v14, 0.0 }
0x6581   :  { %v9526_v53 = vpack.c.bf16 %v9516_v38, %v9515_v50 }
0x6582   :  { %v9525_v62 = vpack.c.bf16 %v9514_v57, %v9513_v52 }
0x6584   :  { %11138 = vmatprep.mubr.msk.bf16.mxu1 %vm1618_vm8, %v9525_v62 }
0x6585   :  { %11139 = vmatmul.mubr.msk.bf16.vlgmr.msra.gmra.mrb[248].mxu1 %vm1618_vm8, %v9526_v53 }
0x6658   :  { %v11140_v1 = vpop.f32.mrb[248].mxu1 }
0x6659   :  { %v9608_v17 = vadd.f32 %v11140_v1, %v13532_v49  ;;  %v9591_v56 = vpop.f32.mrb[249].mxu1 }
0x665a   :  { %v9606_v58 = vadd.f32 %v9591_v56, %v13529_v46  ;;  %v11141_v30 = vpop.f32.mrb[250].mxu1 }
0x665b   :  { %v9609_v33 = vadd.f32 %v11141_v30, %v13541_v42  ;;  %v9594_v3 = vpop.f32.mrb[251].mxu1  ;;  %v9617_v5 = vadd.f32 %v9989_v21, %v9608_v17 }
0x665c   :  { %v9607_v35 = vadd.f32 %v9594_v3, %v13535_v44  ;;  %v9615_v6 = vadd.f32 %v9989_v21, %v9606_v58  ;;  %v11730_v44 = vld [vmem:[#allocation2 + $0x18] sm:$0xff] }
0x665d   :  { %v9618_v37 = vadd.f32 %v9989_v21, %v9609_v33 }
0x665e   :  { %v9616_v9 = vadd.f32 %v9989_v21, %v9607_v35 }
0x665f   :  { %v9624_v2 = vpack.c.bf16 %v9618_v37, %v9617_v5 }
0x6660   :  { %v9623_v60 = vpack.c.bf16 %v9616_v9, %v9615_v6 }
0x6662   :  { %11146 = vmatprep.mubr.msk.bf16.mxu0 %vm158_vm2, %v9623_v60 }
0x6663   :  { %11147 = vmatmul.mubr.msk.bf16.vlgmr.msra.gmra.mrb[248].mxu0 %vm158_vm2, %v9624_v2 }
0x6736   :  { %v11148_v49 = vpop.f32.mrb[248].mxu0 }
0x6737   :  { %v9682_v39 = vpop.f32.mrb[249].mxu0 }
0x6738   :  { %v11149_v46 = vpop.f32.mrb[250].mxu0 }
0x6739   :  { %v9692_v32 = vadd.f32 %v11149_v46, %v9990_v7  ;;  %v9684_v24 = vpop.f32.mrb[251].mxu0 }
0x673a   :  { %v9685_v42 = vadd.f32 %v9990_v7, %v9684_v24 }
0x673b   :  { %v9696_v18 = vadd.f32 %v11730_v44, %v9692_v32 }
0x673c   :  { %v9695_v13 = vadd.f32 %v11731_v25, %v9685_v42 }
0x673d   :  { %9699 = vst.msk [vmem:[#allocation12 + $0x10] sm:$0xf0] %vm3289_vm1, %v9696_v18 }
0x673e   :  { %9698 = vst.msk [vmem:[#allocation12 + $0x4] sm:$0xf0] %vm3289_vm1, %v9695_v13 }
0x673f   :  { %11831 = shalt.err (!%p11828_p8)
}
0x6740   :  { %s11832_s30 = scalar_lea.hbm %s13586_s4, 384 }
0x6741   :  { %p11833_p9 = scmp.ne.s32.totalorder %s13586_s4, %s11832_s30  ;;  %p11836_p10 = scmp.lt.u32.totalorder %s11832_s30, %s13586_s4 }
0x6743   :  { %p11838_p11 = pnand %p11836_p10, %p11833_p9 }
0x6745   :  { %11841 = shalt.err (!%p11838_p11)
}
0x6746   :  { %9711 = dma.vmem_to_hbm [thread:$0]  %s9706_s24, 384, %s13586_s4, [#allocation6], %s11855_s0, %s11855_s0, %s11856_s18  }
0x6747   :  { %11848 = dma.done.wait [#allocation6], 384  }
0x6748   :  { %11849 = vsyncadd [#allocation6], 4294966912 }
0x6749   :  { %9715 = vsyncpa [#allocation5], 1 }
0x674a   :  { %9716 = vsyncpa [#allocation8], 1 }
0x674b   :  { %9717 = vsyncpa [#allocation11], 1 }
0x674c   :  { %9718 = vsyncpa [#allocation6], 1 }

</bundles_post_ra>
